<compile_context>
chip_gen: v7x
topology: tpu7x:2x2x1
jax: 0.10.0
libtpu: 0.0.40
codegen_flags: <defaults>
</compile_context>

<pallas_src>
import numpy as np
import jax
import jax.numpy as jnp
from jax.experimental import pallas as pl
from jax.experimental.pallas import tpu as pltpu

# ---------------- config (matches MelSpectrogramConfig defaults) -------------
SR = 22050
WIN_LENGTH = 1024
HOP_LENGTH = 256
N_FFT = 1024
F_MIN = 0.0
F_MAX = 8000.0
N_MELS = 80
POWER = 1.0
CLAMP_MIN = 1e-5

N_FREQS = N_FFT // 2 + 1          # 513 (onesided)
N_MELS_PAD = 128                  # lane-dense output (extra columns are zero, sliced off)
TF = 256                          # frame tile (MXU-shaped M; multiple of 128 for v5e)
WIN_ROWS = TF + 16                # hop-block rows loaded per tile (need TF+3; +16 keeps
                                  # the load a multiple of the bf16 sublane tile)

assert N_FFT == 4 * HOP_LENGTH and WIN_LENGTH == N_FFT   # in-kernel framing assumes win/hop == 4


# ------------------------- librosa slaney mel filterbank ---------------------
def _hz_to_mel_slaney(f):
    f = np.asarray(f, dtype=np.float64)
    f_sp = 200.0 / 3
    mels = f / f_sp
    min_log_hz = 1000.0
    min_log_mel = min_log_hz / f_sp
    logstep = np.log(6.4) / 27.0
    return np.where(f >= min_log_hz,
                    min_log_mel + np.log(np.maximum(f, 1e-10) / min_log_hz) / logstep,
                    mels)


def _mel_to_hz_slaney(m):
    m = np.asarray(m, dtype=np.float64)
    f_sp = 200.0 / 3
    freqs = f_sp * m
    min_log_hz = 1000.0
    min_log_mel = min_log_hz / f_sp
    logstep = np.log(6.4) / 27.0
    return np.where(m >= min_log_mel,
                    min_log_hz * np.exp(logstep * (m - min_log_mel)),
                    freqs)


def _librosa_mel_fb(sr, n_fft, n_mels, fmin, fmax):
    """Equivalent to librosa.filters.mel(..., htk=False, norm='slaney')."""
    n_freqs = n_fft // 2 + 1
    fftfreqs = np.linspace(0.0, sr / 2.0, n_freqs)
    mels = np.linspace(_hz_to_mel_slaney(fmin), _hz_to_mel_slaney(fmax), n_mels + 2)
    mel_f = _mel_to_hz_slaney(mels)
    fdiff = np.diff(mel_f)
    ramps = mel_f[:, None] - fftfreqs[None, :]
    weights = np.zeros((n_mels, n_freqs), dtype=np.float64)
    for i in range(n_mels):
        lower = -ramps[i] / fdiff[i]
        upper = ramps[i + 2] / fdiff[i + 1]
        weights[i] = np.maximum(0.0, np.minimum(lower, upper))
    enorm = 2.0 / (mel_f[2:n_mels + 2] - mel_f[:n_mels])
    weights *= enorm[:, None]
    return weights.astype(np.float32)          # [n_mels, n_freqs]


# -------------------- constants built ONCE at import (hoisted) ----------------
def _build_constants():
    fb = _librosa_mel_fb(SR, N_FFT, N_MELS, F_MIN, F_MAX)        # [n_mels, n_freqs]

    # Trim frequency bins whose mel weights are all zero (exact: they never reach
    # the output). Re-derived from the filterbank so a config change stays correct.
    nz = np.nonzero(fb.max(axis=0) > 0)[0]
    n_keep = int(nz[-1]) + 1 if nz.size else N_FREQS
    k_bins = ((n_keep + 127) // 128) * 128                       # 384 for default config
    k_real = min(k_bins, N_FREQS)

    # Fused DFT matrix [n_fft, 2*k_bins]: hann window folded in,
    # columns [:k_bins] = cos part, [k_bins:] = sin part.
    # NOTE: the true DFT imaginary part is -sin; the sign is irrelevant here because
    # only the magnitude is consumed downstream.
    n = np.arange(N_FFT, dtype=np.float64)
    k = np.arange(k_real, dtype=np.float64)
    window = 0.5 - 0.5 * np.cos(2.0 * np.pi * n / N_FFT)         # periodic hann (torch default)
    ang = 2.0 * np.pi * np.outer(n, k) / N_FFT
    dft = np.zeros((N_FFT, 2 * k_bins), np.float32)
    dft[:, :k_real] = (window[:, None] * np.cos(ang)).astype(np.float32)
    dft[:, k_bins:k_bins + k_real] = (window[:, None] * np.sin(ang)).astype(np.float32)

    fb_p = np.zeros((k_bins, N_MELS_PAD), np.float32)
    fb_p[:k_real, :N_MELS] = fb[:, :k_real].T
    return dft, fb_p, k_bins


_DFT_NP, _FB_NP, K_BINS = _build_constants()


# ------------------------------- Pallas kernel --------------------------------
def mel_kernel(hops_ref, dft_ref, fb_ref, out_ref):
    # hops_ref: (1, n_hops, HOP) bf16   full (padded) audio row of this batch element
    # dft_ref : (N_FFT, 2*K_BINS) bf16  fused windowed cos|sin DFT matrix
    # fb_ref  : (K_BINS, N_MELS_PAD) f32
    # out_ref : (1, TF, N_MELS_PAD) f32
    j = pl.program_id(1)
    start = pl.multiple_of(j * TF, TF)

    # Window of hop blocks covering this tile's frames (frame f uses rows f..f+3).
    w = hops_ref[0, pl.ds(start, WIN_ROWS), :]                   # (TF+16, HOP) bf16

    # win == n_fft == 4*hop -> frame matrix is 4 shifted slabs side by side.
    frames = jnp.concatenate(
        [w[0:TF, :], w[1:TF + 1, :], w[2:TF + 2, :], w[3:TF + 3, :]],
        axis=-1)                                                 # (TF, N_FFT) bf16

    ri = jnp.dot(frames, dft_ref[...],
                 preferred_element_type=jnp.float32)             # (TF, 2*K_BINS) f32
    re = ri[:, :K_BINS]
    im = ri[:, K_BINS:]
    mag = jnp.sqrt(re * re + im * im)                            # power = 1.0 (magnitude)

    mel = jnp.dot(mag, fb_ref[...],
                  preferred_element_type=jnp.float32)            # (TF, N_MELS_PAD)
    out_ref[0, :, :] = jnp.log(jnp.maximum(mel, CLAMP_MIN))


# ------------------------------- forward wrapper -------------------------------
def _mel_spectrogram_impl(audio):
    """audio: [B, T] float32 -> [B, n_mels, T'] float32 (T' = 1 + T // hop)."""
    B, T = audio.shape
    pad = N_FFT // 2
    n_frames = 1 + T // HOP_LENGTH
    n_tiles = (n_frames + TF - 1) // TF
    n_hops = n_tiles * TF + 16        # slack rows so the last tile's WIN_ROWS read is in-bounds

    padded = jnp.pad(audio, ((0, 0), (pad, pad)), mode="reflect")     # center=True, reflect
    total = n_hops * HOP_LENGTH
    padded = jnp.pad(padded, ((0, 0), (0, total - padded.shape[1])))  # zero tail (sliced off)
    hops = padded.reshape(B, n_hops, HOP_LENGTH).astype(jnp.bfloat16)

    dft = jnp.asarray(_DFT_NP, dtype=jnp.bfloat16)   # [N_FFT, 2*K_BINS]
    fb = jnp.asarray(_FB_NP)                         # [K_BINS, N_MELS_PAD] f32

    # TODO(synk): for extremely long audio rows (> ~10 MiB of samples) the per-batch
    # hop-block window should itself be tiled instead of resident in VMEM.
    out = pl.pallas_call(
        mel_kernel,
        out_shape=jax.ShapeDtypeStruct((B, n_tiles * TF, N_MELS_PAD), jnp.float32),
        grid_spec=pltpu.PrefetchScalarGridSpec(
            num_scalar_prefetch=0,
            grid=(B, n_tiles),
            in_specs=[
                # full padded audio row of the current batch (re-DMA'd only when b changes)
                pl.BlockSpec((1, n_hops, HOP_LENGTH), lambda b, j: (b, 0, 0)),
                # grid-invariant constants
                pl.BlockSpec((N_FFT, 2 * K_BINS), lambda b, j: (0, 0)),
                pl.BlockSpec((K_BINS, N_MELS_PAD), lambda b, j: (0, 0)),
            ],
            out_specs=pl.BlockSpec((1, TF, N_MELS_PAD), lambda b, j: (b, j, 0)),
        ),
        compiler_params=pltpu.CompilerParams(
            dimension_semantics=("parallel", "parallel"),
            vmem_limit_bytes=32 << 20,
        ),
    )(hops, dft, fb)

    mel = out[:, :n_frames, :N_MELS]                 # drop padded frames / padded mel lanes
    return jnp.transpose(mel, (0, 2, 1))             # [B, n_mels, T']


mel_spectrogram = jax.jit(_mel_spectrogram_impl)


# --------------------------------------- main ----------------------------------
if __name__ == "__main__":
    key = jax.random.PRNGKey(0)
    B, T = 2, 4096                                   # small audio clip
    audio = jax.random.normal(key, (B, T), dtype=jnp.float32)

    mel = mel_spectrogram(audio)
    jax.block_until_ready(mel)

    expected_frames = 1 + T // HOP_LENGTH
    assert mel.shape == (B, N_MELS, expected_frames), mel.shape
    assert mel.dtype == jnp.float32
    assert bool(jnp.all(jnp.isfinite(mel)))
    print("KERNEL_OK")
</pallas_src>

<mosaic_0001>
module attributes {stable_mosaic.version = 11 : i64} {
  func.func @mel_kernel(%arg0: i32, %arg1: i32, %arg2: memref<1x272x256xbf16, #tpu.memory_space<vmem>>, %arg3: memref<1024x768xbf16, #tpu.memory_space<vmem>>, %arg4: memref<384x128xf32, #tpu.memory_space<vmem>>, %arg5: memref<1x256x128xf32, #tpu.memory_space<vmem>>) attributes {dimension_semantics = [#tpu.dimension_semantics<parallel>, #tpu.dimension_semantics<parallel>], iteration_bounds = array<i64: 2, 1>, scalar_prefetch = 0 : i64, scratch_operands = 0 : i64, tpu.core_type = #tpu.core_type<tc>, window_params = [{transform_indices = @transform_0, window_bounds = array<i64: 1, 272, 256>}, {pipeline_mode = #tpu.pipeline_mode<synchronous>, transform_indices = @transform_1, window_bounds = array<i64: 1024, 768>}, {pipeline_mode = #tpu.pipeline_mode<synchronous>, transform_indices = @transform_2, window_bounds = array<i64: 384, 128>}, {transform_indices = @transform_3, window_bounds = array<i64: 1, 256, 128>}]} {
    %c256_i32 = arith.constant 256 : i32
    %0 = arith.muli %arg1, %c256_i32 : i32
    %1 = tpu.assume_multiple %0, 256 : i32
    %c0 = arith.constant 0 : index
    %2 = arith.index_cast %1 : i32 to index
    %c0_0 = arith.constant 0 : index
    %3 = vector.load %arg2[%c0, %2, %c0_0] : memref<1x272x256xbf16, #tpu.memory_space<vmem>>, vector<1x272x256xbf16>
    %4 = vector.shape_cast %3 : vector<1x272x256xbf16> to vector<272x256xbf16>
    %5 = vector.extract_strided_slice %4 {offsets = [0, 0], sizes = [256, 256], strides = [1, 1]} : vector<272x256xbf16> to vector<256x256xbf16>
    %6 = vector.extract_strided_slice %4 {offsets = [1, 0], sizes = [256, 256], strides = [1, 1]} : vector<272x256xbf16> to vector<256x256xbf16>
    %7 = vector.extract_strided_slice %4 {offsets = [2, 0], sizes = [256, 256], strides = [1, 1]} : vector<272x256xbf16> to vector<256x256xbf16>
    %8 = vector.extract_strided_slice %4 {offsets = [3, 0], sizes = [256, 256], strides = [1, 1]} : vector<272x256xbf16> to vector<256x256xbf16>
    %9 = tpu.concatenate %5, %6, %7, %8 in 1 : vector<256x256xbf16>, vector<256x256xbf16>, vector<256x256xbf16>, vector<256x256xbf16> -> vector<256x1024xbf16>
    %c0_1 = arith.constant 0 : index
    %c0_2 = arith.constant 0 : index
    %10 = vector.load %arg3[%c0_1, %c0_2] : memref<1024x768xbf16, #tpu.memory_space<vmem>>, vector<1024x768xbf16>
    %cst = arith.constant dense<0.000000e+00> : vector<256x768xf32>
    %11 = tpu.matmul %9, %10, %cst {dimension_numbers = #tpu.dot_dimension_numbers<[1], [0], [0], [1], [0, 0, 1, 1], [], []>} : vector<256x1024xbf16>, vector<1024x768xbf16>, vector<256x768xf32> -> vector<256x768xf32>
    %12 = vector.extract_strided_slice %11 {offsets = [0, 0], sizes = [256, 384], strides = [1, 1]} : vector<256x768xf32> to vector<256x384xf32>
    %13 = vector.extract_strided_slice %11 {offsets = [0, 384], sizes = [256, 384], strides = [1, 1]} : vector<256x768xf32> to vector<256x384xf32>
    %14 = arith.mulf %12, %12 : vector<256x384xf32>
    %15 = arith.mulf %13, %13 : vector<256x384xf32>
    %16 = arith.addf %14, %15 : vector<256x384xf32>
    %17 = math.sqrt %16 : vector<256x384xf32>
    %c0_3 = arith.constant 0 : index
    %c0_4 = arith.constant 0 : index
    %18 = vector.load %arg4[%c0_3, %c0_4] : memref<384x128xf32, #tpu.memory_space<vmem>>, vector<384x128xf32>
    %cst_5 = arith.constant dense<0.000000e+00> : vector<256x128xf32>
    %19 = tpu.matmul %17, %18, %cst_5 {dimension_numbers = #tpu.dot_dimension_numbers<[1], [0], [0], [1], [0, 0, 1, 1], [], []>} : vector<256x384xf32>, vector<384x128xf32>, vector<256x128xf32> -> vector<256x128xf32>
    %cst_6 = arith.constant 9.99999974E-6 : f32
    %20 = vector.broadcast %cst_6 : f32 to vector<256x128xf32>
    %21 = arith.maximumf %19, %20 : vector<256x128xf32>
    %22 = math.log %21 : vector<256x128xf32>
    %c0_7 = arith.constant 0 : index
    %c0_8 = arith.constant 0 : index
    %c0_9 = arith.constant 0 : index
    %23 = vector.load %arg5[%c0_7, %c0_8, %c0_9] : memref<1x256x128xf32, #tpu.memory_space<vmem>>, vector<1x256x128xf32>
    %24 = vector.shape_cast %23 : vector<1x256x128xf32> to vector<256x128xf32>
    %25 = vector.shape_cast %22 : vector<256x128xf32> to vector<1x256x128xf32>
    tpu.vector_store %arg5[%c0_7, %c0_8, %c0_9], %25 {strides = array<i32>} : memref<1x256x128xf32, #tpu.memory_space<vmem>>, vector<1x256x128xf32>,
    return
  }
  func.func @transform_0(%arg0: i32, %arg1: i32) -> (i32, i32, i32) {
    %c0_i32 = arith.constant 0 : i32
    %c0_i32_0 = arith.constant 0 : i32
    %c0_i32_1 = arith.constant 0 : i32
    return %arg0, %c0_i32, %c0_i32_0 : i32, i32, i32
  }
  func.func @transform_1(%arg0: i32, %arg1: i32) -> (i32, i32) {
    %c0_i32 = arith.constant 0 : i32
    %c0_i32_0 = arith.constant 0 : i32
    %c0_i32_1 = arith.constant 0 : i32
    return %c0_i32, %c0_i32_0 : i32, i32
  }
  func.func @transform_2(%arg0: i32, %arg1: i32) -> (i32, i32) {
    %c0_i32 = arith.constant 0 : i32
    %c0_i32_0 = arith.constant 0 : i32
    %c0_i32_1 = arith.constant 0 : i32
    return %c0_i32, %c0_i32_0 : i32, i32
  }
  func.func @transform_3(%arg0: i32, %arg1: i32) -> (i32, i32, i32) {
    %c0_i32 = arith.constant 0 : i32
    %c0_i32_0 = arith.constant 0 : i32
    return %arg0, %arg1, %c0_i32 : i32, i32, i32
  }
}

</mosaic_0001>

<bundles_post_ra>
// kernel: _mel_spectrogram_impl.1
= control target key start
LH: loop header
LB: loop body
LE: loop exit
PB: predicated region body
PF: predicated region fallthrough
CT: control target
= control target key end

     0   :  { %s9479_s12 = smov 0   ;;  %s9481_s13 = smov 0   ;;  %s13799_s0 = inlined_call_operand.vmem [shape: bf16[2,272,256], index: 0, kind: input, shape index: {}]   ;;  %s13800_s1 = inlined_call_operand.vmem [shape: bf16[1024,768], index: 1, kind: input, shape index: {}]   ;;  %s13801_s2 = inlined_call_operand.vmem [shape: f32[384,128], index: 2, kind: input, shape index: {}]   ;;  %s13802_s3 = inlined_call_operand.vmem [shape: f32[2,256,128], index: 3, kind: output, shape index: {}]  }
   0x1   :  { %s9483_s14 = smov 0  }
   0x2 LB: > { %s25_s15 = sadd.s32 1, %s9452_s13  ;;  %p7258_p0 = scmp.ge.s32.totalorder %s9456_s14, 1  ;;  %s9456_s14 = sphi %s9483_s14, %s13_s14   ;;  %s9452_s13 = sphi %s9481_s13, %s14575_s13   ;;  %s9448_s12 = sphi %s9479_s12, %s14574_s12  }
   0x3   : > { %p27_p1 = scmp.ge.s32.totalorder %s25_s15, 2  ;;  %p151_p2 = scmp.lt.s32.totalorder %s9456_s14, 3 }
   0x5   : > { %s14577_s15 = smov (%p27_p1, %s25_s15), 0  ;;  %p152_p3 = pnand %p7258_p0, %p151_p2 }
   0x7   : > { %155 = sbr.rel (%p152_p3) target bundleno = 1505 (0x5e1), region = 32 }
   0xe   : > { %v8493_v0 = vld [vmem:[%s13800_s1 + $0x4] ss:$24 sps:$4 sm:$0xff]   ;;  %v8497_v2 = vld [vmem:[%s13800_s1] ss:$24 sps:$4 sm:$0xff]   ;;  %v8499_v4 = vld [vmem:[%s13800_s1 + $0x34] ss:$24 sps:$4 sm:$0xff]  }
   0xf   : > { %v8495_v1 = vld [vmem:[%s13800_s1 + $0x304] ss:$24 sps:$4 sm:$0xff]   ;;  %3269 = vmatprep.subr.bf16.mxu1 %v8493_v0  ;;  %v8498_v3 = vld [vmem:[%s13800_s1 + $0x300] ss:$24 sps:$4 sm:$0xff]   ;;  %v8501_v5 = vld [vmem:[%s13800_s1 + $0x334] ss:$24 sps:$4 sm:$0xff]  }
  0x10   : > { %3462 = vmatprep.subr.bf16.mxu0 %v8495_v1  ;;  %3270 = vmatpush1.bf16.msra.mxu1 %v8497_v2  ;;  %v8503_v6 = vld [vmem:[%s13800_s1 + $0x30] ss:$24 sps:$4 sm:$0xff]   ;;  %v8505_v8 = vld [vmem:[%s13800_s1 + $0x64] ss:$24 sps:$4 sm:$0xff]   ;;  %v8509_v10 = vld [vmem:[%s13800_s1 + $0x60] ss:$24 sps:$4 sm:$0xff]  }
  0x11   : > { %3463 = vmatpush1.bf16.msra.mxu0 %v8498_v3  ;;  %3271 = vmatprep.subr.bf16.mxu1 %v8499_v4  ;;  %v8504_v7 = vld [vmem:[%s13800_s1 + $0x330] ss:$24 sps:$4 sm:$0xff]   ;;  %v8507_v9 = vld [vmem:[%s13800_s1 + $0x364] ss:$24 sps:$4 sm:$0xff]   ;;  %v8510_v11 = vld [vmem:[%s13800_s1 + $0x360] ss:$24 sps:$4 sm:$0xff]  }
  0x12   : > { %3464 = vmatprep.subr.bf16.mxu0 %v8501_v5  ;;  %v8511_v12 = vld [vmem:[%s13800_s1 + $0x94] ss:$24 sps:$4 sm:$0xff]   ;;  %v8515_v14 = vld [vmem:[%s13800_s1 + $0x90] ss:$24 sps:$4 sm:$0xff]   ;;  %v8517_v16 = vld [vmem:[%s13800_s1 + $0xc4] ss:$24 sps:$4 sm:$0xff]  }
  0x13   : > { %v8513_v13 = vld [vmem:[%s13800_s1 + $0x394] ss:$24 sps:$4 sm:$0xff]   ;;  %v8516_v15 = vld [vmem:[%s13800_s1 + $0x390] ss:$24 sps:$4 sm:$0xff]   ;;  %v8519_v17 = vld [vmem:[%s13800_s1 + $0x3c4] ss:$24 sps:$4 sm:$0xff]  }
  0x14   : > { %3272 = vmatpush1.bf16.msra.mxu1 %v8503_v6  ;;  %v8521_v18 = vld [vmem:[%s13800_s1 + $0xc0] ss:$24 sps:$4 sm:$0xff]   ;;  %v8523_v20 = vld [vmem:[%s13800_s1 + $0xf4] ss:$24 sps:$4 sm:$0xff]   ;;  %v8527_v22 = vld [vmem:[%s13800_s1 + $0xf0] ss:$24 sps:$4 sm:$0xff]  }
  0x15   : > { %3465 = vmatpush1.bf16.msra.mxu0 %v8504_v7  ;;  %3273 = vmatprep.subr.bf16.mxu1 %v8505_v8  ;;  %v8522_v19 = vld [vmem:[%s13800_s1 + $0x3c0] ss:$24 sps:$4 sm:$0xff]   ;;  %v8525_v21 = vld [vmem:[%s13800_s1 + $0x3f4] ss:$24 sps:$4 sm:$0xff]   ;;  %v8528_v23 = vld [vmem:[%s13800_s1 + $0x3f0] ss:$24 sps:$4 sm:$0xff]  }
  0x16   : > { %3466 = vmatprep.subr.bf16.mxu0 %v8507_v9  ;;  %v8529_v24 = vld [vmem:[%s13800_s1 + $0x124] ss:$24 sps:$4 sm:$0xff]   ;;  %v8533_v26 = vld [vmem:[%s13800_s1 + $0x120] ss:$24 sps:$4 sm:$0xff]   ;;  %v8535_v28 = vld [vmem:[%s13800_s1 + $0x154] ss:$24 sps:$4 sm:$0xff]  }
  0x17   : > { %v8531_v25 = vld [vmem:[%s13800_s1 + $0x424] ss:$24 sps:$4 sm:$0xff]   ;;  %v8534_v27 = vld [vmem:[%s13800_s1 + $0x420] ss:$24 sps:$4 sm:$0xff]   ;;  %v8537_v29 = vld [vmem:[%s13800_s1 + $0x454] ss:$24 sps:$4 sm:$0xff]  }
  0x18   : > { %3274 = vmatpush1.bf16.msra.mxu1 %v8509_v10  ;;  %v8539_v30 = vld [vmem:[%s13800_s1 + $0x150] ss:$24 sps:$4 sm:$0xff]   ;;  %v8541_v32 = vld [vmem:[%s13800_s1 + $0x184] ss:$24 sps:$4 sm:$0xff]   ;;  %p179_p4 = scmp.lt.s32.totalorder %s9448_s12, 1  ;;  %vm695_vm1 = vcmask 1046528  }
  0x19   : > { %3467 = vmatpush1.bf16.msra.mxu0 %v8510_v11  ;;  %3275 = vmatprep.subr.bf16.mxu1 %v8511_v12  ;;  %v8540_v31 = vld [vmem:[%s13800_s1 + $0x450] ss:$24 sps:$4 sm:$0xff]   ;;  %v8543_v33 = vld [vmem:[%s13800_s1 + $0x484] ss:$24 sps:$4 sm:$0xff]   ;;  %v8545_v34 = vld [vmem:[%s13800_s1 + $0x180] ss:$24 sps:$4 sm:$0xff]  }
  0x1a   : > { %3468 = vmatprep.subr.bf16.mxu0 %v8513_v13  ;;  %v8546_v35 = vld [vmem:[%s13800_s1 + $0x480] ss:$24 sps:$4 sm:$0xff]   ;;  %v8547_v36 = vld [vmem:[%s13800_s1 + $0x1b4] ss:$24 sps:$4 sm:$0xff]   ;;  %s14579_s12 = smov (!%p179_p4, %s9448_s12), 1 }
  0x1b   : > { %v8549_v37 = vld [vmem:[%s13800_s1 + $0x4b4] ss:$24 sps:$4 sm:$0xff]   ;;  %v8551_v38 = vld [vmem:[%s13800_s1 + $0x1b0] ss:$24 sps:$4 sm:$0xff]   ;;  %v8553_v40 = vld [vmem:[%s13800_s1 + $0x1e4] ss:$24 sps:$4 sm:$0xff]  }
  0x1c   : > { %3276 = vmatpush1.bf16.msra.mxu1 %v8515_v14  ;;  %v8552_v39 = vld [vmem:[%s13800_s1 + $0x4b0] ss:$24 sps:$4 sm:$0xff]   ;;  %s8467_s29 = smul.u32 272, %s14579_s12  ;;  %v8555_v41 = vld [vmem:[%s13800_s1 + $0x4e4] ss:$24 sps:$4 sm:$0xff]   ;;  %s7682_s7 = sshll.u32 %s14579_s12, 8 }
  0x1d   : > { %3469 = vmatpush1.bf16.msra.mxu0 %v8516_v15  ;;  %3277 = vmatprep.subr.bf16.mxu1 %v8517_v16  ;;  %v8557_v42 = vld [vmem:[%s13800_s1 + $0x1e0] ss:$24 sps:$4 sm:$0xff]   ;;  %v8559_v44 = vld [vmem:[%s13800_s1 + $0x214] ss:$24 sps:$4 sm:$0xff]   ;;  %v8563_v46 = vld [vmem:[%s13800_s1 + $0x210] ss:$24 sps:$4 sm:$0xff]   ;;  %s13732_s10 = scalar_lea.vmem %s13802_s3, %s7682_s7 }
  0x1e   : > { %3470 = vmatprep.subr.bf16.mxu0 %v8519_v17  ;;  %v8558_v43 = vld [vmem:[%s13800_s1 + $0x4e0] ss:$24 sps:$4 sm:$0xff]   ;;  %s9642_s17 = scalar_lea.vmem %s13799_s0, %s8467_s29  ;;  %v8561_v45 = vld [vmem:[%s13800_s1 + $0x514] ss:$24 sps:$4 sm:$0xff]   ;;  %v8564_v47 = vld [vmem:[%s13800_s1 + $0x510] ss:$24 sps:$4 sm:$0xff]  }
  0x1f   : > { %v9654_v48 = vld [vmem:[%s9642_s17 + $0x4] ss:$8 sps:$4 sm:$0xff]   ;;  %v9660_v50 = vld [vmem:[%s9642_s17 + $0x14] ss:$8 sps:$4 sm:$0xff]   ;;  %vm398_vm0 = vsmask.f32 7424 }
  0x20   : > { %3278 = vmatpush1.bf16.msra.mxu1 %v8521_v18  ;;  %v8565_v49 = vld [vmem:[%s13800_s1 + $0x244] ss:$24 sps:$4 sm:$0xff]   ;;  %v13840_v52 = vshrl.u32 %v9654_v48, 16  ;;  %v13835_v53 = vshll.u32 %v9654_v48, 16  ;;  %3301 = vmatprep.mubr.bf16.mxu1 %v9654_v48  ;;  %v13831_v54 = vshll.u32 %v9660_v50, 16  ;;  %v13832_v14 = vshrl.u32 %v9660_v50, 16 }
  0x21   : > { %3471 = vmatpush1.bf16.msra.mxu0 %v8522_v19  ;;  %3279 = vmatprep.subr.bf16.mxu1 %v8523_v20  ;;  %v8567_v51 = vld [vmem:[%s13800_s1 + $0x544] ss:$24 sps:$4 sm:$0xff]   ;;  %v8569_v55 = vld [vmem:[%s13800_s1 + $0x240] ss:$24 sps:$4 sm:$0xff]   ;;  %v8571_v58 = vld [vmem:[%s13800_s1 + $0x274] ss:$24 sps:$4 sm:$0xff]  }
  0x22   : > { %3472 = vmatprep.subr.bf16.mxu0 %v8525_v21  ;;  %v8570_v56 = vld [vmem:[%s13800_s1 + $0x540] ss:$24 sps:$4 sm:$0xff]   ;;  %v416_v57 = vrot.slane %v13835_v53, 1  ;;  %v421_v59 = vrot.slane %v13831_v54, 1  ;;  %v8573_v61 = vld [vmem:[%s13800_s1 + $0x574] ss:$24 sps:$4 sm:$0xff]  }
  0x23   : > { %v9683_v60 = vld [vmem:[%s9642_s17] ss:$8 sps:$4 sm:$0xff]   ;;  %v9700_v2 = vld [vmem:[%s9642_s17 + $0x10] ss:$8 sps:$4 sm:$0xff]   ;;  %v8577_v4 = vld [vmem:[%s13800_s1 + $0x2a4] ss:$24 sps:$4 sm:$0xff]  }
  0x24   : > { %3280 = vmatpush1.bf16.msra.mxu1 %v8527_v22  ;;  %v417_v62 = vor.u32 %v416_v57, %v13840_v52  ;;  %v8575_v63 = vld [vmem:[%s13800_s1 + $0x270] ss:$24 sps:$4 sm:$0xff]   ;;  %v13843_v3 = vshll.u32 %v9683_v60, 16  ;;  %v8579_v5 = vld [vmem:[%s13800_s1 + $0x5a4] ss:$24 sps:$4 sm:$0xff]   ;;  %v13846_v10 = vshrl.u32 %v9683_v60, 16 }
  0x25   : > { %3473 = vmatpush1.bf16.msra.mxu0 %v8528_v23  ;;  %3281 = vmatprep.subr.bf16.mxu1 %v8529_v24  ;;  %v8576_v0 = vld [vmem:[%s13800_s1 + $0x570] ss:$24 sps:$4 sm:$0xff]   ;;  %v8581_v6 = vld [vmem:[%s13800_s1 + $0x2a0] ss:$24 sps:$4 sm:$0xff]   ;;  %v9714_v7 = vld [vmem:[%s9642_s17 + $0x24] ss:$8 sps:$4 sm:$0xff]   ;;  %v433_v23 = vor.u32 %v13832_v14, %v421_v59 }
  0x26   : > { %3474 = vmatprep.subr.bf16.mxu0 %v8531_v25  ;;  %v9697_v1 = vsel %vm398_vm0, %v417_v62, %v421_v59  ;;  %v8582_v8 = vld [vmem:[%s13800_s1 + $0x5a0] ss:$24 sps:$4 sm:$0xff]   ;;  %v8583_v9 = vld [vmem:[%s13800_s1 + $0x2d4] ss:$24 sps:$4 sm:$0xff]   ;;  %v404_v11 = vrot.slane %v13843_v3, 1  ;;  %v13850_v12 = vshll.u32 %v9700_v2, 16 }
  0x27   : > { %3494 = vmatprep.mubr.bf16.mxu0 %v9697_v1  ;;  %v8585_v13 = vld [vmem:[%s13800_s1 + $0x5d4] ss:$24 sps:$4 sm:$0xff]   ;;  %v13829_v15 = vshll.u32 %v9714_v7, 16  ;;  %v8587_v16 = vld [vmem:[%s13800_s1 + $0x2d0] ss:$24 sps:$4 sm:$0xff]  }
  0x28   : > { %3282 = vmatpush1.bf16.msra.mxu1 %v8533_v26  ;;  %v8588_v17 = vld [vmem:[%s13800_s1 + $0x5d0] ss:$24 sps:$4 sm:$0xff]   ;;  %v8597_v18 = vld [vmem:[%s13800_s1 + $0x604] ss:$24 sps:$4 sm:$0xff]   ;;  %v405_v19 = vor.u32 %v404_v11, %v13846_v10  ;;  %v409_v20 = vrot.slane %v13850_v12, 1 }
  0x29   : > { %3475 = vmatpush1.bf16.msra.mxu0 %v8534_v27  ;;  %3283 = vmatprep.subr.bf16.mxu1 %v8535_v28  ;;  %v9745_v21 = vld [vmem:[%s9642_s17 + $0x20] ss:$8 sps:$4 sm:$0xff]   ;;  %v9748_v22 = vld [vmem:[%s9642_s17 + $0x34] ss:$8 sps:$4 sm:$0xff]   ;;  %v437_v24 = vrot.slane %v13829_v15, 1  ;;  %v13849_v27 = vshrl.u32 %v9700_v2, 16 }
  0x2a   : > { %3476 = vmatprep.subr.bf16.mxu0 %v8537_v29  ;;  %v9755_v25 = vsel %vm398_vm0, %v405_v19, %v409_v20  ;;  %v8595_v26 = vld [vmem:[%s13800_s1 + $0x600] ss:$24 sps:$4 sm:$0xff]   ;;  %v13827_v28 = vshll.u32 %v9745_v21, 16  ;;  %v8603_v29 = vld [vmem:[%s13800_s1 + $0x634] ss:$24 sps:$4 sm:$0xff]  }
  0x2b   : > { %v8651_v57 = vld [vmem:[%s13800_s1 + $0x3c] ss:$24 sps:$4 sm:$0xff]   ;;  %v8619_v11 = vld [vmem:[%s13800_s1 + $0x6c0] ss:$24 sps:$4 sm:$0xff]   ;;  %v8726_v15 = vld [vmem:[%s13800_s1 + $0x8d0] ss:$24 sps:$4 sm:$0xff]  }
  0x2c   : > { %3284 = vmatpush1.bf16.msra.mxu1 %v8539_v30  ;;  %v13830_v30 = vshrl.u32 %v9714_v7, 16  ;;  %v8627_v19 = vld [vmem:[%s13800_s1 + $0x6f4] ss:$24 sps:$4 sm:$0xff]   ;;  %vm794_vm2 = vsmask.f32 6400 }
  0x2d   : > { %3477 = vmatpush1.bf16.msra.mxu0 %v8540_v31  ;;  %3285 = vmatprep.subr.bf16.mxu1 %v8541_v32  ;;  %v13821_v31 = vshll.u32 %v9748_v22, 16  ;;  %v9768_v32 = vsel %vm398_vm0, %v433_v23, %v437_v24  ;;  %v9871_v23 = vld [vmem:[%s9642_s17 + $0x50] ss:$8 sps:$4 sm:$0xff]  }
  0x2e   : > { %3478 = vmatprep.subr.bf16.mxu0 %v8543_v33  ;;  %14045 = vst [vmem:[#allocation2_spill] sm:$0xff] %v9768_v32  ;;  %v8601_v33 = vld [vmem:[%s13800_s1 + $0x630] ss:$24 sps:$4 sm:$0xff]  }
  0x30   : > { %3286 = vmatpush1.bf16.msra.mxu1 %v8545_v34  ;;  %v425_v34 = vor.u32 %v13849_v27, %v409_v20  ;;  %v8658_v20 = vld [vmem:[%s13800_s1 + $0x68] ss:$24 sps:$4 sm:$0xff]  }
  0x31   : > { %3479 = vmatpush1.bf16.msra.mxu0 %v8546_v35  ;;  %3287 = vmatprep.subr.bf16.mxu1 %v8547_v36  ;;  %v429_v35 = vrot.slane %v13827_v28, 1  ;;  %v9781_v36 = vld [vmem:[%s9642_s17 + $0x30] ss:$8 sps:$4 sm:$0xff]   ;;  %v10129_v28 = vld [vmem:[%s9642_s17 + $0xa0] ss:$8 sps:$4 sm:$0xff]  }
  0x32   : > { %3480 = vmatprep.subr.bf16.mxu0 %v8549_v37  ;;  %v8609_v37 = vld [vmem:[%s13800_s1 + $0x664] ss:$24 sps:$4 sm:$0xff]   ;;  %14057 = vst [vmem:[#allocation14_spill] sm:$0xff] %v10129_v28 }
  0x34   : > { %3288 = vmatpush1.bf16.msra.mxu1 %v8551_v38  ;;  %v449_v38 = vor.u32 %v13830_v30, %v437_v24  ;;  %v8663_v24 = vld [vmem:[%s13800_s1 + $0x9c] ss:$24 sps:$4 sm:$0xff]  }
  0x35   : > { %3481 = vmatpush1.bf16.msra.mxu0 %v8552_v39  ;;  %3289 = vmatprep.subr.bf16.mxu1 %v8553_v40  ;;  %v453_v39 = vrot.slane %v13821_v31, 1  ;;  %v9792_v40 = vld [vmem:[%s9642_s17 + $0x44] ss:$8 sps:$4 sm:$0xff]  }
  0x36   : > { %3482 = vmatprep.subr.bf16.mxu0 %v8555_v41  ;;  %v9795_v41 = vsel %vm398_vm0, %v425_v34, %v429_v35  ;;  %v8737_v30 = vld [vmem:[%s13800_s1 + $0x904] ss:$24 sps:$4 sm:$0xff]  }
  0x38   : > { %3290 = vmatpush1.bf16.msra.mxu1 %v8557_v42  ;;  %v13828_v42 = vshrl.u32 %v9745_v21, 16 }
  0x39   : > { %3483 = vmatpush1.bf16.msra.mxu0 %v8558_v43  ;;  %3291 = vmatprep.subr.bf16.mxu1 %v8559_v44  ;;  %v13819_v43 = vshll.u32 %v9781_v36, 16  ;;  %v8607_v44 = vld [vmem:[%s13800_s1 + $0x660] ss:$24 sps:$4 sm:$0xff]  }
  0x3a   : > { %3484 = vmatprep.subr.bf16.mxu0 %v8561_v45  ;;  %v9803_v45 = vsel %vm398_vm0, %v449_v38, %v453_v39  ;;  %v8633_v38 = vld [vmem:[%s13800_s1 + $0x724] ss:$24 sps:$4 sm:$0xff]  }
  0x3b   : > { %14046 = vst [vmem:[#allocation3_spill] sm:$0xff] %v9803_v45  ;;  %v445_v59 = vrot.slane %v13819_v43, 1  ;;  %v10091_v43 = vld [vmem:[%s9642_s17 + $0xa4] ss:$8 sps:$4 sm:$0xff]  }
  0x3c   : > { %3292 = vmatpush1.bf16.msra.mxu1 %v8563_v46  ;;  %v13822_v46 = vshrl.u32 %v9748_v22, 16 }
  0x3d   : > { %3485 = vmatpush1.bf16.msra.mxu0 %v8564_v47  ;;  %3293 = vmatprep.subr.bf16.mxu1 %v8565_v49  ;;  %v13813_v47 = vshll.u32 %v9792_v40, 16  ;;  %v8648_v49 = vld [vmem:[%s13800_s1 + $0xc] ss:$24 sps:$4 sm:$0xff]  }
  0x3e   : > { %3486 = vmatprep.subr.bf16.mxu0 %v8567_v51  ;;  %v8615_v51 = vld [vmem:[%s13800_s1 + $0x694] ss:$24 sps:$4 sm:$0xff]   ;;  %v465_v62 = vor.u32 %v13822_v46, %v453_v39  ;;  %v8661_v39 = vld [vmem:[%s13800_s1 + $0x98] ss:$24 sps:$4 sm:$0xff]  }
  0x40   : > { %3294 = vmatpush1.bf16.msra.mxu1 %v8569_v55  ;;  %v8646_v55 = vld [vmem:[%s13800_s1 + $0x8] ss:$24 sps:$4 sm:$0xff]  }
  0x41   : > { %3487 = vmatpush1.bf16.msra.mxu0 %v8570_v56  ;;  %3295 = vmatprep.subr.bf16.mxu1 %v8571_v58  ;;  %v9819_v56 = vld [vmem:[%s9642_s17 + $0x40] ss:$8 sps:$4 sm:$0xff]   ;;  %v441_v58 = vor.u32 %v13828_v42, %v429_v35  ;;  %v10134_v42 = vld [vmem:[%s9642_s17 + $0xb4] ss:$8 sps:$4 sm:$0xff]  }
  0x42   : > { %3488 = vmatprep.subr.bf16.mxu0 %v8573_v61  ;;  %v8613_v61 = vld [vmem:[%s13800_s1 + $0x690] ss:$24 sps:$4 sm:$0xff]   ;;  %14058 = vst [vmem:[#allocation15_spill] sm:$0xff] %v10134_v42  ;;  %v13848_v52 = vshrl.u32 %v10134_v42, 16 }
  0x44   : > { %3296 = vmatpush1.bf16.msra.mxu1 %v8575_v63  ;;  %v469_v63 = vrot.slane %v13813_v47, 1 }
  0x45   : > { %3489 = vmatpush1.bf16.msra.mxu0 %v8576_v0  ;;  %3297 = vmatprep.subr.bf16.mxu1 %v8577_v4  ;;  %v9838_v0 = vld [vmem:[%s9642_s17 + $0x54] ss:$8 sps:$4 sm:$0xff]  }
  0x46   : > { %3490 = vmatprep.subr.bf16.mxu0 %v8579_v5  ;;  %v8621_v4 = vld [vmem:[%s13800_s1 + $0x6c4] ss:$24 sps:$4 sm:$0xff]   ;;  %v8649_v5 = vld [vmem:[%s13800_s1 + $0x38] ss:$24 sps:$4 sm:$0xff]  }
  0x48   : > { %3298 = vmatpush1.bf16.msra.mxu1 %v8581_v6  ;;  %v9847_v6 = vsel %vm398_vm0, %v441_v58, %v445_v59  ;;  %v13806_v58 = vshrl.u32 %v9838_v0, 16 }
  0x49   : > { %3491 = vmatpush1.bf16.msra.mxu0 %v8582_v8  ;;  %3299 = vmatprep.subr.bf16.mxu1 %v8583_v9  ;;  %v13820_v8 = vshrl.u32 %v9781_v36, 16  ;;  %v13811_v9 = vshll.u32 %v9819_v56, 16 }
  0x4a   : > { %3492 = vmatprep.subr.bf16.mxu0 %v8585_v13  ;;  %v9855_v13 = vsel %vm398_vm0, %v465_v62, %v469_v63  ;;  %v8639_v62 = vld [vmem:[%s13800_s1 + $0x754] ss:$24 sps:$4 sm:$0xff]  }
  0x4c   : > { %3300 = vmatpush1.bf16.msra.mxu1 %v8587_v16  ;;  %v13814_v16 = vshrl.u32 %v9792_v40, 16 }
  0x4d   : > { %3493 = vmatpush1.bf16.msra.mxu0 %v8588_v17  ;;  %4041 = vmatprep.subr.bf16.mxu1 %v8648_v49  ;;  %v13805_v17 = vshll.u32 %v9838_v0, 16  ;;  %v13812_v49 = vshrl.u32 %v9819_v56, 16 }
  0x4e   : > { %3655 = vmatprep.subr.bf16.mxu0 %v8597_v18  ;;  %v8660_v18 = vld [vmem:[%s13800_s1 + $0x6c] ss:$24 sps:$4 sm:$0xff]   ;;  %v481_v34 = vor.u32 %v13814_v16, %v469_v63  ;;  %v8670_v63 = vld [vmem:[%s13800_s1 + $0xc8] ss:$24 sps:$4 sm:$0xff]  }
  0x4f   : > { %3302 = vmatmul.mubr.bf16.vlgmr.msra.gmra.mrb[0].mxu1 %v9683_v60  ;;  %v485_v35 = vrot.slane %v13805_v17, 1 }
  0x50   : > { %3495 = vmatmul.mubr.bf16.vlgmr.msra.gmra.mrb[0].mxu0 %v9755_v25  ;;  %3311 = vmatprep.mubr.bf16.mxu1 %v9660_v50 }
  0x51   : > { %3656 = vmatpush1.bf16.msra.mxu0 %v8595_v26  ;;  %3504 = vmatprep.mubr.bf16.mxu0 %v9768_v32  ;;  %v457_v26 = vor.u32 %v13820_v8, %v445_v59  ;;  %v8703_v8 = vld [vmem:[%s13800_s1 + $0x870] ss:$24 sps:$4 sm:$0xff]  }
  0x52   : > { %3657 = vmatprep.subr.bf16.mxu0 %v8603_v29  ;;  %4042 = vmatpush1.bf16.msra.mxu1 %v8646_v55  ;;  %v461_v29 = vrot.slane %v13811_v9, 1  ;;  %v8631_v55 = vld [vmem:[%s13800_s1 + $0x720] ss:$24 sps:$4 sm:$0xff]   ;;  %v10039_v9 = vld [vmem:[%s9642_s17 + $0x94] ss:$8 sps:$4 sm:$0xff]  }
  0x53   : > { %4043 = vmatprep.subr.bf16.mxu1 %v8651_v57  ;;  %v9907_v57 = vsel %vm398_vm0, %v481_v34, %v485_v35  ;;  %v8673_v34 = vld [vmem:[%s13800_s1 + $0xf8] ss:$24 sps:$4 sm:$0xff]  }
  0x54   : > { %14048 = vst [vmem:[#allocation5_spill] sm:$0xff] %v9907_v57 }
  0x55   : > { %3658 = vmatpush1.bf16.msra.mxu0 %v8601_v33  ;;  %v9883_v33 = vld [vmem:[%s9642_s17 + $0x64] ss:$8 sps:$4 sm:$0xff]  }
  0x56   : > { %3659 = vmatprep.subr.bf16.mxu0 %v8609_v37  ;;  %4044 = vmatpush1.bf16.msra.mxu1 %v8649_v5  ;;  %v8625_v37 = vld [vmem:[%s13800_s1 + $0x6f0] ss:$24 sps:$4 sm:$0xff]   ;;  %v13803_v59 = vshll.u32 %v9883_v33, 16  ;;  %v473_v5 = vor.u32 %v13812_v49, %v461_v29 }
  0x57   : > { %3312 = vmatmul.mubr.bf16.gmra.mrb[4].mxu1 %v9700_v2  ;;  %4045 = vmatprep.subr.bf16.mxu1 %v8660_v18  ;;  %v9932_v18 = vld [vmem:[%s9642_s17 + $0x60] ss:$8 sps:$4 sm:$0xff]  }
  0x58   : > { %3505 = vmatmul.mubr.bf16.gmra.mrb[4].mxu0 %v9795_v41  ;;  %3321 = vmatprep.mubr.bf16.mxu1 %v9714_v7  ;;  %v8679_v49 = vld [vmem:[%s13800_s1 + $0x810] ss:$24 sps:$4 sm:$0xff]  }
  0x59   : > { %3514 = vmatprep.mubr.bf16.mxu0 %v9803_v45  ;;  %3660 = vmatpush1.bf16.msra.mxu0 %v8607_v44  ;;  %v9899_v44 = vsel %vm398_vm0, %v457_v26, %v461_v29  ;;  %v8637_v26 = vld [vmem:[%s13800_s1 + $0x750] ss:$24 sps:$4 sm:$0xff]   ;;  %v8645_v29 = vld [vmem:[%s13800_s1 + $0x784] ss:$24 sps:$4 sm:$0xff]  }
  0x5a   : > { %3661 = vmatprep.subr.bf16.mxu0 %v8615_v51  ;;  %4046 = vmatpush1.bf16.msra.mxu1 %v8658_v20  ;;  %14047 = vst [vmem:[#allocation4_spill] sm:$0xff] %v9899_v44  ;;  %v13804_v51 = vshll.u32 %v9871_v23, 16  ;;  %v501_v20 = vrot.slane %v13803_v59, 1  ;;  %v9987_v59 = vld [vmem:[%s9642_s17 + $0x84] ss:$8 sps:$4 sm:$0xff]  }
  0x5b   : > { %4047 = vmatprep.subr.bf16.mxu1 %v8663_v24  ;;  %v9939_v24 = vld [vmem:[%s9642_s17 + $0x74] ss:$8 sps:$4 sm:$0xff]  }
  0x5d   : > { %3662 = vmatpush1.bf16.msra.mxu0 %v8613_v61  ;;  %v8672_v61 = vld [vmem:[%s13800_s1 + $0xcc] ss:$24 sps:$4 sm:$0xff]  }
  0x5e   : > { %3663 = vmatprep.subr.bf16.mxu0 %v8621_v4  ;;  %4048 = vmatpush1.bf16.msra.mxu1 %v8661_v39  ;;  %v8675_v4 = vld [vmem:[%s13800_s1 + $0xfc] ss:$24 sps:$4 sm:$0xff]   ;;  %v13809_v39 = vshrl.u32 %v9883_v33, 16 }
  0x5f   : > { %3322 = vmatmul.mubr.bf16.gmra.mrb[8].mxu1 %v9745_v21  ;;  %4049 = vmatprep.subr.bf16.mxu1 %v8672_v61  ;;  %v13808_v61 = vshll.u32 %v9939_v24, 16 }
  0x60   : > { %3515 = vmatmul.mubr.bf16.gmra.mrb[8].mxu0 %v9847_v6  ;;  %3331 = vmatprep.mubr.bf16.mxu1 %v9748_v22 }
  0x61   : > { %3524 = vmatprep.mubr.bf16.mxu0 %v9855_v13  ;;  %3664 = vmatpush1.bf16.msra.mxu0 %v8619_v11  ;;  %v477_v11 = vrot.slane %v13804_v51, 1  ;;  %v513_v51 = vor.u32 %v13809_v39, %v501_v20  ;;  %v517_v17 = vrot.slane %v13808_v61, 1  ;;  %v13818_v39 = vshrl.u32 %v9939_v24, 16 }
  0x62   : > { %3665 = vmatprep.subr.bf16.mxu0 %v8627_v19  ;;  %v497_v19 = vor.u32 %v13806_v58, %v485_v35  ;;  %4050 = vmatpush1.bf16.msra.mxu1 %v8670_v63  ;;  %v8684_v63 = vld [vmem:[%s13800_s1 + $0x12c] ss:$24 sps:$4 sm:$0xff]   ;;  %v8655_v58 = vld [vmem:[%s13800_s1 + $0x7b0] ss:$24 sps:$4 sm:$0xff]  }
  0x63   : > { %4051 = vmatprep.subr.bf16.mxu1 %v8675_v4  ;;  %v9951_v35 = vsel %vm398_vm0, %v473_v5, %v477_v11  ;;  %v9967_v4 = vld [vmem:[%s9642_s17 + $0x70] ss:$8 sps:$4 sm:$0xff]   ;;  %v8657_v5 = vld [vmem:[%s13800_s1 + $0x7b4] ss:$24 sps:$4 sm:$0xff]   ;;  %v529_v47 = vor.u32 %v13818_v39, %v517_v17  ;;  %v8706_v39 = vld [vmem:[%s13800_s1 + $0x1e8] ss:$24 sps:$4 sm:$0xff]  }
  0x64   : > { %14049 = vst [vmem:[#allocation6_spill] sm:$0xff] %v9951_v35  ;;  %v13815_v61 = vshll.u32 %v9967_v4, 16 }
  0x65   : > { %3666 = vmatpush1.bf16.msra.mxu0 %v8625_v37  ;;  %v13810_v37 = vshrl.u32 %v9871_v23, 16 }
  0x66   : > { %3667 = vmatprep.subr.bf16.mxu0 %v8633_v38  ;;  %v13807_v38 = vshll.u32 %v9932_v18, 16  ;;  %4052 = vmatpush1.bf16.msra.mxu1 %v8673_v34 }
  0x67   : > { %3332 = vmatmul.mubr.bf16.gmra.mrb[12].mxu1 %v9781_v36  ;;  %4053 = vmatprep.subr.bf16.mxu1 %v8684_v63  ;;  %v8667_v63 = vld [vmem:[%s13800_s1 + $0x7e0] ss:$24 sps:$4 sm:$0xff]  }
  0x68   : > { %3525 = vmatmul.mubr.bf16.gmra.mrb[12].mxu0 %v9899_v44  ;;  %3341 = vmatprep.mubr.bf16.mxu1 %v9792_v40  ;;  %v493_v34 = vrot.slane %v13807_v38, 1  ;;  %v8685_v38 = vld [vmem:[%s13800_s1 + $0x158] ss:$24 sps:$4 sm:$0xff]  }
  0x69   : > { %3534 = vmatprep.mubr.bf16.mxu0 %v9907_v57  ;;  %3668 = vmatpush1.bf16.msra.mxu0 %v8631_v55  ;;  %v9957_v55 = vsel %vm398_vm0, %v497_v19, %v501_v20  ;;  %v8682_v19 = vld [vmem:[%s13800_s1 + $0x128] ss:$24 sps:$4 sm:$0xff]  }
  0x6a   : > { %3669 = vmatprep.subr.bf16.mxu0 %v8639_v62  ;;  %14050 = vst [vmem:[#allocation7_spill] sm:$0xff] %v9957_v55  ;;  %v8643_v62 = vld [vmem:[%s13800_s1 + $0x780] ss:$24 sps:$4 sm:$0xff]   ;;  %4054 = vmatpush1.bf16.msra.mxu1 %v8682_v19  ;;  %v13817_v19 = vshll.u32 %v9987_v59, 16 }
  0x6c   : > { %v533_v16 = vrot.slane %v13817_v19, 1  ;;  %v8691_v19 = vld [vmem:[%s13800_s1 + $0x840] ss:$24 sps:$4 sm:$0xff]  }
  0x6d   : > { %3670 = vmatpush1.bf16.msra.mxu0 %v8637_v26  ;;  %v8687_v26 = vld [vmem:[%s13800_s1 + $0x15c] ss:$24 sps:$4 sm:$0xff]  }
  0x6e   : > { %3671 = vmatprep.subr.bf16.mxu0 %v8645_v29  ;;  %v489_v29 = vor.u32 %v13810_v37, %v477_v11  ;;  %v8669_v11 = vld [vmem:[%s13800_s1 + $0x7e4] ss:$24 sps:$4 sm:$0xff]   ;;  %4055 = vmatprep.subr.bf16.mxu1 %v8687_v26  ;;  %v8681_v26 = vld [vmem:[%s13800_s1 + $0x814] ss:$24 sps:$4 sm:$0xff]   ;;  %v8694_v37 = vld [vmem:[%s13800_s1 + $0x188] ss:$24 sps:$4 sm:$0xff]  }
  0x6f   : > { %3342 = vmatmul.mubr.bf16.gmra.mrb[16].mxu1 %v9819_v56 }
  0x70   : > { %3535 = vmatmul.mubr.bf16.gmra.mrb[16].mxu0 %v9951_v35  ;;  %3351 = vmatprep.mubr.bf16.mxu1 %v9838_v0  ;;  %v10003_v20 = vsel %vm398_vm0, %v489_v29, %v493_v34  ;;  %v8696_v29 = vld [vmem:[%s13800_s1 + $0x18c] ss:$24 sps:$4 sm:$0xff]  }
  0x71   : > { %3544 = vmatprep.mubr.bf16.mxu0 %v9957_v55  ;;  %3672 = vmatpush1.bf16.msra.mxu0 %v8643_v62  ;;  %14051 = vst [vmem:[#allocation8_spill] sm:$0xff] %v10003_v20  ;;  %v13816_v62 = vshrl.u32 %v9932_v18, 16 }
  0x72   : > { %3673 = vmatprep.subr.bf16.mxu0 %v8657_v5  ;;  %v10012_v5 = vsel %vm398_vm0, %v513_v51, %v517_v17  ;;  %4056 = vmatpush1.bf16.msra.mxu1 %v8685_v38  ;;  %v10027_v51 = vld [vmem:[%s9642_s17 + $0x80] ss:$8 sps:$4 sm:$0xff]  }
  0x73   : > { %14052 = vst [vmem:[#allocation9_spill] sm:$0xff] %v10012_v5  ;;  %v505_v38 = vor.u32 %v13816_v62, %v493_v34  ;;  %v8693_v34 = vld [vmem:[%s13800_s1 + $0x844] ss:$24 sps:$4 sm:$0xff]   ;;  %4057 = vmatprep.subr.bf16.mxu1 %v8696_v29  ;;  %v13824_v62 = vshrl.u32 %v9967_v4, 16  ;;  %v13826_v29 = vshrl.u32 %v9987_v59, 16 }
  0x75   : > { %3674 = vmatpush1.bf16.msra.mxu0 %v8655_v58  ;;  %v8699_v58 = vld [vmem:[%s13800_s1 + $0x1bc] ss:$24 sps:$4 sm:$0xff]   ;;  %v545_v31 = vor.u32 %v13826_v29, %v533_v16  ;;  %v13836_v29 = vshll.u32 %v10091_v43, 16 }
  0x76   : > { %3675 = vmatprep.subr.bf16.mxu0 %v8669_v11  ;;  %v509_v11 = vrot.slane %v13815_v61, 1  ;;  %4058 = vmatpush1.bf16.msra.mxu1 %v8694_v37  ;;  %v8697_v61 = vld [vmem:[%s13800_s1 + $0x1b8] ss:$24 sps:$4 sm:$0xff]   ;;  %v8705_v37 = vld [vmem:[%s13800_s1 + $0x874] ss:$24 sps:$4 sm:$0xff]  }
  0x77   : > { %3352 = vmatmul.mubr.bf16.gmra.mrb[20].mxu1 %v9871_v23  ;;  %4059 = vmatprep.subr.bf16.mxu1 %v8699_v58  ;;  %v13825_v58 = vshll.u32 %v10039_v9, 16  ;;  %v565_v14 = vrot.slane %v13836_v29, 1 }
  0x78   : > { %3545 = vmatmul.mubr.bf16.gmra.mrb[20].mxu0 %v10003_v20  ;;  %3361 = vmatprep.mubr.bf16.mxu1 %v9883_v33  ;;  %v10056_v17 = vsel %vm398_vm0, %v505_v38, %v509_v11  ;;  %v8708_v38 = vld [vmem:[%s13800_s1 + $0x1ec] ss:$24 sps:$4 sm:$0xff]  }
  0x79   : > { %3554 = vmatprep.mubr.bf16.mxu0 %v10012_v5  ;;  %3676 = vmatpush1.bf16.msra.mxu0 %v8667_v63  ;;  %14053 = vst [vmem:[#allocation10_spill] sm:$0xff] %v10056_v17  ;;  %v13823_v63 = vshll.u32 %v10027_v51, 16  ;;  %v549_v46 = vrot.slane %v13825_v58, 1 }
  0x7a   : > { %3677 = vmatprep.subr.bf16.mxu0 %v8681_v26  ;;  %v10066_v26 = vsel %vm398_vm0, %v529_v47, %v533_v16  ;;  %4060 = vmatpush1.bf16.msra.mxu1 %v8697_v61  ;;  %v10079_v47 = vld [vmem:[%s9642_s17 + $0x90] ss:$8 sps:$4 sm:$0xff]   ;;  %v521_v61 = vor.u32 %v13824_v62, %v509_v11  ;;  %v13834_v62 = vshrl.u32 %v10027_v51, 16 }
  0x7b   : > { %14054 = vst [vmem:[#allocation11_spill] sm:$0xff] %v10066_v26  ;;  %4061 = vmatprep.subr.bf16.mxu1 %v8708_v38  ;;  %v8709_v11 = vld [vmem:[%s13800_s1 + $0x218] ss:$24 sps:$4 sm:$0xff]   ;;  %v13833_v38 = vshll.u32 %v10079_v47, 16  ;;  %v10124_v58 = vsel %vm398_vm0, %v545_v31, %v549_v46  ;;  %v8723_v31 = vld [vmem:[%s13800_s1 + $0x27c] ss:$24 sps:$4 sm:$0xff]  }
  0x7c   : > { %v8715_v16 = vld [vmem:[%s13800_s1 + $0x8a0] ss:$24 sps:$4 sm:$0xff]   ;;  %14056 = vst [vmem:[#allocation13_spill] sm:$0xff] %v10124_v58 }
  0x7d   : > { %3678 = vmatpush1.bf16.msra.mxu0 %v8679_v49  ;;  %v8711_v49 = vld [vmem:[%s13800_s1 + $0x21c] ss:$24 sps:$4 sm:$0xff]  }
  0x7e   : > { %3679 = vmatprep.subr.bf16.mxu0 %v8693_v34  ;;  %v525_v34 = vrot.slane %v13823_v63, 1  ;;  %4062 = vmatpush1.bf16.msra.mxu1 %v8706_v39  ;;  %v8717_v63 = vld [vmem:[%s13800_s1 + $0x8a4] ss:$24 sps:$4 sm:$0xff]   ;;  %v8718_v39 = vld [vmem:[%s13800_s1 + $0x248] ss:$24 sps:$4 sm:$0xff]  }
  0x7f   : > { %3362 = vmatmul.mubr.bf16.gmra.mrb[24].mxu1 %v9932_v18  ;;  %4063 = vmatprep.subr.bf16.mxu1 %v8711_v49  ;;  %v8728_v49 = vld [vmem:[%s13800_s1 + $0x8d4] ss:$24 sps:$4 sm:$0xff]  }
  0x80   : > { %3555 = vmatmul.mubr.bf16.gmra.mrb[24].mxu0 %v10056_v17  ;;  %3371 = vmatprep.mubr.bf16.mxu1 %v9939_v24 }
  0x81   : > { %3564 = vmatprep.mubr.bf16.mxu0 %v10066_v26  ;;  %3680 = vmatpush1.bf16.msra.mxu0 %v8691_v19  ;;  %v10111_v19 = vsel %vm398_vm0, %v521_v61, %v525_v34  ;;  %v13839_v61 = vshrl.u32 %v10039_v9, 16 }
  0x82   : > { %3681 = vmatprep.subr.bf16.mxu0 %v8705_v37  ;;  %14055 = vst [vmem:[#allocation12_spill] sm:$0xff] %v10111_v19  ;;  %v8720_v37 = vld [vmem:[%s13800_s1 + $0x24c] ss:$24 sps:$4 sm:$0xff]   ;;  %4064 = vmatpush1.bf16.msra.mxu1 %v8709_v11  ;;  %v8721_v11 = vld [vmem:[%s13800_s1 + $0x278] ss:$24 sps:$4 sm:$0xff]  }
  0x83   : > { %v561_v54 = vor.u32 %v13839_v61, %v549_v46  ;;  %4065 = vmatprep.subr.bf16.mxu1 %v8720_v37  ;;  %v13842_v46 = vshrl.u32 %v10091_v43, 16  ;;  %v13841_v37 = vshll.u32 %v10134_v42, 16 }
  0x85   : > { %3682 = vmatpush1.bf16.msra.mxu0 %v8703_v8  ;;  %v537_v8 = vor.u32 %v13834_v62, %v525_v34  ;;  %v13837_v62 = vshll.u32 %v10129_v28, 16  ;;  %v10164_v53 = vsel %vm398_vm0, %v561_v54, %v565_v14  ;;  %v10177_v54 = vld [vmem:[%s9642_s17 + $0xb0] ss:$8 sps:$4 sm:$0xff]   ;;  %v581_v29 = vrot.slane %v13841_v37, 1 }
  0x86   : > { %3683 = vmatprep.subr.bf16.mxu0 %v8717_v63  ;;  %v541_v63 = vrot.slane %v13833_v38, 1  ;;  %4066 = vmatpush1.bf16.msra.mxu1 %v8718_v39  ;;  %v13838_v38 = vshrl.u32 %v10079_v47, 16  ;;  %14060 = vst [vmem:[#allocation17_spill] sm:$0xff] %v10164_v53  ;;  %v8729_v39 = vld [vmem:[%s13800_s1 + $0x2a8] ss:$24 sps:$4 sm:$0xff]   ;;  %14061 = vst [vmem:[#allocation18_spill] sm:$0xff] %v10177_v54 }
  0x87   : > { %3372 = vmatmul.mubr.bf16.gmra.mrb[28].mxu1 %v9967_v4  ;;  %4067 = vmatprep.subr.bf16.mxu1 %v8723_v31  ;;  %v8734_v31 = vld [vmem:[%s13800_s1 + $0x2dc] ss:$24 sps:$4 sm:$0xff]   ;;  %v13854_v3 = vshrl.u32 %v10177_v54, 16 }
  0x88   : > { %3565 = vmatmul.mubr.bf16.gmra.mrb[28].mxu0 %v10111_v19  ;;  %3381 = vmatprep.mubr.bf16.mxu1 %v9987_v59  ;;  %v10159_v34 = vsel %vm398_vm0, %v537_v8, %v541_v63  ;;  %v8732_v8 = vld [vmem:[%s13800_s1 + $0x2d8] ss:$24 sps:$4 sm:$0xff]  }
  0x89   : > { %3574 = vmatprep.mubr.bf16.mxu0 %v10124_v58  ;;  %3684 = vmatpush1.bf16.msra.mxu0 %v8715_v16  ;;  %14059 = vst [vmem:[#allocation16_spill] sm:$0xff] %v10159_v34  ;;  %v8731_v16 = vld [vmem:[%s13800_s1 + $0x2ac] ss:$24 sps:$4 sm:$0xff]  }
  0x8a   : > { %3685 = vmatprep.subr.bf16.mxu0 %v8728_v49  ;;  %4068 = vmatpush1.bf16.msra.mxu1 %v8721_v11  ;;  %v10180_v49 = vld [vmem:[%s9642_s17 + $0xc4] ss:$8 sps:$4 sm:$0xff]   ;;  %v577_v11 = vor.u32 %v13842_v46, %v565_v14 }
  0x8b   : > { %14062 = vst [vmem:[#allocation19_spill] sm:$0xff] %v10180_v49  ;;  %4069 = vmatprep.subr.bf16.mxu1 %v8731_v16  ;;  %v13847_v14 = vshll.u32 %v10180_v49, 16  ;;  %v8764_v16 = vld [vmem:[%s13800_s1 + $0x30c] ss:$24 sps:$4 sm:$0xff]  }
  0x8c   : > { %v10204_v61 = vsel %vm398_vm0, %v577_v11, %v581_v29  ;;  %v10223_v11 = vld [vmem:[%s9642_s17 + $0xd4] ss:$8 sps:$4 sm:$0xff]  }
  0x8d   : > { %3686 = vmatpush1.bf16.msra.mxu0 %v8726_v15  ;;  %v553_v15 = vor.u32 %v13838_v38, %v541_v63  ;;  %v13845_v38 = vshll.u32 %v10177_v54, 16  ;;  %14064 = vst [vmem:[#allocation21_spill] sm:$0xff] %v10204_v61  ;;  %v597_v37 = vrot.slane %v13847_v14, 1  ;;  %v13855_v10 = vshll.u32 %v10223_v11, 16 }
  0x8e   : > { %3848 = vmatprep.subr.bf16.mxu0 %v8737_v30  ;;  %v557_v30 = vrot.slane %v13837_v62, 1  ;;  %4070 = vmatpush1.bf16.msra.mxu1 %v8729_v39  ;;  %v13844_v62 = vshrl.u32 %v10129_v28, 16  ;;  %v10214_v39 = vld [vmem:[%s9642_s17 + $0xc0] ss:$8 sps:$4 sm:$0xff]  }
  0x8f   : > { %3382 = vmatmul.mubr.bf16.gmra.mrb[32].mxu1 %v10027_v51  ;;  %4071 = vmatprep.subr.bf16.mxu1 %v8734_v31  ;;  %14065 = vst [vmem:[#allocation22_spill] sm:$0xff] %v10214_v39  ;;  %v13866_v12 = vshrl.u32 %v10214_v39, 16 }
  0x90   : > { %3575 = vmatmul.mubr.bf16.gmra.mrb[32].mxu0 %v10159_v34  ;;  %3391 = vmatprep.mubr.bf16.mxu1 %v10039_v9  ;;  %v10199_v63 = vsel %vm398_vm0, %v553_v15, %v557_v30  ;;  %v569_v31 = vor.u32 %v13844_v62, %v557_v30  ;;  %v573_v15 = vrot.slane %v13845_v38, 1  ;;  %v13853_v30 = vshll.u32 %v10214_v39, 16 }
  0x91   : > { %3584 = vmatprep.mubr.bf16.mxu0 %v10164_v53  ;;  %14063 = vst [vmem:[#allocation20_spill] sm:$0xff] %v10199_v63  ;;  %v13856_v38 = vshrl.u32 %v10180_v49, 16 }
  0x92   : > { %4072 = vmatpush1.bf16.msra.mxu1 %v8732_v8  ;;  %v593_v8 = vor.u32 %v13848_v52, %v581_v29  ;;  %v10230_v46 = vsel %vm398_vm0, %v569_v31, %v573_v15  ;;  %v10242_v29 = vld [vmem:[%s9642_s17 + $0xd0] ss:$8 sps:$4 sm:$0xff]   ;;  %v589_v31 = vrot.slane %v13853_v30, 1  ;;  %v613_v52 = vrot.slane %v13855_v10, 1  ;;  %v10279_v10 = vld [vmem:[%s9642_s17 + $0xf4] ss:$8 sps:$4 sm:$0xff]  }
  0x93   : > { %4234 = vmatprep.subr.bf16.mxu1 %v8764_v16  ;;  %14066 = vst [vmem:[#allocation23_spill] sm:$0xff] %v10230_v46  ;;  %v585_v16 = vor.u32 %v13854_v3, %v573_v15  ;;  %v609_v14 = vor.u32 %v13856_v38, %v597_v37  ;;  %v13870_v30 = vshrl.u32 %v10223_v11, 16 }
  0x94   : > { %v10235_v62 = vsel %vm398_vm0, %v593_v8, %v597_v37  ;;  %v10251_v8 = vld [vmem:[%s9642_s17 + $0xe4] ss:$8 sps:$4 sm:$0xff]   ;;  %v10270_v37 = vld [vmem:[%s9642_s17 + $0xe0] ss:$8 sps:$4 sm:$0xff]  }
  0x95   : > { %14067 = vst [vmem:[#allocation24_spill] sm:$0xff] %v10235_v62  ;;  %v10258_v27 = vsel %vm398_vm0, %v585_v16, %v589_v31  ;;  %v10263_v15 = vsel %vm398_vm0, %v609_v14, %v613_v52  ;;  %v13869_v3 = vshll.u32 %v10251_v8, 16  ;;  %v601_v16 = vor.u32 %v13866_v12, %v589_v31 }
  0x96   : > { %14068 = vst [vmem:[#allocation25_spill] sm:$0xff] %v10258_v27  ;;  %14069 = vst [vmem:[#allocation26_spill] sm:$0xff] %v10263_v15  ;;  %v625_v38 = vor.u32 %v13870_v30, %v613_v52  ;;  %v13881_v12 = vshll.u32 %v10279_v10, 16 }
  0x97   : > { %3392 = vmatmul.mubr.bf16.gmra.mrb[36].mxu1 %v10079_v47 }
  0x98   : > { %3585 = vmatmul.mubr.bf16.gmra.mrb[36].mxu0 %v10199_v63  ;;  %3401 = vmatprep.mubr.bf16.mxu1 %v10091_v43  ;;  %v232_v63 = vld [vmem:[%s9642_s17 + $0x100] sm:$0xff]  ;;  %v645_v30 = vrot.slane %v13881_v12, 1 }
  0x99   : > { %3594 = vmatprep.mubr.bf16.mxu0 %v10204_v61  ;;  %v13878_v61 = vshll.u32 %v10270_v37, 16 }
  0x9f   : > { %3402 = vmatmul.mubr.bf16.gmra.mrb[40].mxu1 %v10129_v28  ;;  %v8741_v28 = vld [vmem:[%s13800_s1 + $0x960] ss:$24 sps:$4 sm:$0xff]  }
  0xa0   : > { %3595 = vmatmul.mubr.bf16.gmra.mrb[40].mxu0 %v10230_v46  ;;  %3411 = vmatprep.mubr.bf16.mxu1 %v10134_v42 }
  0xa1   : > { %3604 = vmatprep.mubr.bf16.mxu0 %v10235_v62  ;;  %v13865_v62 = vshll.u32 %v10242_v29, 16 }
  0xa3   : > { %v605_v14 = vrot.slane %v13865_v62, 1  ;;  %v13882_v62 = vshrl.u32 %v10251_v8, 16 }
  0xa5   : > { %v10286_v46 = vsel %vm398_vm0, %v601_v16, %v605_v14  ;;  %v10305_v16 = vld [vmem:[%s9642_s17 + $0xf0] ss:$8 sps:$4 sm:$0xff]  }
  0xa6   : > { %14070 = vst [vmem:[#allocation27_spill] sm:$0xff] %v10286_v46 }
  0xa7   : > { %3412 = vmatmul.mubr.bf16.gmra.mrb[44].mxu1 %v10177_v54 }
  0xa8   : > { %3605 = vmatmul.mubr.bf16.gmra.mrb[44].mxu0 %v10258_v27  ;;  %3421 = vmatprep.mubr.bf16.mxu1 %v10180_v49  ;;  %v629_v27 = vrot.slane %v13869_v3, 1 }
  0xa9   : > { %3614 = vmatprep.mubr.bf16.mxu0 %v10263_v15  ;;  %v13877_v15 = vshrl.u32 %v10242_v29, 16 }
  0xaa   : > { %v10291_v31 = vsel %vm398_vm0, %v625_v38, %v629_v27  ;;  %v621_v38 = vrot.slane %v13878_v61, 1  ;;  %v641_v3 = vor.u32 %v13882_v62, %v629_v27  ;;  %v13891_v61 = vshrl.u32 %v10279_v10, 16 }
  0xab   : > { %14071 = vst [vmem:[#allocation28_spill] sm:$0xff] %v10291_v31  ;;  %v617_v52 = vor.u32 %v13877_v15, %v605_v14  ;;  %v13890_v14 = vshll.u32 %v10305_v16, 16 }
  0xac   : > { %v10319_v15 = vsel %vm398_vm0, %v641_v3, %v645_v30  ;;  %v657_v12 = vor.u32 %v13891_v61, %v645_v30 }
  0xad   : > { %14073 = vst [vmem:[#allocation30_spill] sm:$0xff] %v10319_v15  ;;  %v637_v3 = vrot.slane %v13890_v14, 1  ;;  %v14076_v14 = vshll.u32 %v9700_v2, 16 }
  0xaf   : > { %3422 = vmatmul.mubr.bf16.gmra.mrb[48].mxu1 %v10214_v39  ;;  %v10311_v39 = vcombine.high %v232_v63, %v232_v63  ;;  %v799_v61 = vrot.slane %v14076_v14, 2  ;;  %v9377_v14 = vld [vmem:[%s9642_s17] ss:$8 sps:$4 sm:$0xff]  }
  0xb0   : > { %3615 = vmatmul.mubr.bf16.gmra.mrb[48].mxu0 %v10286_v46  ;;  %3431 = vmatprep.mubr.bf16.mxu1 %v10223_v11  ;;  %v10314_v46 = vsel %vm398_vm0, %v617_v52, %v621_v38  ;;  %v10331_v52 = vcombine.low %v232_v63, %v232_v63  ;;  %v696_v53 = vrot.slane %v9377_v14, 1 }
  0xb1   : > { %3624 = vmatprep.mubr.bf16.mxu0 %v10291_v31  ;;  %14072 = vst [vmem:[#allocation29_spill] sm:$0xff] %v10314_v46  ;;  %v13892_v31 = vshrl.u32 %v10270_v37, 16  ;;  %v13889_v49 = vshll.u32 %v10311_v39, 16 }
  0xb2   : > { %v13897_v54 = vshll.u32 %v10331_v52, 16 }
  0xb3   : > { %v633_v27 = vor.u32 %v13892_v31, %v621_v38  ;;  %v661_v62 = vrot.slane %v13889_v49, 1  ;;  %v14077_v31 = vshrl.u32 %v9700_v2, 16  ;;  %v9378_v2 = vld [vmem:[%s9642_s17 + $0x10] ss:$8 sps:$4 sm:$0xff]  }
  0xb4   : > { %v653_v30 = vrot.slane %v13897_v54, 1  ;;  %v14080_v54 = vshrl.u32 %v9683_v60, 16 }
  0xb5   : > { %v10343_v38 = vsel %vm398_vm0, %v657_v12, %v661_v62  ;;  %v9376_v12 = vld [vmem:[%s9642_s17 + $0x14] ss:$8 sps:$4 sm:$0xff]  }
  0xb6   : > { %14075 = vst [vmem:[#allocation32_spill] sm:$0xff] %v10343_v38  ;;  %v700_v62 = vrot.slane %v9376_v12, 1 }
  0xb7   : > { %3432 = vmatmul.mubr.bf16.gmra.mrb[52].mxu1 %v10242_v29 }
  0xb8   : > { %3625 = vmatmul.mubr.bf16.gmra.mrb[52].mxu0 %v10314_v46  ;;  %3441 = vmatprep.mubr.bf16.mxu1 %v10251_v8  ;;  %v10338_v46 = vsel %vm398_vm0, %v633_v27, %v637_v3  ;;  %v9375_v27 = vld [vmem:[%s9642_s17 + $0x4] ss:$8 sps:$4 sm:$0xff]  }
  0xb9   : > { %3634 = vmatprep.mubr.bf16.mxu0 %v10319_v15  ;;  %14074 = vst [vmem:[#allocation31_spill] sm:$0xff] %v10338_v46  ;;  %v13898_v15 = vshrl.u32 %v10305_v16, 16  ;;  %v699_v49 = vrot.slane %v9375_v27, 1 }
  0xbb   : > { %v649_v63 = vor.u32 %v13898_v15, %v637_v3  ;;  %v10363_v3 = vsel %vm695_vm1, %v699_v49, %v700_v62  ;;  %v795_v15 = vrot.slane %v14080_v54, 1  ;;  %v14081_v49 = vshll.u32 %v9683_v60, 16  ;;  %v8735_v54 = vld [vmem:[%s13800_s1 + $0x900] ss:$24 sps:$4 sm:$0xff]  }
  0xbc   : > { %14079 = vst [vmem:[#allocation34_spill] sm:$0xff] %v10363_v3  ;;  %v8762_v60 = vld [vmem:[%s13800_s1 + $0x308] ss:$24 sps:$4 sm:$0xff]  }
  0xbd   : > { %v796_v42 = vrot.slane %v14081_v49, 2  ;;  %v8738_v49 = vld [vmem:[%s13800_s1 + $0x930] ss:$24 sps:$4 sm:$0xff]  }
  0xbf   : > { %3442 = vmatmul.mubr.bf16.gmra.mrb[56].mxu1 %v10270_v37 }
  0xc0   : > { %3635 = vmatmul.mubr.bf16.gmra.mrb[56].mxu0 %v10338_v46  ;;  %3451 = vmatprep.mubr.bf16.mxu1 %v10279_v10  ;;  %v10360_v46 = vsel %vm398_vm0, %v649_v63, %v653_v30  ;;  %v9379_v63 = vld [vmem:[%s9642_s17 + $0x24] ss:$8 sps:$4 sm:$0xff]  }
  0xc1   : > { %3644 = vmatprep.mubr.bf16.mxu0 %v10343_v38  ;;  %v798_v38 = vrot.slane %v14077_v31, 1  ;;  %14078 = vst [vmem:[#allocation33_spill] sm:$0xff] %v10360_v46  ;;  %v697_v31 = vrot.slane %v9378_v2, 1  ;;  %v704_v30 = vrot.slane %v9379_v63, 1 }
  0xc3   : > { %v10372_v34 = vor.u32 %v799_v61, %v798_v38  ;;  %v10390_v61 = vsel %vm695_vm1, %v700_v62, %v704_v30 }
  0xc4   : > { %14083 = vst [vmem:[#allocation36_spill] sm:$0xff] %v10390_v61 }
  0xc7   : > { %3452 = vmatmul.mubr.bf16.gmra.mrb[60].mxu1 %v10305_v16 }
  0xc8   : > { %3645 = vmatmul.mubr.bf16.gmra.mrb[60].mxu0 %v10360_v46  ;;  %4073 = vmatprep.mubr.bf16.mxu1 %v9375_v27  ;;  %v8740_v27 = vld [vmem:[%s13800_s1 + $0x934] ss:$24 sps:$4 sm:$0xff]   ;;  %v10384_v46 = vsel %vm695_vm1, %v696_v53, %v697_v31  ;;  %v8743_v53 = vld [vmem:[%s13800_s1 + $0x964] ss:$24 sps:$4 sm:$0xff]  }
  0xc9   : > { %3687 = vmatprep.mubr.bf16.mxu0 %v10363_v3  ;;  %v797_v3 = vor.u32 %v796_v42, %v795_v15  ;;  %14082 = vst [vmem:[#allocation35_spill] sm:$0xff] %v10384_v46  ;;  %v8767_v42 = vld [vmem:[%s13800_s1 + $0x33c] ss:$24 sps:$4 sm:$0xff]   ;;  %v9380_v15 = vld [vmem:[%s9642_s17 + $0x20] ss:$8 sps:$4 sm:$0xff]  }
  0xca   : > { %v702_v62 = vrot.slane %v9380_v15, 1 }
  0xcb   : > { %v10394_v38 = vsel %vm794_vm2, %v797_v3, %v10372_v34  ;;  %v8765_v3 = vld [vmem:[%s13800_s1 + $0x338] ss:$24 sps:$4 sm:$0xff]  }
  0xcf   : > { %4074 = vmatmul.mubr.bf16.vlgmr.msra.gmra.mrb[64].mxu1 %v9377_v14  ;;  %v9381_v14 = vld [vmem:[%s9642_s17 + $0x34] ss:$8 sps:$4 sm:$0xff]  }
  0xd0   : > { %3688 = vmatmul.mubr.bf16.vlgmr.msra.gmra.mrb[0].mxu0 %v10384_v46  ;;  %4083 = vmatprep.mubr.bf16.mxu1 %v9376_v12  ;;  %v708_v46 = vrot.slane %v9381_v14, 1  ;;  %v8746_v12 = vld [vmem:[%s13800_s1 + $0x994] ss:$24 sps:$4 sm:$0xff]  }
  0xd1   : > { %3849 = vmatpush1.bf16.msra.mxu0 %v8735_v54  ;;  %3697 = vmatprep.mubr.bf16.mxu0 %v10390_v61  ;;  %v8773_v54 = vld [vmem:[%s13800_s1 + $0x36c] ss:$24 sps:$4 sm:$0xff]   ;;  %v10419_v61 = vsel %vm695_vm1, %v697_v31, %v702_v62  ;;  %v8744_v31 = vld [vmem:[%s13800_s1 + $0x990] ss:$24 sps:$4 sm:$0xff]  }
  0xd2   : > { %3850 = vmatprep.subr.bf16.mxu0 %v8740_v27  ;;  %4235 = vmatpush1.bf16.msra.mxu1 %v8762_v60  ;;  %14084 = vst [vmem:[#allocation37_spill] sm:$0xff] %v10419_v61  ;;  %v8771_v27 = vld [vmem:[%s13800_s1 + $0x368] ss:$24 sps:$4 sm:$0xff]   ;;  %v10428_v60 = vsel %vm695_vm1, %v704_v30, %v708_v46  ;;  %v8749_v30 = vld [vmem:[%s13800_s1 + $0x9c4] ss:$24 sps:$4 sm:$0xff]  }
  0xd3   : > { %4236 = vmatprep.subr.bf16.mxu1 %v8767_v42  ;;  %14085 = vst [vmem:[#allocation38_spill] sm:$0xff] %v10428_v60  ;;  %v9382_v42 = vld [vmem:[%s9642_s17 + $0x30] ss:$8 sps:$4 sm:$0xff]  }
  0xd4   : > { %v706_v58 = vrot.slane %v9382_v42, 1 }
  0xd5   : > { %3851 = vmatpush1.bf16.msra.mxu0 %v8738_v49  ;;  %v8776_v49 = vld [vmem:[%s13800_s1 + $0x39c] ss:$24 sps:$4 sm:$0xff]  }
  0xd6   : > { %3852 = vmatprep.subr.bf16.mxu0 %v8743_v53  ;;  %4237 = vmatpush1.bf16.msra.mxu1 %v8765_v3  ;;  %v9383_v53 = vld [vmem:[%s9642_s17 + $0x44] ss:$8 sps:$4 sm:$0xff]  }
  0xd7   : > { %4084 = vmatmul.mubr.bf16.gmra.mrb[68].mxu1 %v9378_v2  ;;  %v8774_v2 = vld [vmem:[%s13800_s1 + $0x398] ss:$24 sps:$4 sm:$0xff]   ;;  %v712_v3 = vrot.slane %v9383_v53, 1  ;;  %4238 = vmatprep.subr.bf16.mxu1 %v8773_v54  ;;  %v8780_v54 = vld [vmem:[%s13800_s1 + $0x3c8] ss:$24 sps:$4 sm:$0xff]  }
  0xd8   : > { %3698 = vmatmul.mubr.bf16.gmra.mrb[4].mxu0 %v10419_v61  ;;  %4093 = vmatprep.mubr.bf16.mxu1 %v9379_v63  ;;  %v8747_v63 = vld [vmem:[%s13800_s1 + $0x9c0] ss:$24 sps:$4 sm:$0xff]   ;;  %v10453_v61 = vsel %vm695_vm1, %v702_v62, %v706_v58  ;;  %v8750_v62 = vld [vmem:[%s13800_s1 + $0x9f0] ss:$24 sps:$4 sm:$0xff]  }
  0xd9   : > { %3707 = vmatprep.mubr.bf16.mxu0 %v10428_v60  ;;  %3853 = vmatpush1.bf16.msra.mxu0 %v8741_v28  ;;  %v8782_v60 = vld [vmem:[%s13800_s1 + $0x3cc] ss:$24 sps:$4 sm:$0xff]   ;;  %14086 = vst [vmem:[#allocation39_spill] sm:$0xff] %v10453_v61 }
  0xda   : > { %3854 = vmatprep.subr.bf16.mxu0 %v8746_v12  ;;  %4239 = vmatpush1.bf16.msra.mxu1 %v8771_v27  ;;  %v8752_v28 = vld [vmem:[%s13800_s1 + $0x9f4] ss:$24 sps:$4 sm:$0xff]   ;;  %v10462_v12 = vsel %vm695_vm1, %v708_v46, %v712_v3 }
  0xdb   : > { %4240 = vmatprep.subr.bf16.mxu1 %v8776_v49  ;;  %14087 = vst [vmem:[#allocation40_spill] sm:$0xff] %v10462_v12  ;;  %v8785_v27 = vld [vmem:[%s13800_s1 + $0x3fc] ss:$24 sps:$4 sm:$0xff]   ;;  %v9384_v49 = vld [vmem:[%s9642_s17 + $0x40] ss:$8 sps:$4 sm:$0xff]  }
  0xdc   : > { %v710_v46 = vrot.slane %v9384_v49, 1 }
  0xdd   : > { %3855 = vmatpush1.bf16.msra.mxu0 %v8744_v31  ;;  %v8755_v31 = vld [vmem:[%s13800_s1 + $0xa24] ss:$24 sps:$4 sm:$0xff]  }
  0xde   : > { %3856 = vmatprep.subr.bf16.mxu0 %v8749_v30  ;;  %4241 = vmatpush1.bf16.msra.mxu1 %v8774_v2  ;;  %v9385_v30 = vld [vmem:[%s9642_s17 + $0x54] ss:$8 sps:$4 sm:$0xff]  }
  0xdf   : > { %4094 = vmatmul.mubr.bf16.gmra.mrb[72].mxu1 %v9380_v15  ;;  %v8783_v15 = vld [vmem:[%s13800_s1 + $0x3f8] ss:$24 sps:$4 sm:$0xff]   ;;  %v716_v2 = vrot.slane %v9385_v30, 1  ;;  %4242 = vmatprep.subr.bf16.mxu1 %v8782_v60  ;;  %v8758_v60 = vld [vmem:[%s13800_s1 + $0xa54] ss:$24 sps:$4 sm:$0xff]  }
  0xe0   : > { %3708 = vmatmul.mubr.bf16.gmra.mrb[8].mxu0 %v10453_v61  ;;  %4103 = vmatprep.mubr.bf16.mxu1 %v9381_v14  ;;  %v8753_v14 = vld [vmem:[%s13800_s1 + $0xa20] ss:$24 sps:$4 sm:$0xff]   ;;  %v10487_v61 = vsel %vm695_vm1, %v706_v58, %v710_v46  ;;  %v8756_v58 = vld [vmem:[%s13800_s1 + $0xa50] ss:$24 sps:$4 sm:$0xff]  }
  0xe1   : > { %3717 = vmatprep.mubr.bf16.mxu0 %v10462_v12  ;;  %3857 = vmatpush1.bf16.msra.mxu0 %v8747_v63  ;;  %v8791_v12 = vld [vmem:[%s13800_s1 + $0x42c] ss:$24 sps:$4 sm:$0xff]   ;;  %14088 = vst [vmem:[#allocation41_spill] sm:$0xff] %v10487_v61  ;;  %v8789_v63 = vld [vmem:[%s13800_s1 + $0x428] ss:$24 sps:$4 sm:$0xff]  }
  0xe2   : > { %3858 = vmatprep.subr.bf16.mxu0 %v8752_v28  ;;  %4243 = vmatpush1.bf16.msra.mxu1 %v8780_v54  ;;  %v10496_v28 = vsel %vm695_vm1, %v712_v3, %v716_v2  ;;  %v8794_v54 = vld [vmem:[%s13800_s1 + $0x45c] ss:$24 sps:$4 sm:$0xff]  }
  0xe3   : > { %4244 = vmatprep.subr.bf16.mxu1 %v8785_v27  ;;  %14089 = vst [vmem:[#allocation42_spill] sm:$0xff] %v10496_v28  ;;  %v9386_v27 = vld [vmem:[%s9642_s17 + $0x50] ss:$8 sps:$4 sm:$0xff]  }
  0xe4   : > { %v714_v3 = vrot.slane %v9386_v27, 1 }
  0xe5   : > { %3859 = vmatpush1.bf16.msra.mxu0 %v8750_v62  ;;  %v8761_v62 = vld [vmem:[%s13800_s1 + $0xa84] ss:$24 sps:$4 sm:$0xff]  }
  0xe6   : > { %3860 = vmatprep.subr.bf16.mxu0 %v8755_v31  ;;  %4245 = vmatpush1.bf16.msra.mxu1 %v8783_v15  ;;  %v9387_v31 = vld [vmem:[%s9642_s17 + $0x64] ss:$8 sps:$4 sm:$0xff]  }
  0xe7   : > { %4104 = vmatmul.mubr.bf16.gmra.mrb[76].mxu1 %v9382_v42  ;;  %v720_v15 = vrot.slane %v9387_v31, 1  ;;  %4246 = vmatprep.subr.bf16.mxu1 %v8791_v12  ;;  %v8792_v42 = vld [vmem:[%s13800_s1 + $0x458] ss:$24 sps:$4 sm:$0xff]  }
  0xe8   : > { %3718 = vmatmul.mubr.bf16.gmra.mrb[12].mxu0 %v10487_v61  ;;  %4113 = vmatprep.mubr.bf16.mxu1 %v9383_v53  ;;  %v10515_v53 = vsel %vm695_vm1, %v710_v46, %v714_v3  ;;  %v8759_v12 = vld [vmem:[%s13800_s1 + $0xa80] ss:$24 sps:$4 sm:$0xff]  }
  0xe9   : > { %3727 = vmatprep.mubr.bf16.mxu0 %v10496_v28  ;;  %3861 = vmatpush1.bf16.msra.mxu0 %v8753_v14  ;;  %14090 = vst [vmem:[#allocation43_spill] sm:$0xff] %v10515_v53  ;;  %v10518_v28 = vsel %vm695_vm1, %v716_v2, %v720_v15  ;;  %v8800_v14 = vld [vmem:[%s13800_s1 + $0x48c] ss:$24 sps:$4 sm:$0xff]   ;;  %v8798_v46 = vld [vmem:[%s13800_s1 + $0x488] ss:$24 sps:$4 sm:$0xff]  }
  0xea   : > { %3862 = vmatprep.subr.bf16.mxu0 %v8758_v60  ;;  %4247 = vmatpush1.bf16.msra.mxu1 %v8789_v63  ;;  %14091 = vst [vmem:[#allocation44_spill] sm:$0xff] %v10518_v28  ;;  %v8770_v60 = vld [vmem:[%s13800_s1 + $0xab4] ss:$24 sps:$4 sm:$0xff]   ;;  %v9388_v63 = vld [vmem:[%s9642_s17 + $0x60] ss:$8 sps:$4 sm:$0xff]  }
  0xeb   : > { %4248 = vmatprep.subr.bf16.mxu1 %v8794_v54  ;;  %v8803_v2 = vld [vmem:[%s13800_s1 + $0x4bc] ss:$24 sps:$4 sm:$0xff]  }
  0xec   : > { %v9389_v54 = vld [vmem:[%s9642_s17 + $0x74] ss:$8 sps:$4 sm:$0xff]  }
  0xed   : > { %3863 = vmatpush1.bf16.msra.mxu0 %v8756_v58  ;;  %v718_v58 = vrot.slane %v9388_v63, 1 }
  0xee   : > { %3864 = vmatprep.subr.bf16.mxu0 %v8761_v62  ;;  %4249 = vmatpush1.bf16.msra.mxu1 %v8792_v42  ;;  %v724_v62 = vrot.slane %v9389_v54, 1  ;;  %v8768_v42 = vld [vmem:[%s13800_s1 + $0xab0] ss:$24 sps:$4 sm:$0xff]  }
  0xef   : > { %4114 = vmatmul.mubr.bf16.gmra.mrb[80].mxu1 %v9384_v49  ;;  %4250 = vmatprep.subr.bf16.mxu1 %v8800_v14  ;;  %v8779_v49 = vld [vmem:[%s13800_s1 + $0xae4] ss:$24 sps:$4 sm:$0xff]   ;;  %v8777_v14 = vld [vmem:[%s13800_s1 + $0xae0] ss:$24 sps:$4 sm:$0xff]  }
  0xf0   : > { %3728 = vmatmul.mubr.bf16.gmra.mrb[16].mxu0 %v10515_v53  ;;  %4123 = vmatprep.mubr.bf16.mxu1 %v9385_v30  ;;  %v8801_v30 = vld [vmem:[%s13800_s1 + $0x4b8] ss:$24 sps:$4 sm:$0xff]  }
  0xf1   : > { %3737 = vmatprep.mubr.bf16.mxu0 %v10518_v28  ;;  %3865 = vmatpush1.bf16.msra.mxu0 %v8759_v12  ;;  %v10549_v28 = vsel %vm695_vm1, %v714_v3, %v718_v58  ;;  %v10552_v12 = vsel %vm695_vm1, %v720_v15, %v724_v62  ;;  %v8807_v3 = vld [vmem:[%s13800_s1 + $0x4e8] ss:$24 sps:$4 sm:$0xff]   ;;  %v8812_v15 = vld [vmem:[%s13800_s1 + $0x51c] ss:$24 sps:$4 sm:$0xff]  }
  0xf2   : > { %3866 = vmatprep.subr.bf16.mxu0 %v8770_v60  ;;  %4251 = vmatpush1.bf16.msra.mxu1 %v8798_v46  ;;  %14092 = vst [vmem:[#allocation45_spill] sm:$0xff] %v10549_v28  ;;  %14093 = vst [vmem:[#allocation46_spill] sm:$0xff] %v10552_v12  ;;  %v8809_v60 = vld [vmem:[%s13800_s1 + $0x4ec] ss:$24 sps:$4 sm:$0xff]  }
  0xf3   : > { %4252 = vmatprep.subr.bf16.mxu1 %v8803_v2  ;;  %v8788_v46 = vld [vmem:[%s13800_s1 + $0xb14] ss:$24 sps:$4 sm:$0xff]   ;;  %v9390_v2 = vld [vmem:[%s9642_s17 + $0x70] ss:$8 sps:$4 sm:$0xff]  }
  0xf5   : > { %3867 = vmatpush1.bf16.msra.mxu0 %v8768_v42  ;;  %v722_v42 = vrot.slane %v9390_v2, 1 }
  0xf6   : > { %3868 = vmatprep.subr.bf16.mxu0 %v8779_v49  ;;  %4253 = vmatpush1.bf16.msra.mxu1 %v8801_v30  ;;  %v9391_v49 = vld [vmem:[%s9642_s17 + $0x84] ss:$8 sps:$4 sm:$0xff]   ;;  %v8786_v30 = vld [vmem:[%s13800_s1 + $0xb10] ss:$24 sps:$4 sm:$0xff]  }
  0xf7   : > { %4124 = vmatmul.mubr.bf16.gmra.mrb[84].mxu1 %v9386_v27  ;;  %v728_v53 = vrot.slane %v9391_v49, 1  ;;  %4254 = vmatprep.subr.bf16.mxu1 %v8809_v60  ;;  %v8797_v27 = vld [vmem:[%s13800_s1 + $0xb44] ss:$24 sps:$4 sm:$0xff]   ;;  %v8795_v60 = vld [vmem:[%s13800_s1 + $0xb40] ss:$24 sps:$4 sm:$0xff]  }
  0xf8   : > { %3738 = vmatmul.mubr.bf16.gmra.mrb[20].mxu0 %v10549_v28  ;;  %4133 = vmatprep.mubr.bf16.mxu1 %v9387_v31  ;;  %v8810_v31 = vld [vmem:[%s13800_s1 + $0x518] ss:$24 sps:$4 sm:$0xff]  }
  0xf9   : > { %3747 = vmatprep.mubr.bf16.mxu0 %v10552_v12  ;;  %3869 = vmatpush1.bf16.msra.mxu0 %v8777_v14  ;;  %v10583_v12 = vsel %vm695_vm1, %v718_v58, %v722_v42  ;;  %v10586_v14 = vsel %vm695_vm1, %v724_v62, %v728_v53  ;;  %v8816_v58 = vld [vmem:[%s13800_s1 + $0x548] ss:$24 sps:$4 sm:$0xff]   ;;  %v8821_v62 = vld [vmem:[%s13800_s1 + $0x57c] ss:$24 sps:$4 sm:$0xff]  }
  0xfa   : > { %3870 = vmatprep.subr.bf16.mxu0 %v8788_v46  ;;  %4255 = vmatpush1.bf16.msra.mxu1 %v8807_v3  ;;  %14094 = vst [vmem:[#allocation47_spill] sm:$0xff] %v10583_v12  ;;  %14095 = vst [vmem:[#allocation48_spill] sm:$0xff] %v10586_v14  ;;  %v8818_v46 = vld [vmem:[%s13800_s1 + $0x54c] ss:$24 sps:$4 sm:$0xff]  }
  0xfb   : > { %4256 = vmatprep.subr.bf16.mxu1 %v8812_v15  ;;  %v8806_v3 = vld [vmem:[%s13800_s1 + $0xb74] ss:$24 sps:$4 sm:$0xff]   ;;  %v9392_v15 = vld [vmem:[%s9642_s17 + $0x80] ss:$8 sps:$4 sm:$0xff]  }
  0xfd   : > { %3871 = vmatpush1.bf16.msra.mxu0 %v8786_v30  ;;  %v726_v30 = vrot.slane %v9392_v15, 1 }
  0xfe   : > { %3872 = vmatprep.subr.bf16.mxu0 %v8797_v27  ;;  %4257 = vmatpush1.bf16.msra.mxu1 %v8810_v31  ;;  %v9393_v27 = vld [vmem:[%s9642_s17 + $0x94] ss:$8 sps:$4 sm:$0xff]   ;;  %v8804_v31 = vld [vmem:[%s13800_s1 + $0xb70] ss:$24 sps:$4 sm:$0xff]  }
  0xff   : > { %4134 = vmatmul.mubr.bf16.gmra.mrb[88].mxu1 %v9388_v63  ;;  %v732_v28 = vrot.slane %v9393_v27, 1  ;;  %4258 = vmatprep.subr.bf16.mxu1 %v8818_v46  ;;  %v8815_v63 = vld [vmem:[%s13800_s1 + $0xba4] ss:$24 sps:$4 sm:$0xff]   ;;  %v8813_v46 = vld [vmem:[%s13800_s1 + $0xba0] ss:$24 sps:$4 sm:$0xff]  }
 0x100   : > { %3748 = vmatmul.mubr.bf16.gmra.mrb[24].mxu0 %v10583_v12  ;;  %4143 = vmatprep.mubr.bf16.mxu1 %v9389_v54  ;;  %v8819_v54 = vld [vmem:[%s13800_s1 + $0x578] ss:$24 sps:$4 sm:$0xff]  }
 0x101   : > { %3757 = vmatprep.mubr.bf16.mxu0 %v10586_v14  ;;  %3873 = vmatpush1.bf16.msra.mxu0 %v8795_v60  ;;  %v10617_v14 = vsel %vm695_vm1, %v722_v42, %v726_v30  ;;  %v10620_v60 = vsel %vm695_vm1, %v728_v53, %v732_v28  ;;  %v8824_v42 = vld [vmem:[%s13800_s1 + $0xbd4] ss:$24 sps:$4 sm:$0xff]   ;;  %v8825_v53 = vld [vmem:[%s13800_s1 + $0x5a8] ss:$24 sps:$4 sm:$0xff]  }
 0x102   : > { %3874 = vmatprep.subr.bf16.mxu0 %v8806_v3  ;;  %4259 = vmatpush1.bf16.msra.mxu1 %v8816_v58  ;;  %14096 = vst [vmem:[#allocation49_spill] sm:$0xff] %v10617_v14  ;;  %14097 = vst [vmem:[#allocation50_spill] sm:$0xff] %v10620_v60  ;;  %v8827_v3 = vld [vmem:[%s13800_s1 + $0x5ac] ss:$24 sps:$4 sm:$0xff]   ;;  %v8830_v58 = vld [vmem:[%s13800_s1 + $0x5dc] ss:$24 sps:$4 sm:$0xff]  }
 0x103   : > { %4260 = vmatprep.subr.bf16.mxu1 %v8821_v62  ;;  %v9394_v62 = vld [vmem:[%s9642_s17 + $0x90] ss:$8 sps:$4 sm:$0xff]  }
 0x104   : > { %v8822_v12 = vld [vmem:[%s13800_s1 + $0xbd0] ss:$24 sps:$4 sm:$0xff]  }
 0x105   : > { %3875 = vmatpush1.bf16.msra.mxu0 %v8804_v31  ;;  %v730_v31 = vrot.slane %v9394_v62, 1 }
 0x106   : > { %3876 = vmatprep.subr.bf16.mxu0 %v8815_v63  ;;  %4261 = vmatpush1.bf16.msra.mxu1 %v8819_v54  ;;  %v9395_v63 = vld [vmem:[%s9642_s17 + $0xa4] ss:$8 sps:$4 sm:$0xff]  }
 0x107   : > { %4144 = vmatmul.mubr.bf16.gmra.mrb[92].mxu1 %v9390_v2  ;;  %v736_v54 = vrot.slane %v9395_v63, 1  ;;  %4262 = vmatprep.subr.bf16.mxu1 %v8827_v3  ;;  %v8828_v2 = vld [vmem:[%s13800_s1 + $0x5d8] ss:$24 sps:$4 sm:$0xff]   ;;  %v8857_v3 = vld [vmem:[%s13800_s1 + $0x60c] ss:$24 sps:$4 sm:$0xff]  }
 0x108   : > { %3758 = vmatmul.mubr.bf16.gmra.mrb[28].mxu0 %v10617_v14  ;;  %4153 = vmatprep.mubr.bf16.mxu1 %v9391_v49  ;;  %v8833_v49 = vld [vmem:[%s13800_s1 + $0x14] ss:$24 sps:$4 sm:$0xff]  }
 0x109   : > { %3767 = vmatprep.mubr.bf16.mxu0 %v10620_v60  ;;  %3877 = vmatpush1.bf16.msra.mxu0 %v8813_v46  ;;  %v10651_v46 = vsel %vm695_vm1, %v726_v30, %v730_v31  ;;  %v10654_v60 = vsel %vm695_vm1, %v732_v28, %v736_v54  ;;  %v9396_v30 = vld [vmem:[%s9642_s17 + $0xa0] ss:$8 sps:$4 sm:$0xff]  }
 0x10a   : > { %3878 = vmatprep.subr.bf16.mxu0 %v8824_v42  ;;  %4263 = vmatpush1.bf16.msra.mxu1 %v8825_v53  ;;  %14098 = vst [vmem:[#allocation51_spill] sm:$0xff] %v10651_v46  ;;  %14099 = vst [vmem:[#allocation52_spill] sm:$0xff] %v10654_v60  ;;  %v734_v42 = vrot.slane %v9396_v30, 1  ;;  %v9397_v53 = vld [vmem:[%s9642_s17 + $0xb4] ss:$8 sps:$4 sm:$0xff]  }
 0x10b   : > { %4264 = vmatprep.subr.bf16.mxu1 %v8830_v58  ;;  %v740_v28 = vrot.slane %v9397_v53, 1 }
 0x10d   : > { %3879 = vmatpush1.bf16.msra.mxu0 %v8822_v12  ;;  %v10664_v12 = vsel %vm695_vm1, %v730_v31, %v734_v42  ;;  %v10667_v58 = vsel %vm695_vm1, %v736_v54, %v740_v28 }
 0x10e   : > { %4265 = vmatpush1.bf16.msra.mxu1 %v8828_v2  ;;  %4813 = vmatprep.subr.bf16.mxu0 %v8833_v49  ;;  %14100 = vst [vmem:[#allocation53_spill] sm:$0xff] %v10664_v12  ;;  %14101 = vst [vmem:[#allocation54_spill] sm:$0xff] %v10667_v58  ;;  %v9399_v2 = vld [vmem:[%s9642_s17 + $0xc4] ss:$8 sps:$4 sm:$0xff]  }
 0x10f   : > { %4154 = vmatmul.mubr.bf16.gmra.mrb[96].mxu1 %v9392_v15  ;;  %4427 = vmatprep.subr.bf16.mxu1 %v8857_v3  ;;  %v9398_v15 = vld [vmem:[%s9642_s17 + $0xb0] ss:$8 sps:$4 sm:$0xff]   ;;  %v744_v49 = vrot.slane %v9399_v2, 1 }
 0x110   : > { %3768 = vmatmul.mubr.bf16.gmra.mrb[32].mxu0 %v10651_v46  ;;  %4163 = vmatprep.mubr.bf16.mxu1 %v9393_v27  ;;  %v738_v27 = vrot.slane %v9398_v15, 1 }
 0x111   : > { %3777 = vmatprep.mubr.bf16.mxu0 %v10654_v60  ;;  %v10677_v31 = vsel %vm695_vm1, %v740_v28, %v744_v49 }
 0x112   : > { %v10674_v60 = vsel %vm695_vm1, %v734_v42, %v738_v27  ;;  %14103 = vst [vmem:[#allocation56_spill] sm:$0xff] %v10677_v31 }
 0x113   : > { %14102 = vst [vmem:[#allocation55_spill] sm:$0xff] %v10674_v60 }
 0x117   : > { %4164 = vmatmul.mubr.bf16.gmra.mrb[100].mxu1 %v9394_v62  ;;  %v9400_v62 = vld [vmem:[%s9642_s17 + $0xc0] ss:$8 sps:$4 sm:$0xff]  }
 0x118   : > { %3778 = vmatmul.mubr.bf16.gmra.mrb[36].mxu0 %v10664_v12  ;;  %4173 = vmatprep.mubr.bf16.mxu1 %v9395_v63  ;;  %v742_v54 = vrot.slane %v9400_v62, 1  ;;  %v748_v63 = vrot.slane %v10223_v11, 1 }
 0x119   : > { %3787 = vmatprep.mubr.bf16.mxu0 %v10667_v58 }
 0x11a   : > { %v10684_v3 = vsel %vm695_vm1, %v738_v27, %v742_v54  ;;  %v10687_v42 = vsel %vm695_vm1, %v744_v49, %v748_v63  ;;  %v9401_v27 = vld [vmem:[%s9642_s17 + $0xd4] ss:$8 sps:$4 sm:$0xff]  }
 0x11b   : > { %14104 = vst [vmem:[#allocation57_spill] sm:$0xff] %v10684_v3  ;;  %14105 = vst [vmem:[#allocation58_spill] sm:$0xff] %v10687_v42 }
 0x11f   : > { %4174 = vmatmul.mubr.bf16.gmra.mrb[104].mxu1 %v9396_v30  ;;  %v746_v30 = vrot.slane %v10242_v29, 1 }
 0x120   : > { %3788 = vmatmul.mubr.bf16.gmra.mrb[40].mxu0 %v10674_v60  ;;  %4183 = vmatprep.mubr.bf16.mxu1 %v9397_v53  ;;  %v752_v53 = vrot.slane %v10251_v8, 1 }
 0x121   : > { %3797 = vmatprep.mubr.bf16.mxu0 %v10677_v31  ;;  %v10694_v28 = vsel %vm695_vm1, %v742_v54, %v746_v30 }
 0x122   : > { %14106 = vst [vmem:[#allocation59_spill] sm:$0xff] %v10694_v28  ;;  %v10697_v31 = vsel %vm695_vm1, %v748_v63, %v752_v53  ;;  %v760_v63 = vrot.slane %v10311_v39, 1 }
 0x123   : > { %14107 = vst [vmem:[#allocation60_spill] sm:$0xff] %v10697_v31 }
 0x127   : > { %4184 = vmatmul.mubr.bf16.gmra.mrb[108].mxu1 %v9398_v15  ;;  %v750_v15 = vrot.slane %v10270_v37, 1 }
 0x128   : > { %3798 = vmatmul.mubr.bf16.gmra.mrb[44].mxu0 %v10684_v3  ;;  %4193 = vmatprep.mubr.bf16.mxu1 %v9399_v2  ;;  %v756_v2 = vrot.slane %v10279_v10, 1  ;;  %v14113_v3 = vshll.u32 %v9660_v50, 16 }
 0x129   : > { %3807 = vmatprep.mubr.bf16.mxu0 %v10687_v42  ;;  %v10705_v49 = vsel %vm695_vm1, %v746_v30, %v750_v15 }
 0x12a   : > { %14108 = vst [vmem:[#allocation61_spill] sm:$0xff] %v10705_v49  ;;  %v10708_v54 = vsel %vm695_vm1, %v752_v53, %v756_v2  ;;  %v10720_v30 = vsel %vm695_vm1, %v756_v2, %v760_v63  ;;  %v14110_v53 = vshrl.u32 %v9654_v48, 16  ;;  %v806_v60 = vrot.slane %v14113_v3, 2 }
 0x12b   : > { %14109 = vst [vmem:[#allocation62_spill] sm:$0xff] %v10708_v54 }
 0x12f   : > { %4194 = vmatmul.mubr.bf16.gmra.mrb[112].mxu1 %v9400_v62  ;;  %v754_v62 = vrot.slane %v10305_v16, 1 }
 0x130   : > { %3808 = vmatmul.mubr.bf16.gmra.mrb[48].mxu0 %v10694_v28  ;;  %4203 = vmatprep.mubr.bf16.mxu1 %v9401_v27 }
 0x131   : > { %3817 = vmatprep.mubr.bf16.mxu0 %v10697_v31  ;;  %v10717_v27 = vsel %vm695_vm1, %v750_v15, %v754_v62  ;;  %v802_v31 = vrot.slane %v14110_v53, 1  ;;  %v758_v15 = vrot.slane %v10331_v52, 1 }
 0x137   : > { %4204 = vmatmul.mubr.bf16.gmra.mrb[116].mxu1 %v10242_v29 }
 0x138   : > { %3818 = vmatmul.mubr.bf16.gmra.mrb[52].mxu0 %v10705_v49  ;;  %4213 = vmatprep.mubr.bf16.mxu1 %v10251_v8  ;;  %v14111_v49 = vshll.u32 %v9654_v48, 16  ;;  %v10736_v48 = vsel %vm695_vm1, %v754_v62, %v758_v15  ;;  %v14117_v62 = vshll.u32 %v9745_v21, 16 }
 0x139   : > { %3827 = vmatprep.mubr.bf16.mxu0 %v10708_v54  ;;  %v14112_v54 = vshrl.u32 %v9660_v50, 16  ;;  %v14114_v50 = vshrl.u32 %v9714_v7, 16 }
 0x13a   : > { %v803_v28 = vrot.slane %v14111_v49, 2 }
 0x13b   : > { %v805_v42 = vrot.slane %v14112_v54, 1  ;;  %v813_v3 = vrot.slane %v14114_v50, 1  ;;  %v14115_v54 = vshll.u32 %v9714_v7, 16  ;;  %v810_v7 = vrot.slane %v14117_v62, 2 }
 0x13c   : > { %v804_v2 = vor.u32 %v803_v28, %v802_v31  ;;  %v8831_v31 = vld [vmem:[%s13800_s1 + $0x10] ss:$24 sps:$4 sm:$0xff]   ;;  %v14118_v50 = vshrl.u32 %v9748_v22, 16 }
 0x13d   : > { %v807_v63 = vor.u32 %v806_v60, %v805_v42  ;;  %v814_v53 = vrot.slane %v14115_v54, 2  ;;  %v14116_v42 = vshrl.u32 %v9745_v21, 16  ;;  %v14119_v54 = vshll.u32 %v9748_v22, 16  ;;  %v8863_v21 = vld [vmem:[%s13800_s1 + $0x63c] ss:$24 sps:$4 sm:$0xff]  }
 0x13e   : > { %v8834_v22 = vld [vmem:[%s13800_s1 + $0x40] ss:$24 sps:$4 sm:$0xff]  }
 0x13f   : > { %4214 = vmatmul.mubr.bf16.gmra.mrb[120].mxu1 %v10270_v37  ;;  %v10739_v49 = vsel %vm794_vm2, %v804_v2, %v807_v63  ;;  %v815_v60 = vor.u32 %v814_v53, %v813_v3  ;;  %v809_v28 = vrot.slane %v14116_v42, 1  ;;  %v8836_v2 = vld [vmem:[%s13800_s1 + $0x44] ss:$24 sps:$4 sm:$0xff]   ;;  %v821_v3 = vrot.slane %v14118_v50, 1  ;;  %v8855_v42 = vld [vmem:[%s13800_s1 + $0x608] ss:$24 sps:$4 sm:$0xff]  }
 0x140   : > { %3828 = vmatmul.mubr.bf16.gmra.mrb[56].mxu0 %v10717_v27  ;;  %4223 = vmatprep.mubr.bf16.mxu1 %v10279_v10  ;;  %v822_v53 = vrot.slane %v14119_v54, 2  ;;  %v8839_v50 = vld [vmem:[%s13800_s1 + $0x74] ss:$24 sps:$4 sm:$0xff]  }
 0x141   : > { %3837 = vmatprep.mubr.bf16.mxu0 %v10720_v30  ;;  %v10757_v15 = vsel %vm794_vm2, %v807_v63, %v815_v60  ;;  %v811_v63 = vor.u32 %v810_v7, %v809_v28  ;;  %v14120_v7 = vshrl.u32 %v9781_v36, 16 }
 0x142   : > { %v823_v62 = vor.u32 %v822_v53, %v821_v3 }
 0x143   : > { %v10787_v28 = vsel %vm794_vm2, %v10372_v34, %v811_v63  ;;  %v817_v54 = vrot.slane %v14120_v7, 1  ;;  %v14124_v34 = vshll.u32 %v9792_v40, 16  ;;  %v8866_v7 = vld [vmem:[%s13800_s1 + $0x66c] ss:$24 sps:$4 sm:$0xff]  }
 0x144   : > { %v10794_v53 = vsel %vm794_vm2, %v815_v60, %v823_v62  ;;  %v8864_v60 = vld [vmem:[%s13800_s1 + $0x668] ss:$24 sps:$4 sm:$0xff]  }
 0x145   : > { %14122 = vst [vmem:[#allocation63_spill] sm:$0xff] %v10794_v53 }
 0x147   : > { %4224 = vmatmul.mubr.bf16.gmra.mrb[124].mxu1 %v10305_v16 }
 0x148   : > { %3838 = vmatmul.mubr.bf16.gmra.mrb[60].mxu0 %v10736_v48  ;;  %4266 = vmatprep.mubr.bf16.mxu1 %v9697_v1 }
 0x149   : > { %3880 = vmatprep.mubr.bf16.mxu0 %v10739_v49 }
 0x14f   : > { %4267 = vmatmul.mubr.bf16.vlgmr.msra.gmra.mrb[64].mxu1 %v9755_v25 }
 0x150   : > { %3881 = vmatmul.mubr.bf16.vlgmr.msra.gmra.mrb[0].mxu0 %v10394_v38  ;;  %4276 = vmatprep.mubr.bf16.mxu1 %v9768_v32 }
 0x151   : > { %4814 = vmatpush1.bf16.msra.mxu0 %v8831_v31  ;;  %3890 = vmatprep.mubr.bf16.mxu0 %v10757_v15  ;;  %v8861_v31 = vld [vmem:[%s13800_s1 + $0x638] ss:$24 sps:$4 sm:$0xff]  }
 0x152   : > { %4815 = vmatprep.subr.bf16.mxu0 %v8836_v2  ;;  %4428 = vmatpush1.bf16.msra.mxu1 %v8855_v42  ;;  %v14121_v2 = vshll.u32 %v9781_v36, 16  ;;  %v8837_v42 = vld [vmem:[%s13800_s1 + $0x70] ss:$24 sps:$4 sm:$0xff]   ;;  %v8842_v36 = vld [vmem:[%s13800_s1 + $0xa4] ss:$24 sps:$4 sm:$0xff]  }
 0x153   : > { %4429 = vmatprep.subr.bf16.mxu1 %v8863_v21  ;;  %v14123_v21 = vshrl.u32 %v9792_v40, 16  ;;  %v8872_v40 = vld [vmem:[%s13800_s1 + $0x69c] ss:$24 sps:$4 sm:$0xff]  }
 0x154   : > { %v818_v3 = vrot.slane %v14121_v2, 2 }
 0x155   : > { %4816 = vmatpush1.bf16.msra.mxu0 %v8834_v22  ;;  %v829_v32 = vrot.slane %v14123_v21, 1  ;;  %v830_v22 = vrot.slane %v14124_v34, 2  ;;  %v8845_v21 = vld [vmem:[%s13800_s1 + $0xd4] ss:$24 sps:$4 sm:$0xff]   ;;  %v8870_v34 = vld [vmem:[%s13800_s1 + $0x698] ss:$24 sps:$4 sm:$0xff]  }
 0x156   : > { %4817 = vmatprep.subr.bf16.mxu0 %v8839_v50  ;;  %4430 = vmatpush1.bf16.msra.mxu1 %v8861_v31  ;;  %v819_v50 = vor.u32 %v818_v3, %v817_v54  ;;  %v8840_v31 = vld [vmem:[%s13800_s1 + $0xa0] ss:$24 sps:$4 sm:$0xff]  }
 0x157   : > { %4277 = vmatmul.mubr.bf16.gmra.mrb[68].mxu1 %v9795_v41  ;;  %v831_v2 = vor.u32 %v830_v22, %v829_v32  ;;  %4431 = vmatprep.subr.bf16.mxu1 %v8866_v7  ;;  %v14125_v32 = vshrl.u32 %v9819_v56, 16 }
 0x158   : > { %3891 = vmatmul.mubr.bf16.gmra.mrb[4].mxu0 %v10787_v28  ;;  %4286 = vmatprep.mubr.bf16.mxu1 %v9803_v45  ;;  %v10829_v54 = vsel %vm794_vm2, %v811_v63, %v819_v50  ;;  %v14128_v45 = vshll.u32 %v9838_v0, 16  ;;  %v8843_v63 = vld [vmem:[%s13800_s1 + $0xd0] ss:$24 sps:$4 sm:$0xff]  }
 0x159   : > { %3900 = vmatprep.mubr.bf16.mxu0 %v10794_v53  ;;  %4818 = vmatpush1.bf16.msra.mxu0 %v8837_v42  ;;  %v825_v3 = vrot.slane %v14125_v32, 1  ;;  %v14126_v42 = vshll.u32 %v9819_v56, 16  ;;  %v10836_v7 = vsel %vm794_vm2, %v823_v62, %v831_v2  ;;  %v8848_v56 = vld [vmem:[%s13800_s1 + $0x104] ss:$24 sps:$4 sm:$0xff]   ;;  %v8873_v62 = vld [vmem:[%s13800_s1 + $0x6c8] ss:$24 sps:$4 sm:$0xff]  }
 0x15a   : > { %4819 = vmatprep.subr.bf16.mxu0 %v8842_v36  ;;  %4432 = vmatpush1.bf16.msra.mxu1 %v8864_v60  ;;  %v14127_v36 = vshrl.u32 %v9838_v0, 16  ;;  %v838_v53 = vrot.slane %v14128_v45, 2  ;;  %v8881_v45 = vld [vmem:[%s13800_s1 + $0x6fc] ss:$24 sps:$4 sm:$0xff]   ;;  %v8879_v32 = vld [vmem:[%s13800_s1 + $0x6f8] ss:$24 sps:$4 sm:$0xff]  }
 0x15b   : > { %4433 = vmatprep.subr.bf16.mxu1 %v8872_v40  ;;  %v826_v22 = vrot.slane %v14126_v42, 2  ;;  %v8875_v40 = vld [vmem:[%s13800_s1 + $0x6cc] ss:$24 sps:$4 sm:$0xff]  }
 0x15c   : > { %v837_v60 = vrot.slane %v14127_v36, 1 }
 0x15d   : > { %4820 = vmatpush1.bf16.msra.mxu0 %v8840_v31  ;;  %v827_v0 = vor.u32 %v826_v22, %v825_v3  ;;  %v14131_v22 = vshll.u32 %v9871_v23, 16 }
 0x15e   : > { %4821 = vmatprep.subr.bf16.mxu0 %v8845_v21  ;;  %4434 = vmatpush1.bf16.msra.mxu1 %v8870_v34  ;;  %v839_v31 = vor.u32 %v838_v53, %v837_v60  ;;  %v8846_v21 = vld [vmem:[%s13800_s1 + $0x100] ss:$24 sps:$4 sm:$0xff]   ;;  %v8851_v34 = vld [vmem:[%s13800_s1 + $0x134] ss:$24 sps:$4 sm:$0xff]   ;;  %v14130_v53 = vshrl.u32 %v9871_v23, 16 }
 0x15f   : > { %4287 = vmatmul.mubr.bf16.gmra.mrb[72].mxu1 %v9847_v6  ;;  %4435 = vmatprep.subr.bf16.mxu1 %v8875_v40  ;;  %v10871_v3 = vsel %vm794_vm2, %v819_v50, %v827_v0  ;;  %v834_v36 = vrot.slane %v14131_v22, 2  ;;  %v8849_v50 = vld [vmem:[%s13800_s1 + $0x130] ss:$24 sps:$4 sm:$0xff]   ;;  %v8854_v23 = vld [vmem:[%s13800_s1 + $0x164] ss:$24 sps:$4 sm:$0xff]  }
 0x160   : > { %3901 = vmatmul.mubr.bf16.gmra.mrb[8].mxu0 %v10829_v54  ;;  %4296 = vmatprep.mubr.bf16.mxu1 %v9855_v13  ;;  %14129 = vst [vmem:[#allocation64_spill] sm:$0xff] %v10871_v3  ;;  %v833_v42 = vrot.slane %v14130_v53, 1  ;;  %v10878_v60 = vsel %vm794_vm2, %v831_v2, %v839_v31  ;;  %v8890_v2 = vld [vmem:[%s13800_s1 + $0x75c] ss:$24 sps:$4 sm:$0xff]   ;;  %v8888_v22 = vld [vmem:[%s13800_s1 + $0x758] ss:$24 sps:$4 sm:$0xff]  }
 0x161   : > { %3910 = vmatprep.mubr.bf16.mxu0 %v10836_v7  ;;  %4822 = vmatpush1.bf16.msra.mxu0 %v8843_v63  ;;  %14132 = vst [vmem:[#allocation65_spill] sm:$0xff] %v10878_v60  ;;  %v14133_v63 = vshrl.u32 %v9883_v33, 16  ;;  %v8860_v53 = vld [vmem:[%s13800_s1 + $0x194] ss:$24 sps:$4 sm:$0xff]  }
 0x162   : > { %4823 = vmatprep.subr.bf16.mxu0 %v8848_v56  ;;  %4436 = vmatpush1.bf16.msra.mxu1 %v8873_v62  ;;  %v14134_v56 = vshll.u32 %v9883_v33, 16  ;;  %v8882_v33 = vld [vmem:[%s13800_s1 + $0x728] ss:$24 sps:$4 sm:$0xff]  }
 0x163   : > { %4437 = vmatprep.subr.bf16.mxu1 %v8881_v45  ;;  %v845_v40 = vrot.slane %v14133_v63, 1  ;;  %v8884_v45 = vld [vmem:[%s13800_s1 + $0x72c] ss:$24 sps:$4 sm:$0xff]  }
 0x164   : > { %v846_v62 = vrot.slane %v14134_v56, 2 }
 0x165   : > { %4824 = vmatpush1.bf16.msra.mxu0 %v8846_v21  ;;  %v835_v21 = vor.u32 %v834_v36, %v833_v42  ;;  %v14136_v36 = vshrl.u32 %v9932_v18, 16 }
 0x166   : > { %4825 = vmatprep.subr.bf16.mxu0 %v8851_v34  ;;  %4438 = vmatpush1.bf16.msra.mxu1 %v8879_v32  ;;  %v847_v34 = vor.u32 %v846_v62, %v845_v40  ;;  %v8852_v32 = vld [vmem:[%s13800_s1 + $0x160] ss:$24 sps:$4 sm:$0xff]   ;;  %v14137_v40 = vshll.u32 %v9932_v18, 16  ;;  %v8869_v18 = vld [vmem:[%s13800_s1 + $0x1c4] ss:$24 sps:$4 sm:$0xff]  }
 0x167   : > { %4297 = vmatmul.mubr.bf16.gmra.mrb[76].mxu1 %v9899_v44  ;;  %4439 = vmatprep.subr.bf16.mxu1 %v8884_v45  ;;  %v10913_v42 = vsel %vm794_vm2, %v827_v0, %v835_v21  ;;  %v841_v63 = vrot.slane %v14136_v36, 1  ;;  %v8858_v0 = vld [vmem:[%s13800_s1 + $0x190] ss:$24 sps:$4 sm:$0xff]   ;;  %v8878_v36 = vld [vmem:[%s13800_s1 + $0x1f4] ss:$24 sps:$4 sm:$0xff]  }
 0x168   : > { %3911 = vmatmul.mubr.bf16.gmra.mrb[12].mxu0 %v10871_v3  ;;  %4306 = vmatprep.mubr.bf16.mxu1 %v9907_v57  ;;  %14135 = vst [vmem:[#allocation66_spill] sm:$0xff] %v10913_v42  ;;  %v842_v56 = vrot.slane %v14137_v40, 2  ;;  %v10920_v62 = vsel %vm794_vm2, %v839_v31, %v847_v34  ;;  %v8899_v31 = vld [vmem:[%s13800_s1 + $0x7bc] ss:$24 sps:$4 sm:$0xff]   ;;  %v8897_v40 = vld [vmem:[%s13800_s1 + $0x7b8] ss:$24 sps:$4 sm:$0xff]  }
 0x169   : > { %3920 = vmatprep.mubr.bf16.mxu0 %v10878_v60  ;;  %4826 = vmatpush1.bf16.msra.mxu0 %v8849_v50  ;;  %14138 = vst [vmem:[#allocation67_spill] sm:$0xff] %v10920_v62  ;;  %v14139_v50 = vshrl.u32 %v9939_v24, 16  ;;  %v9408_v60 = vld [vmem:[%s9642_s17 + $0x34] ss:$8 sps:$4 sm:$0xff]  }
 0x16a   : > { %4827 = vmatprep.subr.bf16.mxu0 %v8854_v23  ;;  %4440 = vmatpush1.bf16.msra.mxu1 %v8882_v33  ;;  %v14140_v23 = vshll.u32 %v9939_v24, 16  ;;  %v8891_v24 = vld [vmem:[%s13800_s1 + $0x788] ss:$24 sps:$4 sm:$0xff]  }
 0x16b   : > { %4441 = vmatprep.subr.bf16.mxu1 %v8890_v2  ;;  %v853_v45 = vrot.slane %v14139_v50, 1  ;;  %v8893_v2 = vld [vmem:[%s13800_s1 + $0x78c] ss:$24 sps:$4 sm:$0xff]  }
 0x16c   : > { %v854_v33 = vrot.slane %v14140_v23, 2 }
 0x16d   : > { %4828 = vmatpush1.bf16.msra.mxu0 %v8852_v32  ;;  %v843_v32 = vor.u32 %v842_v56, %v841_v63  ;;  %v14142_v56 = vshrl.u32 %v9967_v4, 16 }
 0x16e   : > { %4829 = vmatprep.subr.bf16.mxu0 %v8860_v53  ;;  %4442 = vmatpush1.bf16.msra.mxu1 %v8888_v22  ;;  %v855_v53 = vor.u32 %v854_v33, %v853_v45  ;;  %v8867_v22 = vld [vmem:[%s13800_s1 + $0x1c0] ss:$24 sps:$4 sm:$0xff]   ;;  %v14143_v45 = vshll.u32 %v9967_v4, 16  ;;  %v8887_v4 = vld [vmem:[%s13800_s1 + $0x224] ss:$24 sps:$4 sm:$0xff]  }
 0x16f   : > { %4307 = vmatmul.mubr.bf16.gmra.mrb[80].mxu1 %v9951_v35  ;;  %4443 = vmatprep.subr.bf16.mxu1 %v8893_v2  ;;  %v10955_v63 = vsel %vm794_vm2, %v835_v21, %v843_v32  ;;  %v849_v50 = vrot.slane %v14142_v56, 1  ;;  %v8876_v21 = vld [vmem:[%s13800_s1 + $0x1f0] ss:$24 sps:$4 sm:$0xff]   ;;  %v8896_v56 = vld [vmem:[%s13800_s1 + $0x254] ss:$24 sps:$4 sm:$0xff]  }
 0x170   : > { %3921 = vmatmul.mubr.bf16.gmra.mrb[16].mxu0 %v10913_v42  ;;  %4316 = vmatprep.mubr.bf16.mxu1 %v9957_v55  ;;  %14141 = vst [vmem:[#allocation68_spill] sm:$0xff] %v10955_v63  ;;  %v850_v23 = vrot.slane %v14143_v45, 2  ;;  %v10962_v33 = vsel %vm794_vm2, %v847_v34, %v855_v53  ;;  %v8908_v34 = vld [vmem:[%s13800_s1 + $0x81c] ss:$24 sps:$4 sm:$0xff]   ;;  %v8906_v45 = vld [vmem:[%s13800_s1 + $0x818] ss:$24 sps:$4 sm:$0xff]  }
 0x171   : > { %3930 = vmatprep.mubr.bf16.mxu0 %v10920_v62  ;;  %4830 = vmatpush1.bf16.msra.mxu0 %v8858_v0  ;;  %14144 = vst [vmem:[#allocation69_spill] sm:$0xff] %v10962_v33  ;;  %v14145_v0 = vshrl.u32 %v9987_v59, 16  ;;  %v14223_v55 = vld [vmem:[#allocation38_spill] sm:$0xff]  ;;  %v8977_v42 = vld [vmem:[%s13800_s1 + $0x9fc] ss:$24 sps:$4 sm:$0xff]  }
 0x172   : > { %4831 = vmatprep.subr.bf16.mxu0 %v8869_v18  ;;  %4444 = vmatpush1.bf16.msra.mxu1 %v8891_v24  ;;  %v14146_v18 = vshll.u32 %v9987_v59, 16  ;;  %v8900_v59 = vld [vmem:[%s13800_s1 + $0x7e8] ss:$24 sps:$4 sm:$0xff]   ;;  %v9406_v62 = vld [vmem:[%s9642_s17 + $0x24] ss:$8 sps:$4 sm:$0xff]  }
 0x173   : > { %4445 = vmatprep.subr.bf16.mxu1 %v8899_v31  ;;  %v861_v2 = vrot.slane %v14145_v0, 1  ;;  %v8902_v31 = vld [vmem:[%s13800_s1 + $0x7ec] ss:$24 sps:$4 sm:$0xff]  }
 0x174   : > { %v862_v24 = vrot.slane %v14146_v18, 2 }
 0x175   : > { %4832 = vmatpush1.bf16.msra.mxu0 %v8867_v22  ;;  %v851_v22 = vor.u32 %v850_v23, %v849_v50  ;;  %v14148_v23 = vshrl.u32 %v10027_v51, 16 }
 0x176   : > { %4833 = vmatprep.subr.bf16.mxu0 %v8878_v36  ;;  %4446 = vmatpush1.bf16.msra.mxu1 %v8897_v40  ;;  %v863_v36 = vor.u32 %v862_v24, %v861_v2  ;;  %v8885_v40 = vld [vmem:[%s13800_s1 + $0x220] ss:$24 sps:$4 sm:$0xff]   ;;  %v14149_v2 = vshll.u32 %v10027_v51, 16  ;;  %v8905_v51 = vld [vmem:[%s13800_s1 + $0x284] ss:$24 sps:$4 sm:$0xff]  }
 0x177   : > { %4317 = vmatmul.mubr.bf16.gmra.mrb[84].mxu1 %v10003_v20  ;;  %4447 = vmatprep.subr.bf16.mxu1 %v8902_v31  ;;  %v10997_v50 = vsel %vm794_vm2, %v843_v32, %v851_v22  ;;  %v857_v0 = vrot.slane %v14148_v23, 1  ;;  %v8894_v32 = vld [vmem:[%s13800_s1 + $0x250] ss:$24 sps:$4 sm:$0xff]   ;;  %v8914_v23 = vld [vmem:[%s13800_s1 + $0x2b4] ss:$24 sps:$4 sm:$0xff]  }
 0x178   : > { %3931 = vmatmul.mubr.bf16.gmra.mrb[20].mxu0 %v10955_v63  ;;  %4326 = vmatprep.mubr.bf16.mxu1 %v10012_v5  ;;  %14147 = vst [vmem:[#allocation70_spill] sm:$0xff] %v10997_v50  ;;  %v858_v18 = vrot.slane %v14149_v2, 2  ;;  %v11004_v24 = vsel %vm794_vm2, %v855_v53, %v863_v36  ;;  %v8917_v53 = vld [vmem:[%s13800_s1 + $0x87c] ss:$24 sps:$4 sm:$0xff]   ;;  %v8915_v2 = vld [vmem:[%s13800_s1 + $0x878] ss:$24 sps:$4 sm:$0xff]  }
 0x179   : > { %3940 = vmatprep.mubr.bf16.mxu0 %v10962_v33  ;;  %4834 = vmatpush1.bf16.msra.mxu0 %v8876_v21  ;;  %14150 = vst [vmem:[#allocation71_spill] sm:$0xff] %v11004_v24  ;;  %v14151_v21 = vshrl.u32 %v10039_v9, 16  ;;  %v9404_v33 = vld [vmem:[%s9642_s17 + $0x14] ss:$8 sps:$4 sm:$0xff]   ;;  %v8960_v20 = vld [vmem:[%s13800_s1 + $0x968] ss:$24 sps:$4 sm:$0xff]  }
 0x17a   : > { %4835 = vmatprep.subr.bf16.mxu0 %v8887_v4  ;;  %4448 = vmatpush1.bf16.msra.mxu1 %v8900_v59  ;;  %v14152_v4 = vshll.u32 %v10039_v9, 16  ;;  %v8909_v9 = vld [vmem:[%s13800_s1 + $0x848] ss:$24 sps:$4 sm:$0xff]  }
 0x17b   : > { %4449 = vmatprep.subr.bf16.mxu1 %v8908_v34  ;;  %v869_v31 = vrot.slane %v14151_v21, 1  ;;  %v8911_v34 = vld [vmem:[%s13800_s1 + $0x84c] ss:$24 sps:$4 sm:$0xff]  }
 0x17c   : > { %v870_v59 = vrot.slane %v14152_v4, 2 }
 0x17d   : > { %4836 = vmatpush1.bf16.msra.mxu0 %v8885_v40  ;;  %v859_v40 = vor.u32 %v858_v18, %v857_v0  ;;  %v14154_v18 = vshrl.u32 %v10079_v47, 16 }
 0x17e   : > { %4837 = vmatprep.subr.bf16.mxu0 %v8896_v56  ;;  %4450 = vmatpush1.bf16.msra.mxu1 %v8906_v45  ;;  %v871_v56 = vor.u32 %v870_v59, %v869_v31  ;;  %v8903_v45 = vld [vmem:[%s13800_s1 + $0x280] ss:$24 sps:$4 sm:$0xff]   ;;  %v14155_v31 = vshll.u32 %v10079_v47, 16 }
 0x17f   : > { %4327 = vmatmul.mubr.bf16.gmra.mrb[88].mxu1 %v10056_v17  ;;  %4451 = vmatprep.subr.bf16.mxu1 %v8911_v34  ;;  %v11039_v0 = vsel %vm794_vm2, %v851_v22, %v859_v40  ;;  %v865_v21 = vrot.slane %v14154_v18, 1  ;;  %v8912_v22 = vld [vmem:[%s13800_s1 + $0x2b0] ss:$24 sps:$4 sm:$0xff]   ;;  %v8921_v18 = vld [vmem:[%s13800_s1 + $0x2e0] ss:$24 sps:$4 sm:$0xff]  }
 0x180   : > { %3941 = vmatmul.mubr.bf16.gmra.mrb[24].mxu0 %v10997_v50  ;;  %4336 = vmatprep.mubr.bf16.mxu1 %v10066_v26  ;;  %14153 = vst [vmem:[#allocation72_spill] sm:$0xff] %v11039_v0  ;;  %v866_v4 = vrot.slane %v14155_v31, 2  ;;  %v11046_v59 = vsel %vm794_vm2, %v863_v36, %v871_v56  ;;  %v8918_v47 = vld [vmem:[%s13800_s1 + $0x8a8] ss:$24 sps:$4 sm:$0xff]   ;;  %v8926_v36 = vld [vmem:[%s13800_s1 + $0x8dc] ss:$24 sps:$4 sm:$0xff]  }
 0x181   : > { %3950 = vmatprep.mubr.bf16.mxu0 %v11004_v24  ;;  %4838 = vmatpush1.bf16.msra.mxu0 %v8894_v32  ;;  %14156 = vst [vmem:[#allocation73_spill] sm:$0xff] %v11046_v59  ;;  %v14157_v32 = vshrl.u32 %v10091_v43, 16  ;;  %v8924_v31 = vld [vmem:[%s13800_s1 + $0x8d8] ss:$24 sps:$4 sm:$0xff]  }
 0x182   : > { %4839 = vmatprep.subr.bf16.mxu0 %v8905_v51  ;;  %4452 = vmatpush1.bf16.msra.mxu1 %v8909_v9  ;;  %v14158_v51 = vshll.u32 %v10091_v43, 16  ;;  %v8923_v43 = vld [vmem:[%s13800_s1 + $0x2e4] ss:$24 sps:$4 sm:$0xff]   ;;  %v8930_v50 = vld [vmem:[%s13800_s1 + $0x340] ss:$24 sps:$4 sm:$0xff]  }
 0x183   : > { %4453 = vmatprep.subr.bf16.mxu1 %v8917_v53  ;;  %v877_v34 = vrot.slane %v14157_v32, 1  ;;  %v8920_v53 = vld [vmem:[%s13800_s1 + $0x8ac] ss:$24 sps:$4 sm:$0xff]  }
 0x184   : > { %v878_v9 = vrot.slane %v14158_v51, 2  ;;  %v8929_v32 = vld [vmem:[%s13800_s1 + $0x314] ss:$24 sps:$4 sm:$0xff]  }
 0x185   : > { %4840 = vmatpush1.bf16.msra.mxu0 %v8903_v45  ;;  %v14159_v45 = vld [vmem:[#allocation13_spill] sm:$0xff] }
 0x186   : > { %4841 = vmatprep.subr.bf16.mxu0 %v8914_v23  ;;  %4454 = vmatpush1.bf16.msra.mxu1 %v8915_v2  ;;  %v867_v23 = vor.u32 %v866_v4, %v865_v21  ;;  %v879_v2 = vor.u32 %v878_v9, %v877_v34  ;;  %v14161_v4 = vld [vmem:[#allocation14_spill] sm:$0xff] }
 0x187   : > { %4337 = vmatmul.mubr.bf16.gmra.mrb[92].mxu1 %v10111_v19  ;;  %4455 = vmatprep.subr.bf16.mxu1 %v8920_v53  ;;  %v14162_v34 = vshrl.u32 %v14161_v4, 16  ;;  %v14163_v9 = vshll.u32 %v14161_v4, 16 }
 0x188   : > { %3951 = vmatmul.mubr.bf16.gmra.mrb[28].mxu0 %v11039_v0  ;;  %4346 = vmatprep.mubr.bf16.mxu1 %v14159_v45  ;;  %v11081_v21 = vsel %vm794_vm2, %v859_v40, %v867_v23  ;;  %v11088_v53 = vsel %vm794_vm2, %v871_v56, %v879_v2  ;;  %v8953_v40 = vld [vmem:[%s13800_s1 + $0x90c] ss:$24 sps:$4 sm:$0xff]   ;;  %v14169_v56 = vld [vmem:[#allocation17_spill] sm:$0xff]  ;;  %v927_v0 = vshrl.u32 %v10311_v39, 16 }
 0x189   : > { %3960 = vmatprep.mubr.bf16.mxu0 %v11046_v59  ;;  %4842 = vmatpush1.bf16.msra.mxu0 %v8912_v22  ;;  %14160 = vst [vmem:[#allocation74_spill] sm:$0xff] %v11081_v21  ;;  %v873_v51 = vrot.slane %v14162_v34, 1  ;;  %v874_v22 = vrot.slane %v14163_v9, 2  ;;  %14164 = vst [vmem:[#allocation14_spill] sm:$0xff] %v11088_v53 }
 0x18a   : > { %4843 = vmatprep.subr.bf16.mxu0 %v8923_v43  ;;  %4456 = vmatpush1.bf16.msra.mxu1 %v8918_v47  ;;  %v14165_v47 = vld [vmem:[#allocation15_spill] sm:$0xff] }
 0x18b   : > { %4457 = vmatprep.subr.bf16.mxu1 %v8926_v36  ;;  %v14166_v43 = vshrl.u32 %v14165_v47, 16  ;;  %v14167_v59 = vshll.u32 %v14165_v47, 16  ;;  %v14168_v36 = vld [vmem:[#allocation16_spill] sm:$0xff]  ;;  %v875_v4 = vor.u32 %v874_v22, %v873_v51 }
 0x18d   : > { %v885_v45 = vrot.slane %v14166_v43, 1  ;;  %v886_v19 = vrot.slane %v14167_v59, 2  ;;  %4844 = vmatpush1.bf16.msra.mxu0 %v8921_v18  ;;  %v11102_v59 = vsel %vm794_vm2, %v867_v23, %v875_v4  ;;  %v14171_v18 = vld [vmem:[#allocation18_spill] sm:$0xff] }
 0x18e   : > { %4458 = vmatpush1.bf16.msra.mxu1 %v8924_v31  ;;  %5006 = vmatprep.subr.bf16.mxu0 %v8929_v32  ;;  %14170 = vst [vmem:[#allocation15_spill] sm:$0xff] %v11102_v59  ;;  %v14172_v9 = vshrl.u32 %v14171_v18, 16  ;;  %v14173_v31 = vshll.u32 %v14171_v18, 16 }
 0x18f   : > { %4347 = vmatmul.mubr.bf16.gmra.mrb[96].mxu1 %v14168_v36  ;;  %v887_v34 = vor.u32 %v886_v19, %v885_v45  ;;  %4620 = vmatprep.subr.bf16.mxu1 %v8953_v40  ;;  %v14175_v36 = vld [vmem:[#allocation19_spill] sm:$0xff]  ;;  %v14178_v19 = vld [vmem:[#allocation20_spill] sm:$0xff]  ;;  %v14179_v45 = vld [vmem:[#allocation21_spill] sm:$0xff] }
 0x190   : > { %3961 = vmatmul.mubr.bf16.gmra.mrb[32].mxu0 %v11081_v21  ;;  %4356 = vmatprep.mubr.bf16.mxu1 %v14169_v56  ;;  %v881_v47 = vrot.slane %v14172_v9, 1  ;;  %v882_v32 = vrot.slane %v14173_v31, 2  ;;  %v14176_v21 = vshrl.u32 %v14175_v36, 16  ;;  %v14177_v56 = vshll.u32 %v14175_v36, 16 }
 0x191   : > { %3970 = vmatprep.mubr.bf16.mxu0 %v11088_v53  ;;  %v11109_v43 = vsel %vm794_vm2, %v879_v2, %v887_v34  ;;  %v14181_v2 = vld [vmem:[#allocation22_spill] sm:$0xff]  ;;  %v14185_v31 = vshrl.u32 %v10223_v11, 16 }
 0x192   : > { %14174 = vst [vmem:[#allocation18_spill] sm:$0xff] %v11109_v43  ;;  %v893_v53 = vrot.slane %v14176_v21, 1  ;;  %v894_v51 = vrot.slane %v14177_v56, 2  ;;  %v883_v23 = vor.u32 %v882_v32, %v881_v47  ;;  %v14182_v18 = vshrl.u32 %v14181_v2, 16  ;;  %v14188_v47 = vld [vmem:[#allocation24_spill] sm:$0xff] }
 0x193   : > { %v14183_v21 = vshll.u32 %v14181_v2, 16 }
 0x194   : > { %v895_v22 = vor.u32 %v894_v51, %v893_v53  ;;  %v11120_v40 = vsel %vm794_vm2, %v875_v4, %v883_v23  ;;  %v889_v9 = vrot.slane %v14182_v18, 1  ;;  %v14187_v53 = vld [vmem:[#allocation23_spill] sm:$0xff]  ;;  %v11135_v4 = vpop.f32.mrb[0].mxu1 }
 0x195   : > { %14180 = vst [vmem:[#allocation19_spill] sm:$0xff] %v11120_v40  ;;  %v890_v36 = vrot.slane %v14183_v21, 2  ;;  %v11139_v51 = vpop.f32.mrb[1].mxu1 }
 0x196   : > { %v11127_v56 = vsel %vm794_vm2, %v887_v34, %v895_v22  ;;  %v11141_v2 = vpop.f32.mrb[2].mxu1 }
 0x197   : > { %4357 = vmatmul.mubr.bf16.gmra.mrb[100].mxu1 %v14178_v19  ;;  %14184 = vst [vmem:[#allocation22_spill] sm:$0xff] %v11127_v56  ;;  %v901_v19 = vrot.slane %v14185_v31, 1  ;;  %v891_v32 = vor.u32 %v890_v36, %v889_v9  ;;  %v11143_v18 = vpop.f32.mrb[3].mxu1  ;;  %v14191_v31 = vshll.u32 %v10242_v29, 16  ;;  %v14193_v9 = vshrl.u32 %v10251_v8, 16 }
 0x198   : > { %3971 = vmatmul.mubr.bf16.gmra.mrb[36].mxu0 %v11102_v59  ;;  %4366 = vmatprep.mubr.bf16.mxu1 %v14179_v45 }
 0x199   : > { %3980 = vmatprep.mubr.bf16.mxu0 %v11109_v43  ;;  %v14186_v43 = vshll.u32 %v10223_v11, 16  ;;  %v11146_v11 = vsel %vm794_vm2, %v883_v23, %v891_v32  ;;  %v909_v36 = vrot.slane %v14193_v9, 1  ;;  %v11161_v23 = vpop.f32.mrb[4].mxu1 }
 0x19a   : > { %14189 = vst [vmem:[#allocation75_spill] sm:$0xff] %v11146_v11 }
 0x19b   : > { %v902_v45 = vrot.slane %v14186_v43, 2  ;;  %v14190_v43 = vshrl.u32 %v10242_v29, 16 }
 0x19d   : > { %v903_v34 = vor.u32 %v902_v45, %v901_v19  ;;  %v897_v21 = vrot.slane %v14190_v43, 1  ;;  %v14194_v19 = vshll.u32 %v10251_v8, 16  ;;  %v14196_v43 = vld [vmem:[#allocation26_spill] sm:$0xff] }
 0x19f   : > { %4367 = vmatmul.mubr.bf16.gmra.mrb[104].mxu1 %v14187_v53  ;;  %v898_v53 = vrot.slane %v14191_v31, 2  ;;  %v910_v45 = vrot.slane %v14194_v19, 2  ;;  %v11165_v31 = vpop.f32.mrb[5].mxu1  ;;  %v14198_v19 = vshrl.u32 %v10270_v37, 16 }
 0x1a0   : > { %3981 = vmatmul.mubr.bf16.gmra.mrb[40].mxu0 %v11120_v40  ;;  %4376 = vmatprep.mubr.bf16.mxu1 %v14188_v47  ;;  %v14195_v47 = vld [vmem:[#allocation25_spill] sm:$0xff]  ;;  %v11167_v40 = vpop.f32.mrb[6].mxu1 }
 0x1a1   : > { %3990 = vmatprep.mubr.bf16.mxu0 %v11127_v56  ;;  %v11153_v56 = vsel %vm794_vm2, %v895_v22, %v903_v34  ;;  %v899_v29 = vor.u32 %v898_v53, %v897_v21  ;;  %v911_v22 = vor.u32 %v910_v45, %v909_v36  ;;  %v11169_v9 = vpop.f32.mrb[7].mxu1  ;;  %v14201_v53 = vshrl.u32 %v10279_v10, 16 }
 0x1a2   : > { %14192 = vst [vmem:[#allocation76_spill] sm:$0xff] %v11153_v56  ;;  %v14202_v36 = vshll.u32 %v10279_v10, 16 }
 0x1a3   : > { %v11172_v8 = vsel %vm794_vm2, %v891_v32, %v899_v29  ;;  %v917_v21 = vrot.slane %v14201_v53, 1  ;;  %v11187_v32 = vpop.f32.mrb[8].mxu1 }
 0x1a4   : > { %14197 = vst [vmem:[#allocation77_spill] sm:$0xff] %v11172_v8  ;;  %v918_v45 = vrot.slane %v14202_v36, 2 }
 0x1a7   : > { %4377 = vmatmul.mubr.bf16.gmra.mrb[108].mxu1 %v14195_v47  ;;  %v905_v47 = vrot.slane %v14198_v19, 1  ;;  %v14204_v19 = vld [vmem:[#allocation28_spill] sm:$0xff] }
 0x1a8   : > { %3991 = vmatmul.mubr.bf16.gmra.mrb[44].mxu0 %v11146_v11  ;;  %4386 = vmatprep.mubr.bf16.mxu1 %v14196_v43  ;;  %v14199_v11 = vshll.u32 %v10270_v37, 16  ;;  %v14203_v43 = vld [vmem:[#allocation27_spill] sm:$0xff] }
 0x1a9   : > { %4000 = vmatprep.mubr.bf16.mxu0 %v11153_v56  ;;  %v11179_v56 = vsel %vm794_vm2, %v903_v34, %v911_v22  ;;  %v919_v34 = vor.u32 %v918_v45, %v917_v21  ;;  %v14209_v21 = vshll.u32 %v10311_v39, 16 }
 0x1aa   : > { %v906_v59 = vrot.slane %v14199_v11, 2  ;;  %14200 = vst [vmem:[#allocation78_spill] sm:$0xff] %v11179_v56  ;;  %v11191_v11 = vpop.f32.mrb[9].mxu1 }
 0x1ab   : > { %v11194_v53 = vpop.f32.mrb[10].mxu1  ;;  %v930_v45 = vrot.slane %v14209_v21, 2 }
 0x1ac   : > { %v907_v37 = vor.u32 %v906_v59, %v905_v47  ;;  %v11196_v10 = vpop.f32.mrb[11].mxu1  ;;  %v11206_v59 = vsel %vm794_vm2, %v911_v22, %v919_v34  ;;  %v929_v47 = vrot.slane %v927_v0, 1 }
 0x1ad   : > { %14208 = vst [vmem:[#allocation80_spill] sm:$0xff] %v11206_v59  ;;  %v11212_v24 = vpop.f32.mrb[12].mxu1 }
 0x1ae   : > { %v11199_v36 = vsel %vm794_vm2, %v899_v29, %v907_v37  ;;  %v14211_v29 = vld [vmem:[#allocation30_spill] sm:$0xff]  ;;  %v931_v22 = vor.u32 %v930_v45, %v929_v47  ;;  %v14216_v47 = vld [vmem:[#allocation32_spill] sm:$0xff] }
 0x1af   : > { %4387 = vmatmul.mubr.bf16.gmra.mrb[112].mxu1 %v14203_v43  ;;  %14205 = vst [vmem:[#allocation79_spill] sm:$0xff] %v11199_v36  ;;  %v14206_v43 = vshrl.u32 %v10305_v16, 16 }
 0x1b0   : > { %4001 = vmatmul.mubr.bf16.gmra.mrb[48].mxu0 %v11172_v8  ;;  %4396 = vmatprep.mubr.bf16.mxu1 %v14204_v19  ;;  %v14210_v19 = vld [vmem:[#allocation29_spill] sm:$0xff] }
 0x1b1   : > { %4010 = vmatprep.mubr.bf16.mxu0 %v11179_v56  ;;  %v913_v8 = vrot.slane %v14206_v43, 1  ;;  %v14207_v56 = vshll.u32 %v10305_v16, 16  ;;  %v921_v16 = vshrl.u32 %v10331_v52, 16 }
 0x1b3   : > { %v914_v26 = vrot.slane %v14207_v56, 2  ;;  %v11217_v56 = vpop.f32.mrb[13].mxu1 }
 0x1b4   : > { %v11219_v0 = vpop.f32.mrb[14].mxu1 }
 0x1b5   : > { %v915_v43 = vor.u32 %v914_v26, %v913_v8  ;;  %v11221_v39 = vpop.f32.mrb[15].mxu1  ;;  %v14215_v26 = vld [vmem:[#allocation31_spill] sm:$0xff] }
 0x1b6   : > { %v11233_v8 = vpop.f32.mrb[16].mxu1 }
 0x1b7   : > { %4397 = vmatmul.mubr.bf16.gmra.mrb[116].mxu1 %v14210_v19  ;;  %v11224_v21 = vsel %vm794_vm2, %v907_v37, %v915_v43  ;;  %v923_v19 = vrot.slane %v921_v16, 1  ;;  %v11237_v45 = vpop.f32.mrb[17].mxu1 }
 0x1b8   : > { %4011 = vmatmul.mubr.bf16.gmra.mrb[52].mxu0 %v11199_v36  ;;  %4406 = vmatprep.mubr.bf16.mxu1 %v14211_v29  ;;  %14212 = vst [vmem:[#allocation81_spill] sm:$0xff] %v11224_v21  ;;  %v14213_v36 = vshll.u32 %v10331_v52, 16  ;;  %v11229_v29 = vsel %vm794_vm2, %v919_v34, %v931_v22  ;;  %v11239_v16 = vpop.f32.mrb[18].mxu1 }
 0x1b9   : > { %4020 = vmatprep.mubr.bf16.mxu0 %v11206_v59  ;;  %14214 = vst [vmem:[#allocation82_spill] sm:$0xff] %v11229_v29  ;;  %v11241_v52 = vpop.f32.mrb[19].mxu1  ;;  %v14221_v59 = vld [vmem:[#allocation36_spill] sm:$0xff] }
 0x1ba   : > { %v924_v17 = vrot.slane %v14213_v36, 2  ;;  %v14218_v36 = vld [vmem:[#allocation33_spill] sm:$0xff]  ;;  %v11248_v22 = vpop.f32.mrb[20].mxu1 }
 0x1bc   : > { %v925_v37 = vor.u32 %v924_v17, %v923_v19  ;;  %v11252_v17 = vpop.f32.mrb[21].mxu1 }
 0x1bd   : > { %v11254_v19 = vpop.f32.mrb[22].mxu1 }
 0x1be   : > { %v11244_v34 = vsel %vm794_vm2, %v915_v43, %v925_v37  ;;  %v8927_v43 = vld [vmem:[%s13800_s1 + $0x310] ss:$24 sps:$4 sm:$0xff]   ;;  %v8932_v37 = vld [vmem:[%s13800_s1 + $0x344] ss:$24 sps:$4 sm:$0xff]  }
 0x1bf   : > { %4407 = vmatmul.mubr.bf16.gmra.mrb[120].mxu1 %v14215_v26  ;;  %14217 = vst [vmem:[#allocation83_spill] sm:$0xff] %v11244_v34  ;;  %v11256_v26 = vpop.f32.mrb[23].mxu1 }
 0x1c0   : > { %4021 = vmatmul.mubr.bf16.gmra.mrb[56].mxu0 %v11224_v21  ;;  %4416 = vmatprep.mubr.bf16.mxu1 %v14216_v47  ;;  %v9402_v47 = vld [vmem:[%s9642_s17 + $0x4] ss:$8 sps:$4 sm:$0xff]   ;;  %v11272_v21 = vpop.f32.mrb[24].mxu1 }
 0x1c1   : > { %4030 = vmatprep.mubr.bf16.mxu0 %v11229_v29  ;;  %v14219_v29 = vld [vmem:[#allocation34_spill] sm:$0xff]  ;;  %v11278_v5 = vpop.f32.mrb[25].mxu1 }
 0x1c7   : > { %4417 = vmatmul.mubr.bf16.gmra.mrb[124].mxu1 %v14218_v36  ;;  %v9403_v36 = vld [vmem:[%s9642_s17] ss:$8 sps:$4 sm:$0xff]  }
 0x1c8   : > { %4031 = vmatmul.mubr.bf16.gmra.mrb[60].mxu0 %v11244_v34  ;;  %4459 = vmatprep.mubr.bf16.mxu1 %v14219_v29  ;;  %v8951_v29 = vld [vmem:[%s13800_s1 + $0x908] ss:$24 sps:$4 sm:$0xff]   ;;  %v8959_v34 = vld [vmem:[%s13800_s1 + $0x93c] ss:$24 sps:$4 sm:$0xff]  }
 0x1c9   : > { %4845 = vmatprep.mubr.bf16.mxu0 %v9402_v47  ;;  %v14220_v47 = vld [vmem:[#allocation35_spill] sm:$0xff] }
 0x1cf   : > { %4460 = vmatmul.mubr.bf16.vlgmr.msra.gmra.mrb[64].mxu1 %v14220_v47  ;;  %v11284_v47 = vpop.f32.mrb[26].mxu1 }
 0x1d0   : > { %4846 = vmatmul.mubr.bf16.vlgmr.msra.gmra.mrb[64].mxu0 %v9403_v36  ;;  %4469 = vmatprep.mubr.bf16.mxu1 %v14221_v59  ;;  %v8935_v36 = vld [vmem:[%s13800_s1 + $0x374] ss:$24 sps:$4 sm:$0xff]   ;;  %v11289_v59 = vpop.f32.mrb[27].mxu1 }
 0x1d1   : > { %5007 = vmatpush1.bf16.msra.mxu0 %v8927_v43  ;;  %4855 = vmatprep.mubr.bf16.mxu0 %v9404_v33  ;;  %v8957_v43 = vld [vmem:[%s13800_s1 + $0x938] ss:$24 sps:$4 sm:$0xff]   ;;  %v11308_v63 = vpop.f32.mrb[28].mxu1 }
 0x1d2   : > { %5008 = vmatprep.subr.bf16.mxu0 %v8932_v37  ;;  %4621 = vmatpush1.bf16.msra.mxu1 %v8951_v29  ;;  %v8933_v33 = vld [vmem:[%s13800_s1 + $0x370] ss:$24 sps:$4 sm:$0xff]   ;;  %v8962_v37 = vld [vmem:[%s13800_s1 + $0x96c] ss:$24 sps:$4 sm:$0xff]   ;;  %v11312_v35 = vpop.f32.mrb[29].mxu1 }
 0x1d3   : > { %4622 = vmatprep.subr.bf16.mxu1 %v8959_v34  ;;  %v8938_v29 = vld [vmem:[%s13800_s1 + $0x3a4] ss:$24 sps:$4 sm:$0xff]  }
 0x1d4   : > { %v14222_v34 = vld [vmem:[#allocation37_spill] sm:$0xff] }
 0x1d5   : > { %5009 = vmatpush1.bf16.msra.mxu0 %v8930_v50  ;;  %v9405_v50 = vld [vmem:[%s9642_s17 + $0x10] ss:$8 sps:$4 sm:$0xff]  }
 0x1d6   : > { %5010 = vmatprep.subr.bf16.mxu0 %v8935_v36  ;;  %4623 = vmatpush1.bf16.msra.mxu1 %v8957_v43  ;;  %v8968_v36 = vld [vmem:[%s13800_s1 + $0x99c] ss:$24 sps:$4 sm:$0xff]   ;;  %v8936_v43 = vld [vmem:[%s13800_s1 + $0x3a0] ss:$24 sps:$4 sm:$0xff]  }
 0x1d7   : > { %4470 = vmatmul.mubr.bf16.gmra.mrb[68].mxu1 %v14222_v34  ;;  %4624 = vmatprep.subr.bf16.mxu1 %v8962_v37  ;;  %v8941_v34 = vld [vmem:[%s13800_s1 + $0x3d4] ss:$24 sps:$4 sm:$0xff]   ;;  %v8939_v37 = vld [vmem:[%s13800_s1 + $0x3d0] ss:$24 sps:$4 sm:$0xff]  }
 0x1d8   : > { %4856 = vmatmul.mubr.bf16.gmra.mrb[68].mxu0 %v9405_v50  ;;  %4479 = vmatprep.mubr.bf16.mxu1 %v14223_v55  ;;  %v11317_v50 = vpop.f32.mrb[30].mxu1  ;;  %v8969_v55 = vld [vmem:[%s13800_s1 + $0x9c8] ss:$24 sps:$4 sm:$0xff]  }
 0x1d9   : > { %4865 = vmatprep.mubr.bf16.mxu0 %v9406_v62  ;;  %5011 = vmatpush1.bf16.msra.mxu0 %v8933_v33  ;;  %v8966_v62 = vld [vmem:[%s13800_s1 + $0x998] ss:$24 sps:$4 sm:$0xff]   ;;  %v11325_v33 = vpop.f32.mrb[31].mxu1 }
 0x1da   : > { %5012 = vmatprep.subr.bf16.mxu0 %v8938_v29  ;;  %4625 = vmatpush1.bf16.msra.mxu1 %v8960_v20  ;;  %v8971_v29 = vld [vmem:[%s13800_s1 + $0x9cc] ss:$24 sps:$4 sm:$0xff]   ;;  %v11344_v57 = vpop.f32.mrb[32].mxu1 }
 0x1db   : > { %4626 = vmatprep.subr.bf16.mxu1 %v8968_v36  ;;  %v8944_v20 = vld [vmem:[%s13800_s1 + $0x404] ss:$24 sps:$4 sm:$0xff]   ;;  %v14224_v36 = vld [vmem:[#allocation39_spill] sm:$0xff]  ;;  %v11348_v44 = vpop.f32.mrb[33].mxu1 }
 0x1dd   : > { %5013 = vmatpush1.bf16.msra.mxu0 %v8936_v43  ;;  %v9407_v43 = vld [vmem:[%s9642_s17 + $0x20] ss:$8 sps:$4 sm:$0xff]  }
 0x1de   : > { %5014 = vmatprep.subr.bf16.mxu0 %v8941_v34  ;;  %4627 = vmatpush1.bf16.msra.mxu1 %v8966_v62  ;;  %v14225_v34 = vld [vmem:[#allocation40_spill] sm:$0xff]  ;;  %v8942_v62 = vld [vmem:[%s13800_s1 + $0x400] ss:$24 sps:$4 sm:$0xff]  }
 0x1df   : > { %4480 = vmatmul.mubr.bf16.gmra.mrb[72].mxu1 %v14224_v36  ;;  %4628 = vmatprep.subr.bf16.mxu1 %v8971_v29  ;;  %v8947_v36 = vld [vmem:[%s13800_s1 + $0x434] ss:$24 sps:$4 sm:$0xff]   ;;  %v8945_v29 = vld [vmem:[%s13800_s1 + $0x430] ss:$24 sps:$4 sm:$0xff]  }
 0x1e0   : > { %4866 = vmatmul.mubr.bf16.gmra.mrb[72].mxu0 %v9407_v43  ;;  %4489 = vmatprep.mubr.bf16.mxu1 %v14225_v34  ;;  %v11353_v43 = vpop.f32.mrb[34].mxu1  ;;  %v8978_v34 = vld [vmem:[%s13800_s1 + $0xa28] ss:$24 sps:$4 sm:$0xff]  }
 0x1e1   : > { %4875 = vmatprep.mubr.bf16.mxu0 %v9408_v60  ;;  %5015 = vmatpush1.bf16.msra.mxu0 %v8939_v37  ;;  %14226 = vst [vmem:[#allocation84_spill] sm:$0xff] %v11353_v43  ;;  %v8975_v60 = vld [vmem:[%s13800_s1 + $0x9f8] ss:$24 sps:$4 sm:$0xff]   ;;  %v11361_v37 = vpop.f32.mrb[35].mxu1 }
 0x1e2   : > { %5016 = vmatprep.subr.bf16.mxu0 %v8944_v20  ;;  %4629 = vmatpush1.bf16.msra.mxu1 %v8969_v55  ;;  %14227 = vst [vmem:[#allocation85_spill] sm:$0xff] %v11361_v37  ;;  %v8980_v20 = vld [vmem:[%s13800_s1 + $0xa2c] ss:$24 sps:$4 sm:$0xff]   ;;  %v11380_v3 = vpop.f32.mrb[36].mxu1 }
 0x1e3   : > { %4630 = vmatprep.subr.bf16.mxu1 %v8977_v42  ;;  %v8950_v55 = vld [vmem:[%s13800_s1 + $0x464] ss:$24 sps:$4 sm:$0xff]   ;;  %v9409_v42 = vld [vmem:[%s9642_s17 + $0x30] ss:$8 sps:$4 sm:$0xff]   ;;  %14228 = vst [vmem:[#allocation86_spill] sm:$0xff] %v11380_v3  ;;  %v11384_v43 = vpop.f32.mrb[37].mxu1 }
 0x1e4   : > { %v9410_v37 = vld [vmem:[%s9642_s17 + $0x44] ss:$8 sps:$4 sm:$0xff]   ;;  %14230 = vst [vmem:[#allocation87_spill] sm:$0xff] %v11384_v43  ;;  %v9412_v43 = vld [vmem:[%s9642_s17 + $0x54] ss:$8 sps:$4 sm:$0xff]  }
 0x1e5   : > { %5017 = vmatpush1.bf16.msra.mxu0 %v8942_v62  ;;  %v8986_v62 = vld [vmem:[%s13800_s1 + $0xa5c] ss:$24 sps:$4 sm:$0xff]  }
 0x1e6   : > { %5018 = vmatprep.subr.bf16.mxu0 %v8947_v36  ;;  %4631 = vmatpush1.bf16.msra.mxu1 %v8975_v60  ;;  %v14229_v36 = vld [vmem:[#allocation42_spill] sm:$0xff] }
 0x1e7   : > { %4490 = vmatmul.mubr.bf16.gmra.mrb[76].mxu1 %v10487_v61  ;;  %v8948_v60 = vld [vmem:[%s13800_s1 + $0x460] ss:$24 sps:$4 sm:$0xff]   ;;  %4632 = vmatprep.subr.bf16.mxu1 %v8980_v20  ;;  %v8956_v61 = vld [vmem:[%s13800_s1 + $0x494] ss:$24 sps:$4 sm:$0xff]   ;;  %v8954_v20 = vld [vmem:[%s13800_s1 + $0x490] ss:$24 sps:$4 sm:$0xff]  }
 0x1e8   : > { %4876 = vmatmul.mubr.bf16.gmra.mrb[76].mxu0 %v9409_v42  ;;  %4499 = vmatprep.mubr.bf16.mxu1 %v14229_v36  ;;  %v11389_v42 = vpop.f32.mrb[38].mxu1  ;;  %v8987_v36 = vld [vmem:[%s13800_s1 + $0xa88] ss:$24 sps:$4 sm:$0xff]  }
 0x1e9   : > { %4885 = vmatprep.mubr.bf16.mxu0 %v9410_v37  ;;  %5019 = vmatpush1.bf16.msra.mxu0 %v8945_v29  ;;  %14231 = vst [vmem:[#allocation88_spill] sm:$0xff] %v11389_v42  ;;  %v8984_v37 = vld [vmem:[%s13800_s1 + $0xa58] ss:$24 sps:$4 sm:$0xff]   ;;  %v11397_v29 = vpop.f32.mrb[39].mxu1 }
 0x1ea   : > { %5020 = vmatprep.subr.bf16.mxu0 %v8950_v55  ;;  %4633 = vmatpush1.bf16.msra.mxu1 %v8978_v34  ;;  %14232 = vst [vmem:[#allocation89_spill] sm:$0xff] %v11397_v29  ;;  %v8989_v55 = vld [vmem:[%s13800_s1 + $0xa8c] ss:$24 sps:$4 sm:$0xff]   ;;  %v8995_v29 = vld [vmem:[%s13800_s1 + $0xabc] ss:$24 sps:$4 sm:$0xff]   ;;  %v11416_v42 = vpop.f32.mrb[40].mxu1 }
 0x1eb   : > { %4634 = vmatprep.subr.bf16.mxu1 %v8986_v62  ;;  %v8965_v34 = vld [vmem:[%s13800_s1 + $0x4c4] ss:$24 sps:$4 sm:$0xff]   ;;  %v14233_v62 = vld [vmem:[#allocation43_spill] sm:$0xff]  ;;  %14234 = vst [vmem:[#allocation90_spill] sm:$0xff] %v11416_v42  ;;  %v11420_v3 = vpop.f32.mrb[41].mxu1 }
 0x1ec   : > { %14236 = vst [vmem:[#allocation91_spill] sm:$0xff] %v11420_v3  ;;  %v9414_v3 = vld [vmem:[%s9642_s17 + $0x64] ss:$8 sps:$4 sm:$0xff]  }
 0x1ed   : > { %5021 = vmatpush1.bf16.msra.mxu0 %v8948_v60  ;;  %v9411_v60 = vld [vmem:[%s9642_s17 + $0x40] ss:$8 sps:$4 sm:$0xff]  }
 0x1ee   : > { %5022 = vmatprep.subr.bf16.mxu0 %v8956_v61  ;;  %4635 = vmatpush1.bf16.msra.mxu1 %v8984_v37  ;;  %v14235_v61 = vld [vmem:[#allocation44_spill] sm:$0xff]  ;;  %v8963_v37 = vld [vmem:[%s13800_s1 + $0x4c0] ss:$24 sps:$4 sm:$0xff]  }
 0x1ef   : > { %4500 = vmatmul.mubr.bf16.gmra.mrb[80].mxu1 %v14233_v62  ;;  %4636 = vmatprep.subr.bf16.mxu1 %v8989_v55  ;;  %v8974_v62 = vld [vmem:[%s13800_s1 + $0x4f4] ss:$24 sps:$4 sm:$0xff]   ;;  %v8972_v55 = vld [vmem:[%s13800_s1 + $0x4f0] ss:$24 sps:$4 sm:$0xff]  }
 0x1f0   : > { %4886 = vmatmul.mubr.bf16.gmra.mrb[80].mxu0 %v9411_v60  ;;  %4509 = vmatprep.mubr.bf16.mxu1 %v14235_v61  ;;  %v11425_v60 = vpop.f32.mrb[42].mxu1  ;;  %v8996_v61 = vld [vmem:[%s13800_s1 + $0xae8] ss:$24 sps:$4 sm:$0xff]  }
 0x1f1   : > { %4895 = vmatprep.mubr.bf16.mxu0 %v9412_v43  ;;  %5023 = vmatpush1.bf16.msra.mxu0 %v8954_v20  ;;  %14237 = vst [vmem:[#allocation92_spill] sm:$0xff] %v11425_v60  ;;  %v8993_v43 = vld [vmem:[%s13800_s1 + $0xab8] ss:$24 sps:$4 sm:$0xff]   ;;  %v11433_v20 = vpop.f32.mrb[43].mxu1 }
 0x1f2   : > { %5024 = vmatprep.subr.bf16.mxu0 %v8965_v34  ;;  %4637 = vmatpush1.bf16.msra.mxu1 %v8987_v36  ;;  %14238 = vst [vmem:[#allocation93_spill] sm:$0xff] %v11433_v20  ;;  %v8998_v34 = vld [vmem:[%s13800_s1 + $0xaec] ss:$24 sps:$4 sm:$0xff]   ;;  %v9004_v20 = vld [vmem:[%s13800_s1 + $0xb1c] ss:$24 sps:$4 sm:$0xff]   ;;  %v11452_v60 = vpop.f32.mrb[44].mxu1 }
 0x1f3   : > { %4638 = vmatprep.subr.bf16.mxu1 %v8995_v29  ;;  %v8983_v36 = vld [vmem:[%s13800_s1 + $0x524] ss:$24 sps:$4 sm:$0xff]   ;;  %14240 = vst [vmem:[#allocation94_spill] sm:$0xff] %v11452_v60  ;;  %v11456_v42 = vpop.f32.mrb[45].mxu1 }
 0x1f4   : > { %v14239_v29 = vld [vmem:[#allocation45_spill] sm:$0xff]  ;;  %14242 = vst [vmem:[#allocation95_spill] sm:$0xff] %v11456_v42 }
 0x1f5   : > { %5025 = vmatpush1.bf16.msra.mxu0 %v8963_v37  ;;  %v9413_v37 = vld [vmem:[%s9642_s17 + $0x50] ss:$8 sps:$4 sm:$0xff]   ;;  %v9416_v42 = vld [vmem:[%s9642_s17 + $0x74] ss:$8 sps:$4 sm:$0xff]  }
 0x1f6   : > { %5026 = vmatprep.subr.bf16.mxu0 %v8974_v62  ;;  %4639 = vmatpush1.bf16.msra.mxu1 %v8993_v43  ;;  %v14241_v62 = vld [vmem:[#allocation46_spill] sm:$0xff] }
 0x1f7   : > { %4510 = vmatmul.mubr.bf16.gmra.mrb[84].mxu1 %v14239_v29  ;;  %v8981_v43 = vld [vmem:[%s13800_s1 + $0x520] ss:$24 sps:$4 sm:$0xff]   ;;  %4640 = vmatprep.subr.bf16.mxu1 %v8998_v34  ;;  %v8992_v29 = vld [vmem:[%s13800_s1 + $0x554] ss:$24 sps:$4 sm:$0xff]   ;;  %v8990_v34 = vld [vmem:[%s13800_s1 + $0x550] ss:$24 sps:$4 sm:$0xff]  }
 0x1f8   : > { %4896 = vmatmul.mubr.bf16.gmra.mrb[84].mxu0 %v9413_v37  ;;  %4519 = vmatprep.mubr.bf16.mxu1 %v14241_v62  ;;  %v11461_v37 = vpop.f32.mrb[46].mxu1  ;;  %v9005_v62 = vld [vmem:[%s13800_s1 + $0xb48] ss:$24 sps:$4 sm:$0xff]  }
 0x1f9   : > { %4905 = vmatprep.mubr.bf16.mxu0 %v9414_v3  ;;  %5027 = vmatpush1.bf16.msra.mxu0 %v8972_v55  ;;  %14243 = vst [vmem:[#allocation96_spill] sm:$0xff] %v11461_v37  ;;  %v9002_v3 = vld [vmem:[%s13800_s1 + $0xb18] ss:$24 sps:$4 sm:$0xff]   ;;  %v11469_v55 = vpop.f32.mrb[47].mxu1 }
 0x1fa   : > { %5028 = vmatprep.subr.bf16.mxu0 %v8983_v36  ;;  %4641 = vmatpush1.bf16.msra.mxu1 %v8996_v61  ;;  %14244 = vst [vmem:[#allocation97_spill] sm:$0xff] %v11469_v55  ;;  %v9007_v36 = vld [vmem:[%s13800_s1 + $0xb4c] ss:$24 sps:$4 sm:$0xff]   ;;  %v9013_v55 = vld [vmem:[%s13800_s1 + $0xb7c] ss:$24 sps:$4 sm:$0xff]   ;;  %v11488_v37 = vpop.f32.mrb[48].mxu1 }
 0x1fb   : > { %4642 = vmatprep.subr.bf16.mxu1 %v9004_v20  ;;  %v9001_v61 = vld [vmem:[%s13800_s1 + $0x584] ss:$24 sps:$4 sm:$0xff]   ;;  %v14245_v20 = vld [vmem:[#allocation47_spill] sm:$0xff]  ;;  %v11492_v60 = vpop.f32.mrb[49].mxu1 }
 0x1fd   : > { %5029 = vmatpush1.bf16.msra.mxu0 %v8981_v43  ;;  %v9415_v43 = vld [vmem:[%s9642_s17 + $0x60] ss:$8 sps:$4 sm:$0xff]  }
 0x1fe   : > { %5030 = vmatprep.subr.bf16.mxu0 %v8992_v29  ;;  %4643 = vmatpush1.bf16.msra.mxu1 %v9002_v3  ;;  %v14246_v29 = vld [vmem:[#allocation48_spill] sm:$0xff]  ;;  %v8999_v3 = vld [vmem:[%s13800_s1 + $0x580] ss:$24 sps:$4 sm:$0xff]  }
 0x1ff   : > { %4520 = vmatmul.mubr.bf16.gmra.mrb[88].mxu1 %v14245_v20  ;;  %4644 = vmatprep.subr.bf16.mxu1 %v9007_v36  ;;  %v9010_v20 = vld [vmem:[%s13800_s1 + $0x5b4] ss:$24 sps:$4 sm:$0xff]   ;;  %v9008_v36 = vld [vmem:[%s13800_s1 + $0x5b0] ss:$24 sps:$4 sm:$0xff]  }
 0x200   : > { %4906 = vmatmul.mubr.bf16.gmra.mrb[88].mxu0 %v9415_v43  ;;  %4529 = vmatprep.mubr.bf16.mxu1 %v14246_v29  ;;  %v11497_v43 = vpop.f32.mrb[50].mxu1  ;;  %v9019_v29 = vld [vmem:[%s13800_s1 + $0x5e4] ss:$24 sps:$4 sm:$0xff]  }
 0x201   : > { %4915 = vmatprep.mubr.bf16.mxu0 %v9416_v42  ;;  %5031 = vmatpush1.bf16.msra.mxu0 %v8990_v34  ;;  %14247 = vst [vmem:[#allocation98_spill] sm:$0xff] %v11497_v43  ;;  %v9011_v42 = vld [vmem:[%s13800_s1 + $0xb78] ss:$24 sps:$4 sm:$0xff]   ;;  %v11505_v34 = vpop.f32.mrb[51].mxu1 }
 0x202   : > { %5032 = vmatprep.subr.bf16.mxu0 %v9001_v61  ;;  %4645 = vmatpush1.bf16.msra.mxu1 %v9005_v62  ;;  %14248 = vst [vmem:[#allocation99_spill] sm:$0xff] %v11505_v34  ;;  %v9016_v61 = vld [vmem:[%s13800_s1 + $0xbac] ss:$24 sps:$4 sm:$0xff]   ;;  %v9014_v62 = vld [vmem:[%s13800_s1 + $0xba8] ss:$24 sps:$4 sm:$0xff]   ;;  %v11524_v34 = vpop.f32.mrb[52].mxu1 }
 0x203   : > { %4646 = vmatprep.subr.bf16.mxu1 %v9013_v55  ;;  %v9417_v55 = vld [vmem:[%s9642_s17 + $0x70] ss:$8 sps:$4 sm:$0xff]   ;;  %v11528_v43 = vpop.f32.mrb[53].mxu1 }
 0x204   : > { %14250 = vst [vmem:[#allocation100_spill] sm:$0xff] %v11528_v43 }
 0x205   : > { %5033 = vmatpush1.bf16.msra.mxu0 %v8999_v3  ;;  %v9022_v3 = vld [vmem:[%s13800_s1 + $0xbdc] ss:$24 sps:$4 sm:$0xff]  }
 0x206   : > { %5034 = vmatprep.subr.bf16.mxu0 %v9010_v20  ;;  %4647 = vmatpush1.bf16.msra.mxu1 %v9011_v42  ;;  %v14249_v20 = vld [vmem:[#allocation50_spill] sm:$0xff] }
 0x207   : > { %4530 = vmatmul.mubr.bf16.gmra.mrb[92].mxu1 %v10617_v14  ;;  %v9418_v42 = vld [vmem:[%s9642_s17 + $0x84] ss:$8 sps:$4 sm:$0xff]   ;;  %4648 = vmatprep.subr.bf16.mxu1 %v9016_v61  ;;  %v9017_v14 = vld [vmem:[%s13800_s1 + $0x5e0] ss:$24 sps:$4 sm:$0xff]   ;;  %v14253_v61 = vld [vmem:[#allocation52_spill] sm:$0xff] }
 0x208   : > { %4916 = vmatmul.mubr.bf16.gmra.mrb[92].mxu0 %v9417_v55  ;;  %4539 = vmatprep.mubr.bf16.mxu1 %v14249_v20  ;;  %v11533_v55 = vpop.f32.mrb[54].mxu1  ;;  %v9020_v20 = vld [vmem:[%s13800_s1 + $0xbd8] ss:$24 sps:$4 sm:$0xff]  }
 0x209   : > { %4925 = vmatprep.mubr.bf16.mxu0 %v9418_v42  ;;  %5035 = vmatpush1.bf16.msra.mxu0 %v9008_v36  ;;  %14251 = vst [vmem:[#allocation101_spill] sm:$0xff] %v11533_v55  ;;  %v9025_v42 = vld [vmem:[%s13800_s1 + $0x614] ss:$24 sps:$4 sm:$0xff]   ;;  %v11541_v43 = vpop.f32.mrb[55].mxu1 }
 0x20a   : > { %5036 = vmatprep.subr.bf16.mxu0 %v9019_v29  ;;  %4649 = vmatpush1.bf16.msra.mxu1 %v9014_v62  ;;  %14252 = vst [vmem:[#allocation102_spill] sm:$0xff] %v11541_v43  ;;  %v9419_v29 = vld [vmem:[%s9642_s17 + $0x80] ss:$8 sps:$4 sm:$0xff]   ;;  %v11545_v36 = vpop.f32.mrb[56].mxu1  ;;  %v9420_v62 = vld [vmem:[%s9642_s17 + $0x94] ss:$8 sps:$4 sm:$0xff]  }
 0x20b   : > { %4650 = vmatprep.subr.bf16.mxu1 %v9022_v3  ;;  %v11549_v55 = vpop.f32.mrb[57].mxu1  ;;  %v9421_v3 = vld [vmem:[%s9642_s17 + $0x90] ss:$8 sps:$4 sm:$0xff]  }
 0x20c   : > { %v11551_v43 = vpop.f32.mrb[58].mxu1 }
 0x20d   : > { %5037 = vmatpush1.bf16.msra.mxu0 %v9017_v14  ;;  %14254 = vst [vmem:[#allocation103_spill] sm:$0xff] %v11551_v43  ;;  %v11553_v14 = vpop.f32.mrb[59].mxu1  ;;  %v14264_v43 = vld [vmem:[#allocation57_spill] sm:$0xff] }
 0x20e   : > { %4651 = vmatpush1.bf16.msra.mxu1 %v9020_v20  ;;  %5199 = vmatprep.subr.bf16.mxu0 %v9025_v42  ;;  %14255 = vst [vmem:[#allocation104_spill] sm:$0xff] %v11553_v14  ;;  %v11557_v20 = vpop.f32.mrb[60].mxu1  ;;  %v9422_v42 = vld [vmem:[%s9642_s17 + $0xa4] ss:$8 sps:$4 sm:$0xff]   ;;  %v9423_v14 = vld [vmem:[%s9642_s17 + $0xa0] ss:$8 sps:$4 sm:$0xff]  }
 0x20f   : > { %4540 = vmatmul.mubr.bf16.gmra.mrb[96].mxu1 %v10651_v46  ;;  %14256 = vst [vmem:[#allocation105_spill] sm:$0xff] %v11557_v20  ;;  %v14260_v46 = vld [vmem:[#allocation55_spill] sm:$0xff] }
 0x210   : > { %4926 = vmatmul.mubr.bf16.gmra.mrb[96].mxu0 %v9419_v29  ;;  %4549 = vmatprep.mubr.bf16.mxu1 %v14253_v61  ;;  %v11561_v29 = vpop.f32.mrb[61].mxu1 }
 0x211   : > { %4935 = vmatprep.mubr.bf16.mxu0 %v9420_v62  ;;  %14257 = vst [vmem:[#allocation106_spill] sm:$0xff] %v11561_v29  ;;  %v11563_v62 = vpop.f32.mrb[62].mxu1 }
 0x212   : > { %14258 = vst [vmem:[#allocation107_spill] sm:$0xff] %v11563_v62  ;;  %v11565_v61 = vpop.f32.mrb[63].mxu1 }
 0x213   : > { %14259 = vst [vmem:[#allocation108_spill] sm:$0xff] %v11565_v61 }
 0x217   : > { %4550 = vmatmul.mubr.bf16.gmra.mrb[100].mxu1 %v10664_v12  ;;  %v14261_v12 = vld [vmem:[#allocation56_spill] sm:$0xff] }
 0x218   : > { %4936 = vmatmul.mubr.bf16.gmra.mrb[100].mxu0 %v9421_v3  ;;  %4559 = vmatprep.mubr.bf16.mxu1 %v10667_v58  ;;  %v9424_v3 = vld [vmem:[%s9642_s17 + $0xb4] ss:$8 sps:$4 sm:$0xff]  }
 0x219   : > { %4945 = vmatprep.mubr.bf16.mxu0 %v9422_v42 }
 0x21f   : > { %4560 = vmatmul.mubr.bf16.gmra.mrb[104].mxu1 %v14260_v46 }
 0x220   : > { %4946 = vmatmul.mubr.bf16.gmra.mrb[104].mxu0 %v9423_v14  ;;  %4569 = vmatprep.mubr.bf16.mxu1 %v14261_v12  ;;  %v14265_v12 = vld [vmem:[#allocation58_spill] sm:$0xff] }
 0x221   : > { %4955 = vmatprep.mubr.bf16.mxu0 %v9424_v3  ;;  %v9425_v3 = vld [vmem:[%s9642_s17 + $0xb0] ss:$8 sps:$4 sm:$0xff]  }
 0x223   : > { %v3882_v20 = vpop.f32.mrb[0].mxu0 }
 0x224   : > { %v11572_v58 = vadd.f32 %v3882_v20, %v11135_v4  ;;  %v3884_v42 = vpop.f32.mrb[1].mxu0  ;;  %v9426_v4 = vld [vmem:[%s9642_s17 + $0xc4] ss:$8 sps:$4 sm:$0xff]  }
 0x225   : > { %v11575_v29 = vadd.f32 %v3884_v42, %v11139_v51  ;;  %v3886_v62 = vpop.f32.mrb[2].mxu0 }
 0x226   : > { %v11578_v61 = vadd.f32 %v3886_v62, %v11141_v2  ;;  %v3888_v46 = vpop.f32.mrb[3].mxu0 }
 0x227   : > { %14262 = vst [vmem:[#allocation109_spill] sm:$0xff] %v11575_v29  ;;  %v11581_v14 = vadd.f32 %v3888_v46, %v11143_v18  ;;  %4570 = vmatmul.mubr.bf16.gmra.mrb[108].mxu1 %v14264_v43  ;;  %v14269_v29 = vld [vmem:[#allocation60_spill] sm:$0xff] }
 0x228   : > { %4956 = vmatmul.mubr.bf16.gmra.mrb[108].mxu0 %v9425_v3  ;;  %4579 = vmatprep.mubr.bf16.mxu1 %v14265_v12 }
 0x229   : > { %14263 = vst [vmem:[#allocation110_spill] sm:$0xff] %v11581_v14  ;;  %4965 = vmatprep.mubr.bf16.mxu0 %v9426_v4  ;;  %v14268_v14 = vld [vmem:[#allocation59_spill] sm:$0xff] }
 0x22a   : > { %v9427_v4 = vld [vmem:[%s9642_s17 + $0xc0] ss:$8 sps:$4 sm:$0xff]  }
 0x22b   : > { %v3892_v51 = vpop.f32.mrb[4].mxu0 }
 0x22c   : > { %v11588_v20 = vadd.f32 %v3892_v51, %v11161_v23  ;;  %v3894_v2 = vpop.f32.mrb[5].mxu0  ;;  %v9428_v23 = vld [vmem:[%s9642_s17 + $0xd4] ss:$8 sps:$4 sm:$0xff]  }
 0x22d   : > { %v11591_v62 = vadd.f32 %v3894_v2, %v11165_v31  ;;  %v3896_v46 = vpop.f32.mrb[6].mxu0 }
 0x22e   : > { %v11594_v18 = vadd.f32 %v3896_v46, %v11167_v40  ;;  %v3898_v42 = vpop.f32.mrb[7].mxu0 }
 0x22f   : > { %14266 = vst [vmem:[#allocation57_spill] sm:$0xff] %v11591_v62  ;;  %v11597_v3 = vadd.f32 %v3898_v42, %v11169_v9  ;;  %4580 = vmatmul.mubr.bf16.gmra.mrb[112].mxu1 %v14268_v14  ;;  %v14273_v62 = vld [vmem:[#allocation62_spill] sm:$0xff] }
 0x230   : > { %4966 = vmatmul.mubr.bf16.gmra.mrb[112].mxu0 %v9427_v4  ;;  %4589 = vmatprep.mubr.bf16.mxu1 %v14269_v29 }
 0x231   : > { %14267 = vst [vmem:[#allocation58_spill] sm:$0xff] %v11597_v3  ;;  %4975 = vmatprep.mubr.bf16.mxu0 %v9428_v23  ;;  %v14272_v3 = vld [vmem:[#allocation61_spill] sm:$0xff] }
 0x232   : > { %v9429_v23 = vld [vmem:[%s9642_s17 + $0xd0] ss:$8 sps:$4 sm:$0xff]  }
 0x233   : > { %v3902_v31 = vpop.f32.mrb[8].mxu0 }
 0x234   : > { %v11604_v51 = vadd.f32 %v3902_v31, %v11187_v32  ;;  %v3904_v40 = vpop.f32.mrb[9].mxu0  ;;  %v9430_v32 = vld [vmem:[%s9642_s17 + $0xe4] ss:$8 sps:$4 sm:$0xff]  }
 0x235   : > { %v11607_v2 = vadd.f32 %v3904_v40, %v11191_v11  ;;  %v3906_v9 = vpop.f32.mrb[10].mxu0 }
 0x236   : > { %v11610_v46 = vadd.f32 %v3906_v9, %v11194_v53  ;;  %v3908_v42 = vpop.f32.mrb[11].mxu0 }
 0x237   : > { %14270 = vst [vmem:[#allocation59_spill] sm:$0xff] %v11607_v2  ;;  %v11613_v4 = vadd.f32 %v3908_v42, %v11196_v10  ;;  %4590 = vmatmul.mubr.bf16.gmra.mrb[116].mxu1 %v14272_v3 }
 0x238   : > { %4976 = vmatmul.mubr.bf16.gmra.mrb[116].mxu0 %v9429_v23  ;;  %4599 = vmatprep.mubr.bf16.mxu1 %v14273_v62 }
 0x239   : > { %14271 = vst [vmem:[#allocation60_spill] sm:$0xff] %v11613_v4  ;;  %4985 = vmatprep.mubr.bf16.mxu0 %v9430_v32  ;;  %v9431_v32 = vld [vmem:[%s9642_s17 + $0xe0] ss:$8 sps:$4 sm:$0xff]   ;;  %v14319_v4 = vld [vmem:[#allocation97_spill] sm:$0xff] }
 0x23b   : > { %v3912_v11 = vpop.f32.mrb[12].mxu0 }
 0x23c   : > { %v11620_v31 = vadd.f32 %v3912_v11, %v11212_v24  ;;  %v3914_v53 = vpop.f32.mrb[13].mxu0  ;;  %v9432_v24 = vld [vmem:[%s9642_s17 + $0xf4] ss:$8 sps:$4 sm:$0xff]  }
 0x23d   : > { %v11623_v40 = vadd.f32 %v3914_v53, %v11217_v56  ;;  %v3916_v10 = vpop.f32.mrb[14].mxu0 }
 0x23e   : > { %v11626_v9 = vadd.f32 %v3916_v10, %v11219_v0  ;;  %v3918_v42 = vpop.f32.mrb[15].mxu0 }
 0x23f   : > { %14274 = vst [vmem:[#allocation61_spill] sm:$0xff] %v11623_v40  ;;  %v11629_v23 = vadd.f32 %v3918_v42, %v11221_v39  ;;  %4600 = vmatmul.mubr.bf16.gmra.mrb[120].mxu1 %v10717_v27 }
 0x240   : > { %4986 = vmatmul.mubr.bf16.gmra.mrb[120].mxu0 %v9431_v32  ;;  %4609 = vmatprep.mubr.bf16.mxu1 %v10720_v30  ;;  %v9433_v32 = vld [vmem:[%s9642_s17 + $0xf0] ss:$8 sps:$4 sm:$0xff]  }
 0x241   : > { %14275 = vst [vmem:[#allocation62_spill] sm:$0xff] %v11629_v23  ;;  %4995 = vmatprep.mubr.bf16.mxu0 %v9432_v24 }
 0x243   : > { %v3922_v11 = vpop.f32.mrb[16].mxu0 }
 0x244   : > { %v11636_v56 = vadd.f32 %v3922_v11, %v11233_v8  ;;  %v3924_v53 = vpop.f32.mrb[17].mxu0 }
 0x245   : > { %v11639_v0 = vadd.f32 %v3924_v53, %v11237_v45  ;;  %v3926_v10 = vpop.f32.mrb[18].mxu0 }
 0x246   : > { %v11642_v39 = vadd.f32 %v3926_v10, %v11239_v16  ;;  %v3928_v42 = vpop.f32.mrb[19].mxu0 }
 0x247   : > { %14276 = vst [vmem:[#allocation111_spill] sm:$0xff] %v11639_v0  ;;  %v11645_v23 = vadd.f32 %v3928_v42, %v11241_v52  ;;  %4610 = vmatmul.mubr.bf16.gmra.mrb[124].mxu1 %v10736_v48  ;;  %v9023_v52 = vld [vmem:[%s13800_s1 + $0x610] ss:$24 sps:$4 sm:$0xff]   ;;  %v9031_v42 = vld [vmem:[%s13800_s1 + $0x674] ss:$24 sps:$4 sm:$0xff]  }
 0x248   : > { %4996 = vmatmul.mubr.bf16.gmra.mrb[124].mxu0 %v9433_v32  ;;  %4652 = vmatprep.mubr.bf16.mxu1 %v10739_v49 }
 0x249   : > { %14277 = vst [vmem:[#allocation112_spill] sm:$0xff] %v11645_v23  ;;  %5038 = vmatprep.mubr.bf16.mxu0 %v9697_v1  ;;  %v9028_v1 = vld [vmem:[%s13800_s1 + $0x644] ss:$24 sps:$4 sm:$0xff]  }
 0x24b   : > { %v3932_v8 = vpop.f32.mrb[20].mxu0 }
 0x24c   : > { %v11652_v45 = vadd.f32 %v3932_v8, %v11248_v22  ;;  %v3934_v24 = vpop.f32.mrb[21].mxu0 }
 0x24d   : > { %v11655_v16 = vadd.f32 %v3934_v24, %v11252_v17  ;;  %v3936_v11 = vpop.f32.mrb[22].mxu0  ;;  %v9026_v17 = vld [vmem:[%s13800_s1 + $0x640] ss:$24 sps:$4 sm:$0xff]  }
 0x24e   : > { %v11661_v53 = vadd.f32 %v3936_v11, %v11254_v19  ;;  %v3938_v10 = vpop.f32.mrb[23].mxu0  ;;  %v14280_v19 = vld [vmem:[#allocation2_spill] sm:$0xff] }
 0x24f   : > { %14278 = vst [vmem:[#allocation113_spill] sm:$0xff] %v11655_v16  ;;  %v11667_v22 = vadd.f32 %v3938_v10, %v11256_v26  ;;  %4653 = vmatmul.mubr.bf16.vlgmr.msra.gmra.mrb[64].mxu1 %v10394_v38  ;;  %v9029_v10 = vld [vmem:[%s13800_s1 + $0x670] ss:$24 sps:$4 sm:$0xff]   ;;  %v14309_v16 = vld [vmem:[#allocation93_spill] sm:$0xff] }
 0x250   : > { %5039 = vmatmul.mubr.bf16.vlgmr.msra.gmra.mrb[64].mxu0 %v9755_v25  ;;  %4662 = vmatprep.mubr.bf16.mxu1 %v10757_v15 }
 0x251   : > { %14279 = vst [vmem:[#allocation114_spill] sm:$0xff] %v11667_v22  ;;  %5200 = vmatpush1.bf16.msra.mxu0 %v9023_v52  ;;  %5048 = vmatprep.mubr.bf16.mxu0 %v14280_v19 }
 0x252   : > { %5201 = vmatprep.subr.bf16.mxu0 %v9028_v1 }
 0x253   : > { %v3942_v26 = vpop.f32.mrb[24].mxu0 }
 0x254   : > { %v11680_v32 = vadd.f32 %v3942_v26, %v11272_v21  ;;  %v3944_v8 = vpop.f32.mrb[25].mxu0  ;;  %v9034_v21 = vld [vmem:[%s13800_s1 + $0x6a4] ss:$24 sps:$4 sm:$0xff]  }
 0x255   : > { %v11683_v25 = vadd.f32 %v3944_v8, %v11278_v5  ;;  %v3946_v24 = vpop.f32.mrb[26].mxu0  ;;  %5202 = vmatpush1.bf16.msra.mxu0 %v9026_v17  ;;  %v14283_v5 = vld [vmem:[#allocation63_spill] sm:$0xff]  ;;  %v9032_v17 = vld [vmem:[%s13800_s1 + $0x6a0] ss:$24 sps:$4 sm:$0xff]  }
 0x256   : > { %v11686_v11 = vadd.f32 %v3946_v24, %v11284_v47  ;;  %v3948_v52 = vpop.f32.mrb[27].mxu0  ;;  %5203 = vmatprep.subr.bf16.mxu0 %v9031_v42  ;;  %v14284_v47 = vld [vmem:[#allocation3_spill] sm:$0xff] }
 0x257   : > { %14281 = vst [vmem:[#allocation2_spill] sm:$0xff] %v11683_v25  ;;  %v11692_v1 = vadd.f32 %v3948_v52, %v11289_v59  ;;  %4663 = vmatmul.mubr.bf16.gmra.mrb[68].mxu1 %v10787_v28  ;;  %v9037_v59 = vld [vmem:[%s13800_s1 + $0x6d4] ss:$24 sps:$4 sm:$0xff]  }
 0x258   : > { %5049 = vmatmul.mubr.bf16.gmra.mrb[68].mxu0 %v9795_v41  ;;  %4672 = vmatprep.mubr.bf16.mxu1 %v14283_v5 }
 0x259   : > { %14282 = vst [vmem:[#allocation115_spill] sm:$0xff] %v11692_v1  ;;  %5058 = vmatprep.mubr.bf16.mxu0 %v14284_v47  ;;  %5204 = vmatpush1.bf16.msra.mxu0 %v9029_v10  ;;  %v9035_v10 = vld [vmem:[%s13800_s1 + $0x6d0] ss:$24 sps:$4 sm:$0xff]  }
 0x25a   : > { %5205 = vmatprep.subr.bf16.mxu0 %v9034_v21 }
 0x25b   : > { %v3952_v19 = vpop.f32.mrb[28].mxu0 }
 0x25c   : > { %v11708_v42 = vadd.f32 %v3952_v19, %v11308_v63  ;;  %v3954_v26 = vpop.f32.mrb[29].mxu0  ;;  %v9040_v63 = vld [vmem:[%s13800_s1 + $0x704] ss:$24 sps:$4 sm:$0xff]  }
 0x25d   : > { %v11711_v41 = vadd.f32 %v3954_v26, %v11312_v35  ;;  %v3956_v8 = vpop.f32.mrb[30].mxu0  ;;  %5206 = vmatpush1.bf16.msra.mxu0 %v9032_v17  ;;  %v9038_v35 = vld [vmem:[%s13800_s1 + $0x700] ss:$24 sps:$4 sm:$0xff]  }
 0x25e   : > { %v11714_v24 = vadd.f32 %v3956_v8, %v11317_v50  ;;  %v3958_v52 = vpop.f32.mrb[31].mxu0  ;;  %5207 = vmatprep.subr.bf16.mxu0 %v9037_v59  ;;  %v9041_v8 = vld [vmem:[%s13800_s1 + $0x730] ss:$24 sps:$4 sm:$0xff]  }
 0x25f   : > { %14285 = vst [vmem:[#allocation63_spill] sm:$0xff] %v11711_v41  ;;  %v11720_v21 = vadd.f32 %v3958_v52, %v11325_v33  ;;  %4673 = vmatmul.mubr.bf16.gmra.mrb[72].mxu1 %v10829_v54  ;;  %v9043_v33 = vld [vmem:[%s13800_s1 + $0x734] ss:$24 sps:$4 sm:$0xff]   ;;  %v14289_v52 = vld [vmem:[#allocation85_spill] sm:$0xff] }
 0x260   : > { %5059 = vmatmul.mubr.bf16.gmra.mrb[72].mxu0 %v9847_v6  ;;  %4682 = vmatprep.mubr.bf16.mxu1 %v10836_v7  ;;  %v14299_v41 = vld [vmem:[#allocation89_spill] sm:$0xff] }
 0x261   : > { %14286 = vst [vmem:[#allocation3_spill] sm:$0xff] %v11720_v21  ;;  %5068 = vmatprep.mubr.bf16.mxu0 %v9855_v13  ;;  %5208 = vmatpush1.bf16.msra.mxu0 %v9035_v10  ;;  %v14288_v13 = vld [vmem:[#allocation84_spill] sm:$0xff] }
 0x262   : > { %5209 = vmatprep.subr.bf16.mxu0 %v9040_v63  ;;  %v14292_v63 = vld [vmem:[#allocation4_spill] sm:$0xff] }
 0x263   : > { %v3962_v50 = vpop.f32.mrb[32].mxu0 }
 0x264   : > { %v11736_v47 = vadd.f32 %v3962_v50, %v11344_v57  ;;  %v3964_v17 = vpop.f32.mrb[33].mxu0  ;;  %v9046_v57 = vld [vmem:[%s13800_s1 + $0x764] ss:$24 sps:$4 sm:$0xff]  }
 0x265   : > { %v11739_v6 = vadd.f32 %v3964_v17, %v11348_v44  ;;  %v3966_v19 = vpop.f32.mrb[34].mxu0  ;;  %5210 = vmatpush1.bf16.msra.mxu0 %v9038_v35  ;;  %v14291_v44 = vld [vmem:[#allocation64_spill] sm:$0xff]  ;;  %v14293_v50 = vld [vmem:[#allocation65_spill] sm:$0xff] }
 0x266   : > { %v11742_v59 = vadd.f32 %v3966_v19, %v14288_v13  ;;  %v3968_v26 = vpop.f32.mrb[35].mxu0  ;;  %5211 = vmatprep.subr.bf16.mxu0 %v9043_v33  ;;  %v14294_v17 = vld [vmem:[#allocation5_spill] sm:$0xff]  ;;  %v9049_v33 = vld [vmem:[%s13800_s1 + $0x794] ss:$24 sps:$4 sm:$0xff]   ;;  %v14295_v13 = vld [vmem:[#allocation86_spill] sm:$0xff] }
 0x267   : > { %14287 = vst [vmem:[#allocation116_spill] sm:$0xff] %v11739_v6  ;;  %v11748_v10 = vadd.f32 %v3968_v26, %v14289_v52  ;;  %4683 = vmatmul.mubr.bf16.gmra.mrb[76].mxu1 %v14291_v44  ;;  %v9044_v35 = vld [vmem:[%s13800_s1 + $0x760] ss:$24 sps:$4 sm:$0xff]  }
 0x268   : > { %5069 = vmatmul.mubr.bf16.gmra.mrb[76].mxu0 %v14292_v63  ;;  %4692 = vmatprep.mubr.bf16.mxu1 %v14293_v50  ;;  %v14296_v63 = vld [vmem:[#allocation87_spill] sm:$0xff] }
 0x269   : > { %14290 = vst [vmem:[#allocation84_spill] sm:$0xff] %v11748_v10  ;;  %5078 = vmatprep.mubr.bf16.mxu0 %v14294_v17  ;;  %5212 = vmatpush1.bf16.msra.mxu0 %v9041_v8  ;;  %v14298_v17 = vld [vmem:[#allocation88_spill] sm:$0xff] }
 0x26a   : > { %5213 = vmatprep.subr.bf16.mxu0 %v9046_v57  ;;  %v9047_v57 = vld [vmem:[%s13800_s1 + $0x790] ss:$24 sps:$4 sm:$0xff]  }
 0x26b   : > { %v3972_v19 = vpop.f32.mrb[36].mxu0 }
 0x26c   : > { %v11764_v26 = vadd.f32 %v3972_v19, %v14295_v13  ;;  %v3974_v52 = vpop.f32.mrb[37].mxu0  ;;  %v9052_v19 = vld [vmem:[%s13800_s1 + $0x7c4] ss:$24 sps:$4 sm:$0xff]  }
 0x26d   : > { %v11767_v10 = vadd.f32 %v3974_v52, %v14296_v63  ;;  %v3976_v6 = vpop.f32.mrb[38].mxu0  ;;  %5214 = vmatpush1.bf16.msra.mxu0 %v9044_v35  ;;  %v14301_v13 = vld [vmem:[#allocation66_spill] sm:$0xff]  ;;  %v14304_v63 = vld [vmem:[#allocation7_spill] sm:$0xff] }
 0x26e   : > { %v11770_v8 = vadd.f32 %v3976_v6, %v14298_v17  ;;  %v3978_v21 = vpop.f32.mrb[39].mxu0  ;;  %5215 = vmatprep.subr.bf16.mxu0 %v9049_v33  ;;  %v14302_v52 = vld [vmem:[#allocation6_spill] sm:$0xff]  ;;  %v14303_v6 = vld [vmem:[#allocation67_spill] sm:$0xff] }
 0x26f   : > { %14297 = vst [vmem:[#allocation85_spill] sm:$0xff] %v11767_v10  ;;  %v11776_v1 = vadd.f32 %v3978_v21, %v14299_v41  ;;  %4693 = vmatmul.mubr.bf16.gmra.mrb[80].mxu1 %v14301_v13  ;;  %v9050_v35 = vld [vmem:[%s13800_s1 + $0x7c0] ss:$24 sps:$4 sm:$0xff]   ;;  %v9055_v21 = vld [vmem:[%s13800_s1 + $0x7f4] ss:$24 sps:$4 sm:$0xff]  }
 0x270   : > { %5079 = vmatmul.mubr.bf16.gmra.mrb[80].mxu0 %v14302_v52  ;;  %4702 = vmatprep.mubr.bf16.mxu1 %v14303_v6  ;;  %v14305_v33 = vld [vmem:[#allocation90_spill] sm:$0xff]  ;;  %v14306_v52 = vld [vmem:[#allocation91_spill] sm:$0xff] }
 0x271   : > { %14300 = vst [vmem:[#allocation64_spill] sm:$0xff] %v11776_v1  ;;  %5088 = vmatprep.mubr.bf16.mxu0 %v14304_v63  ;;  %5216 = vmatpush1.bf16.msra.mxu0 %v9047_v57  ;;  %v14308_v63 = vld [vmem:[#allocation92_spill] sm:$0xff] }
 0x272   : > { %5217 = vmatprep.subr.bf16.mxu0 %v9052_v19  ;;  %v9053_v19 = vld [vmem:[%s13800_s1 + $0x7f0] ss:$24 sps:$4 sm:$0xff]  }
 0x273   : > { %v3982_v41 = vpop.f32.mrb[40].mxu0 }
 0x274   : > { %v11792_v17 = vadd.f32 %v3982_v41, %v14305_v33  ;;  %v3984_v1 = vpop.f32.mrb[41].mxu0  ;;  %v9058_v41 = vld [vmem:[%s13800_s1 + $0x824] ss:$24 sps:$4 sm:$0xff]   ;;  %v14312_v33 = vld [vmem:[#allocation8_spill] sm:$0xff] }
 0x275   : > { %v11795_v10 = vadd.f32 %v3984_v1, %v14306_v52  ;;  %v3986_v25 = vpop.f32.mrb[42].mxu0  ;;  %5218 = vmatpush1.bf16.msra.mxu0 %v9050_v35  ;;  %v14311_v1 = vld [vmem:[#allocation68_spill] sm:$0xff]  ;;  %v14314_v52 = vld [vmem:[#allocation9_spill] sm:$0xff] }
 0x276   : > { %v11798_v57 = vadd.f32 %v3986_v25, %v14308_v63  ;;  %v3988_v22 = vpop.f32.mrb[43].mxu0  ;;  %5219 = vmatprep.subr.bf16.mxu0 %v9055_v21  ;;  %v14313_v25 = vld [vmem:[#allocation69_spill] sm:$0xff]  ;;  %v14315_v21 = vld [vmem:[#allocation94_spill] sm:$0xff] }
 0x277   : > { %14307 = vst [vmem:[#allocation4_spill] sm:$0xff] %v11795_v10  ;;  %v11804_v23 = vadd.f32 %v3988_v22, %v14309_v16  ;;  %4703 = vmatmul.mubr.bf16.gmra.mrb[84].mxu1 %v14311_v1  ;;  %v9056_v35 = vld [vmem:[%s13800_s1 + $0x820] ss:$24 sps:$4 sm:$0xff]   ;;  %v9061_v22 = vld [vmem:[%s13800_s1 + $0x854] ss:$24 sps:$4 sm:$0xff]  }
 0x278   : > { %5089 = vmatmul.mubr.bf16.gmra.mrb[84].mxu0 %v14312_v33  ;;  %4712 = vmatprep.mubr.bf16.mxu1 %v14313_v25  ;;  %v14316_v33 = vld [vmem:[#allocation95_spill] sm:$0xff] }
 0x279   : > { %14310 = vst [vmem:[#allocation65_spill] sm:$0xff] %v11804_v23  ;;  %5098 = vmatprep.mubr.bf16.mxu0 %v14314_v52  ;;  %5220 = vmatpush1.bf16.msra.mxu0 %v9053_v19  ;;  %v14318_v52 = vld [vmem:[#allocation96_spill] sm:$0xff] }
 0x27a   : > { %5221 = vmatprep.subr.bf16.mxu0 %v9058_v41  ;;  %v9059_v41 = vld [vmem:[%s13800_s1 + $0x850] ss:$24 sps:$4 sm:$0xff]  }
 0x27b   : > { %v3992_v16 = vpop.f32.mrb[44].mxu0 }
 0x27c   : > { %v11820_v63 = vadd.f32 %v3992_v16, %v14315_v21  ;;  %v3994_v23 = vpop.f32.mrb[45].mxu0  ;;  %v9064_v16 = vld [vmem:[%s13800_s1 + $0x884] ss:$24 sps:$4 sm:$0xff]  }
 0x27d   : > { %v11823_v10 = vadd.f32 %v3994_v23, %v14316_v33  ;;  %v3996_v0 = vpop.f32.mrb[46].mxu0  ;;  %5222 = vmatpush1.bf16.msra.mxu0 %v9056_v35  ;;  %v14321_v23 = vld [vmem:[#allocation70_spill] sm:$0xff]  ;;  %v14324_v33 = vld [vmem:[#allocation11_spill] sm:$0xff] }
 0x27e   : > { %v11826_v19 = vadd.f32 %v3996_v0, %v14318_v52  ;;  %v3998_v40 = vpop.f32.mrb[47].mxu0  ;;  %5223 = vmatprep.subr.bf16.mxu0 %v9061_v22  ;;  %v14322_v21 = vld [vmem:[#allocation10_spill] sm:$0xff]  ;;  %v14323_v0 = vld [vmem:[#allocation71_spill] sm:$0xff] }
 0x27f   : > { %14317 = vst [vmem:[#allocation5_spill] sm:$0xff] %v11823_v10  ;;  %v11832_v2 = vadd.f32 %v3998_v40, %v14319_v4  ;;  %4713 = vmatmul.mubr.bf16.gmra.mrb[88].mxu1 %v14321_v23  ;;  %v9062_v35 = vld [vmem:[%s13800_s1 + $0x880] ss:$24 sps:$4 sm:$0xff]   ;;  %v9067_v40 = vld [vmem:[%s13800_s1 + $0x8b4] ss:$24 sps:$4 sm:$0xff]  }
 0x280   : > { %5099 = vmatmul.mubr.bf16.gmra.mrb[88].mxu0 %v14322_v21  ;;  %4722 = vmatprep.mubr.bf16.mxu1 %v14323_v0  ;;  %v14329_v0 = vld [vmem:[#allocation99_spill] sm:$0xff] }
 0x281   : > { %14320 = vst [vmem:[#allocation86_spill] sm:$0xff] %v11832_v2  ;;  %5108 = vmatprep.mubr.bf16.mxu0 %v14324_v33  ;;  %5224 = vmatpush1.bf16.msra.mxu0 %v9059_v41  ;;  %v14327_v33 = vld [vmem:[#allocation98_spill] sm:$0xff] }
 0x282   : > { %5225 = vmatprep.subr.bf16.mxu0 %v9064_v16  ;;  %v9065_v16 = vld [vmem:[%s13800_s1 + $0x8b0] ss:$24 sps:$4 sm:$0xff]  }
 0x283   : > { %v4002_v4 = vpop.f32.mrb[48].mxu0 }
 0x284   : > { %v11848_v22 = vadd.f32 %v4002_v4, %v11488_v37  ;;  %v4004_v52 = vpop.f32.mrb[49].mxu0  ;;  %v9070_v37 = vld [vmem:[%s13800_s1 + $0x8e4] ss:$24 sps:$4 sm:$0xff]   ;;  %v14332_v4 = vld [vmem:[#allocation12_spill] sm:$0xff] }
 0x285   : > { %v11851_v21 = vadd.f32 %v4004_v52, %v11492_v60  ;;  %v4006_v2 = vpop.f32.mrb[50].mxu0  ;;  %5226 = vmatpush1.bf16.msra.mxu0 %v9062_v35  ;;  %v14331_v60 = vld [vmem:[#allocation72_spill] sm:$0xff]  ;;  %v14334_v52 = vld [vmem:[#allocation13_spill] sm:$0xff] }
 0x286   : > { %14325 = vst [vmem:[#allocation87_spill] sm:$0xff] %v11848_v22  ;;  %v11854_v41 = vadd.f32 %v4006_v2, %v14327_v33  ;;  %v4008_v10 = vpop.f32.mrb[51].mxu0  ;;  %5227 = vmatprep.subr.bf16.mxu0 %v9067_v40  ;;  %v14333_v2 = vld [vmem:[#allocation73_spill] sm:$0xff]  ;;  %v14341_v22 = vld [vmem:[#allocation16_spill] sm:$0xff] }
 0x287   : > { %14326 = vst [vmem:[#allocation88_spill] sm:$0xff] %v11851_v21  ;;  %v11860_v23 = vadd.f32 %v4008_v10, %v14329_v0  ;;  %4723 = vmatmul.mubr.bf16.gmra.mrb[92].mxu1 %v14331_v60  ;;  %v9068_v35 = vld [vmem:[%s13800_s1 + $0x8e0] ss:$24 sps:$4 sm:$0xff]   ;;  %v9073_v0 = vld [vmem:[%s13800_s1 + $0x914] ss:$24 sps:$4 sm:$0xff]  }
 0x288   : > { %14328 = vst [vmem:[#allocation89_spill] sm:$0xff] %v11854_v41  ;;  %5109 = vmatmul.mubr.bf16.gmra.mrb[92].mxu0 %v14332_v4  ;;  %4732 = vmatprep.mubr.bf16.mxu1 %v14333_v2  ;;  %v14335_v4 = vld [vmem:[#allocation100_spill] sm:$0xff]  ;;  %v14338_v60 = vld [vmem:[#allocation102_spill] sm:$0xff] }
 0x289   : > { %14330 = vst [vmem:[#allocation66_spill] sm:$0xff] %v11860_v23  ;;  %5118 = vmatprep.mubr.bf16.mxu0 %v14334_v52  ;;  %5228 = vmatpush1.bf16.msra.mxu0 %v9065_v16  ;;  %v14337_v52 = vld [vmem:[#allocation101_spill] sm:$0xff] }
 0x28a   : > { %5229 = vmatprep.subr.bf16.mxu0 %v9070_v37  ;;  %v14340_v37 = vld [vmem:[#allocation74_spill] sm:$0xff] }
 0x28b   : > { %v4012_v10 = vpop.f32.mrb[52].mxu0 }
 0x28c   : > { %v11876_v40 = vadd.f32 %v4012_v10, %v11524_v34  ;;  %v4014_v33 = vpop.f32.mrb[53].mxu0  ;;  %v14342_v34 = vld [vmem:[#allocation14_spill] sm:$0xff]  ;;  %v14343_v10 = vld [vmem:[#allocation17_spill] sm:$0xff] }
 0x28d   : > { %v11879_v23 = vadd.f32 %v4014_v33, %v14335_v4  ;;  %v4016_v21 = vpop.f32.mrb[54].mxu0  ;;  %5230 = vmatpush1.bf16.msra.mxu0 %v9068_v35 }
 0x28e   : > { %v11882_v16 = vadd.f32 %v4016_v21, %v14337_v52  ;;  %v4018_v2 = vpop.f32.mrb[55].mxu0  ;;  %5392 = vmatprep.subr.bf16.mxu0 %v9073_v0 }
 0x28f   : > { %14336 = vst [vmem:[#allocation6_spill] sm:$0xff] %v11879_v23  ;;  %v11885_v41 = vadd.f32 %v4018_v2, %v14338_v60  ;;  %4733 = vmatmul.mubr.bf16.gmra.mrb[96].mxu1 %v14340_v37  ;;  %v14346_v60 = vld [vmem:[#allocation103_spill] sm:$0xff] }
 0x290   : > { %5119 = vmatmul.mubr.bf16.gmra.mrb[96].mxu0 %v14341_v22  ;;  %4742 = vmatprep.mubr.bf16.mxu1 %v14342_v34  ;;  %v14350_v22 = vld [vmem:[#allocation15_spill] sm:$0xff]  ;;  %v14351_v34 = vld [vmem:[#allocation20_spill] sm:$0xff] }
 0x291   : > { %14339 = vst [vmem:[#allocation67_spill] sm:$0xff] %v11885_v41  ;;  %5128 = vmatprep.mubr.bf16.mxu0 %v14343_v10  ;;  %v14348_v41 = vld [vmem:[#allocation104_spill] sm:$0xff]  ;;  %v14352_v10 = vld [vmem:[#allocation18_spill] sm:$0xff] }
 0x293   : > { %v4022_v33 = vpop.f32.mrb[56].mxu0 }
 0x294   : > { %v11892_v4 = vadd.f32 %v4022_v33, %v11545_v36  ;;  %v4024_v21 = vpop.f32.mrb[57].mxu0  ;;  %v14353_v36 = vld [vmem:[#allocation21_spill] sm:$0xff] }
 0x295   : > { %v11895_v52 = vadd.f32 %v4024_v21, %v11549_v55  ;;  %v4026_v35 = vpop.f32.mrb[58].mxu0 }
 0x296   : > { %14344 = vst [vmem:[#allocation7_spill] sm:$0xff] %v11892_v4  ;;  %v11898_v2 = vadd.f32 %v4026_v35, %v14346_v60  ;;  %v4028_v0 = vpop.f32.mrb[59].mxu0  ;;  %v14354_v4 = vld [vmem:[#allocation105_spill] sm:$0xff] }
 0x297   : > { %14345 = vst [vmem:[#allocation90_spill] sm:$0xff] %v11895_v52  ;;  %v11901_v23 = vadd.f32 %v4028_v0, %v14348_v41  ;;  %4743 = vmatmul.mubr.bf16.gmra.mrb[100].mxu1 %v14350_v22  ;;  %v14355_v52 = vld [vmem:[#allocation106_spill] sm:$0xff] }
 0x298   : > { %14347 = vst [vmem:[#allocation91_spill] sm:$0xff] %v11898_v2  ;;  %5129 = vmatmul.mubr.bf16.gmra.mrb[100].mxu0 %v14351_v34  ;;  %4752 = vmatprep.mubr.bf16.mxu1 %v14352_v10  ;;  %v14357_v2 = vld [vmem:[#allocation107_spill] sm:$0xff] }
 0x299   : > { %14349 = vst [vmem:[#allocation92_spill] sm:$0xff] %v11901_v23  ;;  %5138 = vmatprep.mubr.bf16.mxu0 %v14353_v36  ;;  %v14358_v23 = vld [vmem:[#allocation108_spill] sm:$0xff]  ;;  %v14360_v34 = vld [vmem:[#allocation19_spill] sm:$0xff]  ;;  %v14362_v36 = vld [vmem:[#allocation22_spill] sm:$0xff] }
 0x29a   : > { %v14361_v10 = vld [vmem:[#allocation23_spill] sm:$0xff] }
 0x29b   : > { %v4032_v33 = vpop.f32.mrb[60].mxu0 }
 0x29c   : > { %v11908_v55 = vadd.f32 %v4032_v33, %v14354_v4  ;;  %v4034_v21 = vpop.f32.mrb[61].mxu0  ;;  %v14363_v4 = vld [vmem:[#allocation24_spill] sm:$0xff]  ;;  %v14364_v33 = vld [vmem:[#allocation75_spill] sm:$0xff] }
 0x29d   : > { %v11911_v35 = vadd.f32 %v4034_v21, %v14355_v52  ;;  %v4036_v60 = vpop.f32.mrb[62].mxu0  ;;  %v14365_v52 = vld [vmem:[#allocation25_spill] sm:$0xff]  ;;  %v14366_v21 = vld [vmem:[#allocation76_spill] sm:$0xff] }
 0x29e   : > { %v11914_v41 = vadd.f32 %v4036_v60, %v14357_v2  ;;  %v4038_v0 = vpop.f32.mrb[63].mxu0  ;;  %v14367_v2 = vld [vmem:[#allocation26_spill] sm:$0xff]  ;;  %v14368_v60 = vld [vmem:[#allocation77_spill] sm:$0xff] }
 0x29f   : > { %14356 = vst [vmem:[#allocation93_spill] sm:$0xff] %v11911_v35  ;;  %v11917_v22 = vadd.f32 %v4038_v0, %v14358_v23  ;;  %4753 = vmatmul.mubr.bf16.gmra.mrb[104].mxu1 %v14360_v34  ;;  %v14369_v23 = vld [vmem:[#allocation27_spill] sm:$0xff]  ;;  %v14370_v0 = vld [vmem:[#allocation78_spill] sm:$0xff]  ;;  %v14373_v35 = vld [vmem:[#allocation29_spill] sm:$0xff] }
 0x2a0   : > { %5139 = vmatmul.mubr.bf16.gmra.mrb[104].mxu0 %v14361_v10  ;;  %4762 = vmatprep.mubr.bf16.mxu1 %v14362_v36  ;;  %v14372_v10 = vld [vmem:[#allocation79_spill] sm:$0xff] }
 0x2a1   : > { %14359 = vst [vmem:[#allocation68_spill] sm:$0xff] %v11917_v22  ;;  %5148 = vmatprep.mubr.bf16.mxu0 %v14363_v4  ;;  %v14371_v22 = vld [vmem:[#allocation28_spill] sm:$0xff] }
 0x2a2   : > { %v14374_v4 = vld [vmem:[#allocation80_spill] sm:$0xff] }
 0x2a7   : > { %4763 = vmatmul.mubr.bf16.gmra.mrb[108].mxu1 %v14364_v33  ;;  %v14375_v33 = vld [vmem:[#allocation30_spill] sm:$0xff] }
 0x2a8   : > { %5149 = vmatmul.mubr.bf16.gmra.mrb[108].mxu0 %v14365_v52  ;;  %4772 = vmatprep.mubr.bf16.mxu1 %v14366_v21  ;;  %v14376_v52 = vld [vmem:[#allocation81_spill] sm:$0xff]  ;;  %v14377_v21 = vld [vmem:[#allocation31_spill] sm:$0xff] }
 0x2a9   : > { %5158 = vmatprep.mubr.bf16.mxu0 %v14367_v2  ;;  %v14378_v2 = vld [vmem:[#allocation82_spill] sm:$0xff] }
 0x2af   : > { %4773 = vmatmul.mubr.bf16.gmra.mrb[112].mxu1 %v14368_v60  ;;  %v14379_v60 = vld [vmem:[#allocation32_spill] sm:$0xff] }
 0x2b0   : > { %5159 = vmatmul.mubr.bf16.gmra.mrb[112].mxu0 %v14369_v23  ;;  %4782 = vmatprep.mubr.bf16.mxu1 %v14370_v0  ;;  %v14380_v23 = vld [vmem:[#allocation83_spill] sm:$0xff]  ;;  %v14381_v0 = vld [vmem:[#allocation33_spill] sm:$0xff] }
 0x2b1   : > { %5168 = vmatprep.mubr.bf16.mxu0 %v14371_v22  ;;  %v14382_v22 = vld [vmem:[#allocation34_spill] sm:$0xff] }
 0x2b7   : > { %4783 = vmatmul.mubr.bf16.gmra.mrb[116].mxu1 %v14372_v10  ;;  %v5585_v10 = vmul.f32 %v11572_v58, %v11572_v58  ;;  %v5591_v58 = vmul.f32 %v11588_v20, %v11588_v20  ;;  %v5597_v20 = vmul.f32 %v11604_v51, %v11604_v51  ;;  %v6546_v51 = vld [vmem:[%s13801_s2 + $0x8] sm:$0xff] }
 0x2b8   : > { %5169 = vmatmul.mubr.bf16.gmra.mrb[116].mxu0 %v14373_v35  ;;  %4792 = vmatprep.mubr.bf16.mxu1 %v14374_v4  ;;  %v9071_v35 = vld [vmem:[%s13800_s1 + $0x910] ss:$24 sps:$4 sm:$0xff]  }
 0x2b9   : > { %5178 = vmatprep.mubr.bf16.mxu0 %v14375_v33  ;;  %v9076_v33 = vld [vmem:[%s13800_s1 + $0x944] ss:$24 sps:$4 sm:$0xff]   ;;  %v14403_v4 = vld [vmem:[#allocation55_spill] sm:$0xff] }
 0x2bf   : > { %4793 = vmatmul.mubr.bf16.gmra.mrb[120].mxu1 %v14376_v52  ;;  %v14383_v52 = vld [vmem:[#allocation35_spill] sm:$0xff] }
 0x2c0   : > { %5179 = vmatmul.mubr.bf16.gmra.mrb[120].mxu0 %v14377_v21  ;;  %4802 = vmatprep.mubr.bf16.mxu1 %v14378_v2  ;;  %v14384_v21 = vld [vmem:[#allocation36_spill] sm:$0xff]  ;;  %v14402_v2 = vld [vmem:[#allocation54_spill] sm:$0xff] }
 0x2c1   : > { %5188 = vmatprep.mubr.bf16.mxu0 %v14379_v60  ;;  %v9074_v60 = vld [vmem:[%s13800_s1 + $0x940] ss:$24 sps:$4 sm:$0xff]  }
 0x2c7   : > { %4803 = vmatmul.mubr.bf16.gmra.mrb[124].mxu1 %v14380_v23  ;;  %v14400_v23 = vld [vmem:[#allocation52_spill] sm:$0xff] }
 0x2c8   : > { %5189 = vmatmul.mubr.bf16.gmra.mrb[124].mxu0 %v14381_v0  ;;  %v9079_v0 = vld [vmem:[%s13800_s1 + $0x974] ss:$24 sps:$4 sm:$0xff]  }
 0x2c9   : > { %5231 = vmatprep.mubr.bf16.mxu0 %v14382_v22  ;;  %v9077_v22 = vld [vmem:[%s13800_s1 + $0x970] ss:$24 sps:$4 sm:$0xff]  }
 0x2d0   : > { %5232 = vmatmul.mubr.bf16.vlgmr.msra.gmra.mrb[64].mxu0 %v14383_v52  ;;  %v9082_v52 = vld [vmem:[%s13800_s1 + $0x9a4] ss:$24 sps:$4 sm:$0xff]  }
 0x2d1   : > { %5393 = vmatpush1.bf16.msra.mxu0 %v9071_v35  ;;  %5241 = vmatprep.mubr.bf16.mxu0 %v14384_v21  ;;  %v14385_v35 = vld [vmem:[#allocation37_spill] sm:$0xff]  ;;  %v14386_v21 = vld [vmem:[#allocation38_spill] sm:$0xff] }
 0x2d2   : > { %5394 = vmatprep.subr.bf16.mxu0 %v9076_v33  ;;  %v9080_v33 = vld [vmem:[%s13800_s1 + $0x9a0] ss:$24 sps:$4 sm:$0xff]  }
 0x2d5   : > { %5395 = vmatpush1.bf16.msra.mxu0 %v9074_v60  ;;  %v9085_v60 = vld [vmem:[%s13800_s1 + $0x9d4] ss:$24 sps:$4 sm:$0xff]  }
 0x2d6   : > { %5396 = vmatprep.subr.bf16.mxu0 %v9079_v0  ;;  %v9083_v0 = vld [vmem:[%s13800_s1 + $0x9d0] ss:$24 sps:$4 sm:$0xff]  }
 0x2d8   : > { %5242 = vmatmul.mubr.bf16.gmra.mrb[68].mxu0 %v14385_v35  ;;  %v9088_v35 = vld [vmem:[%s13800_s1 + $0xa04] ss:$24 sps:$4 sm:$0xff]  }
 0x2d9   : > { %5251 = vmatprep.mubr.bf16.mxu0 %v14386_v21  ;;  %5397 = vmatpush1.bf16.msra.mxu0 %v9077_v22  ;;  %v14387_v22 = vld [vmem:[#allocation39_spill] sm:$0xff]  ;;  %v14388_v21 = vld [vmem:[#allocation40_spill] sm:$0xff] }
 0x2da   : > { %5398 = vmatprep.subr.bf16.mxu0 %v9082_v52  ;;  %v9086_v52 = vld [vmem:[%s13800_s1 + $0xa00] ss:$24 sps:$4 sm:$0xff]  }
 0x2dd   : > { %5399 = vmatpush1.bf16.msra.mxu0 %v9080_v33  ;;  %v9091_v33 = vld [vmem:[%s13800_s1 + $0xa34] ss:$24 sps:$4 sm:$0xff]  }
 0x2de   : > { %5400 = vmatprep.subr.bf16.mxu0 %v9085_v60  ;;  %v9089_v60 = vld [vmem:[%s13800_s1 + $0xa30] ss:$24 sps:$4 sm:$0xff]  }
 0x2e0   : > { %5252 = vmatmul.mubr.bf16.gmra.mrb[72].mxu0 %v14387_v22  ;;  %v9094_v22 = vld [vmem:[%s13800_s1 + $0xa64] ss:$24 sps:$4 sm:$0xff]  }
 0x2e1   : > { %5261 = vmatprep.mubr.bf16.mxu0 %v14388_v21  ;;  %5401 = vmatpush1.bf16.msra.mxu0 %v9083_v0  ;;  %v14389_v0 = vld [vmem:[#allocation41_spill] sm:$0xff]  ;;  %v14390_v21 = vld [vmem:[#allocation42_spill] sm:$0xff] }
 0x2e2   : > { %5402 = vmatprep.subr.bf16.mxu0 %v9088_v35  ;;  %v9092_v35 = vld [vmem:[%s13800_s1 + $0xa60] ss:$24 sps:$4 sm:$0xff]  }
 0x2e5   : > { %5403 = vmatpush1.bf16.msra.mxu0 %v9086_v52  ;;  %v9097_v52 = vld [vmem:[%s13800_s1 + $0xa94] ss:$24 sps:$4 sm:$0xff]  }
 0x2e6   : > { %5404 = vmatprep.subr.bf16.mxu0 %v9091_v33  ;;  %v9095_v33 = vld [vmem:[%s13800_s1 + $0xa90] ss:$24 sps:$4 sm:$0xff]  }
 0x2e8   : > { %5262 = vmatmul.mubr.bf16.gmra.mrb[76].mxu0 %v14389_v0  ;;  %v9100_v0 = vld [vmem:[%s13800_s1 + $0xac4] ss:$24 sps:$4 sm:$0xff]  }
 0x2e9   : > { %5271 = vmatprep.mubr.bf16.mxu0 %v14390_v21  ;;  %5405 = vmatpush1.bf16.msra.mxu0 %v9089_v60  ;;  %v14391_v60 = vld [vmem:[#allocation43_spill] sm:$0xff]  ;;  %v14392_v21 = vld [vmem:[#allocation44_spill] sm:$0xff] }
 0x2ea   : > { %5406 = vmatprep.subr.bf16.mxu0 %v9094_v22  ;;  %v9098_v22 = vld [vmem:[%s13800_s1 + $0xac0] ss:$24 sps:$4 sm:$0xff]  }
 0x2ed   : > { %5407 = vmatpush1.bf16.msra.mxu0 %v9092_v35  ;;  %v9103_v35 = vld [vmem:[%s13800_s1 + $0xaf4] ss:$24 sps:$4 sm:$0xff]  }
 0x2ee   : > { %5408 = vmatprep.subr.bf16.mxu0 %v9097_v52  ;;  %v9101_v52 = vld [vmem:[%s13800_s1 + $0xaf0] ss:$24 sps:$4 sm:$0xff]  }
 0x2f0   : > { %5272 = vmatmul.mubr.bf16.gmra.mrb[80].mxu0 %v14391_v60  ;;  %v9106_v60 = vld [vmem:[%s13800_s1 + $0xb24] ss:$24 sps:$4 sm:$0xff]  }
 0x2f1   : > { %5281 = vmatprep.mubr.bf16.mxu0 %v14392_v21  ;;  %5409 = vmatpush1.bf16.msra.mxu0 %v9095_v33  ;;  %v14393_v33 = vld [vmem:[#allocation45_spill] sm:$0xff]  ;;  %v14394_v21 = vld [vmem:[#allocation46_spill] sm:$0xff] }
 0x2f2   : > { %5410 = vmatprep.subr.bf16.mxu0 %v9100_v0  ;;  %v9104_v0 = vld [vmem:[%s13800_s1 + $0xb20] ss:$24 sps:$4 sm:$0xff]  }
 0x2f5   : > { %5411 = vmatpush1.bf16.msra.mxu0 %v9098_v22  ;;  %v9109_v22 = vld [vmem:[%s13800_s1 + $0xb54] ss:$24 sps:$4 sm:$0xff]  }
 0x2f6   : > { %5412 = vmatprep.subr.bf16.mxu0 %v9103_v35  ;;  %v9107_v35 = vld [vmem:[%s13800_s1 + $0xb50] ss:$24 sps:$4 sm:$0xff]  }
 0x2f8   : > { %5282 = vmatmul.mubr.bf16.gmra.mrb[84].mxu0 %v14393_v33  ;;  %v9112_v33 = vld [vmem:[%s13800_s1 + $0xb84] ss:$24 sps:$4 sm:$0xff]  }
 0x2f9   : > { %5291 = vmatprep.mubr.bf16.mxu0 %v14394_v21  ;;  %5413 = vmatpush1.bf16.msra.mxu0 %v9101_v52  ;;  %v14395_v52 = vld [vmem:[#allocation47_spill] sm:$0xff]  ;;  %v14396_v21 = vld [vmem:[#allocation48_spill] sm:$0xff] }
 0x2fa   : > { %5414 = vmatprep.subr.bf16.mxu0 %v9106_v60  ;;  %v9110_v60 = vld [vmem:[%s13800_s1 + $0xb80] ss:$24 sps:$4 sm:$0xff]  }
 0x2fd   : > { %5415 = vmatpush1.bf16.msra.mxu0 %v9104_v0  ;;  %v9115_v0 = vld [vmem:[%s13800_s1 + $0xbb4] ss:$24 sps:$4 sm:$0xff]  }
 0x2fe   : > { %5416 = vmatprep.subr.bf16.mxu0 %v9109_v22  ;;  %v9113_v22 = vld [vmem:[%s13800_s1 + $0xbb0] ss:$24 sps:$4 sm:$0xff]  }
 0x300   : > { %5292 = vmatmul.mubr.bf16.gmra.mrb[88].mxu0 %v14395_v52  ;;  %v9118_v52 = vld [vmem:[%s13800_s1 + $0xbe4] ss:$24 sps:$4 sm:$0xff]  }
 0x301   : > { %5301 = vmatprep.mubr.bf16.mxu0 %v14396_v21  ;;  %5417 = vmatpush1.bf16.msra.mxu0 %v9107_v35  ;;  %v14397_v35 = vld [vmem:[#allocation49_spill] sm:$0xff]  ;;  %v14398_v21 = vld [vmem:[#allocation50_spill] sm:$0xff] }
 0x302   : > { %5418 = vmatprep.subr.bf16.mxu0 %v9112_v33  ;;  %v9116_v33 = vld [vmem:[%s13800_s1 + $0xbe0] ss:$24 sps:$4 sm:$0xff]  }
 0x305   : > { %5419 = vmatpush1.bf16.msra.mxu0 %v9110_v60  ;;  %v14399_v60 = vld [vmem:[#allocation51_spill] sm:$0xff] }
 0x306   : > { %5420 = vmatprep.subr.bf16.mxu0 %v9115_v0  ;;  %v14401_v0 = vld [vmem:[#allocation53_spill] sm:$0xff] }
 0x308   : > { %5302 = vmatmul.mubr.bf16.gmra.mrb[92].mxu0 %v14397_v35  ;;  %v14404_v35 = vld [vmem:[#allocation56_spill] sm:$0xff] }
 0x309   : > { %5311 = vmatprep.mubr.bf16.mxu0 %v14398_v21  ;;  %5421 = vmatpush1.bf16.msra.mxu0 %v9113_v22 }
 0x30a   : > { %5422 = vmatprep.subr.bf16.mxu0 %v9118_v52 }
 0x30d   : > { %5423 = vmatpush1.bf16.msra.mxu0 %v9116_v33 }
 0x310   : > { %5312 = vmatmul.mubr.bf16.gmra.mrb[96].mxu0 %v14399_v60 }
 0x311   : > { %5321 = vmatprep.mubr.bf16.mxu0 %v14400_v23  ;;  %v5588_v23 = vmul.f32 %v11578_v61, %v11578_v61  ;;  %v5594_v61 = vmul.f32 %v11594_v18, %v11594_v18  ;;  %v5600_v18 = vmul.f32 %v11610_v46, %v11610_v46 }
 0x318   : > { %5322 = vmatmul.mubr.bf16.gmra.mrb[100].mxu0 %v14401_v0 }
 0x319   : > { %5331 = vmatprep.mubr.bf16.mxu0 %v14402_v2 }
 0x320   : > { %5332 = vmatmul.mubr.bf16.gmra.mrb[104].mxu0 %v14403_v4 }
 0x321   : > { %5341 = vmatprep.mubr.bf16.mxu0 %v14404_v35 }
 0x322   : > { %v12057_v21 = vpop.f32.mrb[64].mxu1 }
 0x323   : > { %14405 = vst [vmem:[#allocation8_spill] sm:$0xff] %v12057_v21  ;;  %v4656_v22 = vpop.f32.mrb[65].mxu1 }
 0x324   : > { %v5681_v52 = vmul.f32 %v4656_v22, %v4656_v22  ;;  %v12061_v33 = vpop.f32.mrb[66].mxu1 }
 0x325   : > { %14406 = vst [vmem:[#allocation69_spill] sm:$0xff] %v12061_v33  ;;  %v4660_v60 = vpop.f32.mrb[67].mxu1 }
 0x326   : > { %v12065_v0 = vadd.f32 %v5681_v52, %v5585_v10  ;;  %v5684_v2 = vmul.f32 %v4660_v60, %v4660_v60 }
 0x328   : > { %5342 = vmatmul.mubr.bf16.gmra.mrb[108].mxu0 %v14264_v43  ;;  %v12068_v4 = vadd.f32 %v5684_v2, %v5588_v23  ;;  %9119 = vrsqrt.f32 %v12065_v0  ;;  %vm5875_vm3 = vcmp.eq.f32.partialorder %v12065_v0, inf  ;;  %vm5877_vm4 = vcmp.eq.f32.partialorder %v12065_v0, 0.0 }
 0x329   : > { %5351 = vmatprep.mubr.bf16.mxu0 %v14265_v12 }
 0x32a   : > { %v12071_v35 = vpop.f32.mrb[68].mxu1  ;;  %9121 = vrsqrt.f32 %v12068_v4  ;;  %vm5896_vm5 = vcmp.eq.f32.partialorder %v12068_v4, inf  ;;  %vm5898_vm6 = vcmp.eq.f32.partialorder %v12068_v4, 0.0 }
 0x32b   : > { %v4666_v21 = vpop.f32.mrb[69].mxu1 }
 0x32c   : > { %v5687_v22 = vmul.f32 %v4666_v21, %v4666_v21  ;;  %v12075_v33 = vpop.f32.mrb[70].mxu1 }
 0x32d   : > { %v4670_v36 = vpop.f32.mrb[71].mxu1 }
 0x32e   : > { %v12079_v10 = vadd.f32 %v5687_v22, %v5591_v58  ;;  %v5690_v43 = vmul.f32 %v4670_v36, %v4670_v36  ;;  %v14027_v22 = vmov 0.0|0.0  }
 0x32f   : > { %7811 = vmatprep.subr.bf16.mxu1 %v14027_v22 }
 0x330   : > { %5352 = vmatmul.mubr.bf16.gmra.mrb[112].mxu0 %v14268_v14  ;;  %v12082_v52 = vadd.f32 %v5690_v43, %v5594_v61  ;;  %v5603_v43 = vmul.f32 %v11620_v31, %v11620_v31  ;;  %v6548_v31 = vld [vmem:[%s13801_s2 + $0x18] sm:$0xff]  ;;  %9123 = vrsqrt.f32 %v12079_v10  ;;  %vm5917_vm7 = vcmp.eq.f32.partialorder %v12079_v10, inf }
 0x331   : > { %5361 = vmatprep.mubr.bf16.mxu0 %v14269_v29  ;;  %v6545_v29 = vld [vmem:[%s13801_s2] sm:$0xff]  ;;  %vm5919_vm8 = vcmp.eq.f32.partialorder %v12079_v10, 0.0 }
 0x332   : > { %v12085_v12 = vpop.f32.mrb[72].mxu1  ;;  %v7812_v46 = vpack.c.bf16 %v6546_v51, %v6545_v29  ;;  %9125 = vrsqrt.f32 %v12082_v52  ;;  %vm5938_vm9 = vcmp.eq.f32.partialorder %v12082_v52, inf  ;;  %vm5940_vm10 = vcmp.eq.f32.partialorder %v12082_v52, 0.0 }
 0x333   : > { %v4676_v60 = vpop.f32.mrb[73].mxu1 }
 0x334   : > { %v5693_v21 = vmul.f32 %v4676_v60, %v4676_v60  ;;  %v12089_v23 = vpop.f32.mrb[74].mxu1  ;;  %7813 = vmatpush1.bf16.msra.mxu1 %v7812_v46 }
 0x335   : > { %v4680_v2 = vpop.f32.mrb[75].mxu1  ;;  %7814 = vmatprep.subr.bf16.mxu1 %v14027_v22 }
 0x336   : > { %v12093_v36 = vadd.f32 %v5693_v21, %v5597_v20  ;;  %v5696_v14 = vmul.f32 %v4680_v2, %v4680_v2 }
 0x338   : > { %5362 = vmatmul.mubr.bf16.gmra.mrb[116].mxu0 %v14272_v3  ;;  %v12102_v58 = vadd.f32 %v5696_v14, %v5600_v18  ;;  %v6547_v14 = vld [vmem:[%s13801_s2 + $0x10] sm:$0xff]  ;;  %9127 = vrsqrt.f32 %v12093_v36  ;;  %vm5959_vm11 = vcmp.eq.f32.partialorder %v12093_v36, inf  ;;  %vm5961_vm12 = vcmp.eq.f32.partialorder %v12093_v36, 0.0 }
 0x339   : > { %5371 = vmatprep.mubr.bf16.mxu0 %v14273_v62  ;;  %v5606_v62 = vmul.f32 %v11626_v9, %v11626_v9  ;;  %v7815_v51 = vpack.c.bf16 %v6548_v31, %v6547_v14  ;;  %v6551_v14 = vld [vmem:[%s13801_s2 + $0x30] sm:$0xff] }
 0x33a   : > { %v12106_v61 = vpop.f32.mrb[76].mxu1  ;;  %9129 = vrsqrt.f32 %v12102_v58  ;;  %vm5980_vm13 = vcmp.eq.f32.partialorder %v12102_v58, inf  ;;  %vm5982_vm14 = vcmp.eq.f32.partialorder %v12102_v58, 0.0 }
 0x33b   : > { %v4686_v3 = vpop.f32.mrb[77].mxu1  ;;  %7816 = vmatpush1.bf16.msra.mxu1 %v7815_v51 }
 0x33c   : > { %v5699_v60 = vmul.f32 %v4686_v3, %v4686_v3  ;;  %v12111_v20 = vpop.f32.mrb[78].mxu1  ;;  %7817 = vmatprep.subr.bf16.mxu1 %v14027_v22 }
 0x33d   : > { %v4690_v21 = vpop.f32.mrb[79].mxu1 }
 0x33e   : > { %v12115_v2 = vadd.f32 %v5699_v60, %v5603_v43  ;;  %v5702_v18 = vmul.f32 %v4690_v21, %v4690_v21  ;;  %v5612_v21 = vmul.f32 %v11642_v39, %v11642_v39 }
 0x340   : > { %5372 = vmatmul.mubr.bf16.gmra.mrb[120].mxu0 %v10717_v27  ;;  %v12124_v29 = vadd.f32 %v5702_v18, %v5606_v62  ;;  %v5609_v27 = vmul.f32 %v11636_v56, %v11636_v56  ;;  %v6549_v18 = vld [vmem:[%s13801_s2 + $0x20] sm:$0xff]  ;;  %v6550_v56 = vld [vmem:[%s13801_s2 + $0x28] sm:$0xff]  ;;  %9131 = vrsqrt.f32 %v12115_v2  ;;  %vm6001_vm15 = vcmp.eq.f32.partialorder %v12115_v2, inf }
 0x341   : > { %5381 = vmatprep.mubr.bf16.mxu0 %v10720_v30  ;;  %v7818_v39 = vpack.c.bf16 %v6550_v56, %v6549_v18  ;;  %v5618_v56 = vmul.f32 %v11661_v53, %v11661_v53  ;;  %vm6003_vm0 = vcmp.eq.f32.partialorder %v12115_v2, 0.0 }
 0x342   : > { %v12127_v46 = vpop.f32.mrb[80].mxu1  ;;  %9133 = vrsqrt.f32 %v12124_v29  ;;  %vm6022_vm1 = vcmp.eq.f32.partialorder %v12124_v29, inf  ;;  %vm6024_vm2 = vcmp.eq.f32.partialorder %v12124_v29, 0.0 }
 0x343   : > { %v4696_v9 = vpop.f32.mrb[81].mxu1  ;;  %7819 = vmatpush1.bf16.msra.mxu1 %v7818_v39 }
 0x344   : > { %v5705_v3 = vmul.f32 %v4696_v9, %v4696_v9  ;;  %v12132_v43 = vpop.f32.mrb[82].mxu1  ;;  %7820 = vmatprep.subr.bf16.mxu1 %v14027_v22 }
 0x345   : > { %v4700_v60 = vpop.f32.mrb[83].mxu1 }
 0x346   : > { %v12136_v62 = vadd.f32 %v5705_v3, %v5609_v27  ;;  %v5708_v30 = vmul.f32 %v4700_v60, %v4700_v60  ;;  %v6553_v3 = vld [vmem:[%s13801_s2 + $0x40] sm:$0xff]  ;;  %v5615_v60 = vmul.f32 %v11652_v45, %v11652_v45  ;;  %v6555_v45 = vld [vmem:[%s13801_s2 + $0x50] sm:$0xff] }
 0x348   : > { %5382 = vmatmul.mubr.bf16.gmra.mrb[124].mxu0 %v10736_v48  ;;  %v12148_v31 = vadd.f32 %v5708_v30, %v5612_v21  ;;  %v6552_v48 = vld [vmem:[%s13801_s2 + $0x38] sm:$0xff]  ;;  %9135 = vrsqrt.f32 %v12136_v62 }
 0x349   : > { %5424 = vmatprep.mubr.bf16.mxu0 %v10739_v49  ;;  %v7821_v9 = vpack.c.bf16 %v6552_v48, %v6551_v14  ;;  %v6554_v49 = vld [vmem:[%s13801_s2 + $0x48] sm:$0xff] }
 0x34a   : > { %v12154_v51 = vpop.f32.mrb[84].mxu1  ;;  %v7824_v48 = vpack.c.bf16 %v6554_v49, %v6553_v3  ;;  %v6558_v49 = vld [vmem:[%s13801_s2 + $0x68] sm:$0xff]  ;;  %9137 = vrsqrt.f32 %v12148_v31 }
 0x34b   : > { %v4706_v27 = vpop.f32.mrb[85].mxu1  ;;  %7822 = vmatpush1.bf16.msra.mxu1 %v7821_v9 }
 0x34c   : > { %v5711_v21 = vmul.f32 %v4706_v27, %v4706_v27  ;;  %v12165_v30 = vpop.f32.mrb[86].mxu1  ;;  %7823 = vmatprep.subr.bf16.mxu1 %v14027_v22  ;;  %v6556_v27 = vld [vmem:[%s13801_s2 + $0x58] sm:$0xff] }
 0x34d   : > { %14407 = vst [vmem:[#allocation9_spill] sm:$0xff] %v12165_v30  ;;  %v4710_v18 = vpop.f32.mrb[87].mxu1  ;;  %v7827_v9 = vpack.c.bf16 %v6556_v27, %v6555_v45  ;;  %v6560_v27 = vld [vmem:[%s13801_s2 + $0x78] sm:$0xff] }
 0x34e   : > { %v12169_v14 = vadd.f32 %v5711_v21, %v5615_v60  ;;  %v5714_v39 = vmul.f32 %v4710_v18, %v4710_v18  ;;  %v5621_v60 = vmul.f32 %v11680_v32, %v11680_v32  ;;  %v6559_v32 = vld [vmem:[%s13801_s2 + $0x70] sm:$0xff] }
 0x34f   : > { %7825 = vmatpush1.bf16.msra.mxu1 %v7824_v48 }
 0x350   : > { %5425 = vmatmul.mubr.bf16.vlgmr.msra.gmra.mrb[64].mxu0 %v10394_v38  ;;  %v12179_v30 = vadd.f32 %v5714_v39, %v5618_v56  ;;  %7826 = vmatprep.subr.bf16.mxu1 %v14027_v22  ;;  %v6557_v38 = vld [vmem:[%s13801_s2 + $0x60] sm:$0xff]  ;;  %v5624_v56 = vmul.f32 %v11686_v11, %v11686_v11 }
 0x351   : > { %5434 = vmatprep.mubr.bf16.mxu0 %v10757_v15  ;;  %v7830_v45 = vpack.c.bf16 %v6558_v49, %v6557_v38  ;;  %v6562_v49 = vld [vmem:[%s13801_s2 + $0x88] sm:$0xff] }
 0x352   : > { %v12182_v53 = vpop.f32.mrb[88].mxu1 }
 0x353   : > { %v4716_v3 = vpop.f32.mrb[89].mxu1  ;;  %7828 = vmatpush1.bf16.msra.mxu1 %v7827_v9  ;;  %v7833_v9 = vpack.c.bf16 %v6560_v27, %v6559_v32  ;;  %v6564_v27 = vld [vmem:[%s13801_s2 + $0x98] sm:$0xff] }
 0x354   : > { %v5717_v21 = vmul.f32 %v4716_v3, %v4716_v3  ;;  %v12193_v15 = vpop.f32.mrb[90].mxu1  ;;  %7829 = vmatprep.subr.bf16.mxu1 %v14027_v22 }
 0x355   : > { %v4720_v18 = vpop.f32.mrb[91].mxu1 }
 0x356   : > { %v12197_v39 = vadd.f32 %v5717_v21, %v5621_v60  ;;  %v5720_v48 = vmul.f32 %v4720_v18, %v4720_v18  ;;  %v5627_v60 = vmul.f32 %v11708_v42, %v11708_v42  ;;  %v6563_v42 = vld [vmem:[%s13801_s2 + $0x90] sm:$0xff] }
 0x357   : > { %7831 = vmatpush1.bf16.msra.mxu1 %v7830_v45 }
 0x358   : > { %5435 = vmatmul.mubr.bf16.gmra.mrb[68].mxu0 %v10787_v28  ;;  %v12207_v3 = vadd.f32 %v5720_v48, %v5624_v56  ;;  %7832 = vmatprep.subr.bf16.mxu1 %v14027_v22  ;;  %v6561_v28 = vld [vmem:[%s13801_s2 + $0x80] sm:$0xff]  ;;  %v5630_v56 = vmul.f32 %v11714_v24, %v11714_v24 }
 0x359   : > { %5444 = vmatprep.mubr.bf16.mxu0 %v14283_v5  ;;  %v7836_v32 = vpack.c.bf16 %v6562_v49, %v6561_v28  ;;  %v6566_v49 = vld [vmem:[%s13801_s2 + $0xa8] sm:$0xff] }
 0x35a   : > { %v12210_v11 = vpop.f32.mrb[92].mxu1 }
 0x35b   : > { %v4726_v38 = vpop.f32.mrb[93].mxu1  ;;  %7834 = vmatpush1.bf16.msra.mxu1 %v7833_v9  ;;  %v7839_v9 = vpack.c.bf16 %v6564_v27, %v6563_v42  ;;  %v6568_v27 = vld [vmem:[%s13801_s2 + $0xb8] sm:$0xff] }
 0x35c   : > { %v5723_v21 = vmul.f32 %v4726_v38, %v4726_v38  ;;  %v12221_v5 = vpop.f32.mrb[94].mxu1  ;;  %7835 = vmatprep.subr.bf16.mxu1 %v14027_v22 }
 0x35d   : > { %v4730_v18 = vpop.f32.mrb[95].mxu1 }
 0x35e   : > { %v12225_v48 = vadd.f32 %v5723_v21, %v5627_v60  ;;  %v5726_v45 = vmul.f32 %v4730_v18, %v4730_v18  ;;  %v5633_v60 = vmul.f32 %v11736_v47, %v11736_v47  ;;  %v6567_v47 = vld [vmem:[%s13801_s2 + $0xb0] sm:$0xff] }
 0x35f   : > { %7837 = vmatpush1.bf16.msra.mxu1 %v7836_v32 }
 0x360   : > { %5445 = vmatmul.mubr.bf16.gmra.mrb[72].mxu0 %v10829_v54  ;;  %v12235_v38 = vadd.f32 %v5726_v45, %v5630_v56  ;;  %7838 = vmatprep.subr.bf16.mxu1 %v14027_v22  ;;  %v6565_v54 = vld [vmem:[%s13801_s2 + $0xa0] sm:$0xff]  ;;  %v5636_v56 = vmul.f32 %v11742_v59, %v11742_v59 }
 0x361   : > { %5454 = vmatprep.mubr.bf16.mxu0 %v10836_v7  ;;  %v7842_v42 = vpack.c.bf16 %v6566_v49, %v6565_v54  ;;  %v6570_v49 = vld [vmem:[%s13801_s2 + $0xc8] sm:$0xff] }
 0x362   : > { %v12238_v24 = vpop.f32.mrb[96].mxu1 }
 0x363   : > { %14408 = vst [vmem:[#allocation94_spill] sm:$0xff] %v12238_v24  ;;  %v4736_v28 = vpop.f32.mrb[97].mxu1  ;;  %7840 = vmatpush1.bf16.msra.mxu1 %v7839_v9  ;;  %v7845_v9 = vpack.c.bf16 %v6568_v27, %v6567_v47  ;;  %v6572_v27 = vld [vmem:[%s13801_s2 + $0xd8] sm:$0xff] }
 0x364   : > { %v5729_v21 = vmul.f32 %v4736_v28, %v4736_v28  ;;  %v12249_v7 = vpop.f32.mrb[98].mxu1  ;;  %7841 = vmatprep.subr.bf16.mxu1 %v14027_v22 }
 0x365   : > { %14409 = vst [vmem:[#allocation95_spill] sm:$0xff] %v12249_v7  ;;  %v4740_v18 = vpop.f32.mrb[99].mxu1 }
 0x366   : > { %v12253_v45 = vadd.f32 %v5729_v21, %v5633_v60  ;;  %v5732_v32 = vmul.f32 %v4740_v18, %v4740_v18  ;;  %v5639_v60 = vmul.f32 %v11764_v26, %v11764_v26  ;;  %v6571_v26 = vld [vmem:[%s13801_s2 + $0xd0] sm:$0xff] }
 0x367   : > { %7843 = vmatpush1.bf16.msra.mxu1 %v7842_v42 }
 0x368   : > { %5455 = vmatmul.mubr.bf16.gmra.mrb[76].mxu0 %v14291_v44  ;;  %v12263_v28 = vadd.f32 %v5732_v32, %v5636_v56  ;;  %7844 = vmatprep.subr.bf16.mxu1 %v14027_v22  ;;  %v6569_v44 = vld [vmem:[%s13801_s2 + $0xc0] sm:$0xff]  ;;  %v5642_v56 = vmul.f32 %v11770_v8, %v11770_v8 }
 0x369   : > { %5464 = vmatprep.mubr.bf16.mxu0 %v14293_v50  ;;  %v7848_v47 = vpack.c.bf16 %v6570_v49, %v6569_v44 }
 0x36a   : > { %14410 = vst [vmem:[#allocation96_spill] sm:$0xff] %v12263_v28  ;;  %v12266_v59 = vpop.f32.mrb[100].mxu1 }
 0x36b   : > { %14411 = vst [vmem:[#allocation97_spill] sm:$0xff] %v12266_v59  ;;  %v4746_v54 = vpop.f32.mrb[101].mxu1  ;;  %7846 = vmatpush1.bf16.msra.mxu1 %v7845_v9  ;;  %v7851_v9 = vpack.c.bf16 %v6572_v27, %v6571_v26  ;;  %v5651_v26 = vmul.f32 %v11820_v63, %v11820_v63  ;;  %v14426_v63 = vld [vmem:[#allocation87_spill] sm:$0xff] }
 0x36c   : > { %v5735_v21 = vmul.f32 %v4746_v54, %v4746_v54  ;;  %v12277_v50 = vpop.f32.mrb[102].mxu1  ;;  %7847 = vmatprep.subr.bf16.mxu1 %v14027_v22 }
 0x36d   : > { %14412 = vst [vmem:[#allocation10_spill] sm:$0xff] %v12277_v50  ;;  %v4750_v18 = vpop.f32.mrb[103].mxu1  ;;  %v14487_v50 = vld [vmem:[#allocation64_spill] sm:$0xff] }
 0x36e   : > { %v12281_v32 = vadd.f32 %v5735_v21, %v5639_v60  ;;  %v5738_v42 = vmul.f32 %v4750_v18, %v4750_v18  ;;  %v5648_v18 = vmul.f32 %v11798_v57, %v11798_v57 }
 0x36f   : > { %7849 = vmatpush1.bf16.msra.mxu1 %v7848_v47 }
 0x370   : > { %14413 = vst [vmem:[#allocation11_spill] sm:$0xff] %v12281_v32  ;;  %5465 = vmatmul.mubr.bf16.gmra.mrb[80].mxu0 %v14301_v13  ;;  %v12291_v54 = vadd.f32 %v5738_v42, %v5642_v56  ;;  %7850 = vmatprep.subr.bf16.mxu1 %v14027_v22  ;;  %v5645_v13 = vmul.f32 %v11792_v17, %v11792_v17 }
 0x371   : > { %5474 = vmatprep.mubr.bf16.mxu0 %v14303_v6 }
 0x372   : > { %14414 = vst [vmem:[#allocation98_spill] sm:$0xff] %v12291_v54  ;;  %v12294_v8 = vpop.f32.mrb[104].mxu1  ;;  %v5941_v54 = vand.u32 2147483648, %v12082_v52 }
 0x373   : > { %14415 = vst [vmem:[#allocation99_spill] sm:$0xff] %v12294_v8  ;;  %v4756_v44 = vpop.f32.mrb[105].mxu1  ;;  %7852 = vmatpush1.bf16.msra.mxu1 %v7851_v9  ;;  %v5654_v9 = vmul.f32 %v11826_v19, %v11826_v19  ;;  %v14428_v19 = vld [vmem:[#allocation89_spill] sm:$0xff]  ;;  %v14483_v8 = vld [vmem:[#allocation84_spill] sm:$0xff] }
 0x374   : > { %v5741_v49 = vmul.f32 %v4756_v44, %v4756_v44  ;;  %v12299_v60 = vpop.f32.mrb[106].mxu1  ;;  %7853 = vmatprep.subr.bf16.mxu1 %v14027_v22 }
 0x375   : > { %14416 = vst [vmem:[#allocation12_spill] sm:$0xff] %v12299_v60  ;;  %v4760_v21 = vpop.f32.mrb[107].mxu1  ;;  %v14481_v60 = vld [vmem:[#allocation116_spill] sm:$0xff] }
 0x376   : > { %v12303_v56 = vadd.f32 %v5741_v49, %v5645_v13  ;;  %v5744_v6 = vmul.f32 %v4760_v21, %v4760_v21  ;;  %v14422_v49 = vld [vmem:[#allocation70_spill] sm:$0xff] }
 0x378   : > { %14417 = vst [vmem:[#allocation13_spill] sm:$0xff] %v12303_v56  ;;  %5475 = vmatmul.mubr.bf16.gmra.mrb[84].mxu0 %v14311_v1  ;;  %v12307_v42 = vadd.f32 %v5744_v6, %v5648_v18 }
 0x379   : > { %5484 = vmatprep.mubr.bf16.mxu0 %v14313_v25  ;;  %v14424_v25 = vld [vmem:[#allocation71_spill] sm:$0xff] }
 0x37a   : > { %14418 = vst [vmem:[#allocation100_spill] sm:$0xff] %v12307_v42  ;;  %v12310_v17 = vpop.f32.mrb[108].mxu1  ;;  %v14485_v42 = vld [vmem:[#allocation85_spill] sm:$0xff] }
 0x37b   : > { %14419 = vst [vmem:[#allocation101_spill] sm:$0xff] %v12310_v17  ;;  %v4766_v47 = vpop.f32.mrb[109].mxu1 }
 0x37c   : > { %v5747_v27 = vmul.f32 %v4766_v47, %v4766_v47  ;;  %v12314_v57 = vpop.f32.mrb[110].mxu1  ;;  %v5657_v47 = vmul.f32 %v14426_v63, %v14426_v63 }
 0x37d   : > { %14420 = vst [vmem:[#allocation102_spill] sm:$0xff] %v12314_v57  ;;  %v4770_v44 = vpop.f32.mrb[111].mxu1 }
 0x37e   : > { %v12318_v1 = vadd.f32 %v5747_v27, %v5651_v26  ;;  %v5750_v13 = vmul.f32 %v4770_v44, %v4770_v44  ;;  %v5660_v26 = vmul.f32 %v14428_v19, %v14428_v19 }
 0x380   : > { %14421 = vst [vmem:[#allocation74_spill] sm:$0xff] %v12318_v1  ;;  %5485 = vmatmul.mubr.bf16.gmra.mrb[88].mxu0 %v14422_v49  ;;  %v12321_v21 = vadd.f32 %v5750_v13, %v5654_v9  ;;  %v14430_v9 = vld [vmem:[#allocation72_spill] sm:$0xff]  ;;  %v14432_v49 = vld [vmem:[#allocation73_spill] sm:$0xff]  ;;  %v9120_v1 = vpop.eup %9119 }
 0x381   : > { %5494 = vmatprep.mubr.bf16.mxu0 %v14424_v25  ;;  %v9122_v56 = vpop.eup %9121 }
 0x382   : > { %14423 = vst [vmem:[#allocation16_spill] sm:$0xff] %v12321_v21  ;;  %v12324_v18 = vpop.f32.mrb[112].mxu1 }
 0x383   : > { %14425 = vst [vmem:[#allocation17_spill] sm:$0xff] %v12324_v18  ;;  %v4776_v6 = vpop.f32.mrb[113].mxu1 }
 0x384   : > { %v5753_v22 = vmul.f32 %v4776_v6, %v4776_v6  ;;  %v12328_v57 = vpop.f32.mrb[114].mxu1  ;;  %v5663_v6 = vmul.f32 %v11876_v40, %v11876_v40  ;;  %v14439_v40 = vld [vmem:[#allocation7_spill] sm:$0xff] }
 0x385   : > { %14427 = vst [vmem:[#allocation103_spill] sm:$0xff] %v12328_v57  ;;  %v4780_v17 = vpop.f32.mrb[115].mxu1 }
 0x386   : > { %v12332_v27 = vadd.f32 %v5753_v22, %v5657_v47  ;;  %v5756_v44 = vmul.f32 %v4780_v17, %v4780_v17  ;;  %v5666_v22 = vmul.f32 %v11882_v16, %v11882_v16  ;;  %v14441_v16 = vld [vmem:[#allocation91_spill] sm:$0xff] }
 0x388   : > { %14429 = vst [vmem:[#allocation104_spill] sm:$0xff] %v12332_v27  ;;  %5495 = vmatmul.mubr.bf16.gmra.mrb[92].mxu0 %v14430_v9  ;;  %v12335_v13 = vadd.f32 %v5756_v44, %v5660_v26  ;;  %v14437_v26 = vld [vmem:[#allocation14_spill] sm:$0xff]  ;;  %v14479_v27 = vld [vmem:[#allocation3_spill] sm:$0xff] }
 0x389   : > { %5504 = vmatprep.mubr.bf16.mxu0 %v14432_v49 }
 0x38a   : > { %14431 = vst [vmem:[#allocation20_spill] sm:$0xff] %v12335_v13  ;;  %v12338_v25 = vpop.f32.mrb[116].mxu1  ;;  %v14477_v13 = vld [vmem:[#allocation63_spill] sm:$0xff] }
 0x38b   : > { %14433 = vst [vmem:[#allocation21_spill] sm:$0xff] %v12338_v25  ;;  %v4786_v18 = vpop.f32.mrb[117].mxu1 }
 0x38c   : > { %v5759_v63 = vmul.f32 %v4786_v18, %v4786_v18  ;;  %v12342_v57 = vpop.f32.mrb[118].mxu1  ;;  %v5669_v18 = vmul.f32 %v14439_v40, %v14439_v40 }
 0x38d   : > { %14434 = vst [vmem:[#allocation105_spill] sm:$0xff] %v12342_v57  ;;  %v4790_v21 = vpop.f32.mrb[119].mxu1 }
 0x38e   : > { %v12346_v17 = vadd.f32 %v5759_v63, %v5663_v6  ;;  %v5762_v47 = vmul.f32 %v4790_v21, %v4790_v21  ;;  %v5672_v6 = vmul.f32 %v14441_v16, %v14441_v16  ;;  %v14443_v63 = vld [vmem:[#allocation15_spill] sm:$0xff] }
 0x390   : > { %14435 = vst [vmem:[#allocation106_spill] sm:$0xff] %v12346_v17  ;;  %5505 = vmatmul.mubr.bf16.gmra.mrb[96].mxu0 %v14340_v37  ;;  %v12349_v19 = vadd.f32 %v5762_v47, %v5666_v22  ;;  %v14445_v47 = vld [vmem:[#allocation18_spill] sm:$0xff]  ;;  %v14475_v17 = vld [vmem:[#allocation115_spill] sm:$0xff] }
 0x391   : > { %5514 = vmatprep.mubr.bf16.mxu0 %v14437_v26 }
 0x392   : > { %14436 = vst [vmem:[#allocation107_spill] sm:$0xff] %v12349_v19  ;;  %v12352_v44 = vpop.f32.mrb[120].mxu1 }
 0x393   : > { %14438 = vst [vmem:[#allocation108_spill] sm:$0xff] %v12352_v44  ;;  %v4796_v9 = vpop.f32.mrb[121].mxu1 }
 0x394   : > { %v5765_v49 = vmul.f32 %v4796_v9, %v4796_v9  ;;  %v12356_v57 = vpop.f32.mrb[122].mxu1  ;;  %v5675_v9 = vmul.f32 %v11908_v55, %v11908_v55  ;;  %v6573_v55 = vld [vmem:[%s13801_s2 + $0xe0] sm:$0xff] }
 0x395   : > { %14440 = vst [vmem:[#allocation19_spill] sm:$0xff] %v12356_v57  ;;  %v4800_v25 = vpop.f32.mrb[123].mxu1 }
 0x396   : > { %v12360_v21 = vadd.f32 %v5765_v49, %v5669_v18  ;;  %v5768_v37 = vmul.f32 %v4800_v25, %v4800_v25  ;;  %v5678_v18 = vmul.f32 %v11914_v41, %v11914_v41  ;;  %v6574_v41 = vld [vmem:[%s13801_s2 + $0xe8] sm:$0xff] }
 0x398   : > { %14442 = vst [vmem:[#allocation23_spill] sm:$0xff] %v12360_v21  ;;  %5515 = vmatmul.mubr.bf16.gmra.mrb[100].mxu0 %v14443_v63  ;;  %v12363_v22 = vadd.f32 %v5768_v37, %v5672_v6  ;;  %v14450_v6 = vld [vmem:[#allocation22_spill] sm:$0xff]  ;;  %v14451_v37 = vld [vmem:[#allocation75_spill] sm:$0xff]  ;;  %v14452_v63 = vld [vmem:[#allocation76_spill] sm:$0xff] }
 0x399   : > { %5524 = vmatprep.mubr.bf16.mxu0 %v14445_v47  ;;  %v14455_v47 = vld [vmem:[#allocation78_spill] sm:$0xff] }
 0x39a   : > { %14444 = vst [vmem:[#allocation24_spill] sm:$0xff] %v12363_v22  ;;  %v12366_v26 = vpop.f32.mrb[124].mxu1 }
 0x39b   : > { %14446 = vst [vmem:[#allocation25_spill] sm:$0xff] %v12366_v26  ;;  %v4806_v44 = vpop.f32.mrb[125].mxu1  ;;  %v14470_v26 = vld [vmem:[#allocation112_spill] sm:$0xff] }
 0x39c   : > { %v5771_v40 = vmul.f32 %v4806_v44, %v4806_v44  ;;  %v12370_v57 = vpop.f32.mrb[126].mxu1  ;;  %v7854_v44 = vpack.c.bf16 %v6574_v41, %v6573_v55  ;;  %v14458_v41 = vld [vmem:[#allocation81_spill] sm:$0xff] }
 0x39d   : > { %14447 = vst [vmem:[#allocation26_spill] sm:$0xff] %v12370_v57  ;;  %v4810_v19 = vpop.f32.mrb[127].mxu1 }
 0x39e   : > { %v12374_v25 = vadd.f32 %v5771_v40, %v5675_v9  ;;  %v5774_v49 = vmul.f32 %v4810_v19, %v4810_v19  ;;  %7855 = vmatpush1.bf16.msra.mxu1 %v7854_v44  ;;  %v14453_v19 = vmov 0.0|0.0   ;;  %v6575_v9 = vld [vmem:[%s13801_s2 + $0xf0] sm:$0xff]  ;;  %v6576_v40 = vld [vmem:[%s13801_s2 + $0xf8] sm:$0xff]  ;;  %v14459_v44 = vld [vmem:[#allocation82_spill] sm:$0xff] }
 0x39f   : > { %7856 = vmatprep.subr.bf16.mxu1 %v14453_v19  ;;  %v14460_v19 = vld [vmem:[#allocation83_spill] sm:$0xff] }
 0x3a0   : > { %14448 = vst [vmem:[#allocation27_spill] sm:$0xff] %v12374_v25  ;;  %5525 = vmatmul.mubr.bf16.gmra.mrb[104].mxu0 %v14360_v34  ;;  %v12377_v16 = vadd.f32 %v5774_v49, %v5678_v18  ;;  %v14454_v34 = vld [vmem:[#allocation77_spill] sm:$0xff]  ;;  %v7857_v18 = vpack.c.bf16 %v6576_v40, %v6575_v9  ;;  %v14456_v49 = vld [vmem:[#allocation79_spill] sm:$0xff]  ;;  %v14462_v9 = vld [vmem:[#allocation110_spill] sm:$0xff] }
 0x3a1   : > { %5534 = vmatprep.mubr.bf16.mxu0 %v14450_v6  ;;  %v14457_v6 = vld [vmem:[#allocation80_spill] sm:$0xff]  ;;  %v12419_v40 = vmul.f32 %v14462_v9, %v14462_v9 }
 0x3a2   : > { %14449 = vst [vmem:[#allocation28_spill] sm:$0xff] %v12377_v16  ;;  %7858 = vmatpush1.bf16.msra.mxu1 %v7857_v18  ;;  %v14463_v18 = vld [vmem:[#allocation57_spill] sm:$0xff]  ;;  %v12453_v16 = vmul.f32 %v14470_v26, %v14470_v26  ;;  %v12473_v26 = vmul.f32 %v14477_v13, %v14477_v13  ;;  %v12493_v13 = vmul.f32 %v14487_v50, %v14487_v50  ;;  %v14497_v50 = vld [vmem:[#allocation88_spill] sm:$0xff] }
 0x3a4   : > { %14478 = vst [vmem:[#allocation31_spill] sm:$0xff] %v12473_v26  ;;  %14488 = vst [vmem:[#allocation36_spill] sm:$0xff] %v12493_v13  ;;  %v12514_v13 = vmul.f32 %v14497_v50, %v14497_v50 }
 0x3a6   : > { %14498 = vst [vmem:[#allocation41_spill] sm:$0xff] %v12514_v13  ;;  %v14514_v13 = vld [vmem:[#allocation69_spill] sm:$0xff] }
 0x3a8   : > { %5535 = vmatmul.mubr.bf16.gmra.mrb[108].mxu0 %v14451_v37  ;;  %v6577_v37 = vld [vmem:[%s13801_s2 + $0x100] sm:$0xff] }
 0x3a9   : > { %5544 = vmatprep.mubr.bf16.mxu0 %v14452_v63  ;;  %v6578_v63 = vld [vmem:[%s13801_s2 + $0x108] sm:$0xff] }
 0x3aa   : > { %v12405_v55 = vpack.c.bf16 %v6578_v63, %v6577_v37  ;;  %v14465_v63 = vld [vmem:[#allocation59_spill] sm:$0xff] }
 0x3ac   : > { %7860 = vmatprep.subr.bf16.mxu1 %v12405_v55 }
 0x3b0   : > { %5545 = vmatmul.mubr.bf16.gmra.mrb[112].mxu0 %v14454_v34  ;;  %v14461_v34 = vld [vmem:[#allocation109_spill] sm:$0xff] }
 0x3b1   : > { %5554 = vmatprep.mubr.bf16.mxu0 %v14455_v47  ;;  %v12415_v47 = vmul.f32 %v14461_v34, %v14461_v34  ;;  %v14467_v34 = vld [vmem:[#allocation61_spill] sm:$0xff] }
 0x3b2   : > { %v12440_v9 = vmul.f32 %v14467_v34, %v14467_v34  ;;  %v14472_v34 = vld [vmem:[#allocation114_spill] sm:$0xff] }
 0x3b3   : > { %v12461_v22 = vmul.f32 %v14472_v34, %v14472_v34  ;;  %v12481_v34 = vmul.f32 %v14481_v60, %v14481_v60 }
 0x3b5   : > { %14482 = vst [vmem:[#allocation33_spill] sm:$0xff] %v12481_v34  ;;  %v14493_v34 = vld [vmem:[#allocation5_spill] sm:$0xff] }
 0x3b8   : > { %5555 = vmatmul.mubr.bf16.gmra.mrb[116].mxu0 %v14456_v49  ;;  %v12423_v49 = vmul.f32 %v14463_v18, %v14463_v18  ;;  %v14468_v18 = vld [vmem:[#allocation62_spill] sm:$0xff] }
 0x3b9   : > { %5564 = vmatprep.mubr.bf16.mxu0 %v14457_v6  ;;  %v14464_v6 = vld [vmem:[#allocation58_spill] sm:$0xff]  ;;  %v12444_v57 = vmul.f32 %v14468_v18, %v14468_v18 }
 0x3ba   : > { %v12427_v37 = vmul.f32 %v14464_v6, %v14464_v6  ;;  %v14469_v6 = vld [vmem:[#allocation111_spill] sm:$0xff]  ;;  %v14473_v18 = vld [vmem:[#allocation2_spill] sm:$0xff] }
 0x3bb   : > { %v12465_v21 = vmul.f32 %v14473_v18, %v14473_v18  ;;  %v12485_v18 = vmul.f32 %v14483_v8, %v14483_v8  ;;  %v12505_v8 = vmul.f32 %v14493_v34, %v14493_v34  ;;  %v14503_v34 = vld [vmem:[#allocation67_spill] sm:$0xff] }
 0x3bd   : > { %14474 = vst [vmem:[#allocation29_spill] sm:$0xff] %v12465_v21  ;;  %14484 = vst [vmem:[#allocation34_spill] sm:$0xff] %v12485_v18  ;;  %v14505_v18 = vld [vmem:[#allocation90_spill] sm:$0xff] }
 0x3be   : > { %14494 = vst [vmem:[#allocation39_spill] sm:$0xff] %v12505_v8  ;;  %v12526_v8 = vmul.f32 %v14503_v34, %v14503_v34  ;;  %v5874_v34 = vmul.f32 %v9120_v1, %v12065_v0  ;;  %v12559_v1 = vmul.f32 %v12071_v35, %v12071_v35  ;;  %v5920_v35 = vand.u32 2147483648, %v12079_v10 }
 0x3c0   : > { %5565 = vmatmul.mubr.bf16.gmra.mrb[120].mxu0 %v14458_v41  ;;  %v12431_v41 = vmul.f32 %v14465_v63, %v14465_v63  ;;  %v12449_v63 = vmul.f32 %v14469_v6, %v14469_v6  ;;  %v12469_v6 = vmul.f32 %v14475_v17, %v14475_v17  ;;  %v12489_v17 = vmul.f32 %v14485_v42, %v14485_v42  ;;  %v14495_v42 = vld [vmem:[#allocation86_spill] sm:$0xff] }
 0x3c1   : > { %5574 = vmatprep.mubr.bf16.mxu0 %v14459_v44  ;;  %v14466_v44 = vld [vmem:[#allocation60_spill] sm:$0xff]  ;;  %14504 = vst [vmem:[#allocation44_spill] sm:$0xff] %v12526_v8  ;;  %v5895_v8 = vmul.f32 %v9122_v56, %v12068_v4 }
 0x3c2   : > { %14476 = vst [vmem:[#allocation30_spill] sm:$0xff] %v12469_v6  ;;  %14486 = vst [vmem:[#allocation35_spill] sm:$0xff] %v12489_v17  ;;  %v12510_v17 = vmul.f32 %v14495_v42, %v14495_v42  ;;  %v12530_v42 = vmul.f32 %v14505_v18, %v14505_v18  ;;  %v14513_v18 = vld [vmem:[#allocation8_spill] sm:$0xff] }
 0x3c4   : > { %14496 = vst [vmem:[#allocation40_spill] sm:$0xff] %v12510_v17  ;;  %14506 = vst [vmem:[#allocation45_spill] sm:$0xff] %v12530_v42  ;;  %v14507_v17 = vld [vmem:[#allocation92_spill] sm:$0xff]  ;;  %v5587_v42 = vmul.f32 %v14513_v18, %v14513_v18  ;;  %v5899_v18 = vand.u32 2147483648, %v12068_v4 }
 0x3c5   : > { %v12534_v50 = vmul.f32 %v14507_v17, %v14507_v17  ;;  %v5590_v17 = vmul.f32 %v14514_v13, %v14514_v13  ;;  %v12563_v13 = vmul.f32 %v12075_v33, %v12075_v33  ;;  %v12577_v33 = vmul.f32 %v12085_v12, %v12085_v12 }
 0x3c7   : > { %14508 = vst [vmem:[#allocation46_spill] sm:$0xff] %v12534_v50 }
 0x3c8   : > { %5575 = vmatmul.mubr.bf16.gmra.mrb[124].mxu0 %v14460_v19  ;;  %v12436_v19 = vmul.f32 %v14466_v44, %v14466_v44  ;;  %v14471_v44 = vld [vmem:[#allocation113_spill] sm:$0xff] }
 0x3c9   : > { %v12457_v25 = vmul.f32 %v14471_v44, %v14471_v44  ;;  %v12477_v44 = vmul.f32 %v14479_v27, %v14479_v27  ;;  %v14489_v27 = vld [vmem:[#allocation4_spill] sm:$0xff] }
 0x3ca   : > { %v12497_v59 = vmul.f32 %v14489_v27, %v14489_v27  ;;  %v14499_v27 = vld [vmem:[#allocation66_spill] sm:$0xff] }
 0x3cb   : > { %14480 = vst [vmem:[#allocation32_spill] sm:$0xff] %v12477_v44  ;;  %v14491_v44 = vld [vmem:[#allocation65_spill] sm:$0xff] }
 0x3cc   : > { %14490 = vst [vmem:[#allocation37_spill] sm:$0xff] %v12497_v59  ;;  %v12501_v60 = vmul.f32 %v14491_v44, %v14491_v44  ;;  %v12518_v59 = vmul.f32 %v14499_v27, %v14499_v27  ;;  %v14501_v44 = vld [vmem:[#allocation6_spill] sm:$0xff]  ;;  %v14509_v27 = vld [vmem:[#allocation93_spill] sm:$0xff] }
 0x3ce   : > { %14492 = vst [vmem:[#allocation38_spill] sm:$0xff] %v12501_v60  ;;  %14500 = vst [vmem:[#allocation42_spill] sm:$0xff] %v12518_v59  ;;  %v12522_v60 = vmul.f32 %v14501_v44, %v14501_v44  ;;  %v12539_v59 = vmul.f32 %v14509_v27, %v14509_v27  ;;  %v14511_v44 = vld [vmem:[#allocation68_spill] sm:$0xff]  ;;  %v9124_v27 = vpop.eup %9123 }
 0x3cf   : > { %v9126_v56 = vpop.eup %9125  ;;  %v5916_v50 = vmul.f32 %v9124_v27, %v12079_v10 }
 0x3d0   : > { %14502 = vst [vmem:[#allocation43_spill] sm:$0xff] %v12522_v60  ;;  %14510 = vst [vmem:[#allocation47_spill] sm:$0xff] %v12539_v59  ;;  %v12543_v60 = vmul.f32 %v14511_v44, %v14511_v44  ;;  %v5878_v44 = vand.u32 2147483648, %v12065_v0  ;;  %v5897_v59 = vsel %vm5896_vm5, %v12068_v4, %v5895_v8  ;;  %v5937_v26 = vmul.f32 %v9126_v56, %v12082_v52  ;;  %v9128_v27 = vpop.eup %9127 }
 0x3d1   : > { %v12591_v12 = vsel %vm5898_vm6, %v5899_v18, %v5897_v59  ;;  %v5962_v56 = vand.u32 2147483648, %v12093_v36  ;;  %v5918_v4 = vsel %vm5917_vm7, %v12079_v10, %v5916_v50  ;;  %v5958_v18 = vmul.f32 %v9128_v27, %v12093_v36 }
 0x3d2   : > { %14512 = vst [vmem:[#allocation48_spill] sm:$0xff] %v12543_v60  ;;  %v5876_v60 = vsel %vm5875_vm3, %v12065_v0, %v5874_v34  ;;  %v12581_v34 = vmul.f32 %v12089_v23, %v12089_v23  ;;  %v12631_v50 = vsel %vm5919_vm8, %v5920_v35, %v5918_v4  ;;  %v6004_v35 = vand.u32 2147483648, %v12115_v2 }
 0x3d3   : > { %v12587_v6 = vsel %vm5877_vm4, %v5878_v44, %v5876_v60  ;;  %v5939_v44 = vsel %vm5938_vm9, %v12082_v52, %v5937_v26  ;;  %vm6043_vm3 = vcmp.eq.f32.partialorder %v12136_v62, inf  ;;  %vm6064_vm4 = vcmp.eq.f32.partialorder %v12148_v31, inf }
 0x3d4   : > { %vm6045_vm9 = vcmp.eq.f32.partialorder %v12136_v62, 0.0 }
 0x423   : > { %v5426_v8 = vpop.f32.mrb[64].mxu0 }
 0x424   : > { %v5682_v32 = vmul.f32 %v5426_v8, %v5426_v8  ;;  %v5428_v7 = vpop.f32.mrb[65].mxu0  ;;  %v9130_v8 = vpop.eup %9129 }
 0x425   : > { %v5683_v23 = vmul.f32 %v5428_v7, %v5428_v7  ;;  %v5430_v24 = vpop.f32.mrb[66].mxu0  ;;  %v9132_v28 = vpop.eup %9131  ;;  %v5979_v26 = vmul.f32 %v9130_v8, %v12102_v58 }
 0x426   : > { %v12598_v21 = vadd.f32 %v5682_v32, %v12415_v47  ;;  %v5685_v0 = vmul.f32 %v5430_v24, %v5430_v24  ;;  %v5432_v60 = vpop.f32.mrb[67].mxu0  ;;  %v12618_v24 = vmul.f32 %v12106_v61, %v12106_v61  ;;  %v12635_v61 = vsel %vm5940_vm10, %v5941_v54, %v5939_v44 }
 0x427   : > { %v12604_v7 = vadd.f32 %v5683_v23, %v5587_v42  ;;  %v5686_v59 = vmul.f32 %v5432_v60, %v5432_v60  ;;  %v5983_v42 = vand.u32 2147483648, %v12102_v58  ;;  %v5960_v23 = vsel %vm5959_vm11, %v12093_v36, %v5958_v18  ;;  %v6579_v36 = vld [vmem:[%s13801_s2 + $0x110] sm:$0xff] }
 0x428   : > { %v12611_v32 = vadd.f32 %v5685_v0, %v12419_v40  ;;  %9139 = vrsqrt.f32 %v12598_v21  ;;  %v12626_v40 = vmul.f32 %v12111_v20, %v12111_v20  ;;  %v6000_v8 = vmul.f32 %v9132_v28, %v12115_v2 }
 0x429   : > { %v12620_v47 = vadd.f32 %v5686_v59, %v5590_v17  ;;  %v9134_v17 = vpop.eup %9133  ;;  %v12648_v54 = vmul.f32 %v12127_v46, %v12127_v46  ;;  %v12652_v0 = vmul.f32 %v12132_v43, %v12132_v43  ;;  %v5981_v4 = vsel %vm5980_vm13, %v12102_v58, %v5979_v26 }
 0x42a   : > { %9141 = vrsqrt.f32 %v12611_v32  ;;  %v6021_v46 = vmul.f32 %v9134_v17, %v12124_v29  ;;  %v9136_v52 = vpop.eup %9135  ;;  %v6002_v26 = vsel %vm6001_vm15, %v12115_v2, %v6000_v8  ;;  %vm5882_vm5 = vcmp.eq.f32.partialorder %v12598_v21, inf }
 0x42b   : > { %v5436_v27 = vpop.f32.mrb[68].mxu0  ;;  %9143 = vrsqrt.f32 %v12169_v14  ;;  %vm5884_vm6 = vcmp.eq.f32.partialorder %v12598_v21, 0.0  ;;  %vm5903_vm7 = vcmp.eq.f32.partialorder %v12611_v32, inf  ;;  %vm5905_vm8 = vcmp.eq.f32.partialorder %v12611_v32, 0.0 }
 0x42c   : > { %v5688_v20 = vmul.f32 %v5436_v27, %v5436_v27  ;;  %v5438_v10 = vpop.f32.mrb[69].mxu0  ;;  %v12662_v27 = vsel %vm5961_vm12, %v5962_v56, %v5960_v23  ;;  %v12684_v56 = vsel %vm5982_vm14, %v5983_v42, %v5981_v4  ;;  %v14517_v42 = vld [vmem:[#allocation9_spill] sm:$0xff]  ;;  %vm6066_vm10 = vcmp.eq.f32.partialorder %v12148_v31, 0.0 }
 0x42d   : > { %v5689_v28 = vmul.f32 %v5438_v10, %v5438_v10  ;;  %v5440_v60 = vpop.f32.mrb[70].mxu0  ;;  %vm6085_vm15 = vcmp.eq.f32.partialorder %v12169_v14, inf }
 0x42e   : > { %v12658_v59 = vadd.f32 %v5688_v20, %v12423_v49  ;;  %v5691_v44 = vmul.f32 %v5440_v60, %v5440_v60  ;;  %v5442_v18 = vpop.f32.mrb[71].mxu0  ;;  %v9138_v49 = vpop.eup %9137 }
 0x42f   : > { %v12666_v43 = vadd.f32 %v5689_v28, %v12559_v1  ;;  %v5692_v10 = vmul.f32 %v5442_v18, %v5442_v18  ;;  %v6580_v1 = vld [vmem:[%s13801_s2 + $0x118] sm:$0xff]  ;;  %v12700_v28 = vmul.f32 %v14517_v42, %v14517_v42  ;;  %v6042_v18 = vmul.f32 %v9136_v52, %v12136_v62 }
 0x430   : > { %v12673_v20 = vadd.f32 %v5691_v44, %v12427_v37  ;;  %9145 = vrsqrt.f32 %v12658_v59  ;;  %v12690_v37 = vmul.f32 %v12154_v51, %v12154_v51  ;;  %v12705_v51 = vsel %vm6003_vm0, %v6004_v35, %v6002_v26 }
 0x431   : > { %14515 = vst [vmem:[#allocation49_spill] sm:$0xff] %v12666_v43  ;;  %v12693_v23 = vadd.f32 %v5692_v10, %v12563_v13  ;;  %9147 = vrsqrt.f32 %v12179_v30  ;;  %v6023_v13 = vsel %vm6022_vm1, %v12124_v29, %v6021_v46  ;;  %v12712_v44 = vpack.c.bf16 %v6580_v1, %v6579_v36 }
 0x432   : > { %v9140_v58 = vpop.eup %9139  ;;  %9149 = vrsqrt.f32 %v12673_v20  ;;  %v6063_v10 = vmul.f32 %v9138_v49, %v12148_v31  ;;  %v5885_v35 = vand.u32 2147483648, %v12598_v21  ;;  %vm5924_vm11 = vcmp.eq.f32.partialorder %v12658_v59, inf }
 0x433   : > { %14516 = vst [vmem:[#allocation50_spill] sm:$0xff] %v12693_v23  ;;  %v5446_v60 = vpop.f32.mrb[72].mxu0  ;;  %v5881_v4 = vmul.f32 %v9140_v58, %v12598_v21  ;;  %vm5926_vm12 = vcmp.eq.f32.partialorder %v12658_v59, 0.0  ;;  %vm5945_vm13 = vcmp.eq.f32.partialorder %v12673_v20, inf  ;;  %vm5947_vm14 = vcmp.eq.f32.partialorder %v12673_v20, 0.0 }
 0x434   : > { %v9142_v42 = vpop.eup %9141  ;;  %v5694_v8 = vmul.f32 %v5446_v60, %v5446_v60  ;;  %v5448_v2 = vpop.f32.mrb[73].mxu0  ;;  %v5906_v60 = vand.u32 2147483648, %v12611_v32  ;;  %vm6106_vm0 = vcmp.eq.f32.partialorder %v12179_v30, inf }
 0x435   : > { %v5695_v46 = vmul.f32 %v5448_v2, %v5448_v2  ;;  %v5450_v26 = vpop.f32.mrb[74].mxu0  ;;  %v5883_v17 = vsel %vm5882_vm5, %v12598_v21, %v5881_v4  ;;  %v5902_v36 = vmul.f32 %v9142_v42, %v12611_v32  ;;  %v6581_v21 = vld [vmem:[%s13801_s2 + $0x120] sm:$0xff]  ;;  %v9144_v4 = vpop.eup %9143  ;;  %vm6087_vm5 = vcmp.eq.f32.partialorder %v12169_v14, 0.0 }
 0x436   : > { %v12723_v52 = vadd.f32 %v5694_v8, %v12431_v41  ;;  %v5697_v49 = vmul.f32 %v5450_v26, %v5450_v26  ;;  %v5452_v1 = vpop.f32.mrb[75].mxu0  ;;  %v5886_v58 = vsel %vm5884_vm6, %v5885_v35, %v5883_v17  ;;  %v6582_v41 = vld [vmem:[%s13801_s2 + $0x128] sm:$0xff]  ;;  %v6583_v8 = vld [vmem:[%s13801_s2 + $0x130] sm:$0xff]  ;;  %v14518_v35 = vand.u32 2147483648, %v12124_v29 }
 0x437   : > { %v12727_v23 = vadd.f32 %v5695_v46, %v12577_v33  ;;  %v5698_v43 = vmul.f32 %v5452_v1, %v5452_v1  ;;  %6657 = vmatprep.mubr.f32.mxu1 %v5886_v58  ;;  %v5904_v2 = vsel %vm5903_vm7, %v12611_v32, %v5902_v36  ;;  %v6088_v32 = vand.u32 2147483648, %v12169_v14 }
 0x438   : > { %v12738_v17 = vadd.f32 %v5697_v49, %v12436_v19  ;;  %6658 = vmatmul.mubr.f32.vlgmr.msra.gmra.mrb[128].mxu1 %v12587_v6  ;;  %v5907_v33 = vsel %vm5905_vm8, %v5906_v60, %v5904_v2  ;;  %9151 = vrsqrt.f32 %v12723_v52  ;;  %v6584_v19 = vld [vmem:[%s13801_s2 + $0x138] sm:$0xff]  ;;  %v12753_v6 = vmul.f32 %v12182_v53, %v12182_v53 }
 0x439   : > { %v12756_v42 = vadd.f32 %v5698_v43, %v12581_v34  ;;  %6662 = vmatprep.mubr.f32.mxu1 %v5907_v33  ;;  %7862 = vmatpush3.bf16.msra.mxu1 %v12405_v55  ;;  %v12763_v46 = vsel %vm6024_vm2, %v14518_v35, %v6023_v13  ;;  %9153 = vrsqrt.f32 %v12197_v39  ;;  %v6044_v53 = vsel %vm6043_vm3, %v12136_v62, %v6042_v18 }
 0x43a   : > { %v9146_v26 = vpop.eup %9145  ;;  %7864 = vmatprep.subr.bf16.mxu1 %v12712_v44  ;;  %9155 = vrsqrt.f32 %v12738_v17  ;;  %v7867_v34 = vpack.c.bf16 %v6582_v41, %v6581_v21  ;;  %v6109_v55 = vand.u32 2147483648, %v12179_v30  ;;  %v6065_v13 = vsel %vm6064_vm4, %v12148_v31, %v6063_v10 }
 0x43b   : > { %v9148_v43 = vpop.eup %9147  ;;  %v5456_v36 = vpop.f32.mrb[76].mxu0  ;;  %v5923_v29 = vmul.f32 %v9146_v26, %v12658_v59  ;;  %v12776_v49 = vpack.c.bf16 %v6584_v19, %v6583_v8  ;;  %9157 = vrsqrt.f32 %v12207_v3  ;;  %v5927_v18 = vand.u32 2147483648, %v12658_v59 }
 0x43c   : > { %v9150_v1 = vpop.eup %9149  ;;  %v5700_v58 = vmul.f32 %v5456_v36, %v5456_v36  ;;  %v5458_v60 = vpop.f32.mrb[77].mxu0  ;;  %6663 = vmatmul.mubr.f32.gmra.mrb[130].mxu1 %v12591_v12  ;;  %v5948_v35 = vand.u32 2147483648, %v12673_v20  ;;  %vm5966_vm1 = vcmp.eq.f32.partialorder %v12723_v52, inf  ;;  %vm5968_vm2 = vcmp.eq.f32.partialorder %v12723_v52, 0.0 }
 0x43d   : > { %v5701_v2 = vmul.f32 %v5458_v60, %v5458_v60  ;;  %v5460_v21 = vpop.f32.mrb[78].mxu0  ;;  %v5925_v41 = vsel %vm5924_vm11, %v12658_v59, %v5923_v29  ;;  %v5944_v10 = vmul.f32 %v9150_v1, %v12673_v20  ;;  %7866 = vmatpush3.bf16.msra.mxu1 %v12712_v44  ;;  %v6586_v44 = vld [vmem:[%s13801_s2 + $0x148] sm:$0xff]  ;;  %v12804_v29 = vmul.f32 %v12193_v15, %v12193_v15 }
 0x43e   : > { %v12788_v33 = vadd.f32 %v5700_v58, %v12440_v9  ;;  %v5703_v12 = vmul.f32 %v5460_v21, %v5460_v21  ;;  %v5462_v8 = vpop.f32.mrb[79].mxu0  ;;  %v5928_v19 = vsel %vm5926_vm12, %v5927_v18, %v5925_v41  ;;  %7868 = vmatprep.subr.bf16.mxu1 %v7867_v34  ;;  %v6585_v9 = vld [vmem:[%s13801_s2 + $0x140] sm:$0xff]  ;;  %v6588_v58 = vld [vmem:[%s13801_s2 + $0x158] sm:$0xff]  ;;  %v14520_v60 = vand.u32 2147483648, %v12148_v31 }
 0x43f   : > { %v12792_v26 = vadd.f32 %v5701_v2, %v12618_v24  ;;  %v5704_v36 = vmul.f32 %v5462_v8, %v5462_v8  ;;  %6667 = vmatprep.mubr.f32.mxu1 %v5928_v19  ;;  %v5946_v59 = vsel %vm5945_vm13, %v12673_v20, %v5944_v10  ;;  %v6587_v20 = vld [vmem:[%s13801_s2 + $0x150] sm:$0xff]  ;;  %v6084_v2 = vmul.f32 %v9144_v4, %v12169_v14 }
 0x440   : > { %v12807_v24 = vadd.f32 %v5703_v12, %v12444_v57  ;;  %6668 = vmatmul.mubr.f32.gmra.mrb[132].mxu1 %v12631_v50  ;;  %v5949_v1 = vsel %vm5947_vm14, %v5948_v35, %v5946_v59  ;;  %9159 = vrsqrt.f32 %v12788_v33  ;;  %v14519_v57 = vand.u32 2147483648, %v12136_v62 }
 0x441   : > { %v12819_v15 = vadd.f32 %v5704_v36, %v12626_v40  ;;  %6672 = vmatprep.mubr.f32.mxu1 %v5949_v1  ;;  %7870 = vmatpush3.bf16.msra.mxu1 %v7867_v34  ;;  %v12831_v18 = vsel %vm6066_vm10, %v14520_v60, %v6065_v13  ;;  %9161 = vrsqrt.f32 %v12225_v48  ;;  %v6130_v62 = vand.u32 2147483648, %v12197_v39 }
 0x442   : > { %v12825_v50 = vsel %vm6045_vm9, %v14519_v57, %v6044_v53  ;;  %v9152_v40 = vpop.eup %9151  ;;  %9163 = vrsqrt.f32 %v12807_v24  ;;  %7872 = vmatprep.subr.bf16.mxu1 %v12776_v49  ;;  %v7875_v53 = vpack.c.bf16 %v6586_v44, %v6585_v9  ;;  %v6105_v13 = vmul.f32 %v9148_v43, %v12179_v30 }
 0x443   : > { %v9154_v34 = vpop.eup %9153  ;;  %v5466_v21 = vpop.f32.mrb[80].mxu0  ;;  %v5965_v31 = vmul.f32 %v9152_v40, %v12723_v52  ;;  %9165 = vrsqrt.f32 %v12235_v38  ;;  %v12842_v41 = vpack.c.bf16 %v6588_v58, %v6587_v20  ;;  %v5969_v4 = vand.u32 2147483648, %v12723_v52  ;;  %v6591_v40 = vld [vmem:[%s13801_s2 + $0x170] sm:$0xff] }
 0x444   : > { %v9156_v10 = vpop.eup %9155  ;;  %v5706_v12 = vmul.f32 %v5466_v21, %v5466_v21  ;;  %v5468_v8 = vpop.f32.mrb[81].mxu0  ;;  %6673 = vmatmul.mubr.f32.gmra.mrb[134].mxu1 %v12635_v61  ;;  %vm5987_vm3 = vcmp.eq.f32.partialorder %v12738_v17, inf  ;;  %v5990_v20 = vand.u32 2147483648, %v12738_v17  ;;  %vm5989_vm4 = vcmp.eq.f32.partialorder %v12738_v17, 0.0  ;;  %v6592_v21 = vld [vmem:[%s13801_s2 + $0x178] sm:$0xff] }
 0x445   : > { %v9158_v19 = vpop.eup %9157  ;;  %v5707_v35 = vmul.f32 %v5468_v8, %v5468_v8  ;;  %v5470_v36 = vpop.f32.mrb[82].mxu0  ;;  %v5967_v43 = vsel %vm5966_vm1, %v12723_v52, %v5965_v31  ;;  %v5986_v59 = vmul.f32 %v9156_v10, %v12738_v17  ;;  %7874 = vmatpush3.bf16.msra.mxu1 %v12776_v49  ;;  %v6590_v49 = vld [vmem:[%s13801_s2 + $0x168] sm:$0xff]  ;;  %vm6108_vm6 = vcmp.eq.f32.partialorder %v12179_v30, 0.0 }
 0x446   : > { %v12853_v9 = vadd.f32 %v5706_v12, %v12449_v63  ;;  %v5709_v61 = vmul.f32 %v5470_v36, %v5470_v36  ;;  %v5472_v44 = vpop.f32.mrb[83].mxu0  ;;  %v5970_v1 = vsel %vm5968_vm2, %v5969_v4, %v5967_v43  ;;  %7876 = vmatprep.subr.bf16.mxu1 %v7875_v53  ;;  %v6589_v63 = vld [vmem:[%s13801_s2 + $0x160] sm:$0xff]  ;;  %vm6127_vm7 = vcmp.eq.f32.partialorder %v12197_v39, inf }
 0x447   : > { %v12857_v58 = vadd.f32 %v5707_v35, %v12648_v54  ;;  %v5710_v57 = vmul.f32 %v5472_v44, %v5472_v44  ;;  %6677 = vmatprep.mubr.f32.mxu1 %v5970_v1  ;;  %v5988_v52 = vsel %vm5987_vm3, %v12738_v17, %v5986_v59  ;;  %v12870_v54 = vmul.f32 %v12210_v11, %v12210_v11 }
 0x448   : > { %v12873_v60 = vadd.f32 %v5709_v61, %v12453_v16  ;;  %6678 = vmatmul.mubr.f32.gmra.mrb[136].mxu1 %v12662_v27  ;;  %v5991_v17 = vsel %vm5989_vm4, %v5990_v20, %v5988_v52  ;;  %9167 = vrsqrt.f32 %v12853_v9  ;;  %v12886_v11 = vmul.f32 %v12221_v5, %v12221_v5 }
 0x449   : > { %v12889_v16 = vadd.f32 %v5710_v57, %v12652_v0  ;;  %6682 = vmatprep.mubr.f32.mxu1 %v5991_v17  ;;  %v6086_v27 = vsel %vm6085_vm15, %v12169_v14, %v6084_v2  ;;  %vm6148_vm8 = vcmp.eq.f32.partialorder %v12207_v3, inf  ;;  %v6151_v31 = vand.u32 2147483648, %v12207_v3  ;;  %7878 = vmatpush3.bf16.msra.mxu1 %v7875_v53 }
 0x44a   : > { %v9160_v10 = vpop.eup %9159  ;;  %9169 = vrsqrt.f32 %v12873_v60  ;;  %v6107_v5 = vsel %vm6106_vm0, %v12179_v30, %v6105_v13  ;;  %v6126_v0 = vmul.f32 %v9154_v34, %v12197_v39  ;;  %7880 = vmatprep.subr.bf16.mxu1 %v12842_v41  ;;  %v7883_v12 = vpack.c.bf16 %v6590_v49, %v6589_v63 }
 0x44b   : > { %v9162_v2 = vpop.eup %9161  ;;  %v5476_v8 = vpop.f32.mrb[84].mxu0  ;;  %v6007_v4 = vmul.f32 %v9160_v10, %v12788_v33  ;;  %v6147_v35 = vmul.f32 %v9158_v19, %v12207_v3  ;;  %9171 = vrsqrt.f32 %v12253_v45  ;;  %v12906_v53 = vpack.c.bf16 %v6592_v21, %v6591_v40  ;;  %v14521_v10 = vld [vmem:[#allocation96_spill] sm:$0xff] }
 0x44c   : > { %v9164_v36 = vpop.eup %9163  ;;  %v5712_v43 = vmul.f32 %v5476_v8, %v5476_v8  ;;  %v5478_v59 = vpop.f32.mrb[85].mxu0  ;;  %6683 = vmatmul.mubr.f32.gmra.mrb[138].mxu1 %v12684_v56  ;;  %vm6008_vm9 = vcmp.eq.f32.partialorder %v12788_v33, inf  ;;  %vm6010_vm10 = vcmp.eq.f32.partialorder %v12788_v33, 0.0  ;;  %v6011_v34 = vand.u32 2147483648, %v12788_v33 }
 0x44d   : > { %v9166_v13 = vpop.eup %9165  ;;  %v5713_v61 = vmul.f32 %v5478_v59, %v5478_v59  ;;  %v5480_v44 = vpop.f32.mrb[86].mxu0  ;;  %v6009_v19 = vsel %vm6008_vm9, %v12788_v33, %v6007_v4  ;;  %v6028_v1 = vmul.f32 %v9164_v36, %v12807_v24  ;;  %vm6029_vm11 = vcmp.eq.f32.partialorder %v12807_v24, inf  ;;  %7882 = vmatpush3.bf16.msra.mxu1 %v12842_v41  ;;  %v14522_v59 = vld [vmem:[#allocation29_spill] sm:$0xff] }
 0x44e   : > { %v12917_v20 = vadd.f32 %v5712_v43, %v12457_v25  ;;  %v5715_v56 = vmul.f32 %v5480_v44, %v5480_v44  ;;  %v5482_v57 = vpop.f32.mrb[87].mxu0  ;;  %v6012_v52 = vsel %vm6010_vm10, %v6011_v34, %v6009_v19  ;;  %v6032_v63 = vand.u32 2147483648, %v12807_v24  ;;  %7884 = vmatprep.subr.bf16.mxu1 %v7883_v12 }
 0x44f   : > { %v12921_v49 = vadd.f32 %v5713_v61, %v12690_v37  ;;  %v5716_v17 = vmul.f32 %v5482_v57, %v5482_v57  ;;  %6687 = vmatprep.mubr.f32.mxu1 %v6012_v52  ;;  %v6030_v33 = vsel %vm6029_vm11, %v12807_v24, %v6028_v1  ;;  %vm6031_vm12 = vcmp.eq.f32.partialorder %v12807_v24, 0.0  ;;  %v14524_v57 = vld [vmem:[#allocation30_spill] sm:$0xff] }
 0x450   : > { %v12926_v41 = vadd.f32 %v5715_v56, %v12461_v22  ;;  %6688 = vmatmul.mubr.f32.gmra.mrb[140].mxu1 %v12705_v51  ;;  %v6033_v25 = vsel %vm6031_vm12, %v6032_v63, %v6030_v33  ;;  %9173 = vrsqrt.f32 %v12917_v20  ;;  %v12934_v37 = vsel %vm6087_vm5, %v6088_v32, %v6086_v27  ;;  %v14523_v56 = vld [vmem:[#allocation94_spill] sm:$0xff] }
 0x451   : > { %vm6129_vm13 = vcmp.eq.f32.partialorder %v12197_v39, 0.0  ;;  %v12938_v40 = vadd.f32 %v5716_v17, %v12700_v28  ;;  %6692 = vmatprep.mubr.f32.mxu1 %v6033_v25  ;;  %v12944_v22 = vsel %vm6108_vm6, %v6109_v55, %v6107_v5  ;;  %vm6150_vm14 = vcmp.eq.f32.partialorder %v12207_v3, 0.0  ;;  %7886 = vmatpush3.bf16.msra.mxu1 %v7883_v12 }
 0x452   : > { %vm6169_vm15 = vcmp.eq.f32.partialorder %v12225_v48, inf  ;;  %v6172_v14 = vand.u32 2147483648, %v12225_v48  ;;  %v9168_v51 = vpop.eup %9167  ;;  %9175 = vrsqrt.f32 %v12926_v41  ;;  %v6128_v28 = vsel %vm6127_vm7, %v12197_v39, %v6126_v0  ;;  %7888 = vmatprep.subr.bf16.mxu1 %v12906_v53 }
 0x453   : > { %v6149_v30 = vsel %vm6148_vm8, %v12207_v3, %v6147_v35  ;;  %vm6190_vm0 = vcmp.eq.f32.partialorder %v12235_v38, inf  ;;  %v6193_v32 = vand.u32 2147483648, %v12235_v38  ;;  %v5486_v55 = vpop.f32.mrb[88].mxu0  ;;  %v6049_v24 = vmul.f32 %v9168_v51, %v12853_v9 }
 0x454   : > { %v6168_v21 = vmul.f32 %v9162_v2, %v12225_v48  ;;  %v6189_v27 = vmul.f32 %v9166_v13, %v12235_v38  ;;  %9177 = vrsqrt.f32 %v14521_v10  ;;  %v9170_v5 = vpop.eup %9169  ;;  %v5718_v0 = vmul.f32 %v5486_v55, %v5486_v55  ;;  %v5488_v12 = vpop.f32.mrb[89].mxu0  ;;  %6693 = vmatmul.mubr.f32.gmra.mrb[142].mxu1 %v12763_v46 }
 0x455   : > { %vm6050_vm1 = vcmp.eq.f32.partialorder %v12853_v9, inf  ;;  %vm6052_vm2 = vcmp.eq.f32.partialorder %v12853_v9, 0.0  ;;  %v6053_v8 = vand.u32 2147483648, %v12853_v9  ;;  %v9172_v4 = vpop.eup %9171  ;;  %v5719_v35 = vmul.f32 %v5488_v12, %v5488_v12  ;;  %v5490_v36 = vpop.f32.mrb[90].mxu0  ;;  %7890 = vmatpush3.bf16.msra.mxu1 %v12906_v53 }
 0x456   : > { %v6051_v2 = vsel %vm6050_vm1, %v12853_v9, %v6049_v24  ;;  %v6070_v43 = vmul.f32 %v9170_v5, %v12873_v60  ;;  %vm6071_vm3 = vcmp.eq.f32.partialorder %v12873_v60, inf  ;;  %v12972_v34 = vadd.f32 %v5718_v0, %v14522_v59  ;;  %v5492_v13 = vpop.f32.mrb[91].mxu0  ;;  %v14527_v24 = vld [vmem:[#allocation98_spill] sm:$0xff] }
 0x457   : > { %v5721_v46 = vmul.f32 %v5490_v36, %v5490_v36  ;;  %v6054_v61 = vsel %vm6052_vm2, %v6053_v8, %v6051_v2  ;;  %v6074_v44 = vand.u32 2147483648, %v12873_v60  ;;  %v12976_v19 = vadd.f32 %v5719_v35, %v12753_v6  ;;  %v14525_v6 = vld [vmem:[#allocation95_spill] sm:$0xff] }
 0x458   : > { %v5722_v1 = vmul.f32 %v5492_v13, %v5492_v13  ;;  %6697 = vmatprep.mubr.f32.mxu1 %v6054_v61  ;;  %v6072_v9 = vsel %vm6071_vm3, %v12873_v60, %v6070_v43  ;;  %vm6073_vm4 = vcmp.eq.f32.partialorder %v12873_v60, 0.0  ;;  %v12982_v53 = vmul.f32 %v14523_v56, %v14523_v56 }
 0x459   : > { %v12985_v52 = vadd.f32 %v5721_v46, %v14524_v57  ;;  %6698 = vmatmul.mubr.f32.gmra.mrb[144].mxu1 %v12825_v50  ;;  %v6075_v63 = vsel %vm6073_vm4, %v6074_v44, %v6072_v9  ;;  %9179 = vrsqrt.f32 %v12972_v34  ;;  %v12991_v17 = vmul.f32 %v14525_v6, %v14525_v6  ;;  %v14526_v50 = vld [vmem:[#allocation11_spill] sm:$0xff]  ;;  %v14530_v9 = vld [vmem:[#allocation97_spill] sm:$0xff] }
 0x45a   : > { %v12994_v33 = vadd.f32 %v5722_v1, %v12804_v29  ;;  %6702 = vmatprep.mubr.f32.mxu1 %v6075_v63  ;;  %v13000_v60 = vsel %vm6129_vm13, %v6130_v62, %v6128_v28  ;;  %vm6171_vm5 = vcmp.eq.f32.partialorder %v12225_v48, 0.0  ;;  %vm6192_vm6 = vcmp.eq.f32.partialorder %v12235_v38, 0.0  ;;  %v9174_v25 = vpop.eup %9173  ;;  %v14532_v63 = vld [vmem:[#allocation10_spill] sm:$0xff] }
 0x45b   : > { %9181 = vrsqrt.f32 %v14526_v50  ;;  %v13010_v29 = vsel %vm6150_vm14, %v6151_v31, %v6149_v30  ;;  %v6170_v39 = vsel %vm6169_vm15, %v12225_v48, %v6168_v21  ;;  %vm6211_vm7 = vcmp.eq.f32.partialorder %v12253_v45, inf  ;;  %v5496_v62 = vpop.f32.mrb[92].mxu0 }
 0x45c   : > { %9183 = vrsqrt.f32 %v12985_v52  ;;  %v6091_v51 = vmul.f32 %v9174_v25, %v12917_v20  ;;  %v6191_v28 = vsel %vm6190_vm0, %v12235_v38, %v6189_v27  ;;  %v6210_v55 = vmul.f32 %v9172_v4, %v12253_v45  ;;  %v9176_v3 = vpop.eup %9175  ;;  %v5498_v30 = vpop.f32.mrb[93].mxu0  ;;  %v14528_v4 = vld [vmem:[#allocation31_spill] sm:$0xff] }
 0x45d   : > { %9185 = vrsqrt.f32 %v14527_v24  ;;  %v5724_v31 = vmul.f32 %v5496_v62, %v5496_v62  ;;  %6703 = vmatmul.mubr.f32.gmra.mrb[146].mxu1 %v12831_v18  ;;  %vm6092_vm8 = vcmp.eq.f32.partialorder %v12917_v20, inf  ;;  %vm6094_vm9 = vcmp.eq.f32.partialorder %v12917_v20, 0.0  ;;  %v5500_v12 = vpop.f32.mrb[94].mxu0 }
 0x45e   : > { %v6095_v21 = vand.u32 2147483648, %v12917_v20  ;;  %v9178_v5 = vpop.eup %9177  ;;  %v5725_v0 = vmul.f32 %v5498_v30, %v5498_v30  ;;  %v6093_v27 = vsel %vm6092_vm8, %v12917_v20, %v6091_v51  ;;  %v6112_v8 = vmul.f32 %v9176_v3, %v12926_v41  ;;  %v5502_v18 = vpop.f32.mrb[95].mxu0  ;;  %v14529_v20 = vld [vmem:[#allocation32_spill] sm:$0xff] }
 0x45f   : > { %vm6113_vm10 = vcmp.eq.f32.partialorder %v12926_v41, inf  ;;  %v13030_v35 = vadd.f32 %v5724_v31, %v14528_v4  ;;  %v5727_v36 = vmul.f32 %v5500_v12, %v5500_v12  ;;  %v6116_v43 = vand.u32 2147483648, %v12926_v41  ;;  %v14534_v12 = vld [vmem:[#allocation33_spill] sm:$0xff] }
 0x460   : > { %v6096_v2 = vsel %vm6094_vm9, %v6095_v21, %v6093_v27  ;;  %v13034_v59 = vadd.f32 %v5725_v0, %v12870_v54  ;;  %v5728_v46 = vmul.f32 %v5502_v18, %v5502_v18  ;;  %v6114_v13 = vsel %vm6113_vm10, %v12926_v41, %v6112_v8 }
 0x461   : > { %6707 = vmatprep.mubr.f32.mxu1 %v6096_v2  ;;  %vm6115_vm11 = vcmp.eq.f32.partialorder %v12926_v41, 0.0  ;;  %v13039_v61 = vadd.f32 %v5727_v36, %v14529_v20  ;;  %9187 = vrsqrt.f32 %v13030_v35  ;;  %v6214_v1 = vand.u32 2147483648, %v12253_v45 }
 0x462   : > { %6708 = vmatmul.mubr.f32.gmra.mrb[148].mxu1 %v12934_v37  ;;  %v6117_v44 = vsel %vm6115_vm11, %v6116_v43, %v6114_v13  ;;  %v13046_v54 = vmul.f32 %v14530_v9, %v14530_v9  ;;  %v13049_v56 = vadd.f32 %v5728_v46, %v12886_v11  ;;  %vm6213_vm12 = vcmp.eq.f32.partialorder %v12253_v45, 0.0  ;;  %v14531_v37 = vld [vmem:[#allocation13_spill] sm:$0xff] }
 0x463   : > { %6712 = vmatprep.mubr.f32.mxu1 %v6117_v44  ;;  %vm6232_vm13 = vcmp.eq.f32.partialorder %v14521_v10, inf  ;;  %v6235_v41 = vand.u32 2147483648, %v14521_v10  ;;  %9189 = vrsqrt.f32 %v14531_v37  ;;  %v9180_v57 = vpop.eup %9179  ;;  %v13057_v6 = vmul.f32 %v14532_v63, %v14532_v63  ;;  %v5506_v51 = vpop.f32.mrb[96].mxu0 }
 0x464   : > { %v13063_v11 = vsel %vm6171_vm5, %v6172_v14, %v6170_v39  ;;  %9191 = vrsqrt.f32 %v13039_v61  ;;  %v13070_v25 = vsel %vm6192_vm6, %v6193_v32, %v6191_v28  ;;  %v6133_v3 = vmul.f32 %v9180_v57, %v12972_v34  ;;  %v14533_v14 = vld [vmem:[#allocation100_spill] sm:$0xff]  ;;  %v5508_v21 = vpop.f32.mrb[97].mxu0 }
 0x465   : > { %v9182_v62 = vpop.eup %9181  ;;  %v6212_v31 = vsel %vm6211_vm7, %v12253_v45, %v6210_v55  ;;  %v6231_v48 = vmul.f32 %v9178_v5, %v14521_v10  ;;  %9193 = vrsqrt.f32 %v14533_v14  ;;  %v5730_v30 = vmul.f32 %v5506_v51, %v5506_v51  ;;  %v5510_v0 = vpop.f32.mrb[98].mxu0  ;;  %v14537_v57 = vld [vmem:[#allocation12_spill] sm:$0xff] }
 0x466   : > { %v9184_v39 = vpop.eup %9183  ;;  %6713 = vmatmul.mubr.f32.gmra.mrb[150].mxu1 %v12944_v22  ;;  %vm6134_vm14 = vcmp.eq.f32.partialorder %v12972_v34, inf  ;;  %vm6136_vm15 = vcmp.eq.f32.partialorder %v12972_v34, 0.0  ;;  %v6137_v38 = vand.u32 2147483648, %v12972_v34  ;;  %v5731_v28 = vmul.f32 %v5508_v21, %v5508_v21  ;;  %v5512_v22 = vpop.f32.mrb[99].mxu0 }
 0x467   : > { %v9186_v32 = vpop.eup %9185  ;;  %v6135_v55 = vsel %vm6134_vm14, %v12972_v34, %v6133_v3  ;;  %v6154_v5 = vmul.f32 %v9184_v39, %v12985_v52  ;;  %vm6155_vm0 = vcmp.eq.f32.partialorder %v12985_v52, inf  ;;  %v13086_v27 = vadd.f32 %v5730_v30, %v14534_v12  ;;  %v14535_v34 = vld [vmem:[#allocation34_spill] sm:$0xff]  ;;  %v14539_v12 = vld [vmem:[#allocation35_spill] sm:$0xff] }
 0x468   : > { %v5733_v8 = vmul.f32 %v5510_v0, %v5510_v0  ;;  %v6138_v4 = vsel %vm6136_vm15, %v6137_v38, %v6135_v55  ;;  %v6158_v36 = vand.u32 2147483648, %v12985_v52  ;;  %v13090_v18 = vadd.f32 %v5731_v28, %v12982_v53  ;;  %v14536_v53 = vld [vmem:[#allocation99_spill] sm:$0xff]  ;;  %v14538_v28 = vld [vmem:[#allocation74_spill] sm:$0xff] }
 0x469   : > { %v5734_v2 = vmul.f32 %v5512_v22, %v5512_v22  ;;  %6717 = vmatprep.mubr.f32.mxu1 %v6138_v4  ;;  %v6156_v43 = vsel %vm6155_vm0, %v12985_v52, %v6154_v5  ;;  %vm6157_vm1 = vcmp.eq.f32.partialorder %v12985_v52, 0.0  ;;  %vm6234_vm2 = vcmp.eq.f32.partialorder %v14521_v10, 0.0 }
 0x46a   : > { %v13096_v46 = vadd.f32 %v5733_v8, %v14535_v34  ;;  %6718 = vmatmul.mubr.f32.gmra.mrb[152].mxu1 %v13000_v60  ;;  %v6159_v13 = vsel %vm6157_vm1, %v6158_v36, %v6156_v43  ;;  %9195 = vrsqrt.f32 %v13086_v27  ;;  %v6256_v20 = vand.u32 2147483648, %v14526_v50 }
 0x46b   : > { %v13103_v44 = vmul.f32 %v14536_v53, %v14536_v53  ;;  %v13106_v9 = vadd.f32 %v5734_v2, %v12991_v17  ;;  %6722 = vmatprep.mubr.f32.mxu1 %v6159_v13  ;;  %vm6253_vm3 = vcmp.eq.f32.partialorder %v14526_v50, inf  ;;  %vm6274_vm4 = vcmp.eq.f32.partialorder %v14527_v24, inf  ;;  %v9188_v60 = vpop.eup %9187  ;;  %v5516_v39 = vpop.f32.mrb[100].mxu0 }
 0x46c   : > { %v6277_v52 = vand.u32 2147483648, %v14527_v24  ;;  %v13113_v63 = vmul.f32 %v14537_v57, %v14537_v57  ;;  %v13117_v51 = vsel %vm6213_vm12, %v6214_v1, %v6212_v31  ;;  %9197 = vrsqrt.f32 %v13096_v46  ;;  %v5518_v1 = vpop.f32.mrb[101].mxu0 }
 0x46d   : > { %v6233_v17 = vsel %vm6232_vm13, %v14521_v10, %v6231_v48  ;;  %v9190_v3 = vpop.eup %9189  ;;  %v6175_v30 = vmul.f32 %v9188_v60, %v13030_v35  ;;  %v6252_v21 = vmul.f32 %v9182_v62, %v14526_v50  ;;  %v6273_v38 = vmul.f32 %v9186_v32, %v14527_v24  ;;  %v5520_v5 = vpop.f32.mrb[102].mxu0 }
 0x46e   : > { %9199 = vrsqrt.f32 %v14538_v28  ;;  %v9192_v0 = vpop.eup %9191  ;;  %v5736_v45 = vmul.f32 %v5516_v39, %v5516_v39  ;;  %6723 = vmatmul.mubr.f32.gmra.mrb[154].mxu1 %v13010_v29  ;;  %vm6176_vm5 = vcmp.eq.f32.partialorder %v13030_v35, inf  ;;  %vm6178_vm6 = vcmp.eq.f32.partialorder %v13030_v35, 0.0  ;;  %v5522_v29 = vpop.f32.mrb[103].mxu0 }
 0x46f   : > { %v6179_v31 = vand.u32 2147483648, %v13030_v35  ;;  %v9194_v48 = vpop.eup %9193  ;;  %v5737_v55 = vmul.f32 %v5518_v1, %v5518_v1  ;;  %v6177_v62 = vsel %vm6176_vm5, %v13030_v35, %v6175_v30  ;;  %v6196_v32 = vmul.f32 %v9192_v0, %v13039_v61  ;;  %v14540_v35 = vld [vmem:[#allocation36_spill] sm:$0xff] }
 0x470   : > { %vm6197_vm7 = vcmp.eq.f32.partialorder %v13039_v61, inf  ;;  %v13135_v8 = vadd.f32 %v5736_v45, %v14539_v12  ;;  %v5739_v22 = vmul.f32 %v5520_v5, %v5520_v5  ;;  %v6200_v36 = vand.u32 2147483648, %v13039_v61  ;;  %v14542_v45 = vld [vmem:[#allocation104_spill] sm:$0xff] }
 0x471   : > { %v6180_v4 = vsel %vm6178_vm6, %v6179_v31, %v6177_v62  ;;  %v13139_v2 = vadd.f32 %v5737_v55, %v13046_v54  ;;  %v5740_v43 = vmul.f32 %v5522_v29, %v5522_v29  ;;  %v6198_v34 = vsel %vm6197_vm7, %v13039_v61, %v6196_v32  ;;  %v14543_v32 = vld [vmem:[#allocation37_spill] sm:$0xff] }
 0x472   : > { %6727 = vmatprep.mubr.f32.mxu1 %v6180_v4  ;;  %vm6199_vm8 = vcmp.eq.f32.partialorder %v13039_v61, 0.0  ;;  %v13144_v13 = vadd.f32 %v5739_v22, %v14540_v35  ;;  %v13151_v60 = vsel %vm6234_vm2, %v6235_v41, %v6233_v17  ;;  %9201 = vrsqrt.f32 %v13135_v8 }
 0x473   : > { %6728 = vmatmul.mubr.f32.gmra.mrb[156].mxu1 %v13063_v11  ;;  %v6201_v53 = vsel %vm6199_vm8, %v6200_v36, %v6198_v34  ;;  %vm6255_vm9 = vcmp.eq.f32.partialorder %v14526_v50, 0.0  ;;  %vm6276_vm10 = vcmp.eq.f32.partialorder %v14527_v24, 0.0  ;;  %v13157_v61 = vadd.f32 %v5740_v43, %v13057_v6  ;;  %v14541_v11 = vld [vmem:[#allocation16_spill] sm:$0xff]  ;;  %v5526_v17 = vpop.f32.mrb[104].mxu0 }
 0x474   : > { %6732 = vmatprep.mubr.f32.mxu1 %v6201_v53  ;;  %vm6295_vm11 = vcmp.eq.f32.partialorder %v14531_v37, inf  ;;  %v6298_v54 = vand.u32 2147483648, %v14531_v37  ;;  %9203 = vrsqrt.f32 %v14541_v11  ;;  %v9196_v57 = vpop.eup %9195  ;;  %v6254_v10 = vsel %vm6253_vm3, %v14526_v50, %v6252_v21  ;;  %v5528_v31 = vpop.f32.mrb[105].mxu0  ;;  %v14545_v53 = vld [vmem:[#allocation38_spill] sm:$0xff] }
 0x475   : > { %9205 = vrsqrt.f32 %v13144_v13  ;;  %v6275_v41 = vsel %vm6274_vm4, %v14527_v24, %v6273_v38  ;;  %vm6316_vm12 = vcmp.eq.f32.partialorder %v14533_v14, inf  ;;  %v6319_v6 = vand.u32 2147483648, %v14533_v14  ;;  %v5530_v62 = vpop.f32.mrb[106].mxu0 }
 0x476   : > { %v6217_v39 = vmul.f32 %v9196_v57, %v13086_v27  ;;  %v6294_v30 = vmul.f32 %v9190_v3, %v14531_v37  ;;  %v6315_v0 = vmul.f32 %v9194_v48, %v14533_v14  ;;  %9207 = vrsqrt.f32 %v14542_v45  ;;  %v9198_v21 = vpop.eup %9197 }
 0x477   : > { %v5742_v1 = vmul.f32 %v5526_v17, %v5526_v17  ;;  %6733 = vmatmul.mubr.f32.gmra.mrb[158].mxu1 %v13070_v25  ;;  %vm6218_vm13 = vcmp.eq.f32.partialorder %v13086_v27, inf  ;;  %vm6220_vm14 = vcmp.eq.f32.partialorder %v13086_v27, 0.0  ;;  %v6221_v38 = vand.u32 2147483648, %v13086_v27  ;;  %v5532_v25 = vpop.f32.mrb[107].mxu0 }
 0x478   : > { %v9200_v55 = vpop.eup %9199  ;;  %v5743_v5 = vmul.f32 %v5528_v31, %v5528_v31  ;;  %v6219_v3 = vsel %vm6218_vm13, %v13086_v27, %v6217_v39  ;;  %v6238_v48 = vmul.f32 %v9198_v21, %v13096_v46  ;;  %vm6239_vm15 = vcmp.eq.f32.partialorder %v13096_v46, inf  ;;  %v14544_v27 = vld [vmem:[#allocation101_spill] sm:$0xff] }
 0x479   : > { %v13183_v12 = vadd.f32 %v5742_v1, %v14543_v32  ;;  %v5745_v22 = vmul.f32 %v5530_v62, %v5530_v62  ;;  %v6222_v29 = vsel %vm6220_vm14, %v6221_v38, %v6219_v3  ;;  %v6242_v4 = vand.u32 2147483648, %v13096_v46 }
 0x47a   : > { %v13187_v36 = vadd.f32 %v5743_v5, %v13103_v44  ;;  %v5746_v43 = vmul.f32 %v5532_v25, %v5532_v25  ;;  %6737 = vmatprep.mubr.f32.mxu1 %v6222_v29  ;;  %v6240_v34 = vsel %vm6239_vm15, %v13096_v46, %v6238_v48  ;;  %vm6241_vm0 = vcmp.eq.f32.partialorder %v13096_v46, 0.0  ;;  %v14546_v44 = vld [vmem:[#allocation102_spill] sm:$0xff] }
 0x47b   : > { %v5653_v35 = vmul.f32 %v14544_v27, %v14544_v27  ;;  %v13194_v57 = vadd.f32 %v5745_v22, %v14545_v53  ;;  %6738 = vmatmul.mubr.f32.gmra.mrb[160].mxu1 %v13117_v51  ;;  %v6243_v17 = vsel %vm6241_vm0, %v6242_v4, %v6240_v34  ;;  %9209 = vrsqrt.f32 %v13183_v12  ;;  %v14548_v22 = vld [vmem:[#allocation39_spill] sm:$0xff] }
 0x47c   : > { %vm6297_vm1 = vcmp.eq.f32.partialorder %v14531_v37, 0.0  ;;  %v5656_v39 = vmul.f32 %v14546_v44, %v14546_v44  ;;  %v13202_v21 = vadd.f32 %v5746_v43, %v13113_v63  ;;  %6742 = vmatprep.mubr.f32.mxu1 %v6243_v17  ;;  %v6257_v46 = vsel %vm6255_vm9, %v6256_v20, %v6254_v10  ;;  %v9202_v1 = vpop.eup %9201  ;;  %v5536_v20 = vpop.f32.mrb[108].mxu0 }
 0x47d   : > { %v6278_v51 = vsel %vm6276_vm10, %v6277_v52, %v6275_v41  ;;  %vm6318_vm2 = vcmp.eq.f32.partialorder %v14533_v14, 0.0  ;;  %v6296_v31 = vsel %vm6295_vm11, %v14531_v37, %v6294_v30  ;;  %9211 = vrsqrt.f32 %v13194_v57  ;;  %v14547_v41 = vld [vmem:[#allocation20_spill] sm:$0xff]  ;;  %v5538_v5 = vpop.f32.mrb[109].mxu0 }
 0x47e   : > { %vm6337_vm3 = vcmp.eq.f32.partialorder %v14538_v28, inf  ;;  %v6340_v63 = vand.u32 2147483648, %v14538_v28  ;;  %v9204_v50 = vpop.eup %9203  ;;  %v6259_v10 = vmul.f32 %v9202_v1, %v13135_v8  ;;  %v6317_v24 = vsel %vm6316_vm12, %v14533_v14, %v6315_v0  ;;  %v5540_v32 = vpop.f32.mrb[110].mxu0 }
 0x47f   : > { %v6336_v52 = vmul.f32 %v9200_v55, %v14538_v28  ;;  %9213 = vrsqrt.f32 %v14547_v41  ;;  %v9206_v38 = vpop.eup %9205  ;;  %v5748_v30 = vmul.f32 %v5536_v20, %v5536_v20  ;;  %6743 = vmatmul.mubr.f32.gmra.mrb[162].mxu1 %v13151_v60  ;;  %vm6260_vm4 = vcmp.eq.f32.partialorder %v13135_v8, inf  ;;  %v5542_v60 = vpop.f32.mrb[111].mxu0  ;;  %v14550_v20 = vld [vmem:[#allocation17_spill] sm:$0xff] }
 0x480   : > { %vm6262_vm5 = vcmp.eq.f32.partialorder %v13135_v8, 0.0  ;;  %v6263_v62 = vand.u32 2147483648, %v13135_v8  ;;  %v9208_v3 = vpop.eup %9207  ;;  %v5749_v48 = vmul.f32 %v5538_v5, %v5538_v5  ;;  %v6261_v0 = vsel %vm6260_vm4, %v13135_v8, %v6259_v10  ;;  %v14549_v8 = vld [vmem:[#allocation40_spill] sm:$0xff] }
 0x481   : > { %v6280_v55 = vmul.f32 %v9206_v38, %v13144_v13  ;;  %vm6281_vm6 = vcmp.eq.f32.partialorder %v13144_v13, inf  ;;  %v13233_v25 = vadd.f32 %v5748_v30, %v14548_v22  ;;  %v5751_v29 = vmul.f32 %v5540_v32, %v5540_v32 }
 0x482   : > { %v6264_v4 = vsel %vm6262_vm5, %v6263_v62, %v6261_v0  ;;  %v6284_v43 = vand.u32 2147483648, %v13144_v13  ;;  %v13236_v34 = vadd.f32 %v5749_v48, %v5653_v35  ;;  %v5752_v27 = vmul.f32 %v5542_v60, %v5542_v60  ;;  %v14551_v35 = vld [vmem:[#allocation103_spill] sm:$0xff]  ;;  %v14552_v48 = vld [vmem:[#allocation106_spill] sm:$0xff] }
 0x483   : > { %6747 = vmatprep.mubr.f32.mxu1 %v6264_v4  ;;  %v6282_v53 = vsel %vm6281_vm6, %v13144_v13, %v6280_v55  ;;  %vm6283_vm7 = vcmp.eq.f32.partialorder %v13144_v13, 0.0  ;;  %v13241_v17 = vadd.f32 %v5751_v29, %v14549_v8  ;;  %9215 = vrsqrt.f32 %v13233_v25  ;;  %v5546_v37 = vpop.f32.mrb[112].mxu0 }
 0x484   : > { %6748 = vmatmul.mubr.f32.gmra.mrb[164].mxu1 %v6257_v46  ;;  %v6285_v44 = vsel %vm6283_vm7, %v6284_v43, %v6282_v53  ;;  %v6361_v1 = vand.u32 2147483648, %v14541_v11  ;;  %v5659_v10 = vmul.f32 %v14550_v20, %v14550_v20  ;;  %v5662_v38 = vmul.f32 %v14551_v35, %v14551_v35 }
 0x485   : > { %v13249_v30 = vadd.f32 %v5752_v27, %v5656_v39  ;;  %6752 = vmatprep.mubr.f32.mxu1 %v6285_v44  ;;  %v6299_v13 = vsel %vm6297_vm1, %v6298_v54, %v6296_v31  ;;  %vm6339_vm8 = vcmp.eq.f32.partialorder %v14538_v28, 0.0  ;;  %vm6358_vm9 = vcmp.eq.f32.partialorder %v14541_v11, inf  ;;  %v9210_v46 = vpop.eup %9209 }
 0x486   : > { %v6320_v5 = vsel %vm6318_vm2, %v6319_v6, %v6317_v24  ;;  %v6338_v39 = vsel %vm6337_vm3, %v14538_v28, %v6336_v52  ;;  %9217 = vrsqrt.f32 %v13241_v17  ;;  %vm6379_vm10 = vcmp.eq.f32.partialorder %v14542_v45, inf  ;;  %v5548_v6 = vpop.f32.mrb[113].mxu0 }
 0x487   : > { %v6301_v54 = vmul.f32 %v9210_v46, %v13183_v12  ;;  %v6357_v31 = vmul.f32 %v9204_v50, %v14541_v11  ;;  %v6378_v62 = vmul.f32 %v9208_v3, %v14542_v45  ;;  %9219 = vrsqrt.f32 %v14552_v48  ;;  %v9212_v32 = vpop.eup %9211  ;;  %v5550_v55 = vpop.f32.mrb[114].mxu0  ;;  %v14553_v3 = vld [vmem:[#allocation41_spill] sm:$0xff] }
 0x488   : > { %v5754_v14 = vmul.f32 %v5546_v37, %v5546_v37  ;;  %6753 = vmatmul.mubr.f32.gmra.mrb[166].mxu1 %v6278_v51  ;;  %vm6302_vm11 = vcmp.eq.f32.partialorder %v13183_v12, inf  ;;  %vm6304_vm12 = vcmp.eq.f32.partialorder %v13183_v12, 0.0  ;;  %v6305_v24 = vand.u32 2147483648, %v13183_v12  ;;  %v5552_v51 = vpop.f32.mrb[115].mxu0  ;;  %v14555_v46 = vld [vmem:[#allocation21_spill] sm:$0xff] }
 0x489   : > { %v9214_v52 = vpop.eup %9213  ;;  %v5755_v0 = vmul.f32 %v5548_v6, %v5548_v6  ;;  %v6303_v22 = vsel %vm6302_vm11, %v13183_v12, %v6301_v54  ;;  %v6322_v50 = vmul.f32 %v9212_v32, %v13194_v57  ;;  %vm6323_vm13 = vcmp.eq.f32.partialorder %v13194_v57, inf  ;;  %v14554_v12 = vld [vmem:[#allocation42_spill] sm:$0xff]  ;;  %v14556_v54 = vld [vmem:[#allocation107_spill] sm:$0xff] }
 0x48a   : > { %v13277_v29 = vadd.f32 %v5754_v14, %v14553_v3  ;;  %v5757_v60 = vmul.f32 %v5550_v55, %v5550_v55  ;;  %v6306_v4 = vsel %vm6304_vm12, %v6305_v24, %v6303_v22  ;;  %v6326_v43 = vand.u32 2147483648, %v13194_v57  ;;  %v14557_v14 = vld [vmem:[#allocation105_spill] sm:$0xff] }
 0x48b   : > { %v13280_v27 = vadd.f32 %v5755_v0, %v5659_v10  ;;  %v5758_v53 = vmul.f32 %v5552_v51, %v5552_v51  ;;  %6757 = vmatprep.mubr.f32.mxu1 %v6306_v4  ;;  %v6324_v8 = vsel %vm6323_vm13, %v13194_v57, %v6322_v50  ;;  %vm6325_vm14 = vcmp.eq.f32.partialorder %v13194_v57, 0.0  ;;  %v5556_v24 = vpop.f32.mrb[116].mxu0  ;;  %v14558_v50 = vld [vmem:[#allocation23_spill] sm:$0xff] }
 0x48c   : > { %vm6360_vm15 = vcmp.eq.f32.partialorder %v14541_v11, 0.0  ;;  %v13286_v44 = vadd.f32 %v5757_v60, %v14554_v12  ;;  %6758 = vmatmul.mubr.f32.gmra.mrb[168].mxu1 %v6299_v13  ;;  %v6327_v20 = vsel %vm6325_vm14, %v6326_v43, %v6324_v8  ;;  %9221 = vrsqrt.f32 %v13277_v29 }
 0x48d   : > { %v6382_v35 = vand.u32 2147483648, %v14542_v45  ;;  %v5665_v10 = vmul.f32 %v14555_v46, %v14555_v46  ;;  %v13292_v37 = vadd.f32 %v5758_v53, %v5662_v38  ;;  %6762 = vmatprep.mubr.f32.mxu1 %v6327_v20  ;;  %vm6381_vm0 = vcmp.eq.f32.partialorder %v14542_v45, 0.0  ;;  %v9216_v32 = vpop.eup %9215 }
 0x48e   : > { %v6403_v57 = vand.u32 2147483648, %v14547_v41  ;;  %9223 = vrsqrt.f32 %v14556_v54  ;;  %v5668_v13 = vmul.f32 %v14557_v14, %v14557_v14  ;;  %v6341_v6 = vsel %vm6339_vm8, %v6340_v63, %v6338_v39  ;;  %v5558_v39 = vpop.f32.mrb[117].mxu0 }
 0x48f   : > { %v6359_v38 = vsel %vm6358_vm9, %v14541_v11, %v6357_v31  ;;  %9225 = vrsqrt.f32 %v13286_v44  ;;  %vm6400_vm1 = vcmp.eq.f32.partialorder %v14547_v41, inf  ;;  %v6343_v0 = vmul.f32 %v9216_v32, %v13233_v25  ;;  %v5560_v51 = vpop.f32.mrb[118].mxu0 }
 0x490   : > { %v6380_v55 = vsel %vm6379_vm10, %v14542_v45, %v6378_v62  ;;  %v6399_v22 = vmul.f32 %v9214_v52, %v14547_v41  ;;  %9227 = vrsqrt.f32 %v14558_v50  ;;  %v9218_v28 = vpop.eup %9217  ;;  %v5760_v63 = vmul.f32 %v5556_v24, %v5556_v24  ;;  %6763 = vmatmul.mubr.f32.gmra.mrb[170].mxu1 %v6320_v5  ;;  %v14559_v52 = vld [vmem:[#allocation43_spill] sm:$0xff]  ;;  %v5562_v5 = vpop.f32.mrb[119].mxu0 }
 0x491   : > { %vm6344_vm2 = vcmp.eq.f32.partialorder %v13233_v25, inf  ;;  %vm6346_vm3 = vcmp.eq.f32.partialorder %v13233_v25, 0.0  ;;  %v6347_v31 = vand.u32 2147483648, %v13233_v25  ;;  %v9220_v3 = vpop.eup %9219  ;;  %v5761_v60 = vmul.f32 %v5558_v39, %v5558_v39 }
 0x492   : > { %v6345_v4 = vsel %vm6344_vm2, %v13233_v25, %v6343_v0  ;;  %v6364_v62 = vmul.f32 %v9218_v28, %v13241_v17  ;;  %vm6365_vm4 = vcmp.eq.f32.partialorder %v13241_v17, inf  ;;  %v13321_v43 = vadd.f32 %v5760_v63, %v14559_v52  ;;  %v14560_v25 = vld [vmem:[#allocation44_spill] sm:$0xff] }
 0x493   : > { %v5763_v53 = vmul.f32 %v5560_v51, %v5560_v51  ;;  %v6348_v8 = vsel %vm6346_vm3, %v6347_v31, %v6345_v4  ;;  %v6368_v12 = vand.u32 2147483648, %v13241_v17  ;;  %v13324_v20 = vadd.f32 %v5761_v60, %v5665_v10  ;;  %v14561_v28 = vld [vmem:[#allocation24_spill] sm:$0xff]  ;;  %v14563_v31 = vld [vmem:[#allocation19_spill] sm:$0xff] }
 0x494   : > { %v5764_v46 = vmul.f32 %v5562_v5, %v5562_v5  ;;  %6767 = vmatprep.mubr.f32.mxu1 %v6348_v8  ;;  %v6366_v32 = vsel %vm6365_vm4, %v13241_v17, %v6364_v62  ;;  %vm6367_vm5 = vcmp.eq.f32.partialorder %v13241_v17, 0.0  ;;  %v6362_v0 = vsel %vm6360_vm15, %v6361_v1, %v6359_v38  ;;  %v14562_v63 = vld [vmem:[#allocation108_spill] sm:$0xff]  ;;  %v5566_v38 = vpop.f32.mrb[120].mxu0  ;;  %v14564_v62 = vld [vmem:[#allocation27_spill] sm:$0xff] }
 0x495   : > { %v13329_v14 = vadd.f32 %v5763_v53, %v14560_v25  ;;  %6768 = vmatmul.mubr.f32.gmra.mrb[172].mxu1 %v6341_v6  ;;  %v6369_v24 = vsel %vm6367_vm5, %v6368_v12, %v6366_v32  ;;  %vm6402_vm6 = vcmp.eq.f32.partialorder %v14547_v41, 0.0  ;;  %9229 = vrsqrt.f32 %v13321_v43  ;;  %v5568_v45 = vpop.f32.mrb[121].mxu0 }
 0x496   : > { %v13337_v10 = vadd.f32 %v5764_v46, %v5668_v13  ;;  %6772 = vmatprep.mubr.f32.mxu1 %v6369_v24  ;;  %vm6421_vm7 = vcmp.eq.f32.partialorder %v14552_v48, inf  ;;  %v6424_v17 = vand.u32 2147483648, %v14552_v48  ;;  %9231 = vrsqrt.f32 %v14561_v28  ;;  %v9222_v6 = vpop.eup %9221  ;;  %v5570_v8 = vpop.f32.mrb[122].mxu0 }
 0x497   : > { %v5671_v39 = vmul.f32 %v14562_v63, %v14562_v63  ;;  %v5674_v11 = vmul.f32 %v14563_v31, %v14563_v31  ;;  %v6383_v1 = vsel %vm6381_vm0, %v6382_v35, %v6380_v55  ;;  %vm6423_vm8 = vcmp.eq.f32.partialorder %v14552_v48, 0.0  ;;  %v5572_v25 = vpop.f32.mrb[123].mxu0 }
 0x498   : > { %9233 = vrsqrt.f32 %v13329_v14  ;;  %v9224_v13 = vpop.eup %9223  ;;  %v6385_v60 = vmul.f32 %v9222_v6, %v13277_v29  ;;  %v6401_v51 = vsel %vm6400_vm1, %v14547_v41, %v6399_v22  ;;  %v6420_v4 = vmul.f32 %v9220_v3, %v14552_v48  ;;  %v14565_v3 = vld [vmem:[#allocation45_spill] sm:$0xff] }
 0x499   : > { %9235 = vrsqrt.f32 %v14564_v62  ;;  %v9226_v52 = vpop.eup %9225  ;;  %v5766_v53 = vmul.f32 %v5566_v38, %v5566_v38  ;;  %6773 = vmatmul.mubr.f32.gmra.mrb[174].mxu1 %v6362_v0  ;;  %vm6386_vm9 = vcmp.eq.f32.partialorder %v13277_v29, inf  ;;  %vm6388_vm10 = vcmp.eq.f32.partialorder %v13277_v29, 0.0 }
 0x49a   : > { %v6389_v35 = vand.u32 2147483648, %v13277_v29  ;;  %v9228_v55 = vpop.eup %9227  ;;  %v5767_v5 = vmul.f32 %v5568_v45, %v5568_v45  ;;  %v6387_v12 = vsel %vm6386_vm9, %v13277_v29, %v6385_v60  ;;  %v6406_v22 = vmul.f32 %v9226_v52, %v13286_v44  ;;  %v14566_v29 = vld [vmem:[#allocation46_spill] sm:$0xff]  ;;  %v14568_v45 = vld [vmem:[#allocation25_spill] sm:$0xff] }
 0x49b   : > { %vm6407_vm11 = vcmp.eq.f32.partialorder %v13286_v44, inf  ;;  %v13363_v46 = vadd.f32 %v5766_v53, %v14565_v3  ;;  %v5769_v32 = vmul.f32 %v5570_v8, %v5570_v8  ;;  %v6410_v0 = vand.u32 2147483648, %v13286_v44 }
 0x49c   : > { %v6390_v24 = vsel %vm6388_vm10, %v6389_v35, %v6387_v12  ;;  %v13366_v6 = vadd.f32 %v5767_v5, %v5671_v39  ;;  %v5770_v63 = vmul.f32 %v5572_v25, %v5572_v25  ;;  %v6408_v31 = vsel %vm6407_vm11, %v13286_v44, %v6406_v22  ;;  %v14569_v5 = vld [vmem:[#allocation26_spill] sm:$0xff]  ;;  %v5576_v12 = vpop.f32.mrb[124].mxu0 }
 0x49d   : > { %6777 = vmatprep.mubr.f32.mxu1 %v6390_v24  ;;  %vm6409_vm12 = vcmp.eq.f32.partialorder %v13286_v44, 0.0  ;;  %v13371_v38 = vadd.f32 %v5769_v32, %v14566_v29  ;;  %v6422_v52 = vsel %vm6421_vm7, %v14552_v48, %v6420_v4  ;;  %9237 = vrsqrt.f32 %v13363_v46  ;;  %v14567_v44 = vld [vmem:[#allocation28_spill] sm:$0xff]  ;;  %v5578_v32 = vpop.f32.mrb[125].mxu0 }
 0x49e   : > { %6778 = vmatmul.mubr.f32.gmra.mrb[176].mxu1 %v6383_v1  ;;  %v6411_v60 = vsel %vm6409_vm12, %v6410_v0, %v6408_v31  ;;  %v13377_v53 = vadd.f32 %v5770_v63, %v5674_v11  ;;  %v6404_v39 = vsel %vm6402_vm6, %v6403_v57, %v6401_v51  ;;  %vm6442_vm13 = vcmp.eq.f32.partialorder %v14556_v54, inf  ;;  %v5580_v0 = vpop.f32.mrb[126].mxu0 }
 0x49f   : > { %6782 = vmatprep.mubr.f32.mxu1 %v6411_v60  ;;  %9239 = vrsqrt.f32 %v14567_v44  ;;  %v9230_v1 = vpop.eup %9229  ;;  %v5677_v35 = vmul.f32 %v14568_v45, %v14568_v45  ;;  %v5680_v4 = vmul.f32 %v14569_v5, %v14569_v5  ;;  %v6441_v11 = vmul.f32 %v9224_v13, %v14556_v54  ;;  %v5582_v29 = vpop.f32.mrb[127].mxu0 }
 0x4a0   : > { %9241 = vrsqrt.f32 %v13371_v38  ;;  %v9232_v8 = vpop.eup %9231  ;;  %v6427_v41 = vmul.f32 %v9230_v1, %v13321_v43  ;;  %v6425_v57 = vsel %vm6423_vm8, %v6424_v17, %v6422_v52  ;;  %v6462_v51 = vmul.f32 %v9228_v55, %v14558_v50  ;;  %v14570_v55 = vld [vmem:[#allocation47_spill] sm:$0xff] }
 0x4a1   : > { %9243 = vrsqrt.f32 %v12604_v7  ;;  %v5772_v3 = vmul.f32 %v5576_v12, %v5576_v12  ;;  %vm6428_vm14 = vcmp.eq.f32.partialorder %v13321_v43, inf  ;;  %vm6430_vm15 = vcmp.eq.f32.partialorder %v13321_v43, 0.0 }
 0x4a2   : > { %v9234_v22 = vpop.eup %9233  ;;  %6783 = vmatmul.mubr.f32.gmra.mrb[178].mxu1 %v6404_v39  ;;  %v6431_v13 = vand.u32 2147483648, %v13321_v43  ;;  %v5773_v24 = vmul.f32 %v5578_v32, %v5578_v32  ;;  %v6429_v48 = vsel %vm6428_vm14, %v13321_v43, %v6427_v41  ;;  %vm6449_vm0 = vcmp.eq.f32.partialorder %v13329_v14, inf  ;;  %v14571_v43 = vld [vmem:[#allocation48_spill] sm:$0xff] }
 0x4a3   : > { %v9236_v25 = vpop.eup %9235  ;;  %v6448_v17 = vmul.f32 %v9234_v22, %v13329_v14  ;;  %v13403_v63 = vadd.f32 %v5772_v3, %v14570_v55  ;;  %v5775_v31 = vmul.f32 %v5580_v0, %v5580_v0  ;;  %v6452_v52 = vand.u32 2147483648, %v13329_v14 }
 0x4a4   : > { %v6432_v60 = vsel %vm6430_vm15, %v6431_v13, %v6429_v48  ;;  %v13406_v39 = vadd.f32 %v5773_v24, %v5677_v35  ;;  %v5776_v1 = vmul.f32 %v5582_v29, %v5582_v29  ;;  %vm6451_vm1 = vcmp.eq.f32.partialorder %v13329_v14, 0.0  ;;  %v14572_v24 = vld [vmem:[#allocation49_spill] sm:$0xff] }
 0x4a5   : > { %6787 = vmatprep.mubr.f32.mxu1 %v6432_v60  ;;  %v6450_v45 = vsel %vm6449_vm0, %v13329_v14, %v6448_v17  ;;  %v13411_v5 = vadd.f32 %v5775_v31, %v14571_v43  ;;  %v6443_v41 = vsel %vm6442_vm13, %v14556_v54, %v6441_v11  ;;  %9245 = vrsqrt.f32 %v13403_v63 }
 0x4a6   : > { %6788 = vmatmul.mubr.f32.gmra.mrb[180].mxu1 %v6425_v57  ;;  %v6453_v12 = vsel %vm6451_vm1, %v6452_v52, %v6450_v45  ;;  %v13417_v22 = vadd.f32 %v5776_v1, %v5680_v4  ;;  %vm6444_vm2 = vcmp.eq.f32.partialorder %v14556_v54, 0.0  ;;  %v6445_v35 = vand.u32 2147483648, %v14556_v54 }
 0x4a7   : > { %6792 = vmatprep.mubr.f32.mxu1 %v6453_v12  ;;  %vm6463_vm3 = vcmp.eq.f32.partialorder %v14558_v50, inf  ;;  %v9238_v14 = vpop.eup %9237  ;;  %vm6465_vm4 = vcmp.eq.f32.partialorder %v14558_v50, 0.0  ;;  %v6483_v57 = vmul.f32 %v9232_v8, %v14561_v28  ;;  %9247 = vrsqrt.f32 %v13411_v5 }
 0x4a8   : > { %v6464_v3 = vsel %vm6463_vm3, %v14558_v50, %v6462_v51  ;;  %9249 = vrsqrt.f32 %v12620_v47  ;;  %v6446_v4 = vsel %vm6444_vm2, %v6445_v35, %v6443_v41  ;;  %v6469_v32 = vmul.f32 %v9238_v14, %v13363_v46 }
 0x4a9   : > { %v9240_v11 = vpop.eup %9239  ;;  %v6466_v13 = vand.u32 2147483648, %v14558_v50  ;;  %vm6470_vm5 = vcmp.eq.f32.partialorder %v13363_v46, inf  ;;  %v6473_v51 = vand.u32 2147483648, %v13363_v46  ;;  %vm6484_vm6 = vcmp.eq.f32.partialorder %v14561_v28, inf }
 0x4aa   : > { %v9242_v54 = vpop.eup %9241  ;;  %6793 = vmatmul.mubr.f32.gmra.mrb[182].mxu1 %v6446_v4  ;;  %9251 = vrsqrt.f32 %v14572_v24  ;;  %v6471_v0 = vsel %vm6470_vm5, %v13363_v46, %v6469_v32  ;;  %vm6472_vm7 = vcmp.eq.f32.partialorder %v13363_v46, 0.0  ;;  %vm6491_vm8 = vcmp.eq.f32.partialorder %v13371_v38, inf  ;;  %v14573_v46 = vld [vmem:[#allocation50_spill] sm:$0xff] }
 0x4ab   : > { %v9244_v8 = vpop.eup %9243  ;;  %v6467_v48 = vsel %vm6465_vm4, %v6466_v13, %v6464_v3  ;;  %v6490_v17 = vmul.f32 %v9242_v54, %v13371_v38  ;;  %v6474_v55 = vsel %vm6472_vm7, %v6473_v51, %v6471_v0  ;;  %v6494_v31 = vand.u32 2147483648, %v13371_v38 }
 0x4ac   : > { %v6485_v29 = vsel %vm6484_vm6, %v14561_v28, %v6483_v57  ;;  %6797 = vmatprep.mubr.f32.mxu1 %v6474_v55  ;;  %vm6493_vm9 = vcmp.eq.f32.partialorder %v13371_v38, 0.0  ;;  %v6504_v52 = vmul.f32 %v9236_v25, %v14564_v62  ;;  %9253 = vrsqrt.f32 %v14573_v46 }
 0x4ad   : > { %v6492_v60 = vsel %vm6491_vm8, %v13371_v38, %v6490_v17  ;;  %v6487_v1 = vand.u32 2147483648, %v14561_v28  ;;  %9255 = vrsqrt.f32 %v12727_v23  ;;  %vm6486_vm10 = vcmp.eq.f32.partialorder %v14561_v28, 0.0 }
 0x4ae   : > { %6798 = vmatmul.mubr.f32.gmra.mrb[184].mxu1 %v6467_v48  ;;  %v6495_v50 = vsel %vm6493_vm9, %v6494_v31, %v6492_v60  ;;  %vm6505_vm11 = vcmp.eq.f32.partialorder %v14564_v62, inf  ;;  %vm6507_vm12 = vcmp.eq.f32.partialorder %v14564_v62, 0.0  ;;  %v6508_v38 = vand.u32 2147483648, %v14564_v62 }
 0x4af   : > { %6802 = vmatprep.mubr.f32.mxu1 %v6495_v50  ;;  %v9246_v45 = vpop.eup %9245  ;;  %v6488_v43 = vsel %vm6486_vm10, %v6487_v1, %v6485_v29  ;;  %v6506_v12 = vsel %vm6505_vm11, %v14564_v62, %v6504_v52  ;;  %v6525_v41 = vmul.f32 %v9240_v11, %v14567_v44  ;;  %9257 = vrsqrt.f32 %v12756_v42 }
 0x4b0   : > { %v6511_v25 = vmul.f32 %v9246_v45, %v13403_v63  ;;  %vm6512_vm13 = vcmp.eq.f32.partialorder %v13403_v63, inf  ;;  %v6515_v28 = vand.u32 2147483648, %v13403_v63  ;;  %vm6526_vm14 = vcmp.eq.f32.partialorder %v14567_v44, inf }
 0x4b1   : > { %v9248_v35 = vpop.eup %9247  ;;  %9259 = vrsqrt.f32 %v12792_v26  ;;  %vm6514_vm15 = vcmp.eq.f32.partialorder %v13403_v63, 0.0  ;;  %v5888_v11 = vmul.f32 %v9244_v8, %v12604_v7  ;;  %v6509_v13 = vsel %vm6507_vm12, %v6508_v38, %v6506_v12 }
 0x4b2   : > { %6803 = vmatmul.mubr.f32.gmra.mrb[186].mxu1 %v6488_v43  ;;  %v9250_v14 = vpop.eup %9249  ;;  %v6513_v3 = vsel %vm6512_vm13, %v13403_v63, %v6511_v25  ;;  %v6532_v57 = vmul.f32 %v9248_v35, %v13411_v5  ;;  %vm6533_vm0 = vcmp.eq.f32.partialorder %v13411_v5, inf  ;;  %v6536_v54 = vand.u32 2147483648, %v13411_v5 }
 0x4b3   : > { %v6516_v32 = vsel %vm6514_vm15, %v6515_v28, %v6513_v3  ;;  %vm6535_vm1 = vcmp.eq.f32.partialorder %v13411_v5, 0.0  ;;  %v6527_v63 = vsel %vm6526_vm14, %v14567_v44, %v6525_v41  ;;  %9261 = vrsqrt.f32 %v12819_v15 }
 0x4b4   : > { %v9252_v4 = vpop.eup %9251  ;;  %6807 = vmatprep.mubr.f32.mxu1 %v6516_v32  ;;  %v6534_v51 = vsel %vm6533_vm0, %v13411_v5, %v6532_v57  ;;  %vm5889_vm2 = vcmp.eq.f32.partialorder %v12604_v7, inf  ;;  %v5909_v62 = vmul.f32 %v9250_v14, %v12620_v47  ;;  %9263 = vrsqrt.f32 %v12857_v58 }
 0x4b5   : > { %v6537_v8 = vsel %vm6535_vm1, %v6536_v54, %v6534_v51  ;;  %v6529_v48 = vand.u32 2147483648, %v14567_v44  ;;  %v5890_v17 = vsel %vm5889_vm2, %v12604_v7, %v5888_v11  ;;  %v5930_v5 = vmul.f32 %v9252_v4, %v14572_v24 }
 0x4b6   : > { %6808 = vmatmul.mubr.f32.gmra.mrb[188].mxu1 %v6509_v13  ;;  %v9254_v0 = vpop.eup %9253  ;;  %vm6528_vm3 = vcmp.eq.f32.partialorder %v14567_v44, 0.0  ;;  %v5892_v31 = vand.u32 2147483648, %v12604_v7  ;;  %9265 = vrsqrt.f32 %v12889_v16  ;;  %vm5891_vm4 = vcmp.eq.f32.partialorder %v12604_v7, 0.0 }
 0x4b7   : > { %6812 = vmatprep.mubr.f32.mxu1 %v6537_v8  ;;  %v9256_v55 = vpop.eup %9255  ;;  %v6530_v29 = vsel %vm6528_vm3, %v6529_v48, %v6527_v63  ;;  %vm5910_vm5 = vcmp.eq.f32.partialorder %v12620_v47, inf  ;;  %vm5931_vm6 = vcmp.eq.f32.partialorder %v14572_v24, inf  ;;  %v5951_v50 = vmul.f32 %v9254_v0, %v14573_v46 }
 0x4b8   : > { %v5893_v60 = vsel %vm5891_vm4, %v5892_v31, %v5890_v17  ;;  %v5911_v52 = vsel %vm5910_vm5, %v12620_v47, %v5909_v62  ;;  %9267 = vrsqrt.f32 %v12921_v49  ;;  %v5913_v1 = vand.u32 2147483648, %v12620_v47 }
 0x4b9   : > { %v9258_v44 = vpop.eup %9257  ;;  %v5932_v45 = vsel %vm5931_vm6, %v14572_v24, %v5930_v5  ;;  %v5972_v7 = vmul.f32 %v9256_v55, %v12727_v23  ;;  %vm5912_vm7 = vcmp.eq.f32.partialorder %v12620_v47, 0.0  ;;  %v5934_v38 = vand.u32 2147483648, %v14572_v24 }
 0x4ba   : > { %6813 = vmatmul.mubr.f32.gmra.mrb[190].mxu1 %v6530_v29  ;;  %9269 = vrsqrt.f32 %v12938_v40  ;;  %v5914_v25 = vsel %vm5912_vm7, %v5913_v1, %v5911_v52  ;;  %vm5933_vm8 = vcmp.eq.f32.partialorder %v14572_v24, 0.0  ;;  %vm5952_vm9 = vcmp.eq.f32.partialorder %v14573_v46, inf }
 0x4bb   : > { %7763 = vmatprep.mubr.f32.mxu1 %v5893_v60  ;;  %v9260_v43 = vpop.eup %9259  ;;  %vm5973_vm10 = vcmp.eq.f32.partialorder %v12727_v23, inf  ;;  %v5935_v12 = vsel %vm5933_vm8, %v5934_v38, %v5932_v45  ;;  %v5953_v41 = vsel %vm5952_vm9, %v14573_v46, %v5951_v50  ;;  %v5993_v35 = vmul.f32 %v9258_v44, %v12756_v42 }
 0x4bc   : > { %9271 = vrsqrt.f32 %v12976_v19  ;;  %v5955_v28 = vand.u32 2147483648, %v14573_v46  ;;  %v5974_v14 = vsel %vm5973_vm10, %v12727_v23, %v5972_v7  ;;  %v6014_v24 = vmul.f32 %v9260_v43, %v12792_v26 }
 0x4bd   : > { %v9262_v47 = vpop.eup %9261  ;;  %vm5954_vm11 = vcmp.eq.f32.partialorder %v14573_v46, 0.0  ;;  %v5976_v57 = vand.u32 2147483648, %v12727_v23  ;;  %9273 = vrsqrt.f32 %v12994_v33  ;;  %vm5975_vm12 = vcmp.eq.f32.partialorder %v12727_v23, 0.0 }
 0x4be   : > { %7764 = vmatmul.mubr.f32.vlgmr.msra.gmra.mrb[192].mxu1 %v5914_v25  ;;  %v9264_v3 = vpop.eup %9263  ;;  %v5956_v11 = vsel %vm5954_vm11, %v5955_v28, %v5953_v41  ;;  %vm5994_vm13 = vcmp.eq.f32.partialorder %v12756_v42, inf  ;;  %vm6015_vm14 = vcmp.eq.f32.partialorder %v12792_v26, inf  ;;  %v6035_v54 = vmul.f32 %v9262_v47, %v12819_v15 }
 0x4bf   : > { %7766 = vmatprep.mubr.f32.mxu1 %v5935_v12  ;;  %v5977_v32 = vsel %vm5975_vm12, %v5976_v57, %v5974_v14  ;;  %v5995_v13 = vsel %vm5994_vm13, %v12756_v42, %v5993_v35  ;;  %9275 = vrsqrt.f32 %v13034_v59  ;;  %v5997_v46 = vand.u32 2147483648, %v12756_v42 }
 0x4c0   : > { %v9266_v4 = vpop.eup %9265  ;;  %v6016_v51 = vsel %vm6015_vm14, %v12792_v26, %v6014_v24  ;;  %v6056_v23 = vmul.f32 %v9264_v3, %v12857_v58  ;;  %vm5996_vm15 = vcmp.eq.f32.partialorder %v12756_v42, 0.0  ;;  %vm6017_vm0 = vcmp.eq.f32.partialorder %v12792_v26, 0.0 }
 0x4c1   : > { %v6018_v8 = vand.u32 2147483648, %v12792_v26  ;;  %9277 = vrsqrt.f32 %v13049_v56  ;;  %v5998_v62 = vsel %vm5996_vm15, %v5997_v46, %v5995_v13  ;;  %vm6036_vm1 = vcmp.eq.f32.partialorder %v12819_v15, inf }
 0x4c2   : > { %7767 = vmatmul.mubr.f32.gmra.mrb[194].mxu1 %v5956_v11  ;;  %v9268_v63 = vpop.eup %9267  ;;  %v6077_v0 = vmul.f32 %v9266_v4, %v12889_v16  ;;  %9279 = vrsqrt.f32 %v13090_v18  ;;  %v6037_v5 = vsel %vm6036_vm1, %v12819_v15, %v6035_v54  ;;  %vm6057_vm2 = vcmp.eq.f32.partialorder %v12857_v58, inf }
 0x4c3   : > { %7769 = vmatprep.mubr.f32.mxu1 %v5977_v32  ;;  %v6019_v17 = vsel %vm6017_vm0, %v6018_v8, %v6016_v51  ;;  %vm6038_vm3 = vcmp.eq.f32.partialorder %v12819_v15, 0.0  ;;  %v6039_v42 = vand.u32 2147483648, %v12819_v15  ;;  %v6058_v26 = vsel %vm6057_vm2, %v12857_v58, %v6056_v23 }
 0x4c4   : > { %v9270_v48 = vpop.eup %9269  ;;  %v6098_v55 = vmul.f32 %v9268_v63, %v12921_v49  ;;  %vm6059_vm4 = vcmp.eq.f32.partialorder %v12857_v58, 0.0  ;;  %v6060_v29 = vand.u32 2147483648, %v12857_v58  ;;  %vm6078_vm5 = vcmp.eq.f32.partialorder %v12889_v16, inf }
 0x4c5   : > { %9281 = vrsqrt.f32 %v13106_v9  ;;  %v6040_v60 = vsel %vm6038_vm3, %v6039_v42, %v6037_v5  ;;  %v6079_v52 = vsel %vm6078_vm5, %v12889_v16, %v6077_v0  ;;  %v6119_v50 = vmul.f32 %v9270_v48, %v12938_v40 }
 0x4c6   : > { %7770 = vmatmul.mubr.f32.gmra.mrb[196].mxu1 %v5998_v62  ;;  %v9272_v31 = vpop.eup %9271  ;;  %9283 = vrsqrt.f32 %v13139_v2  ;;  %v6061_v44 = vsel %vm6059_vm4, %v6060_v29, %v6058_v26  ;;  %v6081_v1 = vand.u32 2147483648, %v12889_v16  ;;  %vm6099_vm6 = vcmp.eq.f32.partialorder %v12921_v49, inf }
 0x4c7   : > { %7772 = vmatprep.mubr.f32.mxu1 %v6019_v17  ;;  %v9274_v15 = vpop.eup %9273  ;;  %vm6080_vm7 = vcmp.eq.f32.partialorder %v12889_v16, 0.0  ;;  %v6100_v58 = vsel %vm6099_vm6, %v12921_v49, %v6098_v55  ;;  %v6140_v45 = vmul.f32 %v9272_v31, %v12976_v19  ;;  %v6102_v38 = vand.u32 2147483648, %v12921_v49 }
 0x4c8   : > { %v6082_v43 = vsel %vm6080_vm7, %v6081_v1, %v6079_v52  ;;  %vm6120_vm8 = vcmp.eq.f32.partialorder %v12938_v40, inf  ;;  %9285 = vrsqrt.f32 %v13157_v61  ;;  %vm6101_vm9 = vcmp.eq.f32.partialorder %v12921_v49, 0.0 }
 0x4c9   : > { %v9276_v7 = vpop.eup %9275  ;;  %v6121_v25 = vsel %vm6120_vm8, %v12938_v40, %v6119_v50  ;;  %v6161_v12 = vmul.f32 %v9274_v15, %v12994_v33  ;;  %9287 = vrsqrt.f32 %v13187_v36  ;;  %v6103_v41 = vsel %vm6101_vm9, %v6102_v38, %v6100_v58 }
 0x4ca   : > { %7773 = vmatmul.mubr.f32.gmra.mrb[198].mxu1 %v6040_v60  ;;  %v6123_v35 = vand.u32 2147483648, %v12938_v40  ;;  %vm6141_vm10 = vcmp.eq.f32.partialorder %v12976_v19, inf  ;;  %vm6122_vm11 = vcmp.eq.f32.partialorder %v12938_v40, 0.0  ;;  %v6182_v49 = vmul.f32 %v9276_v7, %v13034_v59 }
 0x4cb   : > { %7775 = vmatprep.mubr.f32.mxu1 %v6061_v44  ;;  %v9278_v16 = vpop.eup %9277  ;;  %v6142_v28 = vsel %vm6141_vm10, %v12976_v19, %v6140_v45  ;;  %vm6143_vm12 = vcmp.eq.f32.partialorder %v12976_v19, 0.0  ;;  %v6144_v24 = vand.u32 2147483648, %v12976_v19  ;;  %vm6162_vm13 = vcmp.eq.f32.partialorder %v12994_v33, inf }
 0x4cc   : > { %v9280_v47 = vpop.eup %9279  ;;  %v6124_v14 = vsel %vm6122_vm11, %v6123_v35, %v6121_v25  ;;  %v6163_v3 = vsel %vm6162_vm13, %v12994_v33, %v6161_v12  ;;  %v6165_v57 = vand.u32 2147483648, %v12994_v33  ;;  %v6203_v11 = vmul.f32 %v9278_v16, %v13049_v56 }
 0x4cd   : > { %9289 = vrsqrt.f32 %v13202_v21  ;;  %v6145_v4 = vsel %vm6143_vm12, %v6144_v24, %v6142_v28  ;;  %vm6183_vm14 = vcmp.eq.f32.partialorder %v13034_v59, inf  ;;  %v6224_v32 = vmul.f32 %v9280_v47, %v13090_v18 }
 0x4ce   : > { %7776 = vmatmul.mubr.f32.gmra.mrb[200].mxu1 %v6082_v43  ;;  %9291 = vrsqrt.f32 %v13236_v34  ;;  %vm6164_vm15 = vcmp.eq.f32.partialorder %v12994_v33, 0.0  ;;  %v6184_v13 = vsel %vm6183_vm14, %v13034_v59, %v6182_v49  ;;  %vm6185_vm0 = vcmp.eq.f32.partialorder %v13034_v59, 0.0 }
 0x4cf   : > { %7778 = vmatprep.mubr.f32.mxu1 %v6103_v41  ;;  %v9282_v40 = vpop.eup %9281  ;;  %v6166_v54 = vsel %vm6164_vm15, %v6165_v57, %v6163_v3  ;;  %v6186_v46 = vand.u32 2147483648, %v13034_v59  ;;  %vm6204_vm1 = vcmp.eq.f32.partialorder %v13049_v56, inf  ;;  %v6207_v51 = vand.u32 2147483648, %v13049_v56 }
 0x4d0   : > { %v9284_v19 = vpop.eup %9283  ;;  %v6205_v23 = vsel %vm6204_vm1, %v13049_v56, %v6203_v11  ;;  %vm6225_vm2 = vcmp.eq.f32.partialorder %v13090_v18, inf  ;;  %v6245_v63 = vmul.f32 %v9282_v40, %v13106_v9  ;;  %9293 = vrsqrt.f32 %v13249_v30 }
 0x4d1   : > { %v6187_v8 = vsel %vm6185_vm0, %v6186_v46, %v6184_v13  ;;  %v6226_v62 = vsel %vm6225_vm2, %v13090_v18, %v6224_v32  ;;  %v6266_v0 = vmul.f32 %v9284_v19, %v13139_v2  ;;  %9295 = vrsqrt.f32 %v13280_v27 }
 0x4d2   : > { %7779 = vmatmul.mubr.f32.gmra.mrb[202].mxu1 %v6124_v14  ;;  %v9286_v33 = vpop.eup %9285  ;;  %vm6206_vm3 = vcmp.eq.f32.partialorder %v13049_v56, 0.0  ;;  %v6228_v48 = vand.u32 2147483648, %v13090_v18  ;;  %vm6227_vm4 = vcmp.eq.f32.partialorder %v13090_v18, 0.0  ;;  %vm6246_vm5 = vcmp.eq.f32.partialorder %v13106_v9, inf }
 0x4d3   : > { %7781 = vmatprep.mubr.f32.mxu1 %v6145_v4  ;;  %v9288_v59 = vpop.eup %9287  ;;  %v6208_v17 = vsel %vm6206_vm3, %v6207_v51, %v6205_v23  ;;  %v6249_v5 = vand.u32 2147483648, %v13106_v9  ;;  %v6247_v26 = vsel %vm6246_vm5, %v13106_v9, %v6245_v63  ;;  %vm6267_vm6 = vcmp.eq.f32.partialorder %v13139_v2, inf }
 0x4d4   : > { %v6229_v42 = vsel %vm6227_vm4, %v6228_v48, %v6226_v62  ;;  %9297 = vrsqrt.f32 %v13292_v37  ;;  %v6268_v55 = vsel %vm6267_vm6, %v13139_v2, %v6266_v0  ;;  %v6287_v56 = vmul.f32 %v9286_v33, %v13157_v61 }
 0x4d5   : > { %v6308_v31 = vmul.f32 %v9288_v59, %v13187_v36  ;;  %9299 = vrsqrt.f32 %v13324_v20  ;;  %vm6248_vm7 = vcmp.eq.f32.partialorder %v13106_v9, 0.0  ;;  %v6270_v29 = vand.u32 2147483648, %v13139_v2 }
 0x4d6   : > { %7782 = vmatmul.mubr.f32.gmra.mrb[204].mxu1 %v6166_v54  ;;  %v6250_v52 = vsel %vm6248_vm7, %v6249_v5, %v6247_v26  ;;  %vm6269_vm8 = vcmp.eq.f32.partialorder %v13139_v2, 0.0  ;;  %vm6288_vm9 = vcmp.eq.f32.partialorder %v13157_v61, inf  ;;  %vm6309_vm10 = vcmp.eq.f32.partialorder %v13187_v36, inf }
 0x4d7   : > { %7784 = vmatprep.mubr.f32.mxu1 %v6187_v8  ;;  %v9290_v18 = vpop.eup %9289  ;;  %v6271_v50 = vsel %vm6269_vm8, %v6270_v29, %v6268_v55  ;;  %9301 = vrsqrt.f32 %v13337_v10  ;;  %v6289_v15 = vsel %vm6288_vm9, %v13157_v61, %v6287_v56  ;;  %v6310_v44 = vsel %vm6309_vm10, %v13187_v36, %v6308_v31 }
 0x4d8   : > { %v9292_v60 = vpop.eup %9291  ;;  %v6329_v9 = vmul.f32 %v9290_v18, %v13202_v21  ;;  %9303 = vrsqrt.f32 %v13366_v6  ;;  %v6291_v2 = vand.u32 2147483648, %v13157_v61  ;;  %v6312_v58 = vand.u32 2147483648, %v13187_v36 }
 0x4d9   : > { %v6350_v45 = vmul.f32 %v9292_v60, %v13236_v34  ;;  %vm6290_vm11 = vcmp.eq.f32.partialorder %v13157_v61, 0.0  ;;  %vm6311_vm12 = vcmp.eq.f32.partialorder %v13187_v36, 0.0  ;;  %vm6330_vm13 = vcmp.eq.f32.partialorder %v13202_v21, inf }
 0x4da   : > { %7785 = vmatmul.mubr.f32.gmra.mrb[206].mxu1 %v6208_v17  ;;  %v9294_v1 = vpop.eup %9293  ;;  %v6292_v43 = vsel %vm6290_vm11, %v6291_v2, %v6289_v15  ;;  %v6313_v38 = vsel %vm6311_vm12, %v6312_v58, %v6310_v44  ;;  %9305 = vrsqrt.f32 %v13377_v53  ;;  %v6331_v25 = vsel %vm6330_vm13, %v13202_v21, %v6329_v9 }
 0x4db   : > { %7787 = vmatprep.mubr.f32.mxu1 %v6229_v42  ;;  %v9296_v7 = vpop.eup %9295  ;;  %vm6351_vm14 = vcmp.eq.f32.partialorder %v13236_v34, inf  ;;  %v6371_v12 = vmul.f32 %v9294_v1, %v13249_v30  ;;  %9307 = vrsqrt.f32 %v13406_v39  ;;  %v6333_v61 = vand.u32 2147483648, %v13202_v21 }
 0x4dc   : > { %v6352_v36 = vsel %vm6351_vm14, %v13236_v34, %v6350_v45  ;;  %v6392_v41 = vmul.f32 %v9296_v7, %v13280_v27  ;;  %vm6332_vm15 = vcmp.eq.f32.partialorder %v13202_v21, 0.0  ;;  %v6354_v47 = vand.u32 2147483648, %v13236_v34 }
 0x4dd   : > { %v6334_v28 = vsel %vm6332_vm15, %v6333_v61, %v6331_v25  ;;  %vm6353_vm0 = vcmp.eq.f32.partialorder %v13236_v34, 0.0  ;;  %vm6372_vm1 = vcmp.eq.f32.partialorder %v13249_v30, inf  ;;  %9309 = vrsqrt.f32 %v13417_v22 }
 0x4de   : > { %7788 = vmatmul.mubr.f32.gmra.mrb[208].mxu1 %v6250_v52  ;;  %v9298_v16 = vpop.eup %9297  ;;  %v6355_v49 = vsel %vm6353_vm0, %v6354_v47, %v6352_v36  ;;  %v6373_v14 = vsel %vm6372_vm1, %v13249_v30, %v6371_v12  ;;  %vm6393_vm2 = vcmp.eq.f32.partialorder %v13280_v27, inf  ;;  %v6375_v21 = vand.u32 2147483648, %v13249_v30 }
 0x4df   : > { %7790 = vmatprep.mubr.f32.mxu1 %v6271_v50  ;;  %v9300_v35 = vpop.eup %9299  ;;  %v6413_v24 = vmul.f32 %v9298_v16, %v13292_v37  ;;  %v6394_v57 = vsel %vm6393_vm2, %v13280_v27, %v6392_v41  ;;  %vm6374_vm3 = vcmp.eq.f32.partialorder %v13249_v30, 0.0  ;;  %v6396_v40 = vand.u32 2147483648, %v13280_v27 }
 0x4e0   : > { %v6434_v34 = vmul.f32 %v9300_v35, %v13324_v20  ;;  %v6376_v4 = vsel %vm6374_vm3, %v6375_v21, %v6373_v14  ;;  %vm6395_vm4 = vcmp.eq.f32.partialorder %v13280_v27, 0.0  ;;  %vm6414_vm5 = vcmp.eq.f32.partialorder %v13292_v37, inf }
 0x4e1   : > { %v9302_v3 = vpop.eup %9301  ;;  %v6397_v32 = vsel %vm6395_vm4, %v6396_v40, %v6394_v57  ;;  %v6415_v19 = vsel %vm6414_vm5, %v13292_v37, %v6413_v24  ;;  %vm6435_vm6 = vcmp.eq.f32.partialorder %v13324_v20, inf  ;;  %v6417_v46 = vand.u32 2147483648, %v13292_v37 }
 0x4e2   : > { %7791 = vmatmul.mubr.f32.gmra.mrb[210].mxu1 %v6292_v43  ;;  %v9304_v11 = vpop.eup %9303  ;;  %v6455_v13 = vmul.f32 %v9302_v3, %v13337_v10  ;;  %v6436_v30 = vsel %vm6435_vm6, %v13324_v20, %v6434_v34  ;;  %vm6416_vm7 = vcmp.eq.f32.partialorder %v13292_v37, 0.0  ;;  %v6438_v27 = vand.u32 2147483648, %v13324_v20 }
 0x4e3   : > { %7793 = vmatprep.mubr.f32.mxu1 %v6313_v38  ;;  %v6476_v51 = vmul.f32 %v9304_v11, %v13366_v6  ;;  %v6418_v63 = vsel %vm6416_vm7, %v6417_v46, %v6415_v19  ;;  %vm6437_vm8 = vcmp.eq.f32.partialorder %v13324_v20, 0.0  ;;  %vm6456_vm9 = vcmp.eq.f32.partialorder %v13337_v10, inf }
 0x4e4   : > { %v9306_v54 = vpop.eup %9305  ;;  %v6439_v33 = vsel %vm6437_vm8, %v6438_v27, %v6436_v30  ;;  %v6457_v8 = vsel %vm6456_vm9, %v13337_v10, %v6455_v13  ;;  %vm6477_vm10 = vcmp.eq.f32.partialorder %v13366_v6, inf  ;;  %v6459_v59 = vand.u32 2147483648, %v13337_v10 }
 0x4e5   : > { %v9308_v23 = vpop.eup %9307  ;;  %v6497_v62 = vmul.f32 %v9306_v54, %v13377_v53  ;;  %v6478_v37 = vsel %vm6477_vm10, %v13366_v6, %v6476_v51  ;;  %vm6458_vm11 = vcmp.eq.f32.partialorder %v13337_v10, 0.0  ;;  %v6480_v20 = vand.u32 2147483648, %v13366_v6 }
 0x4e6   : > { %7794 = vmatmul.mubr.f32.gmra.mrb[212].mxu1 %v6334_v28  ;;  %v6518_v48 = vmul.f32 %v9308_v23, %v13406_v39  ;;  %v6460_v17 = vsel %vm6458_vm11, %v6459_v59, %v6457_v8  ;;  %vm6479_vm12 = vcmp.eq.f32.partialorder %v13366_v6, 0.0  ;;  %vm6498_vm13 = vcmp.eq.f32.partialorder %v13377_v53, inf }
 0x4e7   : > { %7796 = vmatprep.mubr.f32.mxu1 %v6355_v49  ;;  %v9310_v0 = vpop.eup %9309  ;;  %v6481_v5 = vsel %vm6479_vm12, %v6480_v20, %v6478_v37  ;;  %v6499_v42 = vsel %vm6498_vm13, %v13377_v53, %v6497_v62  ;;  %vm6519_vm14 = vcmp.eq.f32.partialorder %v13406_v39, inf  ;;  %v6501_v55 = vand.u32 2147483648, %v13377_v53 }
 0x4e8   : > { %v6539_v26 = vmul.f32 %v9310_v0, %v13417_v22  ;;  %v6520_v10 = vsel %vm6519_vm14, %v13406_v39, %v6518_v48  ;;  %vm6500_vm15 = vcmp.eq.f32.partialorder %v13377_v53, 0.0  ;;  %v6522_v56 = vand.u32 2147483648, %v13406_v39 }
 0x4e9   : > { %v6502_v6 = vsel %vm6500_vm15, %v6501_v55, %v6499_v42  ;;  %vm6521_vm0 = vcmp.eq.f32.partialorder %v13406_v39, 0.0  ;;  %vm6540_vm1 = vcmp.eq.f32.partialorder %v13417_v22, inf  ;;  %v6543_v29 = vand.u32 2147483648, %v13417_v22 }
 0x4ea   : > { %7797 = vmatmul.mubr.f32.gmra.mrb[214].mxu1 %v6376_v4  ;;  %v6523_v31 = vsel %vm6521_vm0, %v6522_v56, %v6520_v10  ;;  %v6541_v18 = vsel %vm6540_vm1, %v13417_v22, %v6539_v26  ;;  %vm6542_vm2 = vcmp.eq.f32.partialorder %v13417_v22, 0.0 }
 0x4eb   : > { %7799 = vmatprep.mubr.f32.mxu1 %v6397_v32  ;;  %v6544_v60 = vsel %vm6542_vm2, %v6543_v29, %v6541_v18 }
 0x4ee   : > { %7800 = vmatmul.mubr.f32.gmra.mrb[216].mxu1 %v6418_v63 }
 0x4ef   : > { %7802 = vmatprep.mubr.f32.mxu1 %v6439_v33 }
 0x4f2   : > { %7803 = vmatmul.mubr.f32.gmra.mrb[218].mxu1 %v6460_v17 }
 0x4f3   : > { %7805 = vmatprep.mubr.f32.mxu1 %v6481_v5 }
 0x4f6   : > { %7806 = vmatmul.mubr.f32.gmra.mrb[220].mxu1 %v6502_v6 }
 0x4f7   : > { %7808 = vmatprep.mubr.f32.mxu1 %v6523_v31 }
 0x4fa   : > { %7809 = vmatmul.mubr.f32.gmra.mrb[222].mxu1 %v6544_v60 }
 0x50b   : > { %v13656_v52 = vpop.f32.mrb[128].mxu1 }
 0x50c   : > { %v6661_v53 = vpop.f32.mrb[129].mxu1 }
 0x50f   : > { %v13658_v50 = vpop.f32.mrb[130].mxu1 }
 0x510   : > { %v6666_v15 = vpop.f32.mrb[131].mxu1 }
 0x513   : > { %v13660_v39 = vpop.f32.mrb[132].mxu1 }
 0x514   : > { %v6671_v44 = vpop.f32.mrb[133].mxu1 }
 0x517   : > { %v13662_v9 = vpop.f32.mrb[134].mxu1 }
 0x518   : > { %v6676_v1 = vpop.f32.mrb[135].mxu1 }
 0x51b   : > { %v13664_v2 = vpop.f32.mrb[136].mxu1 }
 0x51c   : > { %v6681_v58 = vpop.f32.mrb[137].mxu1 }
 0x51f   : > { %v13666_v45 = vpop.f32.mrb[138].mxu1 }
 0x520   : > { %v6686_v22 = vpop.f32.mrb[139].mxu1 }
 0x523   : > { %v13668_v7 = vpop.f32.mrb[140].mxu1 }
 0x524   : > { %v6691_v43 = vpop.f32.mrb[141].mxu1 }
 0x527   : > { %v13670_v38 = vpop.f32.mrb[142].mxu1 }
 0x528   : > { %v6696_v25 = vpop.f32.mrb[143].mxu1 }
 0x52c   : > { %v13672_v12 = vpop.f32.mrb[144].mxu1 }
 0x52d   : > { %v6701_v16 = vpop.f32.mrb[145].mxu1 }
 0x530   : > { %v13674_v61 = vpop.f32.mrb[146].mxu1 }
 0x531   : > { %v6706_v36 = vpop.f32.mrb[147].mxu1 }
 0x535   : > { %v13676_v41 = vpop.f32.mrb[148].mxu1 }
 0x536   : > { %v6711_v35 = vpop.f32.mrb[149].mxu1 }
 0x539   : > { %v13678_v47 = vpop.f32.mrb[150].mxu1 }
 0x53a   : > { %v6716_v28 = vpop.f32.mrb[151].mxu1 }
 0x53d   : > { %v13680_v49 = vpop.f32.mrb[152].mxu1 }
 0x53e   : > { %v6721_v14 = vpop.f32.mrb[153].mxu1 }
 0x541   : > { %v13682_v24 = vpop.f32.mrb[154].mxu1 }
 0x542   : > { %v6726_v3 = vpop.f32.mrb[155].mxu1 }
 0x546   : > { %v13684_v21 = vpop.f32.mrb[156].mxu1 }
 0x547   : > { %v6731_v57 = vpop.f32.mrb[157].mxu1 }
 0x54a   : > { %v13686_v34 = vpop.f32.mrb[158].mxu1 }
 0x54b   : > { %v6736_v11 = vpop.f32.mrb[159].mxu1 }
 0x54e   : > { %v13688_v40 = vpop.f32.mrb[160].mxu1 }
 0x54f   : > { %v6741_v4 = vpop.f32.mrb[161].mxu1 }
 0x552   : > { %v13690_v32 = vpop.f32.mrb[162].mxu1 }
 0x553   : > { %v6746_v19 = vpop.f32.mrb[163].mxu1 }
 0x557   : > { %v13692_v13 = vpop.f32.mrb[164].mxu1 }
 0x558   : > { %v6751_v54 = vpop.f32.mrb[165].mxu1 }
 0x55b   : > { %v13694_v46 = vpop.f32.mrb[166].mxu1 }
 0x55c   : > { %v6756_v30 = vpop.f32.mrb[167].mxu1 }
 0x55f   : > { %v13696_v51 = vpop.f32.mrb[168].mxu1 }
 0x560   : > { %v6761_v23 = vpop.f32.mrb[169].mxu1 }
 0x563   : > { %v13698_v27 = vpop.f32.mrb[170].mxu1 }
 0x564   : > { %v6766_v63 = vpop.f32.mrb[171].mxu1 }
 0x568   : > { %v13700_v33 = vpop.f32.mrb[172].mxu1 }
 0x569   : > { %v6771_v8 = vpop.f32.mrb[173].mxu1 }
 0x56c   : > { %v13702_v62 = vpop.f32.mrb[174].mxu1 }
 0x56d   : > { %v6776_v0 = vpop.f32.mrb[175].mxu1 }
 0x571   : > { %v13704_v59 = vpop.f32.mrb[176].mxu1 }
 0x572   : > { %v6781_v37 = vpop.f32.mrb[177].mxu1 }
 0x575   : > { %v13706_v48 = vpop.f32.mrb[178].mxu1 }
 0x576   : > { %v6786_v20 = vpop.f32.mrb[179].mxu1 }
 0x579   : > { %v13708_v17 = vpop.f32.mrb[180].mxu1 }
 0x57a   : > { %v6791_v5 = vpop.f32.mrb[181].mxu1 }
 0x57d   : > { %v13710_v42 = vpop.f32.mrb[182].mxu1 }
 0x57e   : > { %v6796_v26 = vpop.f32.mrb[183].mxu1 }
 0x581   : > { %v13712_v55 = vpop.f32.mrb[184].mxu1 }
 0x582   : > { %v6801_v10 = vpop.f32.mrb[185].mxu1 }
 0x585   : > { %v13714_v56 = vpop.f32.mrb[186].mxu1 }
 0x586   : > { %v6806_v6 = vpop.f32.mrb[187].mxu1 }
 0x589   : > { %v13716_v31 = vpop.f32.mrb[188].mxu1 }
 0x58a   : > { %v6811_v18 = vpop.f32.mrb[189].mxu1 }
 0x58d   : > { %v13718_v29 = vpop.f32.mrb[190].mxu1 }
 0x58e   : > { %v6816_v60 = vpop.f32.mrb[191].mxu1 }
 0x591   : > { %v7765_v53 = vpop.f32.mrb[192].mxu1 }
 0x592   : > { %v6890_v15 = vadd.f32 %v7765_v53, %v13658_v50  ;;  %v6884_v44 = vpop.f32.mrb[193].mxu1 }
 0x593   : > { %v6885_v1 = vadd.f32 %v6884_v44, %v13656_v52 }
 0x594   : > { %v7044_v58 = vmax.f32 %v6890_v15, 1e-05 }
 0x595   : > { %v7043_v22 = vmax.f32 %v6885_v1, 1e-05  ;;  %v7768_v43 = vpop.f32.mrb[194].mxu1 }
 0x596   : > { %9311 = vlog2.f32 %v7044_v58  ;;  %v6900_v25 = vadd.f32 %v7768_v43, %v13662_v9  ;;  %v6894_v16 = vpop.f32.mrb[195].mxu1 }
 0x597   : > { %9313 = vlog2.f32 %v7043_v22  ;;  %v6895_v36 = vadd.f32 %v6894_v16, %v13660_v39 }
 0x598   : > { %v7046_v35 = vmax.f32 %v6900_v25, 1e-05 }
 0x599   : > { %v7045_v28 = vmax.f32 %v6895_v36, 1e-05  ;;  %v7771_v14 = vpop.f32.mrb[196].mxu1 }
 0x59a   : > { %9315 = vlog2.f32 %v7046_v35  ;;  %v6910_v50 = vadd.f32 %v7771_v14, %v13666_v45  ;;  %v6904_v3 = vpop.f32.mrb[197].mxu1 }
 0x59b   : > { %9317 = vlog2.f32 %v7045_v28  ;;  %v6905_v52 = vadd.f32 %v6904_v3, %v13664_v2 }
 0x59c   : > { %v7048_v57 = vmax.f32 %v6910_v50, 1e-05 }
 0x59d   : > { %v7047_v11 = vmax.f32 %v6905_v52, 1e-05  ;;  %v7774_v4 = vpop.f32.mrb[198].mxu1 }
 0x59e   : > { %9319 = vlog2.f32 %v7048_v57  ;;  %v6920_v9 = vadd.f32 %v7774_v4, %v13670_v38  ;;  %v6914_v19 = vpop.f32.mrb[199].mxu1 }
 0x59f   : > { %9321 = vlog2.f32 %v7047_v11  ;;  %v6915_v39 = vadd.f32 %v6914_v19, %v13668_v7 }
 0x5a0   : > { %v9312_v54 = vpop.eup %9311  ;;  %v7050_v2 = vmax.f32 %v6920_v9, 1e-05 }
 0x5a1   : > { %v9314_v45 = vpop.eup %9313  ;;  %v7078_v30 = vmul.f32 0.6931472, %v9312_v54  ;;  %v7049_v23 = vmax.f32 %v6915_v39, 1e-05  ;;  %v7777_v63 = vpop.f32.mrb[200].mxu1 }
 0x5a2   : > { %v7076_v8 = vmul.f32 0.6931472, %v9314_v45  ;;  %9323 = vlog2.f32 %v7050_v2  ;;  %v6930_v38 = vadd.f32 %v7777_v63, %v13674_v61  ;;  %v6924_v0 = vpop.f32.mrb[201].mxu1 }
 0x5a3   : > { %7140 = vst [vmem:[%s13732_s10 + $0x8] sm:$0xff] %v7078_v30  ;;  %9325 = vlog2.f32 %v7049_v23  ;;  %v6925_v7 = vadd.f32 %v6924_v0, %v13672_v12 }
 0x5a4   : > { %v9316_v37 = vpop.eup %9315  ;;  %7139 = vst [vmem:[%s13732_s10] sm:$0xff] %v7076_v8  ;;  %v7052_v20 = vmax.f32 %v6930_v38, 1e-05 }
 0x5a5   : > { %v9318_v5 = vpop.eup %9317  ;;  %v7082_v26 = vmul.f32 0.6931472, %v9316_v37  ;;  %v7051_v10 = vmax.f32 %v6925_v7, 1e-05  ;;  %v7780_v6 = vpop.f32.mrb[202].mxu1 }
 0x5a6   : > { %v7080_v18 = vmul.f32 0.6931472, %v9318_v5  ;;  %9327 = vlog2.f32 %v7052_v20  ;;  %v6940_v60 = vadd.f32 %v7780_v6, %v13678_v47  ;;  %v6934_v61 = vpop.f32.mrb[203].mxu1 }
 0x5a7   : > { %7142 = vst [vmem:[%s13732_s10 + $0x18] sm:$0xff] %v7082_v26  ;;  %9329 = vlog2.f32 %v7051_v10  ;;  %v6935_v53 = vadd.f32 %v6934_v61, %v13676_v41 }
 0x5a8   : > { %v9320_v12 = vpop.eup %9319  ;;  %7141 = vst [vmem:[%s13732_s10 + $0x10] sm:$0xff] %v7080_v18  ;;  %v7054_v15 = vmax.f32 %v6940_v60, 1e-05 }
 0x5a9   : > { %v9322_v44 = vpop.eup %9321  ;;  %v7086_v1 = vmul.f32 0.6931472, %v9320_v12  ;;  %v7053_v58 = vmax.f32 %v6935_v53, 1e-05  ;;  %v7783_v22 = vpop.f32.mrb[204].mxu1 }
 0x5aa   : > { %v7084_v43 = vmul.f32 0.6931472, %v9322_v44  ;;  %9331 = vlog2.f32 %v7054_v15  ;;  %v6950_v25 = vadd.f32 %v7783_v22, %v13682_v24  ;;  %v6944_v47 = vpop.f32.mrb[205].mxu1 }
 0x5ab   : > { %7144 = vst [vmem:[%s13732_s10 + $0x28] sm:$0xff] %v7086_v1  ;;  %9333 = vlog2.f32 %v7053_v58  ;;  %v6945_v16 = vadd.f32 %v6944_v47, %v13680_v49 }
 0x5ac   : > { %v9324_v41 = vpop.eup %9323  ;;  %7143 = vst [vmem:[%s13732_s10 + $0x20] sm:$0xff] %v7084_v43  ;;  %v7056_v36 = vmax.f32 %v6950_v25, 1e-05 }
 0x5ad   : > { %v9326_v35 = vpop.eup %9325  ;;  %v7090_v28 = vmul.f32 0.6931472, %v9324_v41  ;;  %v7055_v14 = vmax.f32 %v6945_v16, 1e-05  ;;  %v7786_v50 = vpop.f32.mrb[206].mxu1 }
 0x5ae   : > { %v7088_v3 = vmul.f32 0.6931472, %v9326_v35  ;;  %9335 = vlog2.f32 %v7056_v36  ;;  %v6960_v52 = vadd.f32 %v7786_v50, %v13686_v34  ;;  %v6954_v24 = vpop.f32.mrb[207].mxu1 }
 0x5af   : > { %7146 = vst [vmem:[%s13732_s10 + $0x38] sm:$0xff] %v7090_v28  ;;  %9337 = vlog2.f32 %v7055_v14  ;;  %v6955_v57 = vadd.f32 %v6954_v24, %v13684_v21 }
 0x5b0   : > { %v9328_v49 = vpop.eup %9327  ;;  %7145 = vst [vmem:[%s13732_s10 + $0x30] sm:$0xff] %v7088_v3  ;;  %v7058_v11 = vmax.f32 %v6960_v52, 1e-05 }
 0x5b1   : > { %v9330_v4 = vpop.eup %9329  ;;  %v7094_v9 = vmul.f32 0.6931472, %v9328_v49  ;;  %v7057_v19 = vmax.f32 %v6955_v57, 1e-05  ;;  %v7789_v39 = vpop.f32.mrb[208].mxu1 }
 0x5b2   : > { %v7092_v54 = vmul.f32 0.6931472, %v9330_v4  ;;  %9339 = vlog2.f32 %v7058_v11  ;;  %v6970_v2 = vadd.f32 %v7789_v39, %v13690_v32  ;;  %v6964_v34 = vpop.f32.mrb[209].mxu1 }
 0x5b3   : > { %7148 = vst [vmem:[%s13732_s10 + $0x48] sm:$0xff] %v7094_v9  ;;  %9341 = vlog2.f32 %v7057_v19  ;;  %v6965_v45 = vadd.f32 %v6964_v34, %v13688_v40 }
 0x5b4   : > { %v9332_v21 = vpop.eup %9331  ;;  %7147 = vst [vmem:[%s13732_s10 + $0x40] sm:$0xff] %v7092_v54  ;;  %v7060_v30 = vmax.f32 %v6970_v2, 1e-05 }
 0x5b5   : > { %v9334_v23 = vpop.eup %9333  ;;  %v7098_v63 = vmul.f32 0.6931472, %v9332_v21  ;;  %v7059_v8 = vmax.f32 %v6965_v45, 1e-05  ;;  %v7792_v38 = vpop.f32.mrb[210].mxu1 }
 0x5b6   : > { %v7096_v0 = vmul.f32 0.6931472, %v9334_v23  ;;  %9343 = vlog2.f32 %v7060_v30  ;;  %v6980_v7 = vadd.f32 %v7792_v38, %v13694_v46  ;;  %v6974_v32 = vpop.f32.mrb[211].mxu1 }
 0x5b7   : > { %7150 = vst [vmem:[%s13732_s10 + $0x58] sm:$0xff] %v7098_v63  ;;  %9345 = vlog2.f32 %v7059_v8  ;;  %v6975_v37 = vadd.f32 %v6974_v32, %v13692_v13 }
 0x5b8   : > { %v9336_v40 = vpop.eup %9335  ;;  %7149 = vst [vmem:[%s13732_s10 + $0x50] sm:$0xff] %v7096_v0  ;;  %v7062_v20 = vmax.f32 %v6980_v7, 1e-05 }
 0x5b9   : > { %v9338_v5 = vpop.eup %9337  ;;  %v7102_v26 = vmul.f32 0.6931472, %v9336_v40  ;;  %v7061_v10 = vmax.f32 %v6975_v37, 1e-05  ;;  %v7795_v6 = vpop.f32.mrb[212].mxu1 }
 0x5ba   : > { %v7100_v18 = vmul.f32 0.6931472, %v9338_v5  ;;  %9347 = vlog2.f32 %v7062_v20  ;;  %v6990_v60 = vadd.f32 %v7795_v6, %v13698_v27  ;;  %v6984_v46 = vpop.f32.mrb[213].mxu1 }
 0x5bb   : > { %7152 = vst [vmem:[%s13732_s10 + $0x68] sm:$0xff] %v7102_v26  ;;  %9349 = vlog2.f32 %v7061_v10  ;;  %v6985_v61 = vadd.f32 %v6984_v46, %v13696_v51 }
 0x5bc   : > { %v9340_v13 = vpop.eup %9339  ;;  %7151 = vst [vmem:[%s13732_s10 + $0x60] sm:$0xff] %v7100_v18  ;;  %v7064_v53 = vmax.f32 %v6990_v60, 1e-05 }
 0x5bd   : > { %v9342_v12 = vpop.eup %9341  ;;  %v7106_v15 = vmul.f32 0.6931472, %v9340_v13  ;;  %v7063_v44 = vmax.f32 %v6985_v61, 1e-05  ;;  %v7798_v1 = vpop.f32.mrb[214].mxu1 }
 0x5be   : > { %v7104_v58 = vmul.f32 0.6931472, %v9342_v12  ;;  %9351 = vlog2.f32 %v7064_v53  ;;  %v7000_v22 = vadd.f32 %v7798_v1, %v13702_v62  ;;  %v6994_v27 = vpop.f32.mrb[215].mxu1 }
 0x5bf   : > { %7154 = vst [vmem:[%s13732_s10 + $0x78] sm:$0xff] %v7106_v15  ;;  %9353 = vlog2.f32 %v7063_v44  ;;  %v6995_v43 = vadd.f32 %v6994_v27, %v13700_v33 }
 0x5c0   : > { %v9344_v51 = vpop.eup %9343  ;;  %7153 = vst [vmem:[%s13732_s10 + $0x70] sm:$0xff] %v7104_v58  ;;  %v7066_v25 = vmax.f32 %v7000_v22, 1e-05 }
 0x5c1   : > { %v9346_v47 = vpop.eup %9345  ;;  %v7110_v16 = vmul.f32 0.6931472, %v9344_v51  ;;  %v7065_v41 = vmax.f32 %v6995_v43, 1e-05  ;;  %v7801_v36 = vpop.f32.mrb[216].mxu1 }
 0x5c2   : > { %v7108_v35 = vmul.f32 0.6931472, %v9346_v47  ;;  %9355 = vlog2.f32 %v7066_v25  ;;  %v7010_v28 = vadd.f32 %v7801_v36, %v13706_v48  ;;  %v7004_v62 = vpop.f32.mrb[217].mxu1 }
 0x5c3   : > { %7156 = vst [vmem:[%s13732_s10 + $0x88] sm:$0xff] %v7110_v16  ;;  %9357 = vlog2.f32 %v7065_v41  ;;  %v7005_v14 = vadd.f32 %v7004_v62, %v13704_v59 }
 0x5c4   : > { %v9348_v33 = vpop.eup %9347  ;;  %7155 = vst [vmem:[%s13732_s10 + $0x80] sm:$0xff] %v7108_v35  ;;  %v7068_v50 = vmax.f32 %v7010_v28, 1e-05 }
 0x5c5   : > { %v9350_v3 = vpop.eup %9349  ;;  %v7114_v52 = vmul.f32 0.6931472, %v9348_v33  ;;  %v7067_v24 = vmax.f32 %v7005_v14, 1e-05  ;;  %v7804_v57 = vpop.f32.mrb[218].mxu1 }
 0x5c6   : > { %v7112_v49 = vmul.f32 0.6931472, %v9350_v3  ;;  %9359 = vlog2.f32 %v7068_v50  ;;  %v7020_v11 = vadd.f32 %v7804_v57, %v13710_v42  ;;  %v7014_v48 = vpop.f32.mrb[219].mxu1 }
 0x5c7   : > { %7158 = vst [vmem:[%s13732_s10 + $0x98] sm:$0xff] %v7114_v52  ;;  %9361 = vlog2.f32 %v7067_v24  ;;  %v7015_v4 = vadd.f32 %v7014_v48, %v13708_v17 }
 0x5c8   : > { %v9352_v59 = vpop.eup %9351  ;;  %7157 = vst [vmem:[%s13732_s10 + $0x90] sm:$0xff] %v7112_v49  ;;  %v7070_v9 = vmax.f32 %v7020_v11, 1e-05 }
 0x5c9   : > { %v9354_v19 = vpop.eup %9353  ;;  %v7118_v39 = vmul.f32 0.6931472, %v9352_v59  ;;  %v7069_v54 = vmax.f32 %v7015_v4, 1e-05  ;;  %v7807_v2 = vpop.f32.mrb[220].mxu1 }
 0x5ca   : > { %v7116_v34 = vmul.f32 0.6931472, %v9354_v19  ;;  %9363 = vlog2.f32 %v7070_v9  ;;  %v7030_v45 = vadd.f32 %v7807_v2, %v13714_v56  ;;  %v7024_v42 = vpop.f32.mrb[221].mxu1 }
 0x5cb   : > { %7160 = vst [vmem:[%s13732_s10 + $0xa8] sm:$0xff] %v7118_v39  ;;  %9365 = vlog2.f32 %v7069_v54  ;;  %v7025_v21 = vadd.f32 %v7024_v42, %v13712_v55 }
 0x5cc   : > { %v9356_v17 = vpop.eup %9355  ;;  %7159 = vst [vmem:[%s13732_s10 + $0xa0] sm:$0xff] %v7116_v34  ;;  %v7072_v30 = vmax.f32 %v7030_v45, 1e-05 }
 0x5cd   : > { %v9358_v23 = vpop.eup %9357  ;;  %v7122_v63 = vmul.f32 0.6931472, %v9356_v17  ;;  %v7071_v8 = vmax.f32 %v7025_v21, 1e-05  ;;  %v7810_v38 = vpop.f32.mrb[222].mxu1 }
 0x5ce   : > { %v7120_v0 = vmul.f32 0.6931472, %v9358_v23  ;;  %9367 = vlog2.f32 %v7072_v30  ;;  %v7040_v7 = vadd.f32 %v7810_v38, %v13718_v29  ;;  %v7034_v56 = vpop.f32.mrb[223].mxu1 }
 0x5cf   : > { %7162 = vst [vmem:[%s13732_s10 + $0xb8] sm:$0xff] %v7122_v63  ;;  %9369 = vlog2.f32 %v7071_v8  ;;  %v7035_v32 = vadd.f32 %v7034_v56, %v13716_v31 }
 0x5d0   : > { %v9360_v55 = vpop.eup %9359  ;;  %7161 = vst [vmem:[%s13732_s10 + $0xb0] sm:$0xff] %v7120_v0  ;;  %v7074_v37 = vmax.f32 %v7040_v7, 1e-05 }
 0x5d1   : > { %v9362_v40 = vpop.eup %9361  ;;  %v7126_v20 = vmul.f32 0.6931472, %v9360_v55  ;;  %v7073_v5 = vmax.f32 %v7035_v32, 1e-05 }
 0x5d2   : > { %v7124_v26 = vmul.f32 0.6931472, %v9362_v40  ;;  %9371 = vlog2.f32 %v7074_v37 }
 0x5d3   : > { %7164 = vst [vmem:[%s13732_s10 + $0xc8] sm:$0xff] %v7126_v20  ;;  %9373 = vlog2.f32 %v7073_v5 }
 0x5d4   : > { %v9364_v29 = vpop.eup %9363  ;;  %7163 = vst [vmem:[%s13732_s10 + $0xc0] sm:$0xff] %v7124_v26 }
 0x5d5   : > { %v9366_v10 = vpop.eup %9365  ;;  %v7130_v31 = vmul.f32 0.6931472, %v9364_v29 }
 0x5d6   : > { %v7128_v6 = vmul.f32 0.6931472, %v9366_v10 }
 0x5d7   : > { %7166 = vst [vmem:[%s13732_s10 + $0xd8] sm:$0xff] %v7130_v31 }
 0x5d8   : > { %v9368_v18 = vpop.eup %9367  ;;  %7165 = vst [vmem:[%s13732_s10 + $0xd0] sm:$0xff] %v7128_v6 }
 0x5d9   : > { %v9370_v60 = vpop.eup %9369  ;;  %v7134_v46 = vmul.f32 0.6931472, %v9368_v18 }
 0x5da   : > { %v7132_v61 = vmul.f32 0.6931472, %v9370_v60 }
 0x5db   : > { %7168 = vst [vmem:[%s13732_s10 + $0xe8] sm:$0xff] %v7134_v46 }
 0x5dc   : > { %v9372_v13 = vpop.eup %9371  ;;  %7167 = vst [vmem:[%s13732_s10 + $0xe0] sm:$0xff] %v7132_v61 }
 0x5dd   : > { %v9374_v53 = vpop.eup %9373  ;;  %v7138_v12 = vmul.f32 0.6931472, %v9372_v13 }
 0x5de   : > { %v7136_v15 = vmul.f32 0.6931472, %v9374_v53 }
 0x5df   : > { %7170 = vst [vmem:[%s13732_s10 + $0xf8] sm:$0xff] %v7138_v12 }
 0x5e0   : > { %7169 = vst [vmem:[%s13732_s10 + $0xf0] sm:$0xff] %v7136_v15 }
 0x5e1 PF: > { %s13_s14 = sadd.s32 1, %s9456_s14   ;;  %s14574_s12 = smov %s9452_s13 }
 0x5e2   : > { %p10_p5 = scmp.ge.s32.totalorder %s13_s14, 4   ;;  %s14575_s13 = smov %s14577_s15 }
 0x5e4   :  { %12 = sbr.rel (!%p10_p5) target bundleno = 2 (0x2), region = 63 }

</bundles_post_ra>
